<compile_context>
chip_gen: v5e
topology: v5e:2x2
jax: 0.10.0
libtpu: 0.0.40
codegen_flags: <defaults>
</compile_context>

<pallas_src>
import functools
import math

import jax
import jax.numpy as jnp
from jax.experimental import pallas as pl
from jax.experimental.pallas import tpu as pltpu

# Whole-array VMEM blocks: total working set is well under 1 MiB at these
# shapes, fits v5e/v6e (128 MiB) and v7x (64 MiB) trivially.
VMEM_SPEC = pl.BlockSpec(memory_space=pltpu.MemorySpace.VMEM)


# ----------------------------------------------------------------------------
# Single fused kernel: input linears + gated graph recurrent + conv readout
# ----------------------------------------------------------------------------
def _net_kernel(x_ref, Aa_ref, Ac_ref, Ad_ref,
                l1w_ref, l1b_ref, l2w_ref, l2b_ref,
                wa_ref, wc_ref, wd_ref, bg_ref,
                wir_ref, wiz_ref, win_ref, whr_ref, whz_ref, whn_ref,
                br_ref, bz_ref, bin_ref, bhn_ref,
                cy1w_ref, cy1b_ref, cy2w_ref, cy2b_ref, fyw_ref, fyb_ref,
                cz1wh_ref, cz1we_ref, cz1b_ref, cz2w_ref, cz2b_ref,
                fzw_ref, fzb_ref,
                o_ref, *, num_layers, B, L, H):
    N = B * L

    def mm(a, b):
        # TODO(synk): cast operands to bf16 (keep f32 accumulation/state) once
        # shapes are large enough for the MXU to matter; irrelevant at N=32.
        return jnp.dot(a, b, preferred_element_type=jnp.float32)

    # ---------------- stage 1: fused input linears (x is VMEM-resident) -----
    x = x_ref[...]                                                   # [N, 128]
    h = jnp.maximum(mm(x, l1w_ref[...]) + l1b_ref[...], 0.0)        # [N, H]
    x2 = jnp.maximum(mm(x, l2w_ref[...]) + l2b_ref[...], 0.0)       # [N, E]

    # ---------------- stage 2: GatedGraphRecurrentLayer (6 iterations) ------
    Aa, Ac, Ad = Aa_ref[...], Ac_ref[...], Ad_ref[...]
    Wa, Wc, Wd = wa_ref[...], wc_ref[...], wd_ref[...]
    Wir, Wiz, Win = wir_ref[...], wiz_ref[...], win_ref[...]
    Whr, Whz, Whn = whr_ref[...], whz_ref[...], whn_ref[...]
    # hoist bias broadcasts out of the unrolled loop (JAX does not CSE them)
    bg = jnp.broadcast_to(bg_ref[...], (N, H))
    b_r = jnp.broadcast_to(br_ref[...], (N, H))
    b_z = jnp.broadcast_to(bz_ref[...], (N, H))
    b_in = jnp.broadcast_to(bin_ref[...], (N, H))
    b_hn = jnp.broadcast_to(bhn_ref[...], (N, H))

    for _ in range(num_layers):  # small fixed trip count -> unroll
        # sum of 3 GCNConvs, no lane concat / lane slicing
        a = mm(mm(Aa, h), Wa) + mm(mm(Ac, h), Wc) + mm(mm(Ad, h), Wd) + bg
        # GRU cell with pre-split (r, z, n) gate weights
        r = jax.nn.sigmoid(mm(a, Wir) + mm(h, Whr) + b_r)
        z = jax.nn.sigmoid(mm(a, Wiz) + mm(h, Whz) + b_z)
        n = jnp.tanh(mm(a, Win) + b_in + r * (mm(h, Whn) + b_hn))
        h = (1.0 - z) * n + z * h

    # ---------------- stage 3: Conv readout (per-graph 2-D, B unrolled) -----
    l1 = L - 3 + 1
    # load all readout weights once (outside the batch loop)
    cy1w = [cy1w_ref[k] for k in range(3)]
    cz1wh = [cz1wh_ref[k] for k in range(3)]
    cz1we = [cz1we_ref[k] for k in range(3)]
    cy1b, cy2w, cy2b = cy1b_ref[...], cy2w_ref[...], cy2b_ref[...]
    fyw, fyb = fyw_ref[...], fyb_ref[...]
    cz1b, cz2w, cz2b = cz1b_ref[...], cz2w_ref[...], cz2b_ref[...]
    fzw, fzb = fzw_ref[...], fzb_ref[...]

    def maxpool_rows(y, k, s):
        """y:[len,C] -> [(len-k)//s+1, C]; stride-1 window max + row select."""
        ln = y.shape[0]
        lw = ln - k + 1
        m = y[0:lw, :]
        for d in range(1, k):
            m = jnp.maximum(m, y[d:d + lw, :])
        lp = (ln - k) // s + 1
        return jnp.concatenate([m[j * s:j * s + 1, :] for j in range(lp)],
                               axis=0)

    def conv_path(blocks, c1b, c2w, c2b, fw, fb):
        """conv1(k=3, sum of shifted matmuls) -> relu -> maxpool(3,2)
           -> conv2(k=1) -> relu -> maxpool(2,2) -> fc (lane reduction)."""
        acc = None
        for xb, wk in blocks:            # wk: list of 3 [Cin, Cout] matrices
            for k in range(3):
                t = mm(xb[k:k + l1, :], wk[k])
                acc = t if acc is None else acc + t
        y = jnp.maximum(acc + c1b, 0.0)                    # [l1, C]
        y = maxpool_rows(y, 3, 2)                          # [6, C]
        y = jnp.maximum(mm(y, c2w) + c2b, 0.0)             # [6, C]
        y = maxpool_rows(y, 2, 2)                          # [3, C]
        return jnp.sum(y * fw, axis=-1, keepdims=True) + fb   # [3, 1]

    outs = []
    for b in range(B):
        hb = h[b * L:(b + 1) * L, :]                       # [L, H]
        xb = x2[b * L:(b + 1) * L, :]                      # [L, E]
        yv = conv_path([(hb, cy1w)], cy1b, cy2w, cy2b, fyw, fyb)
        # z-path never materializes concat([h, x2]): split H-block / E-block
        zv = conv_path([(hb, cz1wh), (xb, cz1we)], cz1b, cz2w, cz2b, fzw, fzb)
        outs.append(jnp.mean(yv * zv, axis=0, keepdims=True))   # [1, 1]

    o_ref[...] = jax.nn.sigmoid(
        jnp.concatenate(outs, axis=0)).astype(o_ref.dtype)       # [B, 1]
    # TODO(synk): for large N, tile the A@h matmuls with a row-block grid
    # (reduction axis "arbitrary"), store adjacencies in bf16 and set
    # pltpu.CompilerParams(vmem_limit_bytes=...) — needed first on v7x (64 MiB).


# ----------------------------------------------------------------------------
# Parameters: init (matches PyTorch module init) + one-time packing/prep
# ----------------------------------------------------------------------------
def init_params(key, H, E, feat=101):
    keys = iter(jax.random.split(key, 32))

    def xavier(shape, fan_in, fan_out):
        bound = math.sqrt(6.0 / (fan_in + fan_out))
        return jax.random.uniform(next(keys), shape, jnp.float32, -bound, bound)

    def unif(shape, bound):
        return jax.random.uniform(next(keys), shape, jnp.float32, -bound, bound)

    HE = H + E
    p = {}
    # Net.linear1 / linear2 (weights stored transposed: [in, out])
    p["lin1_w"] = xavier((feat, H), feat, H); p["lin1_b"] = unif((H,), 1 / math.sqrt(feat))
    p["lin2_w"] = xavier((feat, E), feat, E); p["lin2_b"] = unif((E,), 1 / math.sqrt(feat))
    # GatedGraphRecurrentLayer: 3x GCNConv(H,H) + GRU(H,H)
    for name in ("ast", "cfg", "dfg"):
        p[f"gcn_{name}_w"] = xavier((H, H), H, H)
        p[f"gcn_{name}_b"] = jnp.zeros((H,), jnp.float32)
    k = 1.0 / math.sqrt(H)
    p["gru_wih"] = unif((H, 3 * H), k); p["gru_whh"] = unif((H, 3 * H), k)
    p["gru_bih"] = unif((3 * H,), k);   p["gru_bhh"] = unif((3 * H,), k)
    # Conv readout, y-path (channels = H).  Conv weights stored [ksize, Cin, Cout].
    p["cy1_w"] = xavier((3, H, H), 3 * H, 3 * H); p["cy1_b"] = unif((H,), 1 / math.sqrt(3 * H))
    p["cy2_w"] = xavier((1, H, H), H, H);         p["cy2_b"] = unif((H,), 1 / math.sqrt(H))
    p["fcy_w"] = xavier((H, 1), H, 1);            p["fcy_b"] = unif((1,), 1 / math.sqrt(H))
    # z-path (channels = H + E)
    p["cz1_w"] = xavier((3, HE, HE), 3 * HE, 3 * HE); p["cz1_b"] = unif((HE,), 1 / math.sqrt(3 * HE))
    p["cz2_w"] = xavier((1, HE, HE), HE, HE);         p["cz2_b"] = unif((HE,), 1 / math.sqrt(HE))
    p["fcz_w"] = xavier((HE, 1), HE, 1);              p["fcz_b"] = unif((1,), 1 / math.sqrt(HE))
    return p


def prepare_params(p, *, feat_pad=128):
    """One-time packing: pad/split/reshape weights so the kernel does zero
    layout work per call (done outside the jitted forward)."""
    H = p["lin1_w"].shape[1]
    E = p["lin2_w"].shape[1]
    HE = H + E
    feat = p["lin1_w"].shape[0]
    f32 = lambda a: a.astype(jnp.float32)
    pad = ((0, feat_pad - feat), (0, 0))

    pp = {}
    pp["l1w"] = jnp.pad(f32(p["lin1_w"]), pad)                   # [128, H]
    pp["l1b"] = f32(p["lin1_b"]).reshape(1, H)
    pp["l2w"] = jnp.pad(f32(p["lin2_w"]), pad)                   # [128, E]
    pp["l2b"] = f32(p["lin2_b"]).reshape(1, E)

    pp["wa"], pp["wc"], pp["wd"] = (f32(p["gcn_ast_w"]), f32(p["gcn_cfg_w"]),
                                    f32(p["gcn_dfg_w"]))
    pp["bg"] = (p["gcn_ast_b"] + p["gcn_cfg_b"] + p["gcn_dfg_b"]).reshape(1, H)

    wih, whh = f32(p["gru_wih"]), f32(p["gru_whh"])
    bih, bhh = f32(p["gru_bih"]), f32(p["gru_bhh"])
    pp["wir"], pp["wiz"], pp["win"] = wih[:, :H], wih[:, H:2 * H], wih[:, 2 * H:]
    pp["whr"], pp["whz"], pp["whn"] = whh[:, :H], whh[:, H:2 * H], whh[:, 2 * H:]
    pp["b_r"] = (bih[:H] + bhh[:H]).reshape(1, H)
    pp["b_z"] = (bih[H:2 * H] + bhh[H:2 * H]).reshape(1, H)
    pp["b_in"] = bih[2 * H:].reshape(1, H)
    pp["b_hn"] = bhh[2 * H:].reshape(1, H)

    pp["cy1w"] = f32(p["cy1_w"])                                 # [3, H, H]
    pp["cy1b"] = f32(p["cy1_b"]).reshape(1, H)
    pp["cy2w"] = f32(p["cy2_w"]).reshape(H, H)
    pp["cy2b"] = f32(p["cy2_b"]).reshape(1, H)
    pp["fyw"] = f32(p["fcy_w"]).reshape(1, H)
    pp["fyb"] = f32(p["fcy_b"]).reshape(1, 1)

    cz1 = f32(p["cz1_w"])                                        # [3, HE, HE]
    pp["cz1wh"] = cz1[:, :H, :]                                  # [3, H, HE]
    pp["cz1we"] = cz1[:, H:, :]                                  # [3, E, HE]
    pp["cz1b"] = f32(p["cz1_b"]).reshape(1, HE)
    pp["cz2w"] = f32(p["cz2_w"]).reshape(HE, HE)
    pp["cz2b"] = f32(p["cz2_b"]).reshape(1, HE)
    pp["fzw"] = f32(p["fcz_w"]).reshape(1, HE)
    pp["fzb"] = f32(p["fcz_b"]).reshape(1, 1)
    return pp


# ----------------------------------------------------------------------------
# JAX glue: adjacency normalization + forward pass (single pallas_call)
# ----------------------------------------------------------------------------
def normalized_adj(edge_index, n):
    """GCNConv propagation matrix: D^-1/2 (A + self_loops) D^-1/2, A[dst,src]+=1.

    Duplicate edges accumulate (PyG message summation) and self-loops are only
    added for nodes that do not already have one (add_remaining_self_loops)."""
    src, dst = edge_index
    A = jnp.zeros((n, n), jnp.float32).at[dst, src].add(1.0)
    diag = jnp.diagonal(A)
    A = A + jnp.diag(jnp.where(diag > 0, 0.0, 1.0))
    deg = A.sum(axis=1)
    dinv = jnp.where(deg > 0, 1.0 / jnp.sqrt(deg), 0.0)
    return A * dinv[:, None] * dinv[None, :]


def net_forward(x, A_ast, A_cfg, A_dfg, pp, *, B, max_nodes, num_layers=6):
    H = pp["l1w"].shape[1]
    feat_pad = pp["l1w"].shape[0]
    x_pad = jnp.pad(x.astype(jnp.float32),
                    ((0, 0), (0, feat_pad - x.shape[1])))        # [N, 128]

    args = (x_pad,
            A_ast.astype(jnp.float32), A_cfg.astype(jnp.float32),
            A_dfg.astype(jnp.float32),
            pp["l1w"], pp["l1b"], pp["l2w"], pp["l2b"],
            pp["wa"], pp["wc"], pp["wd"], pp["bg"],
            pp["wir"], pp["wiz"], pp["win"], pp["whr"], pp["whz"], pp["whn"],
            pp["b_r"], pp["b_z"], pp["b_in"], pp["b_hn"],
            pp["cy1w"], pp["cy1b"], pp["cy2w"], pp["cy2b"], pp["fyw"], pp["fyb"],
            pp["cz1wh"], pp["cz1we"], pp["cz1b"], pp["cz2w"], pp["cz2b"],
            pp["fzw"], pp["fzb"])

    out = pl.pallas_call(
        functools.partial(_net_kernel, num_layers=num_layers,
                          B=B, L=max_nodes, H=H),
        out_shape=jax.ShapeDtypeStruct((B, 1), jnp.float32),
        in_specs=[VMEM_SPEC] * len(args),
        out_specs=VMEM_SPEC,
    )(*args)
    return out[:, 0]                                             # [B]


# ----------------------------------------------------------------------------
if __name__ == "__main__":
    H, E, MAX_NODES, B = 32, 16, 16, 2        # hidden, emb, max_nodes, graphs
    N = B * MAX_NODES                         # total nodes
    FEAT = 101                                # Net hard-codes 101 input features

    key = jax.random.PRNGKey(0)
    kx, ke1, ke2, ke3, kp = jax.random.split(key, 5)

    x = jax.random.normal(kx, (N, FEAT), jnp.float32)

    def rand_edges(k, n_edges=64):
        ks, kd = jax.random.split(k)
        src = jax.random.randint(ks, (n_edges,), 0, MAX_NODES)
        dst = jax.random.randint(kd, (n_edges,), 0, MAX_NODES)
        offs = jnp.repeat(jnp.arange(B) * MAX_NODES, n_edges // B)  # keep edges within graphs
        return jnp.stack([src + offs, dst + offs])

    ei_ast, ei_cfg, ei_dfg = rand_edges(ke1), rand_edges(ke2), rand_edges(ke3)

    params = init_params(kp, H, E, FEAT)
    packed = prepare_params(params)           # one-time weight packing

    A_ast = normalized_adj(ei_ast, N)
    A_cfg = normalized_adj(ei_cfg, N)
    A_dfg = normalized_adj(ei_dfg, N)

    fwd = jax.jit(functools.partial(net_forward, B=B, max_nodes=MAX_NODES))
    out = jax.block_until_ready(fwd(x, A_ast, A_cfg, A_dfg, packed))

    assert out.shape == (B,) and out.dtype == jnp.float32
    assert bool(jnp.all((out > 0.0) & (out < 1.0)))
    print("KERNEL_OK")
</pallas_src>

<mosaic_0001>
module attributes {stable_mosaic.version = 11 : i64} {
  func.func @_net_kernel(%arg0: memref<32x128xf32, #tpu.memory_space<vmem>>, %arg1: memref<32x32xf32, #tpu.memory_space<vmem>>, %arg2: memref<32x32xf32, #tpu.memory_space<vmem>>, %arg3: memref<32x32xf32, #tpu.memory_space<vmem>>, %arg4: memref<128x32xf32, #tpu.memory_space<vmem>>, %arg5: memref<1x32xf32, #tpu.memory_space<vmem>>, %arg6: memref<128x16xf32, #tpu.memory_space<vmem>>, %arg7: memref<1x16xf32, #tpu.memory_space<vmem>>, %arg8: memref<32x32xf32, #tpu.memory_space<vmem>>, %arg9: memref<32x32xf32, #tpu.memory_space<vmem>>, %arg10: memref<32x32xf32, #tpu.memory_space<vmem>>, %arg11: memref<1x32xf32, #tpu.memory_space<vmem>>, %arg12: memref<32x32xf32, #tpu.memory_space<vmem>>, %arg13: memref<32x32xf32, #tpu.memory_space<vmem>>, %arg14: memref<32x32xf32, #tpu.memory_space<vmem>>, %arg15: memref<32x32xf32, #tpu.memory_space<vmem>>, %arg16: memref<32x32xf32, #tpu.memory_space<vmem>>, %arg17: memref<32x32xf32, #tpu.memory_space<vmem>>, %arg18: memref<1x32xf32, #tpu.memory_space<vmem>>, %arg19: memref<1x32xf32, #tpu.memory_space<vmem>>, %arg20: memref<1x32xf32, #tpu.memory_space<vmem>>, %arg21: memref<1x32xf32, #tpu.memory_space<vmem>>, %arg22: memref<3x32x32xf32, #tpu.memory_space<vmem>>, %arg23: memref<1x32xf32, #tpu.memory_space<vmem>>, %arg24: memref<32x32xf32, #tpu.memory_space<vmem>>, %arg25: memref<1x32xf32, #tpu.memory_space<vmem>>, %arg26: memref<1x32xf32, #tpu.memory_space<vmem>>, %arg27: memref<1x1xf32, #tpu.memory_space<vmem>>, %arg28: memref<3x32x48xf32, #tpu.memory_space<vmem>>, %arg29: memref<3x16x48xf32, #tpu.memory_space<vmem>>, %arg30: memref<1x48xf32, #tpu.memory_space<vmem>>, %arg31: memref<48x48xf32, #tpu.memory_space<vmem>>, %arg32: memref<1x48xf32, #tpu.memory_space<vmem>>, %arg33: memref<1x48xf32, #tpu.memory_space<vmem>>, %arg34: memref<1x1xf32, #tpu.memory_space<vmem>>, %arg35: memref<2x1xf32, #tpu.memory_space<vmem>>) attributes {dimension_semantics = [], scalar_prefetch = 0 : i64, scratch_operands = 0 : i64, tpu.core_type = #tpu.core_type<tc>} {
    %c0 = arith.constant 0 : index
    %c0_0 = arith.constant 0 : index
    %0 = vector.load %arg0[%c0, %c0_0] : memref<32x128xf32, #tpu.memory_space<vmem>>, vector<32x128xf32>
    %c0_1 = arith.constant 0 : index
    %c0_2 = arith.constant 0 : index
    %1 = vector.load %arg4[%c0_1, %c0_2] : memref<128x32xf32, #tpu.memory_space<vmem>>, vector<128x32xf32>
    %cst = arith.constant dense<0.000000e+00> : vector<32x32xf32>
    %2 = tpu.matmul %0, %1, %cst {dimension_numbers = #tpu.dot_dimension_numbers<[1], [0], [0], [1], [0, 0, 1, 1], [], []>} : vector<32x128xf32>, vector<128x32xf32>, vector<32x32xf32> -> vector<32x32xf32>
    %c0_3 = arith.constant 0 : index
    %c0_4 = arith.constant 0 : index
    %3 = vector.load %arg5[%c0_3, %c0_4] : memref<1x32xf32, #tpu.memory_space<vmem>>, vector<1x32xf32>
    %4 = vector.broadcast %3 : vector<1x32xf32> to vector<32x32xf32>
    %5 = arith.addf %2, %4 : vector<32x32xf32>
    %cst_5 = arith.constant 0.000000e+00 : f32
    %6 = vector.broadcast %cst_5 : f32 to vector<32x32xf32>
    %7 = arith.maximumf %5, %6 : vector<32x32xf32>
    %c0_6 = arith.constant 0 : index
    %c0_7 = arith.constant 0 : index
    %8 = vector.load %arg6[%c0_6, %c0_7] : memref<128x16xf32, #tpu.memory_space<vmem>>, vector<128x16xf32>
    %cst_8 = arith.constant dense<0.000000e+00> : vector<32x16xf32>
    %9 = tpu.matmul %0, %8, %cst_8 {dimension_numbers = #tpu.dot_dimension_numbers<[1], [0], [0], [1], [0, 0, 1, 1], [], []>} : vector<32x128xf32>, vector<128x16xf32>, vector<32x16xf32> -> vector<32x16xf32>
    %c0_9 = arith.constant 0 : index
    %c0_10 = arith.constant 0 : index
    %10 = vector.load %arg7[%c0_9, %c0_10] : memref<1x16xf32, #tpu.memory_space<vmem>>, vector<1x16xf32>
    %11 = vector.broadcast %10 : vector<1x16xf32> to vector<32x16xf32>
    %12 = arith.addf %9, %11 : vector<32x16xf32>
    %cst_11 = arith.constant 0.000000e+00 : f32
    %13 = vector.broadcast %cst_11 : f32 to vector<32x16xf32>
    %14 = arith.maximumf %12, %13 : vector<32x16xf32>
    %c0_12 = arith.constant 0 : index
    %c0_13 = arith.constant 0 : index
    %15 = vector.load %arg1[%c0_12, %c0_13] : memref<32x32xf32, #tpu.memory_space<vmem>>, vector<32x32xf32>
    %c0_14 = arith.constant 0 : index
    %c0_15 = arith.constant 0 : index
    %16 = vector.load %arg2[%c0_14, %c0_15] : memref<32x32xf32, #tpu.memory_space<vmem>>, vector<32x32xf32>
    %c0_16 = arith.constant 0 : index
    %c0_17 = arith.constant 0 : index
    %17 = vector.load %arg3[%c0_16, %c0_17] : memref<32x32xf32, #tpu.memory_space<vmem>>, vector<32x32xf32>
    %c0_18 = arith.constant 0 : index
    %c0_19 = arith.constant 0 : index
    %18 = vector.load %arg8[%c0_18, %c0_19] : memref<32x32xf32, #tpu.memory_space<vmem>>, vector<32x32xf32>
    %c0_20 = arith.constant 0 : index
    %c0_21 = arith.constant 0 : index
    %19 = vector.load %arg9[%c0_20, %c0_21] : memref<32x32xf32, #tpu.memory_space<vmem>>, vector<32x32xf32>
    %c0_22 = arith.constant 0 : index
    %c0_23 = arith.constant 0 : index
    %20 = vector.load %arg10[%c0_22, %c0_23] : memref<32x32xf32, #tpu.memory_space<vmem>>, vector<32x32xf32>
    %c0_24 = arith.constant 0 : index
    %c0_25 = arith.constant 0 : index
    %21 = vector.load %arg12[%c0_24, %c0_25] : memref<32x32xf32, #tpu.memory_space<vmem>>, vector<32x32xf32>
    %c0_26 = arith.constant 0 : index
    %c0_27 = arith.constant 0 : index
    %22 = vector.load %arg13[%c0_26, %c0_27] : memref<32x32xf32, #tpu.memory_space<vmem>>, vector<32x32xf32>
    %c0_28 = arith.constant 0 : index
    %c0_29 = arith.constant 0 : index
    %23 = vector.load %arg14[%c0_28, %c0_29] : memref<32x32xf32, #tpu.memory_space<vmem>>, vector<32x32xf32>
    %c0_30 = arith.constant 0 : index
    %c0_31 = arith.constant 0 : index
    %24 = vector.load %arg15[%c0_30, %c0_31] : memref<32x32xf32, #tpu.memory_space<vmem>>, vector<32x32xf32>
    %c0_32 = arith.constant 0 : index
    %c0_33 = arith.constant 0 : index
    %25 = vector.load %arg16[%c0_32, %c0_33] : memref<32x32xf32, #tpu.memory_space<vmem>>, vector<32x32xf32>
    %c0_34 = arith.constant 0 : index
    %c0_35 = arith.constant 0 : index
    %26 = vector.load %arg17[%c0_34, %c0_35] : memref<32x32xf32, #tpu.memory_space<vmem>>, vector<32x32xf32>
    %c0_36 = arith.constant 0 : index
    %c0_37 = arith.constant 0 : index
    %27 = vector.load %arg11[%c0_36, %c0_37] : memref<1x32xf32, #tpu.memory_space<vmem>>, vector<1x32xf32>
    %28 = vector.shape_cast %27 : vector<1x32xf32> to vector<1x32xf32>
    %29 = vector.broadcast %28 : vector<1x32xf32> to vector<32x32xf32>
    %c0_38 = arith.constant 0 : index
    %c0_39 = arith.constant 0 : index
    %30 = vector.load %arg18[%c0_38, %c0_39] : memref<1x32xf32, #tpu.memory_space<vmem>>, vector<1x32xf32>
    %31 = vector.shape_cast %30 : vector<1x32xf32> to vector<1x32xf32>
    %32 = vector.broadcast %31 : vector<1x32xf32> to vector<32x32xf32>
    %c0_40 = arith.constant 0 : index
    %c0_41 = arith.constant 0 : index
    %33 = vector.load %arg19[%c0_40, %c0_41] : memref<1x32xf32, #tpu.memory_space<vmem>>, vector<1x32xf32>
    %34 = vector.shape_cast %33 : vector<1x32xf32> to vector<1x32xf32>
    %35 = vector.broadcast %34 : vector<1x32xf32> to vector<32x32xf32>
    %c0_42 = arith.constant 0 : index
    %c0_43 = arith.constant 0 : index
    %36 = vector.load %arg20[%c0_42, %c0_43] : memref<1x32xf32, #tpu.memory_space<vmem>>, vector<1x32xf32>
    %37 = vector.shape_cast %36 : vector<1x32xf32> to vector<1x32xf32>
    %38 = vector.broadcast %37 : vector<1x32xf32> to vector<32x32xf32>
    %c0_44 = arith.constant 0 : index
    %c0_45 = arith.constant 0 : index
    %39 = vector.load %arg21[%c0_44, %c0_45] : memref<1x32xf32, #tpu.memory_space<vmem>>, vector<1x32xf32>
    %40 = vector.shape_cast %39 : vector<1x32xf32> to vector<1x32xf32>
    %41 = vector.broadcast %40 : vector<1x32xf32> to vector<32x32xf32>
    %cst_46 = arith.constant dense<0.000000e+00> : vector<32x32xf32>
    %42 = tpu.matmul %15, %7, %cst_46 {dimension_numbers = #tpu.dot_dimension_numbers<[1], [0], [0], [1], [0, 0, 1, 1], [], []>} : vector<32x32xf32>, vector<32x32xf32>, vector<32x32xf32> -> vector<32x32xf32>
    %cst_47 = arith.constant dense<0.000000e+00> : vector<32x32xf32>
    %43 = tpu.matmul %42, %18, %cst_47 {dimension_numbers = #tpu.dot_dimension_numbers<[1], [0], [0], [1], [0, 0, 1, 1], [], []>} : vector<32x32xf32>, vector<32x32xf32>, vector<32x32xf32> -> vector<32x32xf32>
    %cst_48 = arith.constant dense<0.000000e+00> : vector<32x32xf32>
    %44 = tpu.matmul %16, %7, %cst_48 {dimension_numbers = #tpu.dot_dimension_numbers<[1], [0], [0], [1], [0, 0, 1, 1], [], []>} : vector<32x32xf32>, vector<32x32xf32>, vector<32x32xf32> -> vector<32x32xf32>
    %cst_49 = arith.constant dense<0.000000e+00> : vector<32x32xf32>
    %45 = tpu.matmul %44, %19, %cst_49 {dimension_numbers = #tpu.dot_dimension_numbers<[1], [0], [0], [1], [0, 0, 1, 1], [], []>} : vector<32x32xf32>, vector<32x32xf32>, vector<32x32xf32> -> vector<32x32xf32>
    %46 = arith.addf %43, %45 : vector<32x32xf32>
    %cst_50 = arith.constant dense<0.000000e+00> : vector<32x32xf32>
    %47 = tpu.matmul %17, %7, %cst_50 {dimension_numbers = #tpu.dot_dimension_numbers<[1], [0], [0], [1], [0, 0, 1, 1], [], []>} : vector<32x32xf32>, vector<32x32xf32>, vector<32x32xf32> -> vector<32x32xf32>
    %cst_51 = arith.constant dense<0.000000e+00> : vector<32x32xf32>
    %48 = tpu.matmul %47, %20, %cst_51 {dimension_numbers = #tpu.dot_dimension_numbers<[1], [0], [0], [1], [0, 0, 1, 1], [], []>} : vector<32x32xf32>, vector<32x32xf32>, vector<32x32xf32> -> vector<32x32xf32>
    %49 = arith.addf %46, %48 : vector<32x32xf32>
    %50 = arith.addf %49, %29 : vector<32x32xf32>
    %cst_52 = arith.constant dense<0.000000e+00> : vector<32x32xf32>
    %51 = tpu.matmul %50, %21, %cst_52 {dimension_numbers = #tpu.dot_dimension_numbers<[1], [0], [0], [1], [0, 0, 1, 1], [], []>} : vector<32x32xf32>, vector<32x32xf32>, vector<32x32xf32> -> vector<32x32xf32>
    %cst_53 = arith.constant dense<0.000000e+00> : vector<32x32xf32>
    %52 = tpu.matmul %7, %24, %cst_53 {dimension_numbers = #tpu.dot_dimension_numbers<[1], [0], [0], [1], [0, 0, 1, 1], [], []>} : vector<32x32xf32>, vector<32x32xf32>, vector<32x32xf32> -> vector<32x32xf32>
    %53 = arith.addf %51, %52 : vector<32x32xf32>
    %54 = arith.addf %53, %32 : vector<32x32xf32>
    %55 = arith.negf %54 : vector<32x32xf32>
    %56 = math.exp %55 : vector<32x32xf32>
    %cst_54 = arith.constant 1.000000e+00 : f32
    %57 = vector.broadcast %cst_54 : f32 to vector<32x32xf32>
    %58 = arith.addf %57, %56 : vector<32x32xf32>
    %59 = arith.divf %57, %58 : vector<32x32xf32>
    %cst_55 = arith.constant dense<0.000000e+00> : vector<32x32xf32>
    %60 = tpu.matmul %50, %22, %cst_55 {dimension_numbers = #tpu.dot_dimension_numbers<[1], [0], [0], [1], [0, 0, 1, 1], [], []>} : vector<32x32xf32>, vector<32x32xf32>, vector<32x32xf32> -> vector<32x32xf32>
    %cst_56 = arith.constant dense<0.000000e+00> : vector<32x32xf32>
    %61 = tpu.matmul %7, %25, %cst_56 {dimension_numbers = #tpu.dot_dimension_numbers<[1], [0], [0], [1], [0, 0, 1, 1], [], []>} : vector<32x32xf32>, vector<32x32xf32>, vector<32x32xf32> -> vector<32x32xf32>
    %62 = arith.addf %60, %61 : vector<32x32xf32>
    %63 = arith.addf %62, %35 : vector<32x32xf32>
    %64 = arith.negf %63 : vector<32x32xf32>
    %65 = math.exp %64 : vector<32x32xf32>
    %cst_57 = arith.constant 1.000000e+00 : f32
    %66 = vector.broadcast %cst_57 : f32 to vector<32x32xf32>
    %67 = arith.addf %66, %65 : vector<32x32xf32>
    %68 = arith.divf %66, %67 : vector<32x32xf32>
    %cst_58 = arith.constant dense<0.000000e+00> : vector<32x32xf32>
    %69 = tpu.matmul %50, %23, %cst_58 {dimension_numbers = #tpu.dot_dimension_numbers<[1], [0], [0], [1], [0, 0, 1, 1], [], []>} : vector<32x32xf32>, vector<32x32xf32>, vector<32x32xf32> -> vector<32x32xf32>
    %70 = arith.addf %69, %38 : vector<32x32xf32>
    %cst_59 = arith.constant dense<0.000000e+00> : vector<32x32xf32>
    %71 = tpu.matmul %7, %26, %cst_59 {dimension_numbers = #tpu.dot_dimension_numbers<[1], [0], [0], [1], [0, 0, 1, 1], [], []>} : vector<32x32xf32>, vector<32x32xf32>, vector<32x32xf32> -> vector<32x32xf32>
    %72 = arith.addf %71, %41 : vector<32x32xf32>
    %73 = arith.mulf %59, %72 : vector<32x32xf32>
    %74 = arith.addf %70, %73 : vector<32x32xf32>
    %75 = math.tanh %74 : vector<32x32xf32>
    %cst_60 = arith.constant 1.000000e+00 : f32
    %76 = vector.broadcast %cst_60 : f32 to vector<32x32xf32>
    %77 = arith.subf %76, %68 : vector<32x32xf32>
    %78 = arith.mulf %77, %75 : vector<32x32xf32>
    %79 = arith.mulf %68, %7 : vector<32x32xf32>
    %80 = arith.addf %78, %79 : vector<32x32xf32>
    %cst_61 = arith.constant dense<0.000000e+00> : vector<32x32xf32>
    %81 = tpu.matmul %15, %80, %cst_61 {dimension_numbers = #tpu.dot_dimension_numbers<[1], [0], [0], [1], [0, 0, 1, 1], [], []>} : vector<32x32xf32>, vector<32x32xf32>, vector<32x32xf32> -> vector<32x32xf32>
    %cst_62 = arith.constant dense<0.000000e+00> : vector<32x32xf32>
    %82 = tpu.matmul %81, %18, %cst_62 {dimension_numbers = #tpu.dot_dimension_numbers<[1], [0], [0], [1], [0, 0, 1, 1], [], []>} : vector<32x32xf32>, vector<32x32xf32>, vector<32x32xf32> -> vector<32x32xf32>
    %cst_63 = arith.constant dense<0.000000e+00> : vector<32x32xf32>
    %83 = tpu.matmul %16, %80, %cst_63 {dimension_numbers = #tpu.dot_dimension_numbers<[1], [0], [0], [1], [0, 0, 1, 1], [], []>} : vector<32x32xf32>, vector<32x32xf32>, vector<32x32xf32> -> vector<32x32xf32>
    %cst_64 = arith.constant dense<0.000000e+00> : vector<32x32xf32>
    %84 = tpu.matmul %83, %19, %cst_64 {dimension_numbers = #tpu.dot_dimension_numbers<[1], [0], [0], [1], [0, 0, 1, 1], [], []>} : vector<32x32xf32>, vector<32x32xf32>, vector<32x32xf32> -> vector<32x32xf32>
    %85 = arith.addf %82, %84 : vector<32x32xf32>
    %cst_65 = arith.constant dense<0.000000e+00> : vector<32x32xf32>
    %86 = tpu.matmul %17, %80, %cst_65 {dimension_numbers = #tpu.dot_dimension_numbers<[1], [0], [0], [1], [0, 0, 1, 1], [], []>} : vector<32x32xf32>, vector<32x32xf32>, vector<32x32xf32> -> vector<32x32xf32>
    %cst_66 = arith.constant dense<0.000000e+00> : vector<32x32xf32>
    %87 = tpu.matmul %86, %20, %cst_66 {dimension_numbers = #tpu.dot_dimension_numbers<[1], [0], [0], [1], [0, 0, 1, 1], [], []>} : vector<32x32xf32>, vector<32x32xf32>, vector<32x32xf32> -> vector<32x32xf32>
    %88 = arith.addf %85, %87 : vector<32x32xf32>
    %89 = arith.addf %88, %29 : vector<32x32xf32>
    %cst_67 = arith.constant dense<0.000000e+00> : vector<32x32xf32>
    %90 = tpu.matmul %89, %21, %cst_67 {dimension_numbers = #tpu.dot_dimension_numbers<[1], [0], [0], [1], [0, 0, 1, 1], [], []>} : vector<32x32xf32>, vector<32x32xf32>, vector<32x32xf32> -> vector<32x32xf32>
    %cst_68 = arith.constant dense<0.000000e+00> : vector<32x32xf32>
    %91 = tpu.matmul %80, %24, %cst_68 {dimension_numbers = #tpu.dot_dimension_numbers<[1], [0], [0], [1], [0, 0, 1, 1], [], []>} : vector<32x32xf32>, vector<32x32xf32>, vector<32x32xf32> -> vector<32x32xf32>
    %92 = arith.addf %90, %91 : vector<32x32xf32>
    %93 = arith.addf %92, %32 : vector<32x32xf32>
    %94 = arith.negf %93 : vector<32x32xf32>
    %95 = math.exp %94 : vector<32x32xf32>
    %cst_69 = arith.constant 1.000000e+00 : f32
    %96 = vector.broadcast %cst_69 : f32 to vector<32x32xf32>
    %97 = arith.addf %96, %95 : vector<32x32xf32>
    %98 = arith.divf %96, %97 : vector<32x32xf32>
    %cst_70 = arith.constant dense<0.000000e+00> : vector<32x32xf32>
    %99 = tpu.matmul %89, %22, %cst_70 {dimension_numbers = #tpu.dot_dimension_numbers<[1], [0], [0], [1], [0, 0, 1, 1], [], []>} : vector<32x32xf32>, vector<32x32xf32>, vector<32x32xf32> -> vector<32x32xf32>
    %cst_71 = arith.constant dense<0.000000e+00> : vector<32x32xf32>
    %100 = tpu.matmul %80, %25, %cst_71 {dimension_numbers = #tpu.dot_dimension_numbers<[1], [0], [0], [1], [0, 0, 1, 1], [], []>} : vector<32x32xf32>, vector<32x32xf32>, vector<32x32xf32> -> vector<32x32xf32>
    %101 = arith.addf %99, %100 : vector<32x32xf32>
    %102 = arith.addf %101, %35 : vector<32x32xf32>
    %103 = arith.negf %102 : vector<32x32xf32>
    %104 = math.exp %103 : vector<32x32xf32>
    %cst_72 = arith.constant 1.000000e+00 : f32
    %105 = vector.broadcast %cst_72 : f32 to vector<32x32xf32>
    %106 = arith.addf %105, %104 : vector<32x32xf32>
    %107 = arith.divf %105, %106 : vector<32x32xf32>
    %cst_73 = arith.constant dense<0.000000e+00> : vector<32x32xf32>
    %108 = tpu.matmul %89, %23, %cst_73 {dimension_numbers = #tpu.dot_dimension_numbers<[1], [0], [0], [1], [0, 0, 1, 1], [], []>} : vector<32x32xf32>, vector<32x32xf32>, vector<32x32xf32> -> vector<32x32xf32>
    %109 = arith.addf %108, %38 : vector<32x32xf32>
    %cst_74 = arith.constant dense<0.000000e+00> : vector<32x32xf32>
    %110 = tpu.matmul %80, %26, %cst_74 {dimension_numbers = #tpu.dot_dimension_numbers<[1], [0], [0], [1], [0, 0, 1, 1], [], []>} : vector<32x32xf32>, vector<32x32xf32>, vector<32x32xf32> -> vector<32x32xf32>
    %111 = arith.addf %110, %41 : vector<32x32xf32>
    %112 = arith.mulf %98, %111 : vector<32x32xf32>
    %113 = arith.addf %109, %112 : vector<32x32xf32>
    %114 = math.tanh %113 : vector<32x32xf32>
    %cst_75 = arith.constant 1.000000e+00 : f32
    %115 = vector.broadcast %cst_75 : f32 to vector<32x32xf32>
    %116 = arith.subf %115, %107 : vector<32x32xf32>
    %117 = arith.mulf %116, %114 : vector<32x32xf32>
    %118 = arith.mulf %107, %80 : vector<32x32xf32>
    %119 = arith.addf %117, %118 : vector<32x32xf32>
    %cst_76 = arith.constant dense<0.000000e+00> : vector<32x32xf32>
    %120 = tpu.matmul %15, %119, %cst_76 {dimension_numbers = #tpu.dot_dimension_numbers<[1], [0], [0], [1], [0, 0, 1, 1], [], []>} : vector<32x32xf32>, vector<32x32xf32>, vector<32x32xf32> -> vector<32x32xf32>
    %cst_77 = arith.constant dense<0.000000e+00> : vector<32x32xf32>
    %121 = tpu.matmul %120, %18, %cst_77 {dimension_numbers = #tpu.dot_dimension_numbers<[1], [0], [0], [1], [0, 0, 1, 1], [], []>} : vector<32x32xf32>, vector<32x32xf32>, vector<32x32xf32> -> vector<32x32xf32>
    %cst_78 = arith.constant dense<0.000000e+00> : vector<32x32xf32>
    %122 = tpu.matmul %16, %119, %cst_78 {dimension_numbers = #tpu.dot_dimension_numbers<[1], [0], [0], [1], [0, 0, 1, 1], [], []>} : vector<32x32xf32>, vector<32x32xf32>, vector<32x32xf32> -> vector<32x32xf32>
    %cst_79 = arith.constant dense<0.000000e+00> : vector<32x32xf32>
    %123 = tpu.matmul %122, %19, %cst_79 {dimension_numbers = #tpu.dot_dimension_numbers<[1], [0], [0], [1], [0, 0, 1, 1], [], []>} : vector<32x32xf32>, vector<32x32xf32>, vector<32x32xf32> -> vector<32x32xf32>
    %124 = arith.addf %121, %123 : vector<32x32xf32>
    %cst_80 = arith.constant dense<0.000000e+00> : vector<32x32xf32>
    %125 = tpu.matmul %17, %119, %cst_80 {dimension_numbers = #tpu.dot_dimension_numbers<[1], [0], [0], [1], [0, 0, 1, 1], [], []>} : vector<32x32xf32>, vector<32x32xf32>, vector<32x32xf32> -> vector<32x32xf32>
    %cst_81 = arith.constant dense<0.000000e+00> : vector<32x32xf32>
    %126 = tpu.matmul %125, %20, %cst_81 {dimension_numbers = #tpu.dot_dimension_numbers<[1], [0], [0], [1], [0, 0, 1, 1], [], []>} : vector<32x32xf32>, vector<32x32xf32>, vector<32x32xf32> -> vector<32x32xf32>
    %127 = arith.addf %124, %126 : vector<32x32xf32>
    %128 = arith.addf %127, %29 : vector<32x32xf32>
    %cst_82 = arith.constant dense<0.000000e+00> : vector<32x32xf32>
    %129 = tpu.matmul %128, %21, %cst_82 {dimension_numbers = #tpu.dot_dimension_numbers<[1], [0], [0], [1], [0, 0, 1, 1], [], []>} : vector<32x32xf32>, vector<32x32xf32>, vector<32x32xf32> -> vector<32x32xf32>
    %cst_83 = arith.constant dense<0.000000e+00> : vector<32x32xf32>
    %130 = tpu.matmul %119, %24, %cst_83 {dimension_numbers = #tpu.dot_dimension_numbers<[1], [0], [0], [1], [0, 0, 1, 1], [], []>} : vector<32x32xf32>, vector<32x32xf32>, vector<32x32xf32> -> vector<32x32xf32>
    %131 = arith.addf %129, %130 : vector<32x32xf32>
    %132 = arith.addf %131, %32 : vector<32x32xf32>
    %133 = arith.negf %132 : vector<32x32xf32>
    %134 = math.exp %133 : vector<32x32xf32>
    %cst_84 = arith.constant 1.000000e+00 : f32
    %135 = vector.broadcast %cst_84 : f32 to vector<32x32xf32>
    %136 = arith.addf %135, %134 : vector<32x32xf32>
    %137 = arith.divf %135, %136 : vector<32x32xf32>
    %cst_85 = arith.constant dense<0.000000e+00> : vector<32x32xf32>
    %138 = tpu.matmul %128, %22, %cst_85 {dimension_numbers = #tpu.dot_dimension_numbers<[1], [0], [0], [1], [0, 0, 1, 1], [], []>} : vector<32x32xf32>, vector<32x32xf32>, vector<32x32xf32> -> vector<32x32xf32>
    %cst_86 = arith.constant dense<0.000000e+00> : vector<32x32xf32>
    %139 = tpu.matmul %119, %25, %cst_86 {dimension_numbers = #tpu.dot_dimension_numbers<[1], [0], [0], [1], [0, 0, 1, 1], [], []>} : vector<32x32xf32>, vector<32x32xf32>, vector<32x32xf32> -> vector<32x32xf32>
    %140 = arith.addf %138, %139 : vector<32x32xf32>
    %141 = arith.addf %140, %35 : vector<32x32xf32>
    %142 = arith.negf %141 : vector<32x32xf32>
    %143 = math.exp %142 : vector<32x32xf32>
    %cst_87 = arith.constant 1.000000e+00 : f32
    %144 = vector.broadcast %cst_87 : f32 to vector<32x32xf32>
    %145 = arith.addf %144, %143 : vector<32x32xf32>
    %146 = arith.divf %144, %145 : vector<32x32xf32>
    %cst_88 = arith.constant dense<0.000000e+00> : vector<32x32xf32>
    %147 = tpu.matmul %128, %23, %cst_88 {dimension_numbers = #tpu.dot_dimension_numbers<[1], [0], [0], [1], [0, 0, 1, 1], [], []>} : vector<32x32xf32>, vector<32x32xf32>, vector<32x32xf32> -> vector<32x32xf32>
    %148 = arith.addf %147, %38 : vector<32x32xf32>
    %cst_89 = arith.constant dense<0.000000e+00> : vector<32x32xf32>
    %149 = tpu.matmul %119, %26, %cst_89 {dimension_numbers = #tpu.dot_dimension_numbers<[1], [0], [0], [1], [0, 0, 1, 1], [], []>} : vector<32x32xf32>, vector<32x32xf32>, vector<32x32xf32> -> vector<32x32xf32>
    %150 = arith.addf %149, %41 : vector<32x32xf32>
    %151 = arith.mulf %137, %150 : vector<32x32xf32>
    %152 = arith.addf %148, %151 : vector<32x32xf32>
    %153 = math.tanh %152 : vector<32x32xf32>
    %cst_90 = arith.constant 1.000000e+00 : f32
    %154 = vector.broadcast %cst_90 : f32 to vector<32x32xf32>
    %155 = arith.subf %154, %146 : vector<32x32xf32>
    %156 = arith.mulf %155, %153 : vector<32x32xf32>
    %157 = arith.mulf %146, %119 : vector<32x32xf32>
    %158 = arith.addf %156, %157 : vector<32x32xf32>
    %cst_91 = arith.constant dense<0.000000e+00> : vector<32x32xf32>
    %159 = tpu.matmul %15, %158, %cst_91 {dimension_numbers = #tpu.dot_dimension_numbers<[1], [0], [0], [1], [0, 0, 1, 1], [], []>} : vector<32x32xf32>, vector<32x32xf32>, vector<32x32xf32> -> vector<32x32xf32>
    %cst_92 = arith.constant dense<0.000000e+00> : vector<32x32xf32>
    %160 = tpu.matmul %159, %18, %cst_92 {dimension_numbers = #tpu.dot_dimension_numbers<[1], [0], [0], [1], [0, 0, 1, 1], [], []>} : vector<32x32xf32>, vector<32x32xf32>, vector<32x32xf32> -> vector<32x32xf32>
    %cst_93 = arith.constant dense<0.000000e+00> : vector<32x32xf32>
    %161 = tpu.matmul %16, %158, %cst_93 {dimension_numbers = #tpu.dot_dimension_numbers<[1], [0], [0], [1], [0, 0, 1, 1], [], []>} : vector<32x32xf32>, vector<32x32xf32>, vector<32x32xf32> -> vector<32x32xf32>
    %cst_94 = arith.constant dense<0.000000e+00> : vector<32x32xf32>
    %162 = tpu.matmul %161, %19, %cst_94 {dimension_numbers = #tpu.dot_dimension_numbers<[1], [0], [0], [1], [0, 0, 1, 1], [], []>} : vector<32x32xf32>, vector<32x32xf32>, vector<32x32xf32> -> vector<32x32xf32>
    %163 = arith.addf %160, %162 : vector<32x32xf32>
    %cst_95 = arith.constant dense<0.000000e+00> : vector<32x32xf32>
    %164 = tpu.matmul %17, %158, %cst_95 {dimension_numbers = #tpu.dot_dimension_numbers<[1], [0], [0], [1], [0, 0, 1, 1], [], []>} : vector<32x32xf32>, vector<32x32xf32>, vector<32x32xf32> -> vector<32x32xf32>
    %cst_96 = arith.constant dense<0.000000e+00> : vector<32x32xf32>
    %165 = tpu.matmul %164, %20, %cst_96 {dimension_numbers = #tpu.dot_dimension_numbers<[1], [0], [0], [1], [0, 0, 1, 1], [], []>} : vector<32x32xf32>, vector<32x32xf32>, vector<32x32xf32> -> vector<32x32xf32>
    %166 = arith.addf %163, %165 : vector<32x32xf32>
    %167 = arith.addf %166, %29 : vector<32x32xf32>
    %cst_97 = arith.constant dense<0.000000e+00> : vector<32x32xf32>
    %168 = tpu.matmul %167, %21, %cst_97 {dimension_numbers = #tpu.dot_dimension_numbers<[1], [0], [0], [1], [0, 0, 1, 1], [], []>} : vector<32x32xf32>, vector<32x32xf32>, vector<32x32xf32> -> vector<32x32xf32>
    %cst_98 = arith.constant dense<0.000000e+00> : vector<32x32xf32>
    %169 = tpu.matmul %158, %24, %cst_98 {dimension_numbers = #tpu.dot_dimension_numbers<[1], [0], [0], [1], [0, 0, 1, 1], [], []>} : vector<32x32xf32>, vector<32x32xf32>, vector<32x32xf32> -> vector<32x32xf32>
    %170 = arith.addf %168, %169 : vector<32x32xf32>
    %171 = arith.addf %170, %32 : vector<32x32xf32>
    %172 = arith.negf %171 : vector<32x32xf32>
    %173 = math.exp %172 : vector<32x32xf32>
    %cst_99 = arith.constant 1.000000e+00 : f32
    %174 = vector.broadcast %cst_99 : f32 to vector<32x32xf32>
    %175 = arith.addf %174, %173 : vector<32x32xf32>
    %176 = arith.divf %174, %175 : vector<32x32xf32>
    %cst_100 = arith.constant dense<0.000000e+00> : vector<32x32xf32>
    %177 = tpu.matmul %167, %22, %cst_100 {dimension_numbers = #tpu.dot_dimension_numbers<[1], [0], [0], [1], [0, 0, 1, 1], [], []>} : vector<32x32xf32>, vector<32x32xf32>, vector<32x32xf32> -> vector<32x32xf32>
    %cst_101 = arith.constant dense<0.000000e+00> : vector<32x32xf32>
    %178 = tpu.matmul %158, %25, %cst_101 {dimension_numbers = #tpu.dot_dimension_numbers<[1], [0], [0], [1], [0, 0, 1, 1], [], []>} : vector<32x32xf32>, vector<32x32xf32>, vector<32x32xf32> -> vector<32x32xf32>
    %179 = arith.addf %177, %178 : vector<32x32xf32>
    %180 = arith.addf %179, %35 : vector<32x32xf32>
    %181 = arith.negf %180 : vector<32x32xf32>
    %182 = math.exp %181 : vector<32x32xf32>
    %cst_102 = arith.constant 1.000000e+00 : f32
    %183 = vector.broadcast %cst_102 : f32 to vector<32x32xf32>
    %184 = arith.addf %183, %182 : vector<32x32xf32>
    %185 = arith.divf %183, %184 : vector<32x32xf32>
    %cst_103 = arith.constant dense<0.000000e+00> : vector<32x32xf32>
    %186 = tpu.matmul %167, %23, %cst_103 {dimension_numbers = #tpu.dot_dimension_numbers<[1], [0], [0], [1], [0, 0, 1, 1], [], []>} : vector<32x32xf32>, vector<32x32xf32>, vector<32x32xf32> -> vector<32x32xf32>
    %187 = arith.addf %186, %38 : vector<32x32xf32>
    %cst_104 = arith.constant dense<0.000000e+00> : vector<32x32xf32>
    %188 = tpu.matmul %158, %26, %cst_104 {dimension_numbers = #tpu.dot_dimension_numbers<[1], [0], [0], [1], [0, 0, 1, 1], [], []>} : vector<32x32xf32>, vector<32x32xf32>, vector<32x32xf32> -> vector<32x32xf32>
    %189 = arith.addf %188, %41 : vector<32x32xf32>
    %190 = arith.mulf %176, %189 : vector<32x32xf32>
    %191 = arith.addf %187, %190 : vector<32x32xf32>
    %192 = math.tanh %191 : vector<32x32xf32>
    %cst_105 = arith.constant 1.000000e+00 : f32
    %193 = vector.broadcast %cst_105 : f32 to vector<32x32xf32>
    %194 = arith.subf %193, %185 : vector<32x32xf32>
    %195 = arith.mulf %194, %192 : vector<32x32xf32>
    %196 = arith.mulf %185, %158 : vector<32x32xf32>
    %197 = arith.addf %195, %196 : vector<32x32xf32>
    %cst_106 = arith.constant dense<0.000000e+00> : vector<32x32xf32>
    %198 = tpu.matmul %15, %197, %cst_106 {dimension_numbers = #tpu.dot_dimension_numbers<[1], [0], [0], [1], [0, 0, 1, 1], [], []>} : vector<32x32xf32>, vector<32x32xf32>, vector<32x32xf32> -> vector<32x32xf32>
    %cst_107 = arith.constant dense<0.000000e+00> : vector<32x32xf32>
    %199 = tpu.matmul %198, %18, %cst_107 {dimension_numbers = #tpu.dot_dimension_numbers<[1], [0], [0], [1], [0, 0, 1, 1], [], []>} : vector<32x32xf32>, vector<32x32xf32>, vector<32x32xf32> -> vector<32x32xf32>
    %cst_108 = arith.constant dense<0.000000e+00> : vector<32x32xf32>
    %200 = tpu.matmul %16, %197, %cst_108 {dimension_numbers = #tpu.dot_dimension_numbers<[1], [0], [0], [1], [0, 0, 1, 1], [], []>} : vector<32x32xf32>, vector<32x32xf32>, vector<32x32xf32> -> vector<32x32xf32>
    %cst_109 = arith.constant dense<0.000000e+00> : vector<32x32xf32>
    %201 = tpu.matmul %200, %19, %cst_109 {dimension_numbers = #tpu.dot_dimension_numbers<[1], [0], [0], [1], [0, 0, 1, 1], [], []>} : vector<32x32xf32>, vector<32x32xf32>, vector<32x32xf32> -> vector<32x32xf32>
    %202 = arith.addf %199, %201 : vector<32x32xf32>
    %cst_110 = arith.constant dense<0.000000e+00> : vector<32x32xf32>
    %203 = tpu.matmul %17, %197, %cst_110 {dimension_numbers = #tpu.dot_dimension_numbers<[1], [0], [0], [1], [0, 0, 1, 1], [], []>} : vector<32x32xf32>, vector<32x32xf32>, vector<32x32xf32> -> vector<32x32xf32>
    %cst_111 = arith.constant dense<0.000000e+00> : vector<32x32xf32>
    %204 = tpu.matmul %203, %20, %cst_111 {dimension_numbers = #tpu.dot_dimension_numbers<[1], [0], [0], [1], [0, 0, 1, 1], [], []>} : vector<32x32xf32>, vector<32x32xf32>, vector<32x32xf32> -> vector<32x32xf32>
    %205 = arith.addf %202, %204 : vector<32x32xf32>
    %206 = arith.addf %205, %29 : vector<32x32xf32>
    %cst_112 = arith.constant dense<0.000000e+00> : vector<32x32xf32>
    %207 = tpu.matmul %206, %21, %cst_112 {dimension_numbers = #tpu.dot_dimension_numbers<[1], [0], [0], [1], [0, 0, 1, 1], [], []>} : vector<32x32xf32>, vector<32x32xf32>, vector<32x32xf32> -> vector<32x32xf32>
    %cst_113 = arith.constant dense<0.000000e+00> : vector<32x32xf32>
    %208 = tpu.matmul %197, %24, %cst_113 {dimension_numbers = #tpu.dot_dimension_numbers<[1], [0], [0], [1], [0, 0, 1, 1], [], []>} : vector<32x32xf32>, vector<32x32xf32>, vector<32x32xf32> -> vector<32x32xf32>
    %209 = arith.addf %207, %208 : vector<32x32xf32>
    %210 = arith.addf %209, %32 : vector<32x32xf32>
    %211 = arith.negf %210 : vector<32x32xf32>
    %212 = math.exp %211 : vector<32x32xf32>
    %cst_114 = arith.constant 1.000000e+00 : f32
    %213 = vector.broadcast %cst_114 : f32 to vector<32x32xf32>
    %214 = arith.addf %213, %212 : vector<32x32xf32>
    %215 = arith.divf %213, %214 : vector<32x32xf32>
    %cst_115 = arith.constant dense<0.000000e+00> : vector<32x32xf32>
    %216 = tpu.matmul %206, %22, %cst_115 {dimension_numbers = #tpu.dot_dimension_numbers<[1], [0], [0], [1], [0, 0, 1, 1], [], []>} : vector<32x32xf32>, vector<32x32xf32>, vector<32x32xf32> -> vector<32x32xf32>
    %cst_116 = arith.constant dense<0.000000e+00> : vector<32x32xf32>
    %217 = tpu.matmul %197, %25, %cst_116 {dimension_numbers = #tpu.dot_dimension_numbers<[1], [0], [0], [1], [0, 0, 1, 1], [], []>} : vector<32x32xf32>, vector<32x32xf32>, vector<32x32xf32> -> vector<32x32xf32>
    %218 = arith.addf %216, %217 : vector<32x32xf32>
    %219 = arith.addf %218, %35 : vector<32x32xf32>
    %220 = arith.negf %219 : vector<32x32xf32>
    %221 = math.exp %220 : vector<32x32xf32>
    %cst_117 = arith.constant 1.000000e+00 : f32
    %222 = vector.broadcast %cst_117 : f32 to vector<32x32xf32>
    %223 = arith.addf %222, %221 : vector<32x32xf32>
    %224 = arith.divf %222, %223 : vector<32x32xf32>
    %cst_118 = arith.constant dense<0.000000e+00> : vector<32x32xf32>
    %225 = tpu.matmul %206, %23, %cst_118 {dimension_numbers = #tpu.dot_dimension_numbers<[1], [0], [0], [1], [0, 0, 1, 1], [], []>} : vector<32x32xf32>, vector<32x32xf32>, vector<32x32xf32> -> vector<32x32xf32>
    %226 = arith.addf %225, %38 : vector<32x32xf32>
    %cst_119 = arith.constant dense<0.000000e+00> : vector<32x32xf32>
    %227 = tpu.matmul %197, %26, %cst_119 {dimension_numbers = #tpu.dot_dimension_numbers<[1], [0], [0], [1], [0, 0, 1, 1], [], []>} : vector<32x32xf32>, vector<32x32xf32>, vector<32x32xf32> -> vector<32x32xf32>
    %228 = arith.addf %227, %41 : vector<32x32xf32>
    %229 = arith.mulf %215, %228 : vector<32x32xf32>
    %230 = arith.addf %226, %229 : vector<32x32xf32>
    %231 = math.tanh %230 : vector<32x32xf32>
    %cst_120 = arith.constant 1.000000e+00 : f32
    %232 = vector.broadcast %cst_120 : f32 to vector<32x32xf32>
    %233 = arith.subf %232, %224 : vector<32x32xf32>
    %234 = arith.mulf %233, %231 : vector<32x32xf32>
    %235 = arith.mulf %224, %197 : vector<32x32xf32>
    %236 = arith.addf %234, %235 : vector<32x32xf32>
    %cst_121 = arith.constant dense<0.000000e+00> : vector<32x32xf32>
    %237 = tpu.matmul %15, %236, %cst_121 {dimension_numbers = #tpu.dot_dimension_numbers<[1], [0], [0], [1], [0, 0, 1, 1], [], []>} : vector<32x32xf32>, vector<32x32xf32>, vector<32x32xf32> -> vector<32x32xf32>
    %cst_122 = arith.constant dense<0.000000e+00> : vector<32x32xf32>
    %238 = tpu.matmul %237, %18, %cst_122 {dimension_numbers = #tpu.dot_dimension_numbers<[1], [0], [0], [1], [0, 0, 1, 1], [], []>} : vector<32x32xf32>, vector<32x32xf32>, vector<32x32xf32> -> vector<32x32xf32>
    %cst_123 = arith.constant dense<0.000000e+00> : vector<32x32xf32>
    %239 = tpu.matmul %16, %236, %cst_123 {dimension_numbers = #tpu.dot_dimension_numbers<[1], [0], [0], [1], [0, 0, 1, 1], [], []>} : vector<32x32xf32>, vector<32x32xf32>, vector<32x32xf32> -> vector<32x32xf32>
    %cst_124 = arith.constant dense<0.000000e+00> : vector<32x32xf32>
    %240 = tpu.matmul %239, %19, %cst_124 {dimension_numbers = #tpu.dot_dimension_numbers<[1], [0], [0], [1], [0, 0, 1, 1], [], []>} : vector<32x32xf32>, vector<32x32xf32>, vector<32x32xf32> -> vector<32x32xf32>
    %241 = arith.addf %238, %240 : vector<32x32xf32>
    %cst_125 = arith.constant dense<0.000000e+00> : vector<32x32xf32>
    %242 = tpu.matmul %17, %236, %cst_125 {dimension_numbers = #tpu.dot_dimension_numbers<[1], [0], [0], [1], [0, 0, 1, 1], [], []>} : vector<32x32xf32>, vector<32x32xf32>, vector<32x32xf32> -> vector<32x32xf32>
    %cst_126 = arith.constant dense<0.000000e+00> : vector<32x32xf32>
    %243 = tpu.matmul %242, %20, %cst_126 {dimension_numbers = #tpu.dot_dimension_numbers<[1], [0], [0], [1], [0, 0, 1, 1], [], []>} : vector<32x32xf32>, vector<32x32xf32>, vector<32x32xf32> -> vector<32x32xf32>
    %244 = arith.addf %241, %243 : vector<32x32xf32>
    %245 = arith.addf %244, %29 : vector<32x32xf32>
    %cst_127 = arith.constant dense<0.000000e+00> : vector<32x32xf32>
    %246 = tpu.matmul %245, %21, %cst_127 {dimension_numbers = #tpu.dot_dimension_numbers<[1], [0], [0], [1], [0, 0, 1, 1], [], []>} : vector<32x32xf32>, vector<32x32xf32>, vector<32x32xf32> -> vector<32x32xf32>
    %cst_128 = arith.constant dense<0.000000e+00> : vector<32x32xf32>
    %247 = tpu.matmul %236, %24, %cst_128 {dimension_numbers = #tpu.dot_dimension_numbers<[1], [0], [0], [1], [0, 0, 1, 1], [], []>} : vector<32x32xf32>, vector<32x32xf32>, vector<32x32xf32> -> vector<32x32xf32>
    %248 = arith.addf %246, %247 : vector<32x32xf32>
    %249 = arith.addf %248, %32 : vector<32x32xf32>
    %250 = arith.negf %249 : vector<32x32xf32>
    %251 = math.exp %250 : vector<32x32xf32>
    %cst_129 = arith.constant 1.000000e+00 : f32
    %252 = vector.broadcast %cst_129 : f32 to vector<32x32xf32>
    %253 = arith.addf %252, %251 : vector<32x32xf32>
    %254 = arith.divf %252, %253 : vector<32x32xf32>
    %cst_130 = arith.constant dense<0.000000e+00> : vector<32x32xf32>
    %255 = tpu.matmul %245, %22, %cst_130 {dimension_numbers = #tpu.dot_dimension_numbers<[1], [0], [0], [1], [0, 0, 1, 1], [], []>} : vector<32x32xf32>, vector<32x32xf32>, vector<32x32xf32> -> vector<32x32xf32>
    %cst_131 = arith.constant dense<0.000000e+00> : vector<32x32xf32>
    %256 = tpu.matmul %236, %25, %cst_131 {dimension_numbers = #tpu.dot_dimension_numbers<[1], [0], [0], [1], [0, 0, 1, 1], [], []>} : vector<32x32xf32>, vector<32x32xf32>, vector<32x32xf32> -> vector<32x32xf32>
    %257 = arith.addf %255, %256 : vector<32x32xf32>
    %258 = arith.addf %257, %35 : vector<32x32xf32>
    %259 = arith.negf %258 : vector<32x32xf32>
    %260 = math.exp %259 : vector<32x32xf32>
    %cst_132 = arith.constant 1.000000e+00 : f32
    %261 = vector.broadcast %cst_132 : f32 to vector<32x32xf32>
    %262 = arith.addf %261, %260 : vector<32x32xf32>
    %263 = arith.divf %261, %262 : vector<32x32xf32>
    %cst_133 = arith.constant dense<0.000000e+00> : vector<32x32xf32>
    %264 = tpu.matmul %245, %23, %cst_133 {dimension_numbers = #tpu.dot_dimension_numbers<[1], [0], [0], [1], [0, 0, 1, 1], [], []>} : vector<32x32xf32>, vector<32x32xf32>, vector<32x32xf32> -> vector<32x32xf32>
    %265 = arith.addf %264, %38 : vector<32x32xf32>
    %cst_134 = arith.constant dense<0.000000e+00> : vector<32x32xf32>
    %266 = tpu.matmul %236, %26, %cst_134 {dimension_numbers = #tpu.dot_dimension_numbers<[1], [0], [0], [1], [0, 0, 1, 1], [], []>} : vector<32x32xf32>, vector<32x32xf32>, vector<32x32xf32> -> vector<32x32xf32>
    %267 = arith.addf %266, %41 : vector<32x32xf32>
    %268 = arith.mulf %254, %267 : vector<32x32xf32>
    %269 = arith.addf %265, %268 : vector<32x32xf32>
    %270 = math.tanh %269 : vector<32x32xf32>
    %cst_135 = arith.constant 1.000000e+00 : f32
    %271 = vector.broadcast %cst_135 : f32 to vector<32x32xf32>
    %272 = arith.subf %271, %263 : vector<32x32xf32>
    %273 = arith.mulf %272, %270 : vector<32x32xf32>
    %274 = arith.mulf %263, %236 : vector<32x32xf32>
    %275 = arith.addf %273, %274 : vector<32x32xf32>
    %c0_136 = arith.constant 0 : index
    %c0_137 = arith.constant 0 : index
    %c0_138 = arith.constant 0 : index
    %276 = vector.load %arg22[%c0_136, %c0_137, %c0_138] : memref<3x32x32xf32, #tpu.memory_space<vmem>>, vector<1x32x32xf32>
    %277 = vector.shape_cast %276 : vector<1x32x32xf32> to vector<32x32xf32>
    %c1 = arith.constant 1 : index
    %c0_139 = arith.constant 0 : index
    %c0_140 = arith.constant 0 : index
    %278 = vector.load %arg22[%c1, %c0_139, %c0_140] : memref<3x32x32xf32, #tpu.memory_space<vmem>>, vector<1x32x32xf32>
    %279 = vector.shape_cast %278 : vector<1x32x32xf32> to vector<32x32xf32>
    %c2 = arith.constant 2 : index
    %c0_141 = arith.constant 0 : index
    %c0_142 = arith.constant 0 : index
    %280 = vector.load %arg22[%c2, %c0_141, %c0_142] : memref<3x32x32xf32, #tpu.memory_space<vmem>>, vector<1x32x32xf32>
    %281 = vector.shape_cast %280 : vector<1x32x32xf32> to vector<32x32xf32>
    %c0_143 = arith.constant 0 : index
    %c0_144 = arith.constant 0 : index
    %c0_145 = arith.constant 0 : index
    %282 = vector.load %arg28[%c0_143, %c0_144, %c0_145] : memref<3x32x48xf32, #tpu.memory_space<vmem>>, vector<1x32x48xf32>
    %283 = vector.shape_cast %282 : vector<1x32x48xf32> to vector<32x48xf32>
    %c1_146 = arith.constant 1 : index
    %c0_147 = arith.constant 0 : index
    %c0_148 = arith.constant 0 : index
    %284 = vector.load %arg28[%c1_146, %c0_147, %c0_148] : memref<3x32x48xf32, #tpu.memory_space<vmem>>, vector<1x32x48xf32>
    %285 = vector.shape_cast %284 : vector<1x32x48xf32> to vector<32x48xf32>
    %c2_149 = arith.constant 2 : index
    %c0_150 = arith.constant 0 : index
    %c0_151 = arith.constant 0 : index
    %286 = vector.load %arg28[%c2_149, %c0_150, %c0_151] : memref<3x32x48xf32, #tpu.memory_space<vmem>>, vector<1x32x48xf32>
    %287 = vector.shape_cast %286 : vector<1x32x48xf32> to vector<32x48xf32>
    %c0_152 = arith.constant 0 : index
    %c0_153 = arith.constant 0 : index
    %c0_154 = arith.constant 0 : index
    %288 = vector.load %arg29[%c0_152, %c0_153, %c0_154] : memref<3x16x48xf32, #tpu.memory_space<vmem>>, vector<1x16x48xf32>
    %289 = vector.shape_cast %288 : vector<1x16x48xf32> to vector<16x48xf32>
    %c1_155 = arith.constant 1 : index
    %c0_156 = arith.constant 0 : index
    %c0_157 = arith.constant 0 : index
    %290 = vector.load %arg29[%c1_155, %c0_156, %c0_157] : memref<3x16x48xf32, #tpu.memory_space<vmem>>, vector<1x16x48xf32>
    %291 = vector.shape_cast %290 : vector<1x16x48xf32> to vector<16x48xf32>
    %c2_158 = arith.constant 2 : index
    %c0_159 = arith.constant 0 : index
    %c0_160 = arith.constant 0 : index
    %292 = vector.load %arg29[%c2_158, %c0_159, %c0_160] : memref<3x16x48xf32, #tpu.memory_space<vmem>>, vector<1x16x48xf32>
    %293 = vector.shape_cast %292 : vector<1x16x48xf32> to vector<16x48xf32>
    %c0_161 = arith.constant 0 : index
    %c0_162 = arith.constant 0 : index
    %294 = vector.load %arg23[%c0_161, %c0_162] : memref<1x32xf32, #tpu.memory_space<vmem>>, vector<1x32xf32>
    %c0_163 = arith.constant 0 : index
    %c0_164 = arith.constant 0 : index
    %295 = vector.load %arg24[%c0_163, %c0_164] : memref<32x32xf32, #tpu.memory_space<vmem>>, vector<32x32xf32>
    %c0_165 = arith.constant 0 : index
    %c0_166 = arith.constant 0 : index
    %296 = vector.load %arg25[%c0_165, %c0_166] : memref<1x32xf32, #tpu.memory_space<vmem>>, vector<1x32xf32>
    %c0_167 = arith.constant 0 : index
    %c0_168 = arith.constant 0 : index
    %297 = vector.load %arg26[%c0_167, %c0_168] : memref<1x32xf32, #tpu.memory_space<vmem>>, vector<1x32xf32>
    %c0_169 = arith.constant 0 : index
    %c0_170 = arith.constant 0 : index
    %298 = vector.load %arg27[%c0_169, %c0_170] : memref<1x1xf32, #tpu.memory_space<vmem>>, vector<1x1xf32>
    %c0_171 = arith.constant 0 : index
    %c0_172 = arith.constant 0 : index
    %299 = vector.load %arg30[%c0_171, %c0_172] : memref<1x48xf32, #tpu.memory_space<vmem>>, vector<1x48xf32>
    %c0_173 = arith.constant 0 : index
    %c0_174 = arith.constant 0 : index
    %300 = vector.load %arg31[%c0_173, %c0_174] : memref<48x48xf32, #tpu.memory_space<vmem>>, vector<48x48xf32>
    %c0_175 = arith.constant 0 : index
    %c0_176 = arith.constant 0 : index
    %301 = vector.load %arg32[%c0_175, %c0_176] : memref<1x48xf32, #tpu.memory_space<vmem>>, vector<1x48xf32>
    %c0_177 = arith.constant 0 : index
    %c0_178 = arith.constant 0 : index
    %302 = vector.load %arg33[%c0_177, %c0_178] : memref<1x48xf32, #tpu.memory_space<vmem>>, vector<1x48xf32>
    %c0_179 = arith.constant 0 : index
    %c0_180 = arith.constant 0 : index
    %303 = vector.load %arg34[%c0_179, %c0_180] : memref<1x1xf32, #tpu.memory_space<vmem>>, vector<1x1xf32>
    %304 = vector.extract_strided_slice %275 {offsets = [0, 0], sizes = [16, 32], strides = [1, 1]} : vector<32x32xf32> to vector<16x32xf32>
    %305 = vector.extract_strided_slice %14 {offsets = [0, 0], sizes = [16, 16], strides = [1, 1]} : vector<32x16xf32> to vector<16x16xf32>
    %306 = vector.extract_strided_slice %304 {offsets = [0, 0], sizes = [14, 32], strides = [1, 1]} : vector<16x32xf32> to vector<14x32xf32>
    %cst_181 = arith.constant dense<0.000000e+00> : vector<14x32xf32>
    %307 = tpu.matmul %306, %277, %cst_181 {dimension_numbers = #tpu.dot_dimension_numbers<[1], [0], [0], [1], [0, 0, 1, 1], [], []>} : vector<14x32xf32>, vector<32x32xf32>, vector<14x32xf32> -> vector<14x32xf32>
    %308 = vector.extract_strided_slice %304 {offsets = [1, 0], sizes = [14, 32], strides = [1, 1]} : vector<16x32xf32> to vector<14x32xf32>
    %cst_182 = arith.constant dense<0.000000e+00> : vector<14x32xf32>
    %309 = tpu.matmul %308, %279, %cst_182 {dimension_numbers = #tpu.dot_dimension_numbers<[1], [0], [0], [1], [0, 0, 1, 1], [], []>} : vector<14x32xf32>, vector<32x32xf32>, vector<14x32xf32> -> vector<14x32xf32>
    %310 = arith.addf %307, %309 : vector<14x32xf32>
    %311 = vector.extract_strided_slice %304 {offsets = [2, 0], sizes = [14, 32], strides = [1, 1]} : vector<16x32xf32> to vector<14x32xf32>
    %cst_183 = arith.constant dense<0.000000e+00> : vector<14x32xf32>
    %312 = tpu.matmul %311, %281, %cst_183 {dimension_numbers = #tpu.dot_dimension_numbers<[1], [0], [0], [1], [0, 0, 1, 1], [], []>} : vector<14x32xf32>, vector<32x32xf32>, vector<14x32xf32> -> vector<14x32xf32>
    %313 = arith.addf %310, %312 : vector<14x32xf32>
    %314 = vector.broadcast %294 : vector<1x32xf32> to vector<14x32xf32>
    %315 = arith.addf %313, %314 : vector<14x32xf32>
    %cst_184 = arith.constant 0.000000e+00 : f32
    %316 = vector.broadcast %cst_184 : f32 to vector<14x32xf32>
    %317 = arith.maximumf %315, %316 : vector<14x32xf32>
    %318 = vector.extract_strided_slice %317 {offsets = [0, 0], sizes = [12, 32], strides = [1, 1]} : vector<14x32xf32> to vector<12x32xf32>
    %319 = vector.extract_strided_slice %317 {offsets = [1, 0], sizes = [12, 32], strides = [1, 1]} : vector<14x32xf32> to vector<12x32xf32>
    %320 = arith.maximumf %318, %319 : vector<12x32xf32>
    %321 = vector.extract_strided_slice %317 {offsets = [2, 0], sizes = [12, 32], strides = [1, 1]} : vector<14x32xf32> to vector<12x32xf32>
    %322 = arith.maximumf %320, %321 : vector<12x32xf32>
    %323 = vector.extract_strided_slice %322 {offsets = [0, 0], sizes = [1, 32], strides = [1, 1]} : vector<12x32xf32> to vector<1x32xf32>
    %324 = vector.extract_strided_slice %322 {offsets = [2, 0], sizes = [1, 32], strides = [1, 1]} : vector<12x32xf32> to vector<1x32xf32>
    %325 = vector.extract_strided_slice %322 {offsets = [4, 0], sizes = [1, 32], strides = [1, 1]} : vector<12x32xf32> to vector<1x32xf32>
    %326 = vector.extract_strided_slice %322 {offsets = [6, 0], sizes = [1, 32], strides = [1, 1]} : vector<12x32xf32> to vector<1x32xf32>
    %327 = vector.extract_strided_slice %322 {offsets = [8, 0], sizes = [1, 32], strides = [1, 1]} : vector<12x32xf32> to vector<1x32xf32>
    %328 = vector.extract_strided_slice %322 {offsets = [10, 0], sizes = [1, 32], strides = [1, 1]} : vector<12x32xf32> to vector<1x32xf32>
    %329 = tpu.concatenate %323, %324, %325, %326, %327, %328 in 0 : vector<1x32xf32>, vector<1x32xf32>, vector<1x32xf32>, vector<1x32xf32>, vector<1x32xf32>, vector<1x32xf32> -> vector<6x32xf32>
    %cst_185 = arith.constant dense<0.000000e+00> : vector<6x32xf32>
    %330 = tpu.matmul %329, %295, %cst_185 {dimension_numbers = #tpu.dot_dimension_numbers<[1], [0], [0], [1], [0, 0, 1, 1], [], []>} : vector<6x32xf32>, vector<32x32xf32>, vector<6x32xf32> -> vector<6x32xf32>
    %331 = vector.broadcast %296 : vector<1x32xf32> to vector<6x32xf32>
    %332 = arith.addf %330, %331 : vector<6x32xf32>
    %cst_186 = arith.constant 0.000000e+00 : f32
    %333 = vector.broadcast %cst_186 : f32 to vector<6x32xf32>
    %334 = arith.maximumf %332, %333 : vector<6x32xf32>
    %335 = vector.extract_strided_slice %334 {offsets = [0, 0], sizes = [5, 32], strides = [1, 1]} : vector<6x32xf32> to vector<5x32xf32>
    %336 = vector.extract_strided_slice %334 {offsets = [1, 0], sizes = [5, 32], strides = [1, 1]} : vector<6x32xf32> to vector<5x32xf32>
    %337 = arith.maximumf %335, %336 : vector<5x32xf32>
    %338 = vector.extract_strided_slice %337 {offsets = [0, 0], sizes = [1, 32], strides = [1, 1]} : vector<5x32xf32> to vector<1x32xf32>
    %339 = vector.extract_strided_slice %337 {offsets = [2, 0], sizes = [1, 32], strides = [1, 1]} : vector<5x32xf32> to vector<1x32xf32>
    %340 = vector.extract_strided_slice %337 {offsets = [4, 0], sizes = [1, 32], strides = [1, 1]} : vector<5x32xf32> to vector<1x32xf32>
    %341 = tpu.concatenate %338, %339, %340 in 0 : vector<1x32xf32>, vector<1x32xf32>, vector<1x32xf32> -> vector<3x32xf32>
    %342 = vector.broadcast %297 : vector<1x32xf32> to vector<3x32xf32>
    %343 = arith.mulf %341, %342 : vector<3x32xf32>
    %cst_187 = arith.constant dense<0.000000e+00> : vector<3xf32>
    %344 = vector.multi_reduction <add>, %343, %cst_187 [1] : vector<3x32xf32> to vector<3xf32>
    %345 = vector.shape_cast %344 : vector<3xf32> to vector<3x1xf32>
    %346 = vector.broadcast %298 : vector<1x1xf32> to vector<3x1xf32>
    %347 = arith.addf %345, %346 : vector<3x1xf32>
    %348 = vector.extract_strided_slice %304 {offsets = [0, 0], sizes = [14, 32], strides = [1, 1]} : vector<16x32xf32> to vector<14x32xf32>
    %cst_188 = arith.constant dense<0.000000e+00> : vector<14x48xf32>
    %349 = tpu.matmul %348, %283, %cst_188 {dimension_numbers = #tpu.dot_dimension_numbers<[1], [0], [0], [1], [0, 0, 1, 1], [], []>} : vector<14x32xf32>, vector<32x48xf32>, vector<14x48xf32> -> vector<14x48xf32>
    %350 = vector.extract_strided_slice %304 {offsets = [1, 0], sizes = [14, 32], strides = [1, 1]} : vector<16x32xf32> to vector<14x32xf32>
    %cst_189 = arith.constant dense<0.000000e+00> : vector<14x48xf32>
    %351 = tpu.matmul %350, %285, %cst_189 {dimension_numbers = #tpu.dot_dimension_numbers<[1], [0], [0], [1], [0, 0, 1, 1], [], []>} : vector<14x32xf32>, vector<32x48xf32>, vector<14x48xf32> -> vector<14x48xf32>
    %352 = arith.addf %349, %351 : vector<14x48xf32>
    %353 = vector.extract_strided_slice %304 {offsets = [2, 0], sizes = [14, 32], strides = [1, 1]} : vector<16x32xf32> to vector<14x32xf32>
    %cst_190 = arith.constant dense<0.000000e+00> : vector<14x48xf32>
    %354 = tpu.matmul %353, %287, %cst_190 {dimension_numbers = #tpu.dot_dimension_numbers<[1], [0], [0], [1], [0, 0, 1, 1], [], []>} : vector<14x32xf32>, vector<32x48xf32>, vector<14x48xf32> -> vector<14x48xf32>
    %355 = arith.addf %352, %354 : vector<14x48xf32>
    %356 = vector.extract_strided_slice %305 {offsets = [0, 0], sizes = [14, 16], strides = [1, 1]} : vector<16x16xf32> to vector<14x16xf32>
    %cst_191 = arith.constant dense<0.000000e+00> : vector<14x48xf32>
    %357 = tpu.matmul %356, %289, %cst_191 {dimension_numbers = #tpu.dot_dimension_numbers<[1], [0], [0], [1], [0, 0, 1, 1], [], []>} : vector<14x16xf32>, vector<16x48xf32>, vector<14x48xf32> -> vector<14x48xf32>
    %358 = arith.addf %355, %357 : vector<14x48xf32>
    %359 = vector.extract_strided_slice %305 {offsets = [1, 0], sizes = [14, 16], strides = [1, 1]} : vector<16x16xf32> to vector<14x16xf32>
    %cst_192 = arith.constant dense<0.000000e+00> : vector<14x48xf32>
    %360 = tpu.matmul %359, %291, %cst_192 {dimension_numbers = #tpu.dot_dimension_numbers<[1], [0], [0], [1], [0, 0, 1, 1], [], []>} : vector<14x16xf32>, vector<16x48xf32>, vector<14x48xf32> -> vector<14x48xf32>
    %361 = arith.addf %358, %360 : vector<14x48xf32>
    %362 = vector.extract_strided_slice %305 {offsets = [2, 0], sizes = [14, 16], strides = [1, 1]} : vector<16x16xf32> to vector<14x16xf32>
    %cst_193 = arith.constant dense<0.000000e+00> : vector<14x48xf32>
    %363 = tpu.matmul %362, %293, %cst_193 {dimension_numbers = #tpu.dot_dimension_numbers<[1], [0], [0], [1], [0, 0, 1, 1], [], []>} : vector<14x16xf32>, vector<16x48xf32>, vector<14x48xf32> -> vector<14x48xf32>
    %364 = arith.addf %361, %363 : vector<14x48xf32>
    %365 = vector.broadcast %299 : vector<1x48xf32> to vector<14x48xf32>
    %366 = arith.addf %364, %365 : vector<14x48xf32>
    %cst_194 = arith.constant 0.000000e+00 : f32
    %367 = vector.broadcast %cst_194 : f32 to vector<14x48xf32>
    %368 = arith.maximumf %366, %367 : vector<14x48xf32>
    %369 = vector.extract_strided_slice %368 {offsets = [0, 0], sizes = [12, 48], strides = [1, 1]} : vector<14x48xf32> to vector<12x48xf32>
    %370 = vector.extract_strided_slice %368 {offsets = [1, 0], sizes = [12, 48], strides = [1, 1]} : vector<14x48xf32> to vector<12x48xf32>
    %371 = arith.maximumf %369, %370 : vector<12x48xf32>
    %372 = vector.extract_strided_slice %368 {offsets = [2, 0], sizes = [12, 48], strides = [1, 1]} : vector<14x48xf32> to vector<12x48xf32>
    %373 = arith.maximumf %371, %372 : vector<12x48xf32>
    %374 = vector.extract_strided_slice %373 {offsets = [0, 0], sizes = [1, 48], strides = [1, 1]} : vector<12x48xf32> to vector<1x48xf32>
    %375 = vector.extract_strided_slice %373 {offsets = [2, 0], sizes = [1, 48], strides = [1, 1]} : vector<12x48xf32> to vector<1x48xf32>
    %376 = vector.extract_strided_slice %373 {offsets = [4, 0], sizes = [1, 48], strides = [1, 1]} : vector<12x48xf32> to vector<1x48xf32>
    %377 = vector.extract_strided_slice %373 {offsets = [6, 0], sizes = [1, 48], strides = [1, 1]} : vector<12x48xf32> to vector<1x48xf32>
    %378 = vector.extract_strided_slice %373 {offsets = [8, 0], sizes = [1, 48], strides = [1, 1]} : vector<12x48xf32> to vector<1x48xf32>
    %379 = vector.extract_strided_slice %373 {offsets = [10, 0], sizes = [1, 48], strides = [1, 1]} : vector<12x48xf32> to vector<1x48xf32>
    %380 = tpu.concatenate %374, %375, %376, %377, %378, %379 in 0 : vector<1x48xf32>, vector<1x48xf32>, vector<1x48xf32>, vector<1x48xf32>, vector<1x48xf32>, vector<1x48xf32> -> vector<6x48xf32>
    %cst_195 = arith.constant dense<0.000000e+00> : vector<6x48xf32>
    %381 = tpu.matmul %380, %300, %cst_195 {dimension_numbers = #tpu.dot_dimension_numbers<[1], [0], [0], [1], [0, 0, 1, 1], [], []>} : vector<6x48xf32>, vector<48x48xf32>, vector<6x48xf32> -> vector<6x48xf32>
    %382 = vector.broadcast %301 : vector<1x48xf32> to vector<6x48xf32>
    %383 = arith.addf %381, %382 : vector<6x48xf32>
    %cst_196 = arith.constant 0.000000e+00 : f32
    %384 = vector.broadcast %cst_196 : f32 to vector<6x48xf32>
    %385 = arith.maximumf %383, %384 : vector<6x48xf32>
    %386 = vector.extract_strided_slice %385 {offsets = [0, 0], sizes = [5, 48], strides = [1, 1]} : vector<6x48xf32> to vector<5x48xf32>
    %387 = vector.extract_strided_slice %385 {offsets = [1, 0], sizes = [5, 48], strides = [1, 1]} : vector<6x48xf32> to vector<5x48xf32>
    %388 = arith.maximumf %386, %387 : vector<5x48xf32>
    %389 = vector.extract_strided_slice %388 {offsets = [0, 0], sizes = [1, 48], strides = [1, 1]} : vector<5x48xf32> to vector<1x48xf32>
    %390 = vector.extract_strided_slice %388 {offsets = [2, 0], sizes = [1, 48], strides = [1, 1]} : vector<5x48xf32> to vector<1x48xf32>
    %391 = vector.extract_strided_slice %388 {offsets = [4, 0], sizes = [1, 48], strides = [1, 1]} : vector<5x48xf32> to vector<1x48xf32>
    %392 = tpu.concatenate %389, %390, %391 in 0 : vector<1x48xf32>, vector<1x48xf32>, vector<1x48xf32> -> vector<3x48xf32>
    %393 = vector.broadcast %302 : vector<1x48xf32> to vector<3x48xf32>
    %394 = arith.mulf %392, %393 : vector<3x48xf32>
    %cst_197 = arith.constant dense<0.000000e+00> : vector<3xf32>
    %395 = vector.multi_reduction <add>, %394, %cst_197 [1] : vector<3x48xf32> to vector<3xf32>
    %396 = vector.shape_cast %395 : vector<3xf32> to vector<3x1xf32>
    %397 = vector.broadcast %303 : vector<1x1xf32> to vector<3x1xf32>
    %398 = arith.addf %396, %397 : vector<3x1xf32>
    %399 = arith.mulf %347, %398 : vector<3x1xf32>
    %cst_198 = arith.constant dense<0.000000e+00> : vector<1xf32>
    %400 = vector.multi_reduction <add>, %399, %cst_198 [0] : vector<3x1xf32> to vector<1xf32>
    %401 = vector.shape_cast %400 : vector<1xf32> to vector<1x1xf32>
    %cst_199 = arith.constant 3.000000e+00 : f32
    %402 = vector.broadcast %cst_199 : f32 to vector<1x1xf32>
    %403 = arith.divf %401, %402 : vector<1x1xf32>
    %404 = vector.extract_strided_slice %275 {offsets = [16, 0], sizes = [16, 32], strides = [1, 1]} : vector<32x32xf32> to vector<16x32xf32>
    %405 = vector.extract_strided_slice %14 {offsets = [16, 0], sizes = [16, 16], strides = [1, 1]} : vector<32x16xf32> to vector<16x16xf32>
    %406 = vector.extract_strided_slice %404 {offsets = [0, 0], sizes = [14, 32], strides = [1, 1]} : vector<16x32xf32> to vector<14x32xf32>
    %cst_200 = arith.constant dense<0.000000e+00> : vector<14x32xf32>
    %407 = tpu.matmul %406, %277, %cst_200 {dimension_numbers = #tpu.dot_dimension_numbers<[1], [0], [0], [1], [0, 0, 1, 1], [], []>} : vector<14x32xf32>, vector<32x32xf32>, vector<14x32xf32> -> vector<14x32xf32>
    %408 = vector.extract_strided_slice %404 {offsets = [1, 0], sizes = [14, 32], strides = [1, 1]} : vector<16x32xf32> to vector<14x32xf32>
    %cst_201 = arith.constant dense<0.000000e+00> : vector<14x32xf32>
    %409 = tpu.matmul %408, %279, %cst_201 {dimension_numbers = #tpu.dot_dimension_numbers<[1], [0], [0], [1], [0, 0, 1, 1], [], []>} : vector<14x32xf32>, vector<32x32xf32>, vector<14x32xf32> -> vector<14x32xf32>
    %410 = arith.addf %407, %409 : vector<14x32xf32>
    %411 = vector.extract_strided_slice %404 {offsets = [2, 0], sizes = [14, 32], strides = [1, 1]} : vector<16x32xf32> to vector<14x32xf32>
    %cst_202 = arith.constant dense<0.000000e+00> : vector<14x32xf32>
    %412 = tpu.matmul %411, %281, %cst_202 {dimension_numbers = #tpu.dot_dimension_numbers<[1], [0], [0], [1], [0, 0, 1, 1], [], []>} : vector<14x32xf32>, vector<32x32xf32>, vector<14x32xf32> -> vector<14x32xf32>
    %413 = arith.addf %410, %412 : vector<14x32xf32>
    %414 = vector.broadcast %294 : vector<1x32xf32> to vector<14x32xf32>
    %415 = arith.addf %413, %414 : vector<14x32xf32>
    %cst_203 = arith.constant 0.000000e+00 : f32
    %416 = vector.broadcast %cst_203 : f32 to vector<14x32xf32>
    %417 = arith.maximumf %415, %416 : vector<14x32xf32>
    %418 = vector.extract_strided_slice %417 {offsets = [0, 0], sizes = [12, 32], strides = [1, 1]} : vector<14x32xf32> to vector<12x32xf32>
    %419 = vector.extract_strided_slice %417 {offsets = [1, 0], sizes = [12, 32], strides = [1, 1]} : vector<14x32xf32> to vector<12x32xf32>
    %420 = arith.maximumf %418, %419 : vector<12x32xf32>
    %421 = vector.extract_strided_slice %417 {offsets = [2, 0], sizes = [12, 32], strides = [1, 1]} : vector<14x32xf32> to vector<12x32xf32>
    %422 = arith.maximumf %420, %421 : vector<12x32xf32>
    %423 = vector.extract_strided_slice %422 {offsets = [0, 0], sizes = [1, 32], strides = [1, 1]} : vector<12x32xf32> to vector<1x32xf32>
    %424 = vector.extract_strided_slice %422 {offsets = [2, 0], sizes = [1, 32], strides = [1, 1]} : vector<12x32xf32> to vector<1x32xf32>
    %425 = vector.extract_strided_slice %422 {offsets = [4, 0], sizes = [1, 32], strides = [1, 1]} : vector<12x32xf32> to vector<1x32xf32>
    %426 = vector.extract_strided_slice %422 {offsets = [6, 0], sizes = [1, 32], strides = [1, 1]} : vector<12x32xf32> to vector<1x32xf32>
    %427 = vector.extract_strided_slice %422 {offsets = [8, 0], sizes = [1, 32], strides = [1, 1]} : vector<12x32xf32> to vector<1x32xf32>
    %428 = vector.extract_strided_slice %422 {offsets = [10, 0], sizes = [1, 32], strides = [1, 1]} : vector<12x32xf32> to vector<1x32xf32>
    %429 = tpu.concatenate %423, %424, %425, %426, %427, %428 in 0 : vector<1x32xf32>, vector<1x32xf32>, vector<1x32xf32>, vector<1x32xf32>, vector<1x32xf32>, vector<1x32xf32> -> vector<6x32xf32>
    %cst_204 = arith.constant dense<0.000000e+00> : vector<6x32xf32>
    %430 = tpu.matmul %429, %295, %cst_204 {dimension_numbers = #tpu.dot_dimension_numbers<[1], [0], [0], [1], [0, 0, 1, 1], [], []>} : vector<6x32xf32>, vector<32x32xf32>, vector<6x32xf32> -> vector<6x32xf32>
    %431 = vector.broadcast %296 : vector<1x32xf32> to vector<6x32xf32>
    %432 = arith.addf %430, %431 : vector<6x32xf32>
    %cst_205 = arith.constant 0.000000e+00 : f32
    %433 = vector.broadcast %cst_205 : f32 to vector<6x32xf32>
    %434 = arith.maximumf %432, %433 : vector<6x32xf32>
    %435 = vector.extract_strided_slice %434 {offsets = [0, 0], sizes = [5, 32], strides = [1, 1]} : vector<6x32xf32> to vector<5x32xf32>
    %436 = vector.extract_strided_slice %434 {offsets = [1, 0], sizes = [5, 32], strides = [1, 1]} : vector<6x32xf32> to vector<5x32xf32>
    %437 = arith.maximumf %435, %436 : vector<5x32xf32>
    %438 = vector.extract_strided_slice %437 {offsets = [0, 0], sizes = [1, 32], strides = [1, 1]} : vector<5x32xf32> to vector<1x32xf32>
    %439 = vector.extract_strided_slice %437 {offsets = [2, 0], sizes = [1, 32], strides = [1, 1]} : vector<5x32xf32> to vector<1x32xf32>
    %440 = vector.extract_strided_slice %437 {offsets = [4, 0], sizes = [1, 32], strides = [1, 1]} : vector<5x32xf32> to vector<1x32xf32>
    %441 = tpu.concatenate %438, %439, %440 in 0 : vector<1x32xf32>, vector<1x32xf32>, vector<1x32xf32> -> vector<3x32xf32>
    %442 = vector.broadcast %297 : vector<1x32xf32> to vector<3x32xf32>
    %443 = arith.mulf %441, %442 : vector<3x32xf32>
    %cst_206 = arith.constant dense<0.000000e+00> : vector<3xf32>
    %444 = vector.multi_reduction <add>, %443, %cst_206 [1] : vector<3x32xf32> to vector<3xf32>
    %445 = vector.shape_cast %444 : vector<3xf32> to vector<3x1xf32>
    %446 = vector.broadcast %298 : vector<1x1xf32> to vector<3x1xf32>
    %447 = arith.addf %445, %446 : vector<3x1xf32>
    %448 = vector.extract_strided_slice %404 {offsets = [0, 0], sizes = [14, 32], strides = [1, 1]} : vector<16x32xf32> to vector<14x32xf32>
    %cst_207 = arith.constant dense<0.000000e+00> : vector<14x48xf32>
    %449 = tpu.matmul %448, %283, %cst_207 {dimension_numbers = #tpu.dot_dimension_numbers<[1], [0], [0], [1], [0, 0, 1, 1], [], []>} : vector<14x32xf32>, vector<32x48xf32>, vector<14x48xf32> -> vector<14x48xf32>
    %450 = vector.extract_strided_slice %404 {offsets = [1, 0], sizes = [14, 32], strides = [1, 1]} : vector<16x32xf32> to vector<14x32xf32>
    %cst_208 = arith.constant dense<0.000000e+00> : vector<14x48xf32>
    %451 = tpu.matmul %450, %285, %cst_208 {dimension_numbers = #tpu.dot_dimension_numbers<[1], [0], [0], [1], [0, 0, 1, 1], [], []>} : vector<14x32xf32>, vector<32x48xf32>, vector<14x48xf32> -> vector<14x48xf32>
    %452 = arith.addf %449, %451 : vector<14x48xf32>
    %453 = vector.extract_strided_slice %404 {offsets = [2, 0], sizes = [14, 32], strides = [1, 1]} : vector<16x32xf32> to vector<14x32xf32>
    %cst_209 = arith.constant dense<0.000000e+00> : vector<14x48xf32>
    %454 = tpu.matmul %453, %287, %cst_209 {dimension_numbers = #tpu.dot_dimension_numbers<[1], [0], [0], [1], [0, 0, 1, 1], [], []>} : vector<14x32xf32>, vector<32x48xf32>, vector<14x48xf32> -> vector<14x48xf32>
    %455 = arith.addf %452, %454 : vector<14x48xf32>
    %456 = vector.extract_strided_slice %405 {offsets = [0, 0], sizes = [14, 16], strides = [1, 1]} : vector<16x16xf32> to vector<14x16xf32>
    %cst_210 = arith.constant dense<0.000000e+00> : vector<14x48xf32>
    %457 = tpu.matmul %456, %289, %cst_210 {dimension_numbers = #tpu.dot_dimension_numbers<[1], [0], [0], [1], [0, 0, 1, 1], [], []>} : vector<14x16xf32>, vector<16x48xf32>, vector<14x48xf32> -> vector<14x48xf32>
    %458 = arith.addf %455, %457 : vector<14x48xf32>
    %459 = vector.extract_strided_slice %405 {offsets = [1, 0], sizes = [14, 16], strides = [1, 1]} : vector<16x16xf32> to vector<14x16xf32>
    %cst_211 = arith.constant dense<0.000000e+00> : vector<14x48xf32>
    %460 = tpu.matmul %459, %291, %cst_211 {dimension_numbers = #tpu.dot_dimension_numbers<[1], [0], [0], [1], [0, 0, 1, 1], [], []>} : vector<14x16xf32>, vector<16x48xf32>, vector<14x48xf32> -> vector<14x48xf32>
    %461 = arith.addf %458, %460 : vector<14x48xf32>
    %462 = vector.extract_strided_slice %405 {offsets = [2, 0], sizes = [14, 16], strides = [1, 1]} : vector<16x16xf32> to vector<14x16xf32>
    %cst_212 = arith.constant dense<0.000000e+00> : vector<14x48xf32>
    %463 = tpu.matmul %462, %293, %cst_212 {dimension_numbers = #tpu.dot_dimension_numbers<[1], [0], [0], [1], [0, 0, 1, 1], [], []>} : vector<14x16xf32>, vector<16x48xf32>, vector<14x48xf32> -> vector<14x48xf32>
    %464 = arith.addf %461, %463 : vector<14x48xf32>
    %465 = vector.broadcast %299 : vector<1x48xf32> to vector<14x48xf32>
    %466 = arith.addf %464, %465 : vector<14x48xf32>
    %cst_213 = arith.constant 0.000000e+00 : f32
    %467 = vector.broadcast %cst_213 : f32 to vector<14x48xf32>
    %468 = arith.maximumf %466, %467 : vector<14x48xf32>
    %469 = vector.extract_strided_slice %468 {offsets = [0, 0], sizes = [12, 48], strides = [1, 1]} : vector<14x48xf32> to vector<12x48xf32>
    %470 = vector.extract_strided_slice %468 {offsets = [1, 0], sizes = [12, 48], strides = [1, 1]} : vector<14x48xf32> to vector<12x48xf32>
    %471 = arith.maximumf %469, %470 : vector<12x48xf32>
    %472 = vector.extract_strided_slice %468 {offsets = [2, 0], sizes = [12, 48], strides = [1, 1]} : vector<14x48xf32> to vector<12x48xf32>
    %473 = arith.maximumf %471, %472 : vector<12x48xf32>
    %474 = vector.extract_strided_slice %473 {offsets = [0, 0], sizes = [1, 48], strides = [1, 1]} : vector<12x48xf32> to vector<1x48xf32>
    %475 = vector.extract_strided_slice %473 {offsets = [2, 0], sizes = [1, 48], strides = [1, 1]} : vector<12x48xf32> to vector<1x48xf32>
    %476 = vector.extract_strided_slice %473 {offsets = [4, 0], sizes = [1, 48], strides = [1, 1]} : vector<12x48xf32> to vector<1x48xf32>
    %477 = vector.extract_strided_slice %473 {offsets = [6, 0], sizes = [1, 48], strides = [1, 1]} : vector<12x48xf32> to vector<1x48xf32>
    %478 = vector.extract_strided_slice %473 {offsets = [8, 0], sizes = [1, 48], strides = [1, 1]} : vector<12x48xf32> to vector<1x48xf32>
    %479 = vector.extract_strided_slice %473 {offsets = [10, 0], sizes = [1, 48], strides = [1, 1]} : vector<12x48xf32> to vector<1x48xf32>
    %480 = tpu.concatenate %474, %475, %476, %477, %478, %479 in 0 : vector<1x48xf32>, vector<1x48xf32>, vector<1x48xf32>, vector<1x48xf32>, vector<1x48xf32>, vector<1x48xf32> -> vector<6x48xf32>
    %cst_214 = arith.constant dense<0.000000e+00> : vector<6x48xf32>
    %481 = tpu.matmul %480, %300, %cst_214 {dimension_numbers = #tpu.dot_dimension_numbers<[1], [0], [0], [1], [0, 0, 1, 1], [], []>} : vector<6x48xf32>, vector<48x48xf32>, vector<6x48xf32> -> vector<6x48xf32>
    %482 = vector.broadcast %301 : vector<1x48xf32> to vector<6x48xf32>
    %483 = arith.addf %481, %482 : vector<6x48xf32>
    %cst_215 = arith.constant 0.000000e+00 : f32
    %484 = vector.broadcast %cst_215 : f32 to vector<6x48xf32>
    %485 = arith.maximumf %483, %484 : vector<6x48xf32>
    %486 = vector.extract_strided_slice %485 {offsets = [0, 0], sizes = [5, 48], strides = [1, 1]} : vector<6x48xf32> to vector<5x48xf32>
    %487 = vector.extract_strided_slice %485 {offsets = [1, 0], sizes = [5, 48], strides = [1, 1]} : vector<6x48xf32> to vector<5x48xf32>
    %488 = arith.maximumf %486, %487 : vector<5x48xf32>
    %489 = vector.extract_strided_slice %488 {offsets = [0, 0], sizes = [1, 48], strides = [1, 1]} : vector<5x48xf32> to vector<1x48xf32>
    %490 = vector.extract_strided_slice %488 {offsets = [2, 0], sizes = [1, 48], strides = [1, 1]} : vector<5x48xf32> to vector<1x48xf32>
    %491 = vector.extract_strided_slice %488 {offsets = [4, 0], sizes = [1, 48], strides = [1, 1]} : vector<5x48xf32> to vector<1x48xf32>
    %492 = tpu.concatenate %489, %490, %491 in 0 : vector<1x48xf32>, vector<1x48xf32>, vector<1x48xf32> -> vector<3x48xf32>
    %493 = vector.broadcast %302 : vector<1x48xf32> to vector<3x48xf32>
    %494 = arith.mulf %492, %493 : vector<3x48xf32>
    %cst_216 = arith.constant dense<0.000000e+00> : vector<3xf32>
    %495 = vector.multi_reduction <add>, %494, %cst_216 [1] : vector<3x48xf32> to vector<3xf32>
    %496 = vector.shape_cast %495 : vector<3xf32> to vector<3x1xf32>
    %497 = vector.broadcast %303 : vector<1x1xf32> to vector<3x1xf32>
    %498 = arith.addf %496, %497 : vector<3x1xf32>
    %499 = arith.mulf %447, %498 : vector<3x1xf32>
    %cst_217 = arith.constant dense<0.000000e+00> : vector<1xf32>
    %500 = vector.multi_reduction <add>, %499, %cst_217 [0] : vector<3x1xf32> to vector<1xf32>
    %501 = vector.shape_cast %500 : vector<1xf32> to vector<1x1xf32>
    %cst_218 = arith.constant 3.000000e+00 : f32
    %502 = vector.broadcast %cst_218 : f32 to vector<1x1xf32>
    %503 = arith.divf %501, %502 : vector<1x1xf32>
    %504 = tpu.concatenate %403, %503 in 0 : vector<1x1xf32>, vector<1x1xf32> -> vector<2x1xf32>
    %505 = arith.negf %504 : vector<2x1xf32>
    %506 = math.exp %505 : vector<2x1xf32>
    %cst_219 = arith.constant 1.000000e+00 : f32
    %507 = vector.broadcast %cst_219 : f32 to vector<2x1xf32>
    %508 = arith.addf %507, %506 : vector<2x1xf32>
    %509 = arith.divf %507, %508 : vector<2x1xf32>
    %c0_220 = arith.constant 0 : index
    %c0_221 = arith.constant 0 : index
    %510 = vector.load %arg35[%c0_220, %c0_221] : memref<2x1xf32, #tpu.memory_space<vmem>>, vector<2x1xf32>
    tpu.vector_store %arg35[%c0_220, %c0_221], %509 {strides = array<i32>} : memref<2x1xf32, #tpu.memory_space<vmem>>, vector<2x1xf32>,
    return
  }
}

</mosaic_0001>

<bundles_post_ra>
// kernel: net_forward.1
= control target key start
LH: loop header
LB: loop body
LE: loop exit
PB: predicated region body
PF: predicated region fallthrough
CT: control target
= control target key end

     0   :  { %s6696_s6 = smov 1   ;;  %s6697_s10 = smov 2   ;;  %s9886_s0 = inlined_call_operand.smem [shape: u32[36], index: -1, kind: input, shape index: {}] }
   0x1   :  { %s6764_s5 = sld [smem:[%s9886_s0]]   ;;  %s6698_s14 = smov 3  }
   0x2   :  { %s6769_s9 = sld [smem:[%s9886_s0 + %s6696_s6]]   ;;  %s6699_s18 = smov 4  }
   0x3   :  { %s6774_s13 = sld [smem:[%s9886_s0 + %s6697_s10]]   ;;  %s6700_s22 = smov 5  }
   0x4   :  { %s6779_s17 = sld [smem:[%s9886_s0 + %s6698_s14]]   ;;  %s6701_s26 = smov 6  }
   0x5   :  { %s6784_s21 = sld [smem:[%s9886_s0 + %s6699_s18]]   ;;  %s6702_s30 = smov 7  }
   0x6   :  { %s6789_s25 = sld [smem:[%s9886_s0 + %s6700_s22]]   ;;  %s6703_s4 = smov 8  }
   0x7   :  { %10003 = sst [smem:[#allocation50_spill]] %s6764_s5  ;;  %s6704_s10 = smov 9  }
   0x8   :  { %10004 = sst [smem:[#allocation51_spill]] %s6769_s9  ;;  %s6705_s15 = smov 10  }
   0x9   :  { %s6794_s29 = sld [smem:[%s9886_s0 + %s6701_s26]]   ;;  %s6706_s20 = smov 11  }
   0xa   :  { %s6799_s3 = sld [smem:[%s9886_s0 + %s6702_s30]]   ;;  %s6707_s26 = smov 12  }
   0xb   :  { %10005 = sst [smem:[#allocation52_spill]] %s6784_s21  ;;  %s6708_s1 = smov 13  }
   0xc   :  { %10006 = sst [smem:[#allocation53_spill]] %s6789_s25  ;;  %s6709_s7 = smov 14  }
   0xd   :  { %s6804_s8 = sld [smem:[%s9886_s0 + %s6703_s4]]   ;;  %s6711_s22 = smov 16  }
   0xe   :  { %s6809_s14 = sld [smem:[%s9886_s0 + %s6704_s10]]   ;;  %s6712_s28 = smov 17  }
   0xf   :  { %10007 = sst [smem:[#allocation54_spill]] %s6794_s29  ;;  %s6723_s23 = smov 28  }
  0x10   :  { %10008 = sst [smem:[#allocation55_spill]] %s6799_s3  ;;  %s6725_s10 = smov 30  }
  0x11   :  { %s6814_s19 = sld [smem:[%s9886_s0 + %s6705_s15]]   ;;  %s6710_s15 = smov 15  }
  0x12   :  { %s6819_s24 = sld [smem:[%s9886_s0 + %s6706_s20]]   ;;  %s6726_s16 = smov 31  }
  0x13   :  { %s6824_s30 = sld [smem:[%s9886_s0 + %s6707_s26]]  }
  0x14   :  { %s6829_s6 = sld [smem:[%s9886_s0 + %s6708_s1]]   ;;  %s6724_s1 = smov 29  }
  0x15   :  { %s6834_s12 = sld [smem:[%s9886_s0 + %s6709_s7]]   ;;  %s6713_s7 = smov 18  }
  0x16   :  { %s6839_s20 = sld [smem:[%s9886_s0 + %s6710_s15]]   ;;  %s6714_s15 = smov 19  }
  0x17   :  { %s6844_s27 = sld [smem:[%s9886_s0 + %s6711_s22]]   ;;  %s6715_s22 = smov 20  }
  0x18   :  { %s6849_s4 = sld [smem:[%s9886_s0 + %s6712_s28]]   ;;  %s6716_s28 = smov 21  }
  0x19   :  { %10009 = sst [smem:[#allocation56_spill]] %s6824_s30 }
  0x1a   :  { %s6854_s3 = sld [smem:[%s9886_s0 + %s6713_s7]]   ;;  %s6717_s7 = smov 22  }
  0x1b   :  { %s6859_s30 = sld [smem:[%s9886_s0 + %s6714_s15]]   ;;  %s6718_s15 = smov 23  }
  0x1c   :  { %10010 = sst [smem:[#allocation57_spill]] %s6839_s20 }
  0x1d   :  { %s6864_s29 = sld [smem:[%s9886_s0 + %s6715_s22]]   ;;  %s6719_s22 = smov 24  }
  0x1e   :  { %10011 = sst [smem:[#allocation58_spill]] %s6849_s4 }
  0x1f   :  { %s6869_s9 = sld [smem:[%s9886_s0 + %s6716_s28]]   ;;  %s6720_s28 = smov 25  }
  0x20   :  { %s6874_s25 = sld [smem:[%s9886_s0 + %s6717_s7]]   ;;  %s6721_s7 = smov 26  }
  0x21   :  { %10012 = sst [smem:[#allocation59_spill]] %s6859_s30 }
  0x22   :  { %s6879_s5 = sld [smem:[%s9886_s0 + %s6718_s15]]   ;;  %s6722_s15 = smov 27  }
  0x23   :  { %s6884_s21 = sld [smem:[%s9886_s0 + %s6719_s22]]  }
  0x24   :  { %s5310_s30 = sld [smem:[%s9886_s0 + %s6722_s15]]  }
  0x25   :  { %10013 = sst [smem:[#allocation60_spill]] %s6869_s9 }
  0x26   :  { %10014 = sst [smem:[#allocation61_spill]] %s6874_s25 }
  0x27   :  { %s6889_s9 = sld [smem:[%s9886_s0 + %s6720_s28]]  }
  0x28   :  { %s6894_s25 = sld [smem:[%s9886_s0 + %s6721_s7]]  }
  0x29   :  { %10015 = sst [smem:[#allocation62_spill]] %s6884_s21 }
  0x2a   :  { %s6902_s21 = sld [smem:[%s9886_s0 + %s6723_s23]]   ;;  %s6727_s23 = smov 32   ;;  %v76_v0 = vstv %s5310_s30 }
  0x2b   :  { %s6907_s4 = sld [smem:[%s9886_s0 + %s6724_s1]]   ;;  %s6728_s1 = smov 33   ;;  %77 = vst [vmem:[#allocation2] sm:$0x1] %v76_v0 }
  0x2c   :  { %s6917_s20 = sld [smem:[%s9886_s0 + %s6726_s16]]   ;;  %s6730_s16 = smov 34  }
  0x2e   :  { %10016 = sst [smem:[#allocation63_spill]] %s6894_s25 }
  0x2f   :  { %s6912_s25 = sld [smem:[%s9886_s0 + %s6725_s10]]   ;;  %s6729_s10 = smov 35  }
  0x30   :  { %10017 = sst [smem:[#allocation64_spill]] %s6902_s21 }
  0x31   :  { %10018 = sst [smem:[#allocation65_spill]] %s6907_s4 }
  0x32   :  { %10019 = sst [smem:[#allocation66_spill]] %s6917_s20 }
  0x33   :  { %s6922_s21 = sld [smem:[%s9886_s0 + %s6727_s23]]  }
  0x34   :  { %s6927_s4 = sld [smem:[%s9886_s0 + %s6728_s1]]  }
  0x35   :  { %s6932_s15 = sld [smem:[%s9886_s0 + %s6729_s10]]  }
  0x36   :  { %s5317_s23 = sld [smem:[%s9886_s0 + %s6730_s16]]  }
  0x3c   :  { %v78_v1 = vstv %s5317_s23 }
  0x3d   :  { %79 = vst [vmem:[#allocation3] sm:$0x1] %v78_v1 }
  0x3e   :  { %80 = vsyncpa [#allocation5], 0 }
  0x3f   :  { %81 = vsyncpa [#allocation7], 0 }
  0x40   :  { %82 = vsyncpa [#allocation10], 0 }
  0x41   :  { %83 = vsyncpa [#allocation13], 0 }
  0x42   :  { %84 = vsyncpa [#allocation16], 0 }
  0x43   :  { %85 = vsyncpa [#allocation19], 0 }
  0x44   :  { %86 = vsyncpa [#allocation22], 0 }
  0x45   :  { %87 = vsyncpa [#allocation25], 0 }
  0x46   :  { %88 = vsyncpa [#allocation28], 0 }
  0x47   :  { %89 = vsyncpa [#allocation31], 0 }
  0x48   :  { %90 = vsyncpa [#allocation34], 0 }
  0x49   :  { %91 = vsyncpa [#allocation37], 0  ;;  %s113_s30 = sshll.u32 %s6779_s17, 4  ;;  %s6731_s0 = smov [#allocation6]   ;;  %s114_s30 = int_to_ptr.hbm [resolvable:$true] %s113_s30 }
  0x4a   :  { %s115_s20 = sshll.u32 %s6731_s0, 4  ;;  %s147_s22 = sshll.u32 %s6809_s14, 4  ;;  %s116_s20 = int_to_ptr.vmem [resolvable:$true] %s115_s20  ;;  %s148_s22 = int_to_ptr.hbm [resolvable:$true] %s147_s22 }
  0x4b   :  { %s6144_s26 = sshra.s32 %s114_s30, 4  ;;  %s6148_s28 = scalar_lea.hbm %s6779_s17, 32  ;;  %s6145_s26 = int_to_ptr.hbm [resolvable:$true] %s6144_s26 }
  0x4c   :  { %s6146_s1 = scalar_lea.hbm %s6145_s26, 32  ;;  %p6149_p1 = scmp.lt.s32.totalorder %s6145_s26, %s6779_s17 }
  0x4d   :  { %p6147_p0 = scmp.ne.s32.totalorder %s6145_s26, %s6146_s1  ;;  %p6150_p2 = scmp.lt.s32.totalorder %s6148_s28, %s6146_s1 }
  0x4f   :  { %p6151_p3 = por %p6150_p2, %p6149_p1 }
  0x51   :  { %p6152_p4 = pnand %p6151_p3, %p6147_p0 }
  0x53   :  { %6155 = shalt.err (!%p6152_p4)
}
  0x54   :  { %s6732_s2 = smov 128   ;;  %s6733_s10 = smov 8  }
  0x55   :  { %121 = dma.hbm_to_vmem [thread:$0]  %s114_s30, 512, %s116_s20, [#allocation7], %s6732_s2, %s6732_s2, %s6733_s10  }
  0x56   :  { %s6734_s7 = smov [#allocation9]   ;;  %s174_s16 = sshll.u32 %s6819_s24, 4  ;;  %s175_s16 = int_to_ptr.hbm [resolvable:$true] %s174_s16 }
  0x57   :  { %s149_s11 = sshll.u32 %s6734_s7, 4  ;;  %s6168_s17 = sshra.s32 %s148_s22, 4  ;;  %s150_s11 = int_to_ptr.vmem [resolvable:$true] %s149_s11  ;;  %s6169_s17 = int_to_ptr.hbm [resolvable:$true] %s6168_s17 }
  0x58   :  { %s6170_s18 = scalar_lea.hbm %s6169_s17, 32  ;;  %s6172_s23 = scalar_lea.hbm %s6809_s14, 32 }
  0x59   :  { %p6171_p5 = scmp.ne.s32.totalorder %s6169_s17, %s6170_s18  ;;  %p6173_p6 = scmp.lt.s32.totalorder %s6169_s17, %s6809_s14 }
  0x5a   :  { %p6174_p7 = scmp.lt.s32.totalorder %s6172_s23, %s6170_s18 }
  0x5c   :  { %p6175_p8 = por %p6174_p7, %p6173_p6 }
  0x5e   :  { %p6176_p9 = pnand %p6175_p8, %p6171_p5 }
  0x60   :  { %6179 = shalt.err (!%p6176_p9)
}
  0x61   :  { %155 = dma.hbm_to_vmem [thread:$0]  %s148_s22, 512, %s150_s11, [#allocation10], %s6732_s2, %s6732_s2, %s6733_s10  }
  0x62   :  { %s199_s30 = sshll.u32 %s6834_s12, 4  ;;  %s6735_s0 = smov [#allocation12]   ;;  %s6951_s30 = int_to_ptr.hbm [resolvable:$true] %s199_s30 }
  0x63   :  { %s176_s20 = sshll.u32 %s6735_s0, 4  ;;  %s6192_s26 = sshra.s32 %s175_s16, 4  ;;  %s177_s20 = int_to_ptr.vmem [resolvable:$true] %s176_s20  ;;  %s6193_s26 = int_to_ptr.hbm [resolvable:$true] %s6192_s26 }
  0x64   :  { %s6194_s14 = scalar_lea.hbm %s6193_s26, 1  ;;  %s6196_s1 = scalar_lea.hbm %s6819_s24, 1 }
  0x65   :  { %p6195_p10 = scmp.ne.s32.totalorder %s6193_s26, %s6194_s14  ;;  %p6197_p11 = scmp.lt.s32.totalorder %s6193_s26, %s6819_s24 }
  0x66   :  { %p6198_p12 = scmp.lt.s32.totalorder %s6196_s1, %s6194_s14 }
  0x68   :  { %p6199_p13 = por %p6198_p12, %p6197_p11 }
  0x6a   :  { %p6200_p0 = pnand %p6199_p13, %p6195_p10 }
  0x6c   :  { %6203 = shalt.err (!%p6200_p0)
}
  0x6d   :  { %179 = dma.hbm_to_vmem [thread:$0]  %s175_s16, 16, %s177_s20, [#allocation13]  }
  0x6e   :  { %s6736_s22 = smov [#allocation15]   ;;  %s225_s7 = sshll.u32 %s6844_s27, 4  ;;  %s6956_s7 = int_to_ptr.hbm [resolvable:$true] %s225_s7 }
  0x6f   :  { %s201_s28 = sshll.u32 %s6736_s22, 4  ;;  %s6216_s11 = sshra.s32 %s6951_s30, 4  ;;  %s202_s28 = int_to_ptr.vmem [resolvable:$true] %s201_s28  ;;  %s6217_s11 = int_to_ptr.hbm [resolvable:$true] %s6216_s11 }
  0x70   :  { %s6218_s17 = scalar_lea.hbm %s6217_s11, 32  ;;  %s6220_s24 = scalar_lea.hbm %s6834_s12, 32 }
  0x71   :  { %p6219_p1 = scmp.ne.s32.totalorder %s6217_s11, %s6218_s17  ;;  %p6221_p2 = scmp.lt.s32.totalorder %s6217_s11, %s6834_s12 }
  0x72   :  { %p6222_p3 = scmp.lt.s32.totalorder %s6220_s24, %s6218_s17 }
  0x74   :  { %p6223_p4 = por %p6222_p3, %p6221_p2 }
  0x76   :  { %p6224_p5 = pnand %p6223_p4, %p6219_p1 }
  0x78   :  { %6227 = shalt.err (!%p6224_p5)
}
  0x79   :  { %207 = dma.hbm_to_vmem [thread:$0]  %s6951_s30, 512, %s202_s28, [#allocation16], %s6732_s2, %s6732_s2, %s6733_s10  }
  0x7a   :  { %s252_s16 = sshll.u32 %s6854_s3, 4  ;;  %s6737_s18 = smov [#allocation18]   ;;  %s253_s16 = int_to_ptr.hbm [resolvable:$true] %s252_s16 }
  0x7b   :  { %s227_s23 = sshll.u32 %s6737_s18, 4  ;;  %s6240_s0 = sshra.s32 %s6956_s7, 4  ;;  %s228_s23 = int_to_ptr.vmem [resolvable:$true] %s227_s23  ;;  %s6241_s0 = int_to_ptr.hbm [resolvable:$true] %s6240_s0 }
  0x7c   :  { %s6242_s12 = scalar_lea.hbm %s6241_s0, 32  ;;  %s6244_s20 = scalar_lea.hbm %s6844_s27, 32 }
  0x7d   :  { %p6243_p6 = scmp.ne.s32.totalorder %s6241_s0, %s6242_s12  ;;  %p6245_p7 = scmp.lt.s32.totalorder %s6241_s0, %s6844_s27 }
  0x7e   :  { %p6246_p8 = scmp.lt.s32.totalorder %s6244_s20, %s6242_s12 }
  0x80   :  { %p6247_p9 = por %p6246_p8, %p6245_p7 }
  0x82   :  { %p6248_p10 = pnand %p6247_p9, %p6243_p6 }
  0x84   :  { %6251 = shalt.err (!%p6248_p10)
}
  0x85   :  { %233 = dma.hbm_to_vmem [thread:$0]  %s6956_s7, 512, %s228_s23, [#allocation19], %s6732_s2, %s6732_s2, %s6733_s10  }
  0x86   :  { %s6738_s30 = smov [#allocation21]   ;;  %s274_s14 = sshll.u32 %s6864_s29, 4  ;;  %s275_s14 = int_to_ptr.hbm [resolvable:$true] %s274_s14 }
  0x87   :  { %s254_s26 = sshll.u32 %s6738_s30, 4  ;;  %s6264_s1 = sshra.s32 %s253_s16, 4  ;;  %s255_s26 = int_to_ptr.vmem [resolvable:$true] %s254_s26  ;;  %s6265_s1 = int_to_ptr.hbm [resolvable:$true] %s6264_s1 }
  0x88   :  { %s6266_s27 = scalar_lea.hbm %s6265_s1, 1  ;;  %s6268_s22 = scalar_lea.hbm %s6854_s3, 1 }
  0x89   :  { %p6267_p11 = scmp.ne.s32.totalorder %s6265_s1, %s6266_s27  ;;  %p6269_p12 = scmp.lt.s32.totalorder %s6265_s1, %s6854_s3 }
  0x8a   :  { %p6270_p13 = scmp.lt.s32.totalorder %s6268_s22, %s6266_s27 }
  0x8c   :  { %p6271_p0 = por %p6270_p13, %p6269_p12 }
  0x8e   :  { %p6272_p1 = pnand %p6271_p0, %p6267_p11 }
  0x90   :  { %6275 = shalt.err (!%p6272_p1)
}
  0x91   :  { %257 = dma.hbm_to_vmem [thread:$0]  %s253_s16, 16, %s255_s26, [#allocation22]  }
  0x92   :  { %s298_s28 = sshll.u32 %s6879_s5, 4  ;;  %s6739_s7 = smov [#allocation24]   ;;  %s299_s28 = int_to_ptr.hbm [resolvable:$true] %s298_s28 }
  0x93   :  { %s276_s11 = sshll.u32 %s6739_s7, 4  ;;  %s6288_s17 = sshra.s32 %s275_s14, 4  ;;  %s277_s11 = int_to_ptr.vmem [resolvable:$true] %s276_s11  ;;  %s6289_s17 = int_to_ptr.hbm [resolvable:$true] %s6288_s17 }
  0x94   :  { %s6290_s24 = scalar_lea.hbm %s6289_s17, 1  ;;  %s6292_s18 = scalar_lea.hbm %s6864_s29, 1 }
  0x95   :  { %p6291_p2 = scmp.ne.s32.totalorder %s6289_s17, %s6290_s24  ;;  %p6293_p3 = scmp.lt.s32.totalorder %s6289_s17, %s6864_s29 }
  0x96   :  { %p6294_p4 = scmp.lt.s32.totalorder %s6292_s18, %s6290_s24 }
  0x98   :  { %p6295_p5 = por %p6294_p4, %p6293_p3 }
  0x9a   :  { %p6296_p6 = pnand %p6295_p5, %p6291_p2 }
  0x9c   :  { %6299 = shalt.err (!%p6296_p6)
}
  0x9d   :  { %279 = dma.hbm_to_vmem [thread:$0]  %s275_s14, 16, %s277_s11, [#allocation25]  }
  0x9e   :  { %s6740_s3 = smov [#allocation27]   ;;  %s322_s23 = sshll.u32 %s6889_s9, 4  ;;  %s323_s23 = int_to_ptr.hbm [resolvable:$true] %s322_s23 }
  0x9f   :  { %s300_s16 = sshll.u32 %s6740_s3, 4  ;;  %s6312_s0 = sshra.s32 %s299_s28, 4  ;;  %s301_s16 = int_to_ptr.vmem [resolvable:$true] %s300_s16  ;;  %s6313_s0 = int_to_ptr.hbm [resolvable:$true] %s6312_s0 }
  0xa0   :  { %s6314_s12 = scalar_lea.hbm %s6313_s0, 1  ;;  %s6316_s20 = scalar_lea.hbm %s6879_s5, 1 }
  0xa1   :  { %p6315_p7 = scmp.ne.s32.totalorder %s6313_s0, %s6314_s12  ;;  %p6317_p8 = scmp.lt.s32.totalorder %s6313_s0, %s6879_s5 }
  0xa2   :  { %p6318_p9 = scmp.lt.s32.totalorder %s6316_s20, %s6314_s12 }
  0xa4   :  { %p6319_p10 = por %p6318_p9, %p6317_p8 }
  0xa6   :  { %p6320_p11 = pnand %p6319_p10, %p6315_p7 }
  0xa8   :  { %6323 = shalt.err (!%p6320_p11)
}
  0xa9   :  { %303 = dma.hbm_to_vmem [thread:$0]  %s299_s28, 16, %s301_s16, [#allocation28]  }
  0xaa   :  { %s350_s29 = sshll.u32 %s6912_s25, 4  ;;  %s6741_s30 = smov [#allocation30]   ;;  %s351_s29 = int_to_ptr.hbm [resolvable:$true] %s350_s29 }
  0xab   :  { %s324_s26 = sshll.u32 %s6741_s30, 4  ;;  %s6336_s14 = sshra.s32 %s323_s23, 4  ;;  %s325_s26 = int_to_ptr.vmem [resolvable:$true] %s324_s26  ;;  %s6337_s14 = int_to_ptr.hbm [resolvable:$true] %s6336_s14 }
  0xac   :  { %s6338_s1 = scalar_lea.hbm %s6337_s14, 1  ;;  %s6340_s27 = scalar_lea.hbm %s6889_s9, 1 }
  0xad   :  { %p6339_p12 = scmp.ne.s32.totalorder %s6337_s14, %s6338_s1  ;;  %p6341_p13 = scmp.lt.s32.totalorder %s6337_s14, %s6889_s9 }
  0xae   :  { %p6342_p0 = scmp.lt.s32.totalorder %s6340_s27, %s6338_s1 }
  0xb0   :  { %p6343_p1 = por %p6342_p0, %p6341_p13 }
  0xb2   :  { %p6344_p2 = pnand %p6343_p1, %p6339_p12 }
  0xb4   :  { %6347 = shalt.err (!%p6344_p2)
}
  0xb5   :  { %327 = dma.hbm_to_vmem [thread:$0]  %s323_s23, 16, %s325_s26, [#allocation31]  }
  0xb6   :  { %s6742_s5 = smov [#allocation33]   ;;  %s100_s28 = sshll.u32 %s6774_s13, 4  ;;  %s6986_s28 = int_to_ptr.hbm [resolvable:$true] %s100_s28 }
  0xb7   :  { %s352_s22 = sshll.u32 %s6742_s5, 4  ;;  %s6360_s7 = sshra.s32 %s351_s29, 4  ;;  %s353_s22 = int_to_ptr.vmem [resolvable:$true] %s352_s22  ;;  %s6361_s7 = int_to_ptr.hbm [resolvable:$true] %s6360_s7 }
  0xb8   :  { %s6362_s11 = scalar_lea.hbm %s6361_s7, 1  ;;  %s6364_s17 = scalar_lea.hbm %s6912_s25, 1 }
  0xb9   :  { %p6363_p3 = scmp.ne.s32.totalorder %s6361_s7, %s6362_s11  ;;  %p6365_p4 = scmp.lt.s32.totalorder %s6361_s7, %s6912_s25 }
  0xba   :  { %p6366_p5 = scmp.lt.s32.totalorder %s6364_s17, %s6362_s11 }
  0xbc   :  { %p6367_p6 = por %p6366_p5, %p6365_p4 }
  0xbe   :  { %p6368_p7 = pnand %p6367_p6, %p6363_p3 }
  0xc0   :  { %6371 = shalt.err (!%p6368_p7)
}
  0xc1   :  { %355 = dma.hbm_to_vmem [thread:$0]  %s351_s29, 16, %s353_s22, [#allocation34]  }
  0xc2   :  { %s134_s9 = sshll.u32 %s6804_s8, 4  ;;  %s6743_s24 = smov [#allocation4]   ;;  %s6991_s9 = int_to_ptr.hbm [resolvable:$true] %s134_s9 }
  0xc3   :  { %s102_s18 = sshll.u32 %s6743_s24, 4  ;;  %s6384_s3 = sshra.s32 %s6986_s28, 4  ;;  %s103_s18 = int_to_ptr.vmem [resolvable:$true] %s102_s18  ;;  %s6385_s3 = int_to_ptr.hbm [resolvable:$true] %s6384_s3 }
  0xc4   :  { %s6386_s16 = scalar_lea.hbm %s6385_s3, 32  ;;  %s6388_s25 = scalar_lea.hbm %s6774_s13, 32 }
  0xc5   :  { %p6387_p8 = scmp.ne.s32.totalorder %s6385_s3, %s6386_s16  ;;  %p6389_p9 = scmp.lt.s32.totalorder %s6385_s3, %s6774_s13 }
  0xc6   :  { %p6390_p10 = scmp.lt.s32.totalorder %s6388_s25, %s6386_s16 }
  0xc8   :  { %p6391_p11 = por %p6390_p10, %p6389_p9 }
  0xca   :  { %p6392_p12 = pnand %p6391_p11, %p6387_p8 }
  0xcc   :  { %6395 = shalt.err (!%p6392_p12)
}
  0xcd   :  { %108 = dma.hbm_to_vmem [thread:$0]  %s6986_s28, 512, %s103_s18, [#allocation5], %s6732_s2, %s6732_s2, %s6733_s10  }
  0xce   :  { %s6744_s23 = smov [#allocation8]   ;;  %s160_s12 = sshll.u32 %s6814_s19, 4  ;;  %s7001_s12 = int_to_ptr.hbm [resolvable:$true] %s160_s12 }
  0xcf   :  { %s136_s0 = sshll.u32 %s6744_s23, 4  ;;  %s6408_s13 = sshra.s32 %s6991_s9, 4  ;;  %s137_s0 = int_to_ptr.vmem [resolvable:$true] %s136_s0  ;;  %s6409_s13 = int_to_ptr.hbm [resolvable:$true] %s6408_s13 }
  0xd0   :  { %s6410_s20 = scalar_lea.hbm %s6409_s13, 32  ;;  %s6412_s29 = scalar_lea.hbm %s6804_s8, 32 }
  0xd1   :  { %p6411_p13 = scmp.ne.s32.totalorder %s6409_s13, %s6410_s20  ;;  %p6413_p0 = scmp.lt.s32.totalorder %s6409_s13, %s6804_s8 }
  0xd2   :  { %p6414_p1 = scmp.lt.s32.totalorder %s6412_s29, %s6410_s20 }
  0xd4   :  { %p6415_p2 = por %p6414_p1, %p6413_p0 }
  0xd6   :  { %p6416_p3 = pnand %p6415_p2, %p6411_p13 }
  0xd8   :  { %6419 = shalt.err (!%p6416_p3)
}
  0xd9   :  { %142 = dma.hbm_to_vmem [thread:$0]  %s6991_s9, 512, %s137_s0, [#allocation7], %s6732_s2, %s6732_s2, %s6733_s10  }
  0xda   :  { %s186_s30 = sshll.u32 %s6829_s6, 4  ;;  %s6745_s26 = smov [#allocation11]   ;;  %s7011_s30 = int_to_ptr.hbm [resolvable:$true] %s186_s30 }
  0xdb   :  { %s162_s14 = sshll.u32 %s6745_s26, 4  ;;  %s6432_s8 = sshra.s32 %s7001_s12, 4  ;;  %s163_s14 = int_to_ptr.vmem [resolvable:$true] %s162_s14  ;;  %s6433_s8 = int_to_ptr.hbm [resolvable:$true] %s6432_s8 }
  0xdc   :  { %s6434_s1 = scalar_lea.hbm %s6433_s8, 32  ;;  %s6436_s27 = scalar_lea.hbm %s6814_s19, 32 }
  0xdd   :  { %p6435_p4 = scmp.ne.s32.totalorder %s6433_s8, %s6434_s1  ;;  %p6437_p5 = scmp.lt.s32.totalorder %s6433_s8, %s6814_s19 }
  0xde   :  { %p6438_p6 = scmp.lt.s32.totalorder %s6436_s27, %s6434_s1 }
  0xe0   :  { %p6439_p7 = por %p6438_p6, %p6437_p5 }
  0xe2   :  { %p6440_p8 = pnand %p6439_p7, %p6435_p4 }
  0xe4   :  { %6443 = shalt.err (!%p6440_p8)
}
  0xe5   :  { %s10020_s5 = sld [smem:[#allocation57_spill]]  ;;  %s6746_s22 = smov [#allocation14]  }
  0xe6   :  { %168 = dma.hbm_to_vmem [thread:$0]  %s7001_s12, 512, %s163_s14, [#allocation10], %s6732_s2, %s6732_s2, %s6733_s10  }
  0xe7   :  { %s188_s28 = sshll.u32 %s6746_s22, 4  ;;  %s6456_s19 = sshra.s32 %s7011_s30, 4  ;;  %s189_s28 = int_to_ptr.vmem [resolvable:$true] %s188_s28  ;;  %s6457_s19 = int_to_ptr.hbm [resolvable:$true] %s6456_s19 }
  0xe8   :  { %s6458_s11 = scalar_lea.hbm %s6457_s19, 32  ;;  %s6460_s17 = scalar_lea.hbm %s6829_s6, 32 }
  0xe9   :  { %p6459_p9 = scmp.ne.s32.totalorder %s6457_s19, %s6458_s11  ;;  %p6461_p10 = scmp.lt.s32.totalorder %s6457_s19, %s6829_s6 }
  0xea   :  { %p6462_p11 = scmp.lt.s32.totalorder %s6460_s17, %s6458_s11 }
  0xeb   :  { %s212_s7 = sshll.u32 %s10020_s5, 4  ;;  %s7021_s7 = int_to_ptr.hbm [resolvable:$true] %s212_s7 }
  0xec   :  { %p6463_p12 = por %p6462_p11, %p6461_p10 }
  0xee   :  { %p6464_p13 = pnand %p6463_p12, %p6459_p9 }
  0xf0   :  { %6467 = shalt.err (!%p6464_p13)
}
  0xf1   :  { %s10021_s9 = sld [smem:[#allocation58_spill]]  ;;  %s6747_s18 = smov [#allocation17]  }
  0xf2   :  { %194 = dma.hbm_to_vmem [thread:$0]  %s7011_s30, 512, %s189_s28, [#allocation13], %s6732_s2, %s6732_s2, %s6733_s10  }
  0xf3   :  { %s214_s3 = sshll.u32 %s6747_s18, 4  ;;  %s6480_s6 = sshra.s32 %s7021_s7, 4  ;;  %s215_s3 = int_to_ptr.vmem [resolvable:$true] %s214_s3  ;;  %s6481_s6 = int_to_ptr.hbm [resolvable:$true] %s6480_s6 }
  0xf4   :  { %s6482_s16 = scalar_lea.hbm %s6481_s6, 32  ;;  %s6484_s25 = scalar_lea.hbm %s10020_s5, 32 }
  0xf5   :  { %p6483_p0 = scmp.ne.s32.totalorder %s6481_s6, %s6482_s16  ;;  %p6485_p1 = scmp.lt.s32.totalorder %s6481_s6, %s10020_s5 }
  0xf6   :  { %p6486_p2 = scmp.lt.s32.totalorder %s6484_s25, %s6482_s16 }
  0xf7   :  { %s238_s24 = sshll.u32 %s10021_s9, 4  ;;  %s7031_s24 = int_to_ptr.hbm [resolvable:$true] %s238_s24 }
  0xf8   :  { %p6487_p3 = por %p6486_p2, %p6485_p1 }
  0xfa   :  { %p6488_p4 = pnand %p6487_p3, %p6483_p0 }
  0xfc   :  { %6491 = shalt.err (!%p6488_p4)
}
  0xfd   :  { %s10022_s23 = sld [smem:[#allocation59_spill]]  ;;  %s6748_s0 = smov [#allocation20]  }
  0xfe   :  { %220 = dma.hbm_to_vmem [thread:$0]  %s7021_s7, 512, %s215_s3, [#allocation16], %s6732_s2, %s6732_s2, %s6733_s10  }
  0xff   :  { %s240_s12 = sshll.u32 %s6748_s0, 4  ;;  %s6504_s20 = sshra.s32 %s7031_s24, 4  ;;  %s241_s12 = int_to_ptr.vmem [resolvable:$true] %s240_s12  ;;  %s6505_s20 = int_to_ptr.hbm [resolvable:$true] %s6504_s20 }
 0x100   :  { %s6506_s29 = scalar_lea.hbm %s6505_s20, 32  ;;  %s6508_s30 = scalar_lea.hbm %s10021_s9, 32 }
 0x101   :  { %p6507_p5 = scmp.ne.s32.totalorder %s6505_s20, %s6506_s29  ;;  %p6509_p6 = scmp.lt.s32.totalorder %s6505_s20, %s10021_s9 }
 0x102   :  { %p6510_p7 = scmp.lt.s32.totalorder %s6508_s30, %s6506_s29 }
 0x103   :  { %s263_s13 = sshll.u32 %s10022_s23, 4  ;;  %s264_s13 = int_to_ptr.hbm [resolvable:$true] %s263_s13 }
 0x104   :  { %p6511_p8 = por %p6510_p7, %p6509_p6 }
 0x106   :  { %p6512_p9 = pnand %p6511_p8, %p6507_p5 }
 0x108   :  { %6515 = shalt.err (!%p6512_p9)
}
 0x109   :  { %s10023_s26 = sld [smem:[#allocation60_spill]]  ;;  %s6749_s8 = smov [#allocation23]  }
 0x10a   :  { %246 = dma.hbm_to_vmem [thread:$0]  %s7031_s24, 512, %s241_s12, [#allocation19], %s6732_s2, %s6732_s2, %s6733_s10  }
 0x10b   :  { %s265_s1 = sshll.u32 %s6749_s8, 4  ;;  %s6528_s27 = sshra.s32 %s264_s13, 4  ;;  %s266_s1 = int_to_ptr.vmem [resolvable:$true] %s265_s1  ;;  %s6529_s27 = int_to_ptr.hbm [resolvable:$true] %s6528_s27 }
 0x10c   :  { %s6530_s5 = scalar_lea.hbm %s6529_s27, 1  ;;  %s6532_s22 = scalar_lea.hbm %s10022_s23, 1 }
 0x10d   :  { %p6531_p10 = scmp.ne.s32.totalorder %s6529_s27, %s6530_s5  ;;  %p6533_p11 = scmp.lt.s32.totalorder %s6529_s27, %s10022_s23 }
 0x10e   :  { %p6534_p12 = scmp.lt.s32.totalorder %s6532_s22, %s6530_s5 }
 0x10f   :  { %s285_s14 = sshll.u32 %s10023_s26, 4  ;;  %s286_s14 = int_to_ptr.hbm [resolvable:$true] %s285_s14 }
 0x110   :  { %p6535_p13 = por %p6534_p12, %p6533_p11 }
 0x112   :  { %p6536_p0 = pnand %p6535_p13, %p6531_p10 }
 0x114   :  { %6539 = shalt.err (!%p6536_p0)
}
 0x115   :  { %268 = dma.hbm_to_vmem [thread:$0]  %s264_s13, 16, %s266_s1, [#allocation22]  }
 0x116   :  { %s10024_s28 = sld [smem:[#allocation62_spill]]  ;;  %s6750_s7 = smov [#allocation26]  }
 0x117   :  { %s287_s19 = sshll.u32 %s6750_s7, 4  ;;  %s6552_s17 = sshra.s32 %s286_s14, 4  ;;  %s288_s19 = int_to_ptr.vmem [resolvable:$true] %s287_s19  ;;  %s6553_s17 = int_to_ptr.hbm [resolvable:$true] %s6552_s17 }
 0x118   :  { %s6554_s9 = scalar_lea.hbm %s6553_s17, 1  ;;  %s6556_s24 = scalar_lea.hbm %s10023_s26, 1 }
 0x119   :  { %p6555_p1 = scmp.ne.s32.totalorder %s6553_s17, %s6554_s9  ;;  %p6557_p2 = scmp.lt.s32.totalorder %s6553_s17, %s10023_s26 }
 0x11a   :  { %p6558_p3 = scmp.lt.s32.totalorder %s6556_s24, %s6554_s9 }
 0x11c   :  { %s308_s11 = sshll.u32 %s10024_s28, 4  ;;  %p6559_p4 = por %p6558_p3, %p6557_p2  ;;  %s7052_s11 = int_to_ptr.hbm [resolvable:$true] %s308_s11 }
 0x11e   :  { %p6560_p5 = pnand %p6559_p4, %p6555_p1 }
 0x120   :  { %6563 = shalt.err (!%p6560_p5)
}
 0x121   :  { %290 = dma.hbm_to_vmem [thread:$0]  %s286_s14, 16, %s288_s19, [#allocation25]  }
 0x122   :  { %s10025_s18 = sld [smem:[#allocation63_spill]]  ;;  %s6751_s6 = smov [#allocation29]  }
 0x123   :  { %s310_s16 = sshll.u32 %s6751_s6, 4  ;;  %s6576_s25 = sshra.s32 %s7052_s11, 4  ;;  %s311_s16 = int_to_ptr.vmem [resolvable:$true] %s310_s16  ;;  %s6577_s25 = int_to_ptr.hbm [resolvable:$true] %s6576_s25 }
 0x124   :  { %s6578_s23 = scalar_lea.hbm %s6577_s25, 32  ;;  %s6580_s0 = scalar_lea.hbm %s10024_s28, 32 }
 0x125   :  { %p6579_p6 = scmp.ne.s32.totalorder %s6577_s25, %s6578_s23  ;;  %p6581_p7 = scmp.lt.s32.totalorder %s6577_s25, %s10024_s28 }
 0x126   :  { %p6582_p8 = scmp.lt.s32.totalorder %s6580_s0, %s6578_s23 }
 0x128   :  { %s333_s3 = sshll.u32 %s10025_s18, 4  ;;  %p6583_p9 = por %p6582_p8, %p6581_p7  ;;  %s334_s3 = int_to_ptr.hbm [resolvable:$true] %s333_s3 }
 0x12a   :  { %p6584_p10 = pnand %p6583_p9, %p6579_p6 }
 0x12c   :  { %6587 = shalt.err (!%p6584_p10)
}
 0x12d   :  { %316 = dma.hbm_to_vmem [thread:$0]  %s7052_s11, 512, %s311_s16, [#allocation28], %s6732_s2, %s6732_s2, %s6733_s10  }
 0x12e   :  { %s6752_s12 = smov [#allocation32]   ;;  %s363_s20 = sshll.u32 %s6922_s21, 4  ;;  %s364_s20 = int_to_ptr.hbm [resolvable:$true] %s363_s20 }
 0x12f   :  { %s335_s13 = sshll.u32 %s6752_s12, 4  ;;  %s6600_s29 = sshra.s32 %s334_s3, 4  ;;  %s336_s13 = int_to_ptr.vmem [resolvable:$true] %s335_s13  ;;  %s6601_s29 = int_to_ptr.hbm [resolvable:$true] %s6600_s29 }
 0x130   :  { %s6602_s30 = scalar_lea.hbm %s6601_s29, 1  ;;  %s6604_s26 = scalar_lea.hbm %s10025_s18, 1 }
 0x131   :  { %p6603_p11 = scmp.ne.s32.totalorder %s6601_s29, %s6602_s30  ;;  %p6605_p12 = scmp.lt.s32.totalorder %s6601_s29, %s10025_s18 }
 0x132   :  { %p6606_p13 = scmp.lt.s32.totalorder %s6604_s26, %s6602_s30 }
 0x134   :  { %p6607_p0 = por %p6606_p13, %p6605_p12 }
 0x136   :  { %p6608_p1 = pnand %p6607_p0, %p6603_p11 }
 0x138   :  { %6611 = shalt.err (!%p6608_p1)
}
 0x139   :  { %338 = dma.hbm_to_vmem [thread:$0]  %s334_s3, 16, %s336_s13, [#allocation31]  }
 0x13a   :  { %s374_s2 = sshll.u32 %s6927_s4, 4  ;;  %s6753_s10 = smov [#allocation35]   ;;  %s375_s2 = int_to_ptr.hbm [resolvable:$true] %s374_s2 }
 0x13b   :  { %s365_s14 = sshll.u32 %s6753_s10, 4  ;;  %s6624_s8 = sshra.s32 %s364_s20, 4  ;;  %s366_s14 = int_to_ptr.vmem [resolvable:$true] %s365_s14  ;;  %s6625_s8 = int_to_ptr.hbm [resolvable:$true] %s6624_s8 }
 0x13c   :  { %s6626_s1 = scalar_lea.hbm %s6625_s8, 1  ;;  %s6628_s27 = scalar_lea.hbm %s6922_s21, 1 }
 0x13d   :  { %p6627_p2 = scmp.ne.s32.totalorder %s6625_s8, %s6626_s1  ;;  %p6629_p3 = scmp.lt.s32.totalorder %s6625_s8, %s6922_s21 }
 0x13e   :  { %p6630_p4 = scmp.lt.s32.totalorder %s6628_s27, %s6626_s1 }
 0x140   :  { %p6631_p5 = por %p6630_p4, %p6629_p3 }
 0x142   :  { %p6632_p6 = pnand %p6631_p5, %p6627_p2 }
 0x144   :  { %6635 = shalt.err (!%p6632_p6)
}
 0x145   :  { %368 = dma.hbm_to_vmem [thread:$0]  %s364_s20, 16, %s366_s14, [#allocation34]  }
 0x146   :  { %s6754_s5 = smov [#allocation36]   ;;  %s6648_s28 = sshra.s32 %s375_s2, 4  ;;  %s6649_s28 = int_to_ptr.hbm [resolvable:$true] %s6648_s28 }
 0x147   :  { %s376_s22 = sshll.u32 %s6754_s5, 4  ;;  %s6650_s7 = scalar_lea.hbm %s6649_s28, 1  ;;  %s377_s22 = int_to_ptr.vmem [resolvable:$true] %s376_s22 }
 0x148   :  { %p6651_p7 = scmp.ne.s32.totalorder %s6649_s28, %s6650_s7  ;;  %s6652_s19 = scalar_lea.hbm %s6927_s4, 1 }
 0x149   :  { %p6653_p8 = scmp.lt.s32.totalorder %s6649_s28, %s6927_s4  ;;  %p6654_p9 = scmp.lt.s32.totalorder %s6652_s19, %s6650_s7 }
 0x14b   :  { %p6655_p10 = por %p6654_p9, %p6653_p8 }
 0x14d   :  { %p6656_p11 = pnand %p6655_p10, %p6651_p7 }
 0x14f   :  { %6659 = shalt.err (!%p6656_p11)
}
 0x150   :  { %379 = dma.hbm_to_vmem [thread:$0]  %s375_s2, 16, %s377_s22, [#allocation37]  }
 0x151   :  { %6672 = dma.done.wait [#allocation5], 512  }
 0x152   :  { %6673 = vsyncadd [#allocation5], 4294966784 }
 0x153   :  { %6674 = dma.done.wait [#allocation7], 1024  }
 0x154   :  { %6675 = vsyncadd [#allocation7], 4294966272 }
 0x155   :  { %6676 = dma.done.wait [#allocation10], 1024  }
 0x156   :  { %6677 = vsyncadd [#allocation10], 4294966272 }
 0x157   :  { %6678 = dma.done.wait [#allocation13], 528  }
 0x158   :  { %6679 = vsyncadd [#allocation13], 4294966768 }
 0x159   :  { %6680 = dma.done.wait [#allocation16], 1024  }
 0x15a   :  { %6681 = vsyncadd [#allocation16], 4294966272 }
 0x15b   :  { %6682 = dma.done.wait [#allocation19], 1024  }
 0x15c   :  { %6683 = vsyncadd [#allocation19], 4294966272 }
 0x15d   :  { %6684 = dma.done.wait [#allocation22], 32  }
 0x15e   :  { %6685 = vsyncadd [#allocation22], 4294967264 }
 0x15f   :  { %6686 = dma.done.wait [#allocation25], 32  }
 0x160   :  { %6687 = vsyncadd [#allocation25], 4294967264 }
 0x161   :  { %6688 = dma.done.wait [#allocation28], 528  }
 0x162   :  { %6689 = vsyncadd [#allocation28], 4294966768 }
 0x163   :  { %6690 = dma.done.wait [#allocation31], 32  }
 0x164   :  { %6691 = vsyncadd [#allocation31], 4294967264 }
 0x165   :  { %6692 = dma.done.wait [#allocation34], 32  }
 0x166   :  { %6693 = vsyncadd [#allocation34], 4294967264 }
 0x167   :  { %6694 = dma.done.wait [#allocation37], 16  }
 0x168   :  { %6695 = vsyncadd [#allocation37], 4294967280  ;;  %s10026_s21 = sld [smem:[#allocation52_spill]]  ;;  %vm648_vm0 = vcmask 261120   ;;  %v7125_v36 = vld [vmem:[#allocation4] sm:$0xff]  ;;  %v7140_v39 = vld [vmem:[#allocation18 + $0x10] sm:$0xff] }
 0x169   :  { %s10027_s4 = sld [smem:[#allocation50_spill]]  ;;  %v7127_v37 = vld [vmem:[#allocation6] sm:$0xff]  ;;  %v7143_v40 = vld [vmem:[#allocation18 + $0x8] sm:$0xff]  ;;  %v7179_v49 = vld [vmem:[#allocation4 + $0x18] sm:$0xff] }
 0x16a   :  { %s10028_s11 = sld [smem:[#allocation53_spill]]  ;;  %10030 = vst [vmem:[#allocation67_spill] sm:$0xff] %v7127_v37  ;;  %v7131_v38 = vld [vmem:[#allocation18 + $0x18] sm:$0xff]  ;;  %v7149_v42 = vld [vmem:[#allocation18] sm:$0xff]  ;;  %v7166_v46 = vld [vmem:[#allocation4 + $0x10] sm:$0xff] }
 0x16b   :  { %s10029_s17 = sld [smem:[#allocation51_spill]]  ;;  %v7151_v43 = vld [vmem:[#allocation4 + $0x8] sm:$0xff]  ;;  %10034 = vst [vmem:[#allocation70_spill] sm:$0xff] %v7166_v46  ;;  %v7168_v47 = vld [vmem:[#allocation6 + $0x10] sm:$0xff]  ;;  %v7181_v50 = vld [vmem:[#allocation6 + $0x18] sm:$0xff] }
 0x16c   :  { %v7153_v44 = vld [vmem:[#allocation6 + $0x8] sm:$0xff]  ;;  %s10032_s9 = sld [smem:[#allocation54_spill]]  ;;  %10035 = vst [vmem:[#allocation71_spill] sm:$0xff] %v7168_v47  ;;  %v7209_v1 = vld [vmem:[#allocation9 + $0x18] sm:$0xff] }
 0x16d   :  { %10031 = vst [vmem:[#allocation68_spill] sm:$0xff] %v7153_v44  ;;  %s10051_s24 = sld [smem:[#allocation56_spill]] }
 0x16e   :  { %v489_v2 = vld [vmem:[%s10026_s21 + $0x78] sm:$0xff]  ;;  %v488_v3 = vld [vmem:[%s10026_s21 + $0x70] sm:$0xff]  ;;  %v487_v4 = vld [vmem:[%s10026_s21 + $0x68] sm:$0xff]  ;;  %10037 = vst [vmem:[#allocation73_spill] sm:$0xff] %v7179_v49  ;;  %s10313_s18 = sld [smem:[#allocation61_spill]] }
 0x16f   :  { %494 = vmatpush.msra.mxu0 %v489_v2  ;;  %v486_v5 = vld [vmem:[%s10026_s21 + $0x60] sm:$0xff]  ;;  %v485_v6 = vld [vmem:[%s10026_s21 + $0x58] sm:$0xff]  ;;  %v484_v7 = vld [vmem:[%s10026_s21 + $0x50] sm:$0xff]  ;;  %10038 = vst [vmem:[#allocation74_spill] sm:$0xff] %v7181_v50  ;;  %s10320_s3 = sld [smem:[#allocation64_spill]] }
 0x170   :  { %v483_v8 = vld [vmem:[%s10026_s21 + $0x48] sm:$0xff]  ;;  %v482_v9 = vld [vmem:[%s10026_s21 + $0x40] sm:$0xff]  ;;  %v481_v10 = vld [vmem:[%s10026_s21 + $0x38] sm:$0xff]  ;;  %10039 = vst [vmem:[#allocation75_spill] sm:$0xff] %v7209_v1  ;;  %s10321_s6 = sld [smem:[#allocation65_spill]] }
 0x171   :  { %495 = vmatpush.msra.mxu0 %v488_v3  ;;  %v480_v11 = vld [vmem:[%s10026_s21 + $0x30] sm:$0xff]  ;;  %v479_v12 = vld [vmem:[%s10026_s21 + $0x28] sm:$0xff]  ;;  %v478_v13 = vld [vmem:[%s10026_s21 + $0x20] sm:$0xff]  ;;  %s10328_s16 = sld [smem:[#allocation55_spill]] }
 0x172   :  { %v477_v14 = vld [vmem:[%s10026_s21 + $0x18] sm:$0xff]  ;;  %v476_v15 = vld [vmem:[%s10026_s21 + $0x10] sm:$0xff]  ;;  %v475_v16 = vld [vmem:[%s10026_s21 + $0x8] sm:$0xff]  ;;  %s10335_s25 = sld [smem:[#allocation66_spill]] }
 0x173   :  { %496 = vmatpush.msra.mxu0 %v487_v4  ;;  %v474_v17 = vld [vmem:[%s10026_s21] sm:$0xff]  ;;  %v7093_v19 = vld [vmem:[%s10027_s4 + $0x8] sm:$0xff]  ;;  %v7097_v20 = vld [vmem:[%s10027_s4 + $0x10] sm:$0xff] }
 0x174   :  { %v7089_v18 = vld [vmem:[%s10027_s4] sm:$0xff]  ;;  %v7101_v21 = vld [vmem:[%s10027_s4 + $0x18] sm:$0xff]  ;;  %v7147_v41 = vld [vmem:[%s10029_s17 + $0x8] sm:$0xff] }
 0x175   :  { %497 = vmatpush.msra.mxu0 %v486_v5  ;;  %v5776_v25 = vld [vmem:[%s10028_s11] ss:$0 sm:$0xff]  ;;  %v7164_v45 = vld [vmem:[%s10029_s17 + $0x10] sm:$0xff]  ;;  %v7177_v48 = vld [vmem:[%s10029_s17 + $0x18] sm:$0xff] }
 0x176   :  { %v7122_v35 = vld [vmem:[%s10029_s17] sm:$0xff]  ;;  %10033 = vst [vmem:[#allocation69_spill] sm:$0xff] %v7164_v45  ;;  %v542_v51 = vld [vmem:[%s10032_s9 + $0x78] sm:$0xff]  ;;  %v541_v52 = vld [vmem:[%s10032_s9 + $0x70] sm:$0xff] }
 0x177   :  { %498 = vmatpush.msra.mxu0 %v485_v6  ;;  %10036 = vst [vmem:[#allocation72_spill] sm:$0xff] %v7177_v48  ;;  %547 = vmatpush.msra.mxu1 %v542_v51  ;;  %v540_v53 = vld [vmem:[%s10032_s9 + $0x68] sm:$0xff]  ;;  %v539_v54 = vld [vmem:[%s10032_s9 + $0x60] sm:$0xff]  ;;  %v538_v55 = vld [vmem:[%s10032_s9 + $0x58] sm:$0xff] }
 0x178   :  { %v537_v56 = vld [vmem:[%s10032_s9 + $0x50] sm:$0xff]  ;;  %v536_v57 = vld [vmem:[%s10032_s9 + $0x48] sm:$0xff]  ;;  %v535_v58 = vld [vmem:[%s10032_s9 + $0x40] sm:$0xff] }
 0x179   :  { %499 = vmatpush.msra.mxu0 %v484_v7  ;;  %548 = vmatpush.msra.mxu1 %v541_v52  ;;  %v534_v59 = vld [vmem:[%s10032_s9 + $0x38] sm:$0xff]  ;;  %v533_v60 = vld [vmem:[%s10032_s9 + $0x30] sm:$0xff]  ;;  %v532_v61 = vld [vmem:[%s10032_s9 + $0x28] sm:$0xff] }
 0x17a   :  { %v531_v62 = vld [vmem:[%s10032_s9 + $0x20] sm:$0xff]  ;;  %v530_v63 = vld [vmem:[%s10032_s9 + $0x18] sm:$0xff]  ;;  %v529_v0 = vld [vmem:[%s10032_s9 + $0x10] sm:$0xff] }
 0x17b   :  { %500 = vmatpush.msra.mxu0 %v483_v8  ;;  %549 = vmatpush.msra.mxu1 %v540_v53  ;;  %v7211_v2 = vld [vmem:[#allocation8 + $0x18] sm:$0xff]  ;;  %v528_v3 = vld [vmem:[%s10032_s9 + $0x8] sm:$0xff]  ;;  %v7223_v5 = vld [vmem:[#allocation9 + $0x10] sm:$0xff] }
 0x17c   :  { %10040 = vst [vmem:[#allocation76_spill] sm:$0xff] %v7211_v2  ;;  %v527_v4 = vld [vmem:[%s10032_s9] sm:$0xff]  ;;  %v7225_v6 = vld [vmem:[#allocation8 + $0x10] sm:$0xff]  ;;  %v7227_v7 = vld [vmem:[#allocation9 + $0x8] sm:$0xff] }
 0x17d   :  { %501 = vmatpush.msra.mxu0 %v482_v9  ;;  %550 = vmatpush.msra.mxu1 %v539_v54  ;;  %10041 = vst [vmem:[#allocation77_spill] sm:$0xff] %v7223_v5  ;;  %v7231_v8 = vld [vmem:[#allocation8 + $0x8] sm:$0xff]  ;;  %v7235_v9 = vld [vmem:[#allocation9] sm:$0xff]  ;;  %v7290_v53 = vld [vmem:[%s10051_s24 + $0x18] sm:$0xff] }
 0x17e   :  { %10042 = vst [vmem:[#allocation78_spill] sm:$0xff] %v7225_v6  ;;  %v7292_v54 = vld [vmem:[#allocation14 + $0x18] sm:$0xff] }
 0x17f   :  { %502 = vmatpush.msra.mxu0 %v481_v10  ;;  %551 = vmatpush.msra.mxu1 %v538_v55  ;;  %10043 = vst [vmem:[#allocation79_spill] sm:$0xff] %v7227_v7  ;;  %v7237_v10 = vld [vmem:[#allocation8] sm:$0xff] }
 0x180   :  { %10044 = vst [vmem:[#allocation80_spill] sm:$0xff] %v7231_v8  ;;  %v7294_v55 = vld [vmem:[#allocation15 + $0x18] sm:$0xff] }
 0x181   :  { %503 = vmatpush.msra.mxu0 %v480_v11  ;;  %552 = vmatpush.msra.mxu1 %v537_v56  ;;  %10045 = vst [vmem:[#allocation81_spill] sm:$0xff] %v7235_v9  ;;  %v7241_v11 = vld [vmem:[#allocation11 + $0x18] sm:$0xff]  ;;  %v7300_v56 = vld [vmem:[%s10051_s24 + $0x10] sm:$0xff] }
 0x182   :  { %10046 = vst [vmem:[#allocation82_spill] sm:$0xff] %v7237_v10 }
 0x183   :  { %504 = vmatpush.msra.mxu0 %v479_v12  ;;  %553 = vmatpush.msra.mxu1 %v536_v57  ;;  %v7244_v12 = vld [vmem:[#allocation11 + $0x10] sm:$0xff]  ;;  %10054 = vst [vmem:[#allocation89_spill] sm:$0xff] %v7290_v53 }
 0x184   :  { %10055 = vst [vmem:[#allocation90_spill] sm:$0xff] %v7294_v55  ;;  %v7302_v57 = vld [vmem:[#allocation14 + $0x10] sm:$0xff] }
 0x185   :  { %505 = vmatpush.msra.mxu0 %v478_v13  ;;  %554 = vmatpush.msra.mxu1 %v535_v58  ;;  %v7246_v13 = vld [vmem:[#allocation11 + $0x8] sm:$0xff]  ;;  %10056 = vst [vmem:[#allocation91_spill] sm:$0xff] %v7300_v56  ;;  %v7306_v58 = vld [vmem:[#allocation15 + $0x10] sm:$0xff] }
 0x186   :  { %10057 = vst [vmem:[#allocation92_spill] sm:$0xff] %v7306_v58 }
 0x187   :  { %506 = vmatpush.msra.mxu0 %v477_v14  ;;  %555 = vmatpush.msra.mxu1 %v534_v59  ;;  %v7250_v14 = vld [vmem:[#allocation11] sm:$0xff] }
 0x188   :  { %v7310_v59 = vld [vmem:[%s10051_s24 + $0x8] sm:$0xff] }
 0x189   :  { %507 = vmatpush.msra.mxu0 %v476_v15  ;;  %556 = vmatpush.msra.mxu1 %v533_v60  ;;  %v7253_v15 = vld [vmem:[#allocation17 + $0x18] sm:$0xff]  ;;  %10058 = vst [vmem:[#allocation93_spill] sm:$0xff] %v7310_v59  ;;  %v7312_v60 = vld [vmem:[#allocation14 + $0x8] sm:$0xff] }
 0x18a   :  { %10047 = vst [vmem:[#allocation83_spill] sm:$0xff] %v7253_v15 }
 0x18b   :  { %508 = vmatpush.msra.mxu0 %v475_v16  ;;  %557 = vmatpush.msra.mxu1 %v532_v61  ;;  %v7314_v61 = vld [vmem:[#allocation15 + $0x8] sm:$0xff] }
 0x18c   :  { %10059 = vst [vmem:[#allocation94_spill] sm:$0xff] %v7314_v61 }
 0x18d   :  { %509 = vmatpush.msra.mxu0 %v474_v17  ;;  %558 = vmatpush.msra.mxu1 %v531_v62  ;;  %v7256_v17 = vld [vmem:[#allocation17 + $0x10] sm:$0xff]  ;;  %v7320_v62 = vld [vmem:[%s10051_s24] sm:$0xff] }
 0x18e   :  { %510 = vmatmul.f32.vlgmr.msra.gmra.mxu0 %v7089_v18  ;;  %10048 = vst [vmem:[#allocation84_spill] sm:$0xff] %v7256_v17 }
 0x18f   :  { %559 = vmatpush.msra.mxu1 %v530_v63  ;;  %10060 = vst [vmem:[#allocation95_spill] sm:$0xff] %v7320_v62  ;;  %v7322_v63 = vld [vmem:[#allocation14] sm:$0xff] }
 0x190   :  { %10061 = vst [vmem:[#allocation96_spill] sm:$0xff] %v7322_v63 }
 0x191   :  { %560 = vmatpush.msra.mxu1 %v529_v0  ;;  %v7324_v0 = vld [vmem:[#allocation15] sm:$0xff] }
 0x192   :  { %10062 = vst [vmem:[#allocation97_spill] sm:$0xff] %v7324_v0 }
 0x193   :  { %561 = vmatpush.msra.mxu1 %v528_v3 }
 0x195   :  { %562 = vmatpush.msra.mxu1 %v527_v4 }
 0x196   :  { %513 = vmatmul.f32.gmra.mxu0 %v7093_v19  ;;  %563 = vmatmul.f32.vlgmr.msra.gmra.mxu1 %v7089_v18  ;;  %v7259_v18 = vld [vmem:[#allocation17 + $0x8] sm:$0xff] }
 0x197   :  { %878 = vmatpush.msrb.mxu1 %v7241_v11  ;;  %10049 = vst [vmem:[#allocation85_spill] sm:$0xff] %v7259_v18 }
 0x199   :  { %879 = vmatpush.msrb.mxu1 %v7244_v12 }
 0x19b   :  { %880 = vmatpush.msrb.mxu1 %v7246_v13 }
 0x19d   :  { %881 = vmatpush.msrb.mxu1 %v7250_v14 }
 0x19e   :  { %516 = vmatmul.f32.gmra.mxu0 %v7097_v20  ;;  %566 = vmatmul.f32.gmra.mxu1 %v7093_v19  ;;  %v7262_v19 = vld [vmem:[#allocation17] sm:$0xff] }
 0x19f   :  { %10050 = vst [vmem:[#allocation86_spill] sm:$0xff] %v7262_v19  ;;  %1106 = vmatpush.msra.mxu1 %v7292_v54 }
 0x1a1   :  { %1107 = vmatpush.msra.mxu1 %v7302_v57 }
 0x1a3   :  { %1108 = vmatpush.msra.mxu1 %v7312_v60 }
 0x1a5   :  { %1109 = vmatpush.msra.mxu1 %v7322_v63 }
 0x1a6   :  { %519 = vmatmul.f32.gmra.mxu0 %v7101_v21  ;;  %569 = vmatmul.f32.gmra.mxu1 %v7097_v20 }
 0x1ae   :  { %572 = vmatmul.f32.gmra.mxu1 %v7101_v21 }
 0x20b   :  { %v511_v22 = vpop.f32.mrf.mxu0 }
 0x20c   :  { %v512_v31 = vadd.f32 %v5776_v25, %v511_v22 }
 0x20e   :  { %v7117_v34 = vmax.f32 %v512_v31, 0.0 }
 0x213   :  { %v514_v23 = vpop.f32.mrf.mxu0  ;;  %v7285_v51 = vpop.f32.mrf.mxu1 }
 0x214   :  { %v515_v29 = vadd.f32 %v5776_v25, %v514_v23  ;;  %10052 = vst [vmem:[#allocation87_spill] sm:$0xff] %v7285_v51 }
 0x216   :  { %v7112_v33 = vmax.f32 %v515_v29, 0.0 }
 0x21b   :  { %v517_v24 = vpop.f32.mrf.mxu0  ;;  %v7287_v52 = vpop.f32.mrf.mxu1 }
 0x21c   :  { %v518_v27 = vadd.f32 %v5776_v25, %v517_v24  ;;  %10053 = vst [vmem:[#allocation88_spill] sm:$0xff] %v7287_v52 }
 0x21e   :  { %v7107_v32 = vmax.f32 %v518_v27, 0.0 }
 0x223   :  { %v520_v26 = vpop.f32.mrf.mxu0  ;;  %v7329_v3 = vpop.f32.mrf.mxu1 }
 0x224   :  { %v521_v28 = vadd.f32 %v5776_v25, %v520_v26  ;;  %10063 = vst [vmem:[#allocation98_spill] sm:$0xff] %v7329_v3 }
 0x226   :  { %v7105_v30 = vmax.f32 %v521_v28, 0.0 }
 0x228   :  { %673 = vmatpush.msra.mxu2 %v7105_v30  ;;  %714 = vmatpush.msra.mxu3 %v7105_v30 }
 0x229   :  { %837 = vmatpush.msrb.mxu0 %v7105_v30 }
 0x22a   :  { %674 = vmatpush.msra.mxu2 %v7107_v32  ;;  %715 = vmatpush.msra.mxu3 %v7107_v32 }
 0x22b   :  { %838 = vmatpush.msrb.mxu0 %v7107_v32  ;;  %v7335_v4 = vpop.f32.mrf.mxu1 }
 0x22c   :  { %675 = vmatpush.msra.mxu2 %v7112_v33  ;;  %716 = vmatpush.msra.mxu3 %v7112_v33  ;;  %10064 = vst [vmem:[#allocation99_spill] sm:$0xff] %v7335_v4 }
 0x22d   :  { %839 = vmatpush.msrb.mxu0 %v7112_v33 }
 0x22e   :  { %676 = vmatpush.msra.mxu2 %v7117_v34  ;;  %717 = vmatpush.msra.mxu3 %v7117_v34 }
 0x22f   :  { %840 = vmatpush.msrb.mxu0 %v7117_v34  ;;  %5319 = vmatmul.msk.f32.vlgmr.msra.gmra.mxu2 %vm648_vm0, %v7122_v35 }
 0x230   :  { %5323 = vmatmul.msk.f32.vlgmr.msra.gmra.mxu3 %vm648_vm0, %v7125_v36  ;;  %5335 = vmatmul.msk.f32.vlgmr.msrb.gmra.mxu0 %vm648_vm0, %v7127_v37  ;;  %v7485_v37 = vld [vmem:[#allocation26] ss:$0 sm:$0xff] }
 0x231   :  { %1077 = vmatpush.msra.mxu0 %v7131_v38  ;;  %755 = vmatpush.msrb.mxu2 %v7209_v1 }
 0x232   :  { %796 = vmatpush.msrb.mxu3 %v7211_v2 }
 0x233   :  { %1078 = vmatpush.msra.mxu0 %v7140_v39  ;;  %756 = vmatpush.msrb.mxu2 %v7223_v5 }
 0x234   :  { %797 = vmatpush.msrb.mxu3 %v7225_v6 }
 0x235   :  { %1079 = vmatpush.msra.mxu0 %v7143_v40  ;;  %757 = vmatpush.msrb.mxu2 %v7227_v7 }
 0x236   :  { %798 = vmatpush.msrb.mxu3 %v7231_v8 }
 0x237   :  { %5320 = vmatmul.msk.f32.gmra.mxu2 %vm648_vm0, %v7147_v41  ;;  %1080 = vmatpush.msra.mxu0 %v7149_v42 }
 0x238   :  { %5324 = vmatmul.msk.f32.gmra.mxu3 %vm648_vm0, %v7151_v43  ;;  %5336 = vmatmul.msk.f32.gmra.mxu0 %vm648_vm0, %v7153_v44 }
 0x239   :  { %758 = vmatpush.msrb.mxu2 %v7235_v9  ;;  %799 = vmatpush.msrb.mxu3 %v7237_v10 }
 0x23b   :  { %927 = vmatpush.msra.mxu2 %v7253_v15  ;;  %968 = vmatpush.msra.mxu3 %v7290_v53 }
 0x23d   :  { %928 = vmatpush.msra.mxu2 %v7256_v17  ;;  %969 = vmatpush.msra.mxu3 %v7300_v56 }
 0x23f   :  { %5321 = vmatmul.msk.f32.gmra.mxu2 %vm648_vm0, %v7164_v45  ;;  %970 = vmatpush.msra.mxu3 %v7310_v59 }
 0x240   :  { %5325 = vmatmul.msk.f32.gmra.mxu3 %vm648_vm0, %v7166_v46  ;;  %5337 = vmatmul.msk.f32.gmra.mxu0 %vm648_vm0, %v7168_v47 }
 0x241   :  { %929 = vmatpush.msra.mxu2 %v7259_v18  ;;  %971 = vmatpush.msra.mxu3 %v7320_v62 }
 0x243   :  { %930 = vmatpush.msra.mxu2 %v7262_v19 }
 0x247   :  { %5322 = vmatmul.msk.f32.gmra.mxu2 %vm648_vm0, %v7177_v48 }
 0x248   :  { %5326 = vmatmul.msk.f32.gmra.mxu3 %vm648_vm0, %v7179_v49  ;;  %5338 = vmatmul.msk.f32.gmra.mxu0 %vm648_vm0, %v7181_v50 }
 0x250   :  { %5355 = vmatmul.msk.f32.vlgmr.msra.gmra.mxu0 %vm648_vm0, %v7117_v34 }
 0x258   :  { %5356 = vmatmul.msk.f32.gmra.mxu0 %vm648_vm0, %v7112_v33 }
 0x260   :  { %5357 = vmatmul.msk.f32.gmra.mxu0 %vm648_vm0, %v7107_v32 }
 0x268   :  { %5358 = vmatmul.msk.f32.gmra.mxu0 %vm648_vm0, %v7105_v30 }
 0x2ad   :  { %v842_v16 = vpop.f32.mrf.mxu0 }
 0x2ae   :  { %5339 = vmatmul.msk.f32.vlgmr.msrb.gmra.mxu1 %vm648_vm0, %v842_v16 }
 0x2b2   :  { %v678_v20 = vpop.f32.mrf.mxu2 }
 0x2b3   :  { %v719_v21 = vpop.f32.mrf.mxu3  ;;  %5331 = vmatmul.msk.f32.vlgmr.msrb.gmra.mxu3 %vm648_vm0, %v678_v20 }
 0x2b4   :  { %5327 = vmatmul.msk.f32.vlgmr.msrb.gmra.mxu2 %vm648_vm0, %v719_v21 }
 0x2b5   :  { %v845_v22 = vpop.f32.mrf.mxu0  ;;  %1215 = vmatpush.msrb.mxu2 %v7294_v55 }
 0x2b6   :  { %5340 = vmatmul.msk.f32.gmra.mxu1 %vm648_vm0, %v845_v22  ;;  %v7337_v22 = vld [vmem:[#allocation20 + $0x18] sm:$0xff] }
 0x2b7   :  { %1216 = vmatpush.msrb.mxu2 %v7306_v58  ;;  %10065 = vst [vmem:[#allocation100_spill] sm:$0xff] %v7337_v22  ;;  %1244 = vmatpush.msrb.mxu3 %v7337_v22 }
 0x2b9   :  { %1217 = vmatpush.msrb.mxu2 %v7314_v61 }
 0x2ba   :  { %v681_v23 = vpop.f32.mrf.mxu2 }
 0x2bb   :  { %v722_v24 = vpop.f32.mrf.mxu3  ;;  %5332 = vmatmul.msk.f32.gmra.mxu3 %vm648_vm0, %v681_v23  ;;  %1218 = vmatpush.msrb.mxu2 %v7324_v0  ;;  %v7339_v23 = vld [vmem:[#allocation20 + $0x10] sm:$0xff] }
 0x2bc   :  { %5328 = vmatmul.msk.f32.gmra.mxu2 %vm648_vm0, %v722_v24  ;;  %10066 = vst [vmem:[#allocation101_spill] sm:$0xff] %v7339_v23  ;;  %1245 = vmatpush.msrb.mxu3 %v7339_v23 }
 0x2bd   :  { %v848_v25 = vpop.f32.mrf.mxu0 }
 0x2be   :  { %5341 = vmatmul.msk.f32.gmra.mxu1 %vm648_vm0, %v848_v25  ;;  %v7341_v25 = vld [vmem:[#allocation12] ss:$0 sm:$0xff] }
 0x2bf   :  { %10067 = vst [vmem:[#allocation102_spill] sm:$0xff] %v7341_v25 }
 0x2c2   :  { %v684_v26 = vpop.f32.mrf.mxu2 }
 0x2c3   :  { %v725_v27 = vpop.f32.mrf.mxu3  ;;  %5333 = vmatmul.msk.f32.gmra.mxu3 %vm648_vm0, %v684_v26  ;;  %v7344_v26 = vld [vmem:[#allocation20 + $0x8] sm:$0xff] }
 0x2c4   :  { %5329 = vmatmul.msk.f32.gmra.mxu2 %vm648_vm0, %v725_v27  ;;  %10068 = vst [vmem:[#allocation103_spill] sm:$0xff] %v7344_v26  ;;  %1246 = vmatpush.msrb.mxu3 %v7344_v26 }
 0x2c5   :  { %v851_v28 = vpop.f32.mrf.mxu0 }
 0x2c6   :  { %5342 = vmatmul.msk.f32.gmra.mxu1 %vm648_vm0, %v851_v28 }
 0x2ca   :  { %v687_v29 = vpop.f32.mrf.mxu2 }
 0x2cb   :  { %v728_v31 = vpop.f32.mrf.mxu3  ;;  %5334 = vmatmul.msk.f32.gmra.mxu3 %vm648_vm0, %v687_v29 }
 0x2cc   :  { %5330 = vmatmul.msk.f32.gmra.mxu2 %vm648_vm0, %v728_v31  ;;  %v7349_v31 = vld [vmem:[#allocation20] sm:$0xff] }
 0x2cd   :  { %10069 = vst [vmem:[#allocation104_spill] sm:$0xff] %v7349_v31  ;;  %1247 = vmatpush.msrb.mxu3 %v7349_v31 }
 0x2d4   :  { %5343 = vmatmul.msk.f32.vlgmr.msra.gmra.mxu2 %vm648_vm0, %v7117_v34 }
 0x2d5   :  { %1371 = vmatpush.msra.mxu2 %v7209_v1 }
 0x2d7   :  { %1372 = vmatpush.msra.mxu2 %v7223_v5 }
 0x2d9   :  { %1373 = vmatpush.msra.mxu2 %v7227_v7 }
 0x2db   :  { %1374 = vmatpush.msra.mxu2 %v7235_v9 }
 0x2dc   :  { %5344 = vmatmul.msk.f32.gmra.mxu2 %vm648_vm0, %v7112_v33 }
 0x2e4   :  { %5345 = vmatmul.msk.f32.gmra.mxu2 %vm648_vm0, %v7107_v32 }
 0x2ec   :  { %5346 = vmatmul.msk.f32.gmra.mxu2 %vm648_vm0, %v7105_v30 }
 0x32b   :  { %v883_v16 = vpop.f32.mrf.mxu1 }
 0x333   :  { %v886_v28 = vpop.f32.mrf.mxu1 }
 0x336   :  { %v801_v20 = vpop.f32.mrf.mxu3 }
 0x337   :  { %v760_v21 = vpop.f32.mrf.mxu2 }
 0x338   :  { %v802_v24 = vadd.f32 %v801_v20, %v760_v21 }
 0x33a   :  { %v895_v27 = vadd.f32 %v883_v16, %v802_v24 }
 0x33c   :  { %v899_v29 = vadd.f32 %v7341_v25, %v895_v27 }
 0x33e   :  { %5347 = vmatmul.msk.f32.vlgmr.msra.gmra.mxu3 %vm648_vm0, %v899_v29  ;;  %5359 = vmatmul.msk.f32.vlgmr.msra.gmra.mxu1 %vm648_vm0, %v899_v29  ;;  %v804_v20 = vpop.f32.mrf.mxu3 }
 0x33f   :  { %5367 = vmatmul.msk.f32.vlgmr.msrb.gmra.mxu2 %vm648_vm0, %v899_v29  ;;  %v763_v21 = vpop.f32.mrf.mxu2  ;;  %1412 = vmatpush.msra.mxu3 %v7211_v2  ;;  %v889_v29 = vpop.f32.mrf.mxu1 }
 0x340   :  { %v805_v16 = vadd.f32 %v804_v20, %v763_v21  ;;  %1531 = vmatpush.msrb.mxu2 %v7253_v15 }
 0x341   :  { %1413 = vmatpush.msra.mxu3 %v7225_v6 }
 0x342   :  { %v896_v24 = vadd.f32 %v886_v28, %v805_v16  ;;  %1532 = vmatpush.msrb.mxu2 %v7256_v17 }
 0x343   :  { %1414 = vmatpush.msra.mxu3 %v7231_v8 }
 0x344   :  { %v900_v27 = vadd.f32 %v7341_v25, %v896_v24  ;;  %1533 = vmatpush.msrb.mxu2 %v7259_v18 }
 0x345   :  { %1415 = vmatpush.msra.mxu3 %v7237_v10 }
 0x346   :  { %5348 = vmatmul.msk.f32.gmra.mxu3 %vm648_vm0, %v900_v27  ;;  %5360 = vmatmul.msk.f32.gmra.mxu1 %vm648_vm0, %v900_v27  ;;  %v807_v20 = vpop.f32.mrf.mxu3 }
 0x347   :  { %5368 = vmatmul.msk.f32.gmra.mxu2 %vm648_vm0, %v900_v27  ;;  %v766_v21 = vpop.f32.mrf.mxu2  ;;  %v892_v52 = vpop.f32.mrf.mxu1 }
 0x348   :  { %v808_v28 = vadd.f32 %v807_v20, %v766_v21  ;;  %1534 = vmatpush.msrb.mxu2 %v7262_v19 }
 0x34a   :  { %v897_v16 = vadd.f32 %v889_v29, %v808_v28  ;;  %v7387_v29 = vld [vmem:[#allocation21] ss:$0 sm:$0xff] }
 0x34b   :  { %10070 = vst [vmem:[#allocation105_spill] sm:$0xff] %v7387_v29 }
 0x34c   :  { %v901_v24 = vadd.f32 %v7341_v25, %v897_v16 }
 0x34e   :  { %5349 = vmatmul.msk.f32.gmra.mxu3 %vm648_vm0, %v901_v24  ;;  %5361 = vmatmul.msk.f32.gmra.mxu1 %vm648_vm0, %v901_v24  ;;  %v810_v4 = vpop.f32.mrf.mxu3 }
 0x34f   :  { %5369 = vmatmul.msk.f32.gmra.mxu2 %vm648_vm0, %v901_v24  ;;  %v769_v3 = vpop.f32.mrf.mxu2 }
 0x350   :  { %v811_v51 = vadd.f32 %v810_v4, %v769_v3 }
 0x352   :  { %v898_v27 = vadd.f32 %v892_v52, %v811_v51  ;;  %v1082_v51 = vpop.f32.mrf.mxu0 }
 0x354   :  { %v902_v18 = vadd.f32 %v7341_v25, %v898_v27  ;;  %v7390_v27 = vld [vmem:[#allocation23] ss:$0 sm:$0xff] }
 0x355   :  { %10071 = vst [vmem:[#allocation106_spill] sm:$0xff] %v7390_v27 }
 0x356   :  { %5350 = vmatmul.msk.f32.gmra.mxu3 %vm648_vm0, %v902_v18  ;;  %5362 = vmatmul.msk.f32.gmra.mxu1 %vm648_vm0, %v902_v18 }
 0x357   :  { %5370 = vmatmul.msk.f32.gmra.mxu2 %vm648_vm0, %v902_v18  ;;  %v932_v18 = vpop.f32.mrf.mxu2 }
 0x35a   :  { %v1085_v4 = vpop.f32.mrf.mxu0 }
 0x35e   :  { %5371 = vmatmul.msk.f32.vlgmr.msrb.gmra.mxu3 %vm648_vm0, %v7117_v34 }
 0x35f   :  { %1572 = vmatpush.msrb.mxu3 %v7290_v53  ;;  %v935_v52 = vpop.f32.mrf.mxu2 }
 0x361   :  { %1573 = vmatpush.msrb.mxu3 %v7300_v56 }
 0x362   :  { %v1088_v56 = vpop.f32.mrf.mxu0 }
 0x363   :  { %1574 = vmatpush.msrb.mxu3 %v7310_v59 }
 0x365   :  { %1575 = vmatpush.msrb.mxu3 %v7320_v62 }
 0x366   :  { %5372 = vmatmul.msk.f32.gmra.mxu3 %vm648_vm0, %v7112_v33 }
 0x367   :  { %v938_v28 = vpop.f32.mrf.mxu2 }
 0x36e   :  { %5373 = vmatmul.msk.f32.gmra.mxu3 %vm648_vm0, %v7107_v32 }
 0x376   :  { %5374 = vmatmul.msk.f32.gmra.mxu3 %vm648_vm0, %v7105_v30 }
 0x3bb   :  { %v1111_v3 = vpop.f32.mrf.mxu1 }
 0x3bc   :  { %v1112_v62 = vadd.f32 %v1111_v3, %v1082_v51 }
 0x3be   :  { %v1123_v10 = vadd.f32 %v7390_v27, %v1112_v62 }
 0x3c0   :  { %v5363_v2 = vmul.f32 -1.442695, %v1123_v10 }
 0x3c1   :  { %v973_v20 = vpop.f32.mrf.mxu3 }
 0x3c2   :  { %v974_v21 = vadd.f32 %v973_v20, %v932_v18  ;;  %v941_v18 = vpop.f32.mrf.mxu2 }
 0x3c3   :  { %v1114_v16 = vpop.f32.mrf.mxu1 }
 0x3c4   :  { %v985_v24 = vadd.f32 %v7387_v29, %v974_v21  ;;  %v1115_v53 = vadd.f32 %v1114_v16, %v1085_v4 }
 0x3c6   :  { %v5351_v59 = vmul.f32 -1.442695, %v985_v24  ;;  %v1124_v20 = vadd.f32 %v7390_v27, %v1115_v53 }
 0x3c8   :  { %5791 = vpow2.f32 %v5351_v59  ;;  %v5364_v3 = vmul.f32 -1.442695, %v1124_v20 }
 0x3c9   :  { %v976_v19 = vpop.f32.mrf.mxu3 }
 0x3ca   :  { %v977_v8 = vadd.f32 %v976_v19, %v935_v52  ;;  %v1091_v19 = vpop.f32.mrf.mxu0 }
 0x3cb   :  { %v1117_v17 = vpop.f32.mrf.mxu1 }
 0x3cc   :  { %v986_v6 = vadd.f32 %v7387_v29, %v977_v8  ;;  %v1118_v15 = vadd.f32 %v1117_v17, %v1088_v56  ;;  %v1220_v56 = vpop.f32.mrf.mxu2 }
 0x3ce   :  { %v5352_v21 = vmul.f32 -1.442695, %v986_v6  ;;  %v5792_v25 = vpop.eup %5791  ;;  %v1125_v51 = vadd.f32 %v7390_v27, %v1118_v15 }
 0x3cf   :  { %v7396_v4 = vadd.f32 1.0, %v5792_v25 }
 0x3d0   :  { %5793 = vpow2.f32 %v5352_v21  ;;  %v5365_v52 = vmul.f32 -1.442695, %v1125_v51 }
 0x3d1   :  { %v979_v59 = vpop.f32.mrf.mxu3  ;;  %5795 = vpow2.f32 %v5363_v2  ;;  %vm1010_vm1 = vweird.f32 %v7396_v4  ;;  %v1016_v1 = vand.u32 2147483648, %v7396_v4 }
 0x3d2   :  { %v980_v62 = vadd.f32 %v979_v59, %v938_v28  ;;  %5797 = vpow2.f32 %v5364_v3 }
 0x3d3   :  { %v1120_v16 = vpop.f32.mrf.mxu1  ;;  %5799 = vrcp.f32 %v7396_v4 }
 0x3d4   :  { %v987_v8 = vadd.f32 %v7387_v29, %v980_v62  ;;  %v1121_v17 = vadd.f32 %v1120_v16, %v1091_v19  ;;  %5801 = vpow2.f32 %v5365_v52 }
 0x3d6   :  { %v5794_v10 = vpop.eup %5793  ;;  %v5353_v6 = vmul.f32 -1.442695, %v987_v8  ;;  %v1126_v15 = vadd.f32 %v7390_v27, %v1121_v17  ;;  %v1223_v8 = vpop.f32.mrf.mxu2 }
 0x3d7   :  { %v7401_v53 = vadd.f32 1.0, %v5794_v10  ;;  %v5796_v2 = vpop.eup %5795 }
 0x3d8   :  { %5803 = vpow2.f32 %v5353_v6  ;;  %v5366_v25 = vmul.f32 -1.442695, %v1126_v15  ;;  %v5798_v20 = vpop.eup %5797  ;;  %v7404_v21 = vadd.f32 1.0, %v5796_v2 }
 0x3d9   :  { %5805 = vrcp.f32 %v7401_v53  ;;  %v982_v28 = vpop.f32.mrf.mxu3  ;;  %v7406_v51 = vpop.eup %5799  ;;  %v7412_v52 = vadd.f32 1.0, %v5798_v20  ;;  %v1029_v58 = vand.u32 2147483647, %v7401_v53  ;;  %vm1025_vm6 = vweird.f32 %v7401_v53 }
 0x3da   :  { %5807 = vpow2.f32 %v5366_v25  ;;  %v983_v24 = vadd.f32 %v982_v28, %v941_v18  ;;  %v5802_v59 = vpop.eup %5801  ;;  %v1006_v2 = vmul.f32 %v7406_v51, %v7396_v4  ;;  %vm1011_vm2 = vweird.f32 %v7406_v51 }
 0x3db   :  { %5809 = vrcp.f32 %v7404_v21  ;;  %v7416_v10 = vadd.f32 1.0, %v5802_v59  ;;  %vm7491_vm5 = vmor %vm1010_vm1, %vm1011_vm2  ;;  %vm7500_vm8 = vcmp.eq.f32.partialorder %v1029_v58, 8.507059e+37  ;;  %vm1163_vm15 = vweird.f32 %v7412_v52 }
 0x3dc   :  { %v988_v3 = vadd.f32 %v7387_v29, %v983_v24  ;;  %v7431_v24 = vld [vmem:[#allocation24] ss:$0 sm:$0xff] }
 0x3dd   :  { %v7447_v9 = vadd.f32 %v7431_v24, %v1220_v56  ;;  %v1014_v56 = vand.u32 2147483647, %v7396_v4 }
 0x3de   :  { %v5804_v62 = vpop.eup %5803  ;;  %v5354_v19 = vmul.f32 -1.442695, %v988_v3  ;;  %v1007_v3 = vsub.f32 1.0, %v1006_v2  ;;  %v1226_v7 = vpop.f32.mrf.mxu2 }
 0x3df   :  { %v7409_v16 = vpop.eup %5805  ;;  %v7414_v17 = vadd.f32 1.0, %v5804_v62  ;;  %vm1015_vm1 = vcmp.eq.f32.partialorder %v1014_v56, 8.507059e+37 }
 0x3e0   :  { %v5808_v18 = vpop.eup %5807  ;;  %5811 = vpow2.f32 %v5354_v19  ;;  %v1021_v25 = vmul.f32 %v7409_v16, %v7401_v53  ;;  %vm1026_vm3 = vweird.f32 %v7409_v16 }
 0x3e1   :  { %5813 = vrcp.f32 %v7414_v17  ;;  %v7419_v6 = vpop.f32.mrf.mxu3  ;;  %v7421_v15 = vadd.f32 1.0, %v5808_v18  ;;  %v7429_v28 = vpop.eup %5809  ;;  %v1046_v44 = vand.u32 2147483648, %v7414_v17  ;;  %vm1040_vm7 = vweird.f32 %v7414_v17  ;;  %vm7515_vm10 = vmor %vm1025_vm6, %vm1026_vm3 }
 0x3e2   :  { %5815 = vrcp.f32 %v7412_v52  ;;  %v1022_v19 = vsub.f32 1.0, %v1021_v25  ;;  %v7440_v18 = vmul.f32 %v7429_v28, %v7404_v21  ;;  %v7453_v25 = vadd.f32 %v7431_v24, %v1223_v8 }
 0x3e3   :  { %5817 = vrcp.f32 %v7416_v10  ;;  %vm1149_vm14 = vweird.f32 %v7429_v28 }
 0x3e4   :  { %5819 = vrcp.f32 %v7421_v15  ;;  %v1023_v0 = vmul.f32 %v7409_v16, %v1022_v19  ;;  %v1145_v23 = vsub.f32 1.0, %v7440_v18  ;;  %v1031_v19 = vand.u32 2147483648, %v7401_v53 }
 0x3e5   :  { %v1017_v18 = vor.u32 1.1754944e-38, %v1016_v1  ;;  %v1250_v1 = vadd.f32 %v7485_v37, %v7419_v6 }
 0x3e6   :  { %v5812_v20 = vpop.eup %5811  ;;  %v1024_v50 = vadd.f32 %v7409_v16, %v1023_v0  ;;  %v1044_v0 = vand.u32 2147483647, %v7414_v17  ;;  %v1032_v4 = vor.u32 1.1754944e-38, %v1031_v19 }
 0x3e7   :  { %v7434_v59 = vpop.eup %5813  ;;  %v7436_v62 = vadd.f32 1.0, %v5812_v20  ;;  %v1008_v20 = vmul.f32 %v7406_v51, %v1007_v3  ;;  %v7467_v3 = vadd.f32 %v7431_v24, %v1226_v7 }
 0x3e8   :  { %v1036_v27 = vmul.f32 %v7434_v59, %v7414_v17  ;;  %v7444_v29 = vpop.eup %5815  ;;  %vm1041_vm4 = vweird.f32 %v7434_v59  ;;  %v1028_v45 = vsel %vm7515_vm10, %v7409_v16, %v1024_v50  ;;  %vm1045_vm11 = vcmp.eq.f32.partialorder %v1044_v0, 8.507059e+37 }
 0x3e9   :  { %5821 = vrcp.f32 %v7436_v62  ;;  %v1252_v2 = vpop.f32.mrf.mxu3  ;;  %v7450_v5 = vpop.eup %5817  ;;  %v1159_v8 = vmul.f32 %v7444_v29, %v7412_v52  ;;  %v1009_v22 = vadd.f32 %v7406_v51, %v1008_v20  ;;  %vm7506_vm9 = vmor %vm1040_vm7, %vm1041_vm4  ;;  %vm1055_vm13 = vweird.f32 %v7436_v62 }
 0x3ea   :  { %v1037_v26 = vsub.f32 1.0, %v1036_v27  ;;  %v7461_v61 = vpop.eup %5819  ;;  %v1174_v31 = vmul.f32 %v7450_v5, %v7416_v10  ;;  %v1033_v50 = vsel %vm7500_vm8, %v1032_v4, %v1028_v45  ;;  %v1059_v6 = vand.u32 2147483647, %v7436_v62 }
 0x3eb   :  { %v1189_v55 = vmul.f32 %v7461_v61, %v7421_v15  ;;  %v1160_v20 = vsub.f32 1.0, %v1159_v8  ;;  %v1013_v17 = vsel %vm7491_vm5, %v7406_v51, %v1009_v22  ;;  %v1253_v22 = vadd.f32 %v7485_v37, %v1252_v2 }
 0x3ec   :  { %v1038_v27 = vmul.f32 %v7434_v59, %v1037_v26  ;;  %v1047_v51 = vor.u32 1.1754944e-38, %v1046_v44  ;;  %vm1164_vm3 = vweird.f32 %v7444_v29  ;;  %vm1178_vm4 = vweird.f32 %v7416_v10 }
 0x3ed   :  { %v1190_v46 = vsub.f32 1.0, %v1189_v55  ;;  %v1061_v55 = vand.u32 2147483648, %v7436_v62  ;;  %v1262_v0 = vmul.f32 %v1253_v22, %v1033_v50  ;;  %v1018_v45 = vsel %vm1015_vm1, %v1017_v18, %v1013_v17 }
 0x3ee   :  { %v1039_v47 = vadd.f32 %v7434_v59, %v1038_v27  ;;  %v1175_v27 = vsub.f32 1.0, %v1174_v31  ;;  %vm1148_vm5 = vweird.f32 %v7404_v21  ;;  %vm1179_vm6 = vweird.f32 %v7450_v5 }
 0x3ef   :  { %v7478_v7 = vpop.eup %5821  ;;  %v1191_v2 = vmul.f32 %v7461_v61, %v1190_v46  ;;  %v1161_v46 = vmul.f32 %v7444_v29, %v1160_v20  ;;  %v1062_v56 = vor.u32 1.1754944e-38, %v1061_v55  ;;  %vm1060_vm7 = vcmp.eq.f32.partialorder %v1059_v6, 8.507059e+37 }
 0x3f0   :  { %v1051_v26 = vmul.f32 %v7478_v7, %v7436_v62  ;;  %v1043_v58 = vsel %vm7506_vm9, %v7434_v59, %v1039_v47  ;;  %vm1056_vm12 = vweird.f32 %v7478_v7  ;;  %v1176_v47 = vmul.f32 %v7450_v5, %v1175_v27  ;;  %vm7569_vm9 = vmor %vm1178_vm4, %vm1179_vm6 }
 0x3f1   :  { %v1255_v53 = vpop.f32.mrf.mxu3  ;;  %v1048_v48 = vsel %vm1045_vm11, %v1047_v51, %v1043_v58  ;;  %v1146_v59 = vmul.f32 %v7429_v28, %v1145_v23  ;;  %vm7544_vm2 = vmor %vm1055_vm13, %vm1056_vm12  ;;  %v1229_v23 = vpop.f32.mrf.mxu2  ;;  %v1261_v62 = vmul.f32 %v1250_v1, %v1018_v45  ;;  %vm1194_vm8 = vweird.f32 %v7461_v61  ;;  %v10107_v51 = vld [vmem:[#allocation104_spill] sm:$0xff] }
 0x3f2   :  { %v1256_v8 = vadd.f32 %v7485_v37, %v1255_v53  ;;  %v1052_v19 = vsub.f32 1.0, %v1051_v26  ;;  %v1177_v27 = vadd.f32 %v7450_v5, %v1176_v47  ;;  %v1192_v20 = vadd.f32 %v7461_v61, %v1191_v2  ;;  %vm7595_vm12 = vmor %vm1163_vm15, %vm1164_vm3 }
 0x3f3   :  { %v1184_v17 = vand.u32 2147483648, %v7416_v10  ;;  %v1199_v31 = vand.u32 2147483648, %v7421_v15  ;;  %v1230_v58 = vadd.f32 %v7431_v24, %v1229_v23  ;;  %vm1193_vm10 = vweird.f32 %v7421_v15 }
 0x3f4   :  { %v1053_v63 = vmul.f32 %v7478_v7, %v1052_v19  ;;  %v1263_v16 = vmul.f32 %v1256_v8, %v1048_v48  ;;  %v1182_v19 = vand.u32 2147483647, %v7416_v10  ;;  %v1197_v22 = vand.u32 2147483647, %v7421_v15  ;;  %vm7577_vm11 = vmor %vm1193_vm10, %vm1194_vm8 }
 0x3f5   :  { %v1265_v1 = vadd.f32 %v1261_v62, %v7447_v9  ;;  %v1167_v47 = vand.u32 2147483647, %v7412_v52  ;;  %v1147_v55 = vadd.f32 %v7429_v28, %v1146_v59  ;;  %v1181_v50 = vsel %vm7569_vm9, %v7450_v5, %v1177_v27  ;;  %v10110_v9 = vld [vmem:[#allocation79_spill] sm:$0xff] }
 0x3f6   :  { %v1054_v44 = vadd.f32 %v7478_v7, %v1053_v63  ;;  %v1267_v4 = vadd.f32 %v1263_v16, %v7467_v3  ;;  %v1196_v10 = vsel %vm7577_vm11, %v7461_v61, %v1192_v20  ;;  %v1154_v15 = vand.u32 2147483648, %v7404_v21 }
 0x3f7   :  { %v1185_v16 = vor.u32 1.1754944e-38, %v1184_v17  ;;  %v1152_v6 = vand.u32 2147483647, %v7404_v21  ;;  %vm1183_vm13 = vcmp.eq.f32.partialorder %v1182_v19, 8.507059e+37  ;;  %vm1198_vm1 = vcmp.eq.f32.partialorder %v1197_v22, 8.507059e+37  ;;  %v10106_v22 = vld [vmem:[#allocation97_spill] sm:$0xff] }
 0x3f8   :  { %v1058_v63 = vsel %vm7544_vm2, %v7478_v7, %v1054_v44  ;;  %v1266_v7 = vadd.f32 %v1262_v0, %v7453_v25  ;;  %v1162_v25 = vadd.f32 %v7444_v29, %v1161_v46  ;;  %5823 = vtanh.f32 %v1267_v4  ;;  %vm7607_vm2 = vmor %vm1148_vm5, %vm1149_vm14 }
 0x3f9   :  { %v1258_v26 = vpop.f32.mrf.mxu3  ;;  %v1063_v53 = vsel %vm1060_vm7, %v1062_v56, %v1058_v63  ;;  %v1200_v44 = vor.u32 1.1754944e-38, %v1199_v31  ;;  %v10090_v59 = vand.u32 2147483648, %v7412_v52  ;;  %v1186_v0 = vsel %vm1183_vm13, %v1185_v16, %v1181_v50 }
 0x3fa   :  { %v1259_v18 = vadd.f32 %v7485_v37, %v1258_v26  ;;  %5825 = vtanh.f32 %v1266_v7  ;;  %v1166_v5 = vsel %vm7595_vm12, %v7444_v29, %v1162_v25  ;;  %v1151_v29 = vsel %vm7607_vm2, %v7429_v28, %v1147_v55 }
 0x3fb   :  { %v1170_v2 = vor.u32 1.1754944e-38, %v10090_v59  ;;  %v1201_v49 = vsel %vm1198_vm1, %v1200_v44, %v1196_v10  ;;  %vm1168_vm15 = vcmp.eq.f32.partialorder %v1167_v47, 8.507059e+37  ;;  %v1155_v63 = vor.u32 1.1754944e-38, %v1154_v15  ;;  %v10108_v10 = vld [vmem:[#allocation75_spill] sm:$0xff]  ;;  %v10109_v15 = vld [vmem:[#allocation77_spill] sm:$0xff] }
 0x3fc   :  { %v1264_v8 = vmul.f32 %v1259_v18, %v1063_v53  ;;  %vm1153_vm3 = vcmp.eq.f32.partialorder %v1152_v6, 8.507059e+37  ;;  %v1275_v21 = vsub.f32 1.0, %v1186_v0  ;;  %v1276_v62 = vsub.f32 1.0, %v1201_v49  ;;  %v10111_v44 = vld [vmem:[#allocation81_spill] sm:$0xff] }
 0x3fd   :  { %v1171_v46 = vsel %vm1168_vm15, %v1170_v2, %v1166_v5  ;;  %v1156_v26 = vsel %vm1153_vm3, %v1155_v63, %v1151_v29  ;;  %v1284_v18 = vmul.f32 %v1201_v49, %v7105_v30  ;;  %v1283_v28 = vmul.f32 %v1186_v0, %v7107_v32  ;;  %v10091_v32 = vld [vmem:[#allocation96_spill] sm:$0xff]  ;;  %v10112_v63 = vld [vmem:[#allocation102_spill] sm:$0xff] }
 0x3fe   :  { %v1268_v48 = vadd.f32 %v1264_v8, %v1230_v58  ;;  %v5824_v45 = vpop.eup %5823  ;;  %v1274_v27 = vsub.f32 1.0, %v1171_v46  ;;  %v1273_v53 = vsub.f32 1.0, %v1156_v26  ;;  %v1282_v58 = vmul.f32 %v1171_v46, %v7112_v33  ;;  %v10092_v33 = vld [vmem:[#allocation69_spill] sm:$0xff] }
 0x3ff   :  { %v1279_v52 = vmul.f32 %v5824_v45, %v1275_v21  ;;  %v1281_v3 = vmul.f32 %v1156_v26, %v7117_v34  ;;  %v10093_v34 = vld [vmem:[#allocation70_spill] sm:$0xff] }
 0x400   :  { %5827 = vtanh.f32 %v1268_v48  ;;  %v5826_v23 = vpop.eup %5825  ;;  %v10115_v26 = vld [vmem:[#allocation78_spill] sm:$0xff] }
 0x401   :  { %5829 = vtanh.f32 %v1265_v1  ;;  %v1278_v20 = vmul.f32 %v5826_v23, %v1274_v27  ;;  %v7621_v8 = vadd.f32 %v1283_v28, %v1279_v52  ;;  %v10113_v23 = vld [vmem:[#allocation76_spill] sm:$0xff]  ;;  %v10119_v28 = vld [vmem:[#allocation82_spill] sm:$0xff] }
 0x402   :  { %v10116_v52 = vld [vmem:[#allocation84_spill] sm:$0xff] }
 0x403   :  { %v7626_v25 = vadd.f32 %v1282_v58, %v1278_v20  ;;  %v10118_v20 = vld [vmem:[#allocation85_spill] sm:$0xff]  ;;  %v10120_v58 = vld [vmem:[#allocation86_spill] sm:$0xff] }
 0x406   :  { %v5828_v56 = vpop.eup %5827 }
 0x407   :  { %v1280_v4 = vmul.f32 %v5828_v56, %v1276_v62  ;;  %v5830_v7 = vpop.eup %5829  ;;  %v10114_v62 = vld [vmem:[#allocation83_spill] sm:$0xff] }
 0x408   :  { %v1277_v31 = vmul.f32 %v5830_v7, %v1273_v53  ;;  %v10117_v7 = vld [vmem:[#allocation80_spill] sm:$0xff] }
 0x409   :  { %v7618_v17 = vadd.f32 %v1284_v18, %v1280_v4 }
 0x40a   :  { %v7630_v30 = vadd.f32 %v1281_v3, %v1277_v31 }
 0x40b   :  { %1301 = vmatpush.msrb.mxu0 %v7618_v17  ;;  %1330 = vmatpush.msrb.mxu1 %v7618_v17 }
 0x40d   :  { %1302 = vmatpush.msrb.mxu0 %v7621_v8  ;;  %1331 = vmatpush.msrb.mxu1 %v7621_v8 }
 0x40f   :  { %1303 = vmatpush.msrb.mxu0 %v7626_v25  ;;  %1332 = vmatpush.msrb.mxu1 %v7626_v25 }
 0x411   :  { %1304 = vmatpush.msrb.mxu0 %v7630_v30  ;;  %1333 = vmatpush.msrb.mxu1 %v7630_v30 }
 0x412   :  { %5375 = vmatmul.msk.f32.vlgmr.msrb.gmra.mxu0 %vm648_vm0, %v7122_v35  ;;  %5379 = vmatmul.msk.f32.vlgmr.msrb.gmra.mxu1 %vm648_vm0, %v7125_v36  ;;  %v10094_v35 = vld [vmem:[#allocation72_spill] sm:$0xff]  ;;  %v10095_v36 = vld [vmem:[#allocation73_spill] sm:$0xff] }
 0x413   :  { %1441 = vmatpush.msra.mxu0 %v7618_v17  ;;  %1482 = vmatpush.msra.mxu1 %v7241_v11  ;;  %v10100_v11 = vld [vmem:[#allocation90_spill] sm:$0xff] }
 0x415   :  { %1442 = vmatpush.msra.mxu0 %v7621_v8  ;;  %1483 = vmatpush.msra.mxu1 %v7244_v12  ;;  %v10101_v12 = vld [vmem:[#allocation100_spill] sm:$0xff] }
 0x417   :  { %1443 = vmatpush.msra.mxu0 %v7626_v25  ;;  %1484 = vmatpush.msra.mxu1 %v7246_v13  ;;  %v10102_v13 = vld [vmem:[#allocation92_spill] sm:$0xff] }
 0x419   :  { %1444 = vmatpush.msra.mxu0 %v7630_v30  ;;  %1485 = vmatpush.msra.mxu1 %v7250_v14  ;;  %v10103_v14 = vld [vmem:[#allocation101_spill] sm:$0xff] }
 0x41a   :  { %5376 = vmatmul.msk.f32.gmra.mxu0 %vm648_vm0, %v7147_v41  ;;  %5380 = vmatmul.msk.f32.gmra.mxu1 %vm648_vm0, %v7151_v43  ;;  %v10099_v41 = vld [vmem:[#allocation74_spill] sm:$0xff] }
 0x41b   :  { %1681 = vmatpush.msrb.mxu0 %v7131_v38  ;;  %1710 = vmatpush.msrb.mxu1 %v7292_v54  ;;  %v10096_v38 = vld [vmem:[#allocation67_spill] sm:$0xff]  ;;  %v10104_v54 = vld [vmem:[#allocation94_spill] sm:$0xff] }
 0x41d   :  { %1682 = vmatpush.msrb.mxu0 %v7140_v39  ;;  %1711 = vmatpush.msrb.mxu1 %v7302_v57  ;;  %v10097_v39 = vld [vmem:[#allocation68_spill] sm:$0xff]  ;;  %v10105_v57 = vld [vmem:[#allocation103_spill] sm:$0xff] }
 0x41f   :  { %1683 = vmatpush.msrb.mxu0 %v7143_v40  ;;  %1712 = vmatpush.msrb.mxu1 %v7312_v60  ;;  %v10098_v40 = vld [vmem:[#allocation71_spill] sm:$0xff] }
 0x421   :  { %1684 = vmatpush.msrb.mxu0 %v7149_v42  ;;  %1713 = vmatpush.msrb.mxu1 %v10091_v32 }
 0x422   :  { %5377 = vmatmul.msk.f32.gmra.mxu0 %vm648_vm0, %v10092_v33  ;;  %5381 = vmatmul.msk.f32.gmra.mxu1 %vm648_vm0, %v10093_v34 }
 0x42a   :  { %5378 = vmatmul.msk.f32.gmra.mxu0 %vm648_vm0, %v10094_v35  ;;  %5382 = vmatmul.msk.f32.gmra.mxu1 %vm648_vm0, %v10095_v36 }
 0x432   :  { %5391 = vmatmul.msk.f32.vlgmr.msra.gmra.mxu0 %vm648_vm0, %v10096_v38 }
 0x43a   :  { %5392 = vmatmul.msk.f32.gmra.mxu0 %vm648_vm0, %v10097_v39 }
 0x442   :  { %5393 = vmatmul.msk.f32.gmra.mxu0 %vm648_vm0, %v10098_v40 }
 0x44a   :  { %5394 = vmatmul.msk.f32.gmra.mxu0 %vm648_vm0, %v10099_v41  ;;  %v10121_v41 = vld [vmem:[#allocation89_spill] sm:$0xff] }
 0x452   :  { %5411 = vmatmul.msk.f32.vlgmr.msrb.gmra.mxu0 %vm648_vm0, %v7630_v30 }
 0x45a   :  { %5412 = vmatmul.msk.f32.gmra.mxu0 %vm648_vm0, %v7626_v25 }
 0x462   :  { %5413 = vmatmul.msk.f32.gmra.mxu0 %vm648_vm0, %v7621_v8 }
 0x46a   :  { %5414 = vmatmul.msk.f32.gmra.mxu0 %vm648_vm0, %v7618_v17 }
 0x48f   :  { %v1306_v42 = vpop.f32.mrf.mxu0  ;;  %v1335_v43 = vpop.f32.mrf.mxu1 }
 0x490   :  { %5383 = vmatmul.msk.f32.vlgmr.msra.gmra.mxu2 %vm648_vm0, %v1335_v43  ;;  %5387 = vmatmul.msk.f32.vlgmr.msra.gmra.mxu3 %vm648_vm0, %v1306_v42  ;;  %v10122_v42 = vld [vmem:[#allocation91_spill] sm:$0xff]  ;;  %v10123_v43 = vld [vmem:[#allocation93_spill] sm:$0xff] }
 0x491   :  { %1819 = vmatpush.msra.mxu2 %v10100_v11  ;;  %1848 = vmatpush.msra.mxu3 %v10101_v12  ;;  %v10124_v11 = vld [vmem:[#allocation95_spill] sm:$0xff] }
 0x493   :  { %1820 = vmatpush.msra.mxu2 %v10102_v13  ;;  %1849 = vmatpush.msra.mxu3 %v10103_v14 }
 0x495   :  { %1821 = vmatpush.msra.mxu2 %v10104_v54  ;;  %1850 = vmatpush.msra.mxu3 %v10105_v57 }
 0x497   :  { %v1309_v60 = vpop.f32.mrf.mxu0  ;;  %v1338_v19 = vpop.f32.mrf.mxu1  ;;  %1822 = vmatpush.msra.mxu2 %v10106_v22  ;;  %1851 = vmatpush.msra.mxu3 %v10107_v51 }
 0x498   :  { %5384 = vmatmul.msk.f32.gmra.mxu2 %vm648_vm0, %v1338_v19  ;;  %5388 = vmatmul.msk.f32.gmra.mxu3 %vm648_vm0, %v1309_v60 }
 0x49f   :  { %v1312_v1 = vpop.f32.mrf.mxu0  ;;  %v1341_v47 = vpop.f32.mrf.mxu1 }
 0x4a0   :  { %5385 = vmatmul.msk.f32.gmra.mxu2 %vm648_vm0, %v1341_v47  ;;  %5389 = vmatmul.msk.f32.gmra.mxu3 %vm648_vm0, %v1312_v1  ;;  %v10125_v1 = vld [vmem:[#allocation105_spill] sm:$0xff] }
 0x4a7   :  { %v1315_v48 = vpop.f32.mrf.mxu0  ;;  %v1344_v55 = vpop.f32.mrf.mxu1 }
 0x4a8   :  { %5386 = vmatmul.msk.f32.gmra.mxu2 %vm648_vm0, %v1344_v55  ;;  %5390 = vmatmul.msk.f32.gmra.mxu3 %vm648_vm0, %v1315_v48 }
 0x4af   :  { %v1446_v50 = vpop.f32.mrf.mxu0 }
 0x4b0   :  { %5395 = vmatmul.msk.f32.vlgmr.msra.gmra.mxu1 %vm648_vm0, %v1446_v50  ;;  %5399 = vmatmul.msk.f32.vlgmr.msrb.gmra.mxu2 %vm648_vm0, %v7630_v30 }
 0x4b1   :  { %1975 = vmatpush.msrb.mxu2 %v10108_v10 }
 0x4b3   :  { %1976 = vmatpush.msrb.mxu2 %v10109_v15 }
 0x4b5   :  { %1977 = vmatpush.msrb.mxu2 %v10110_v9  ;;  %v10126_v9 = vld [vmem:[#allocation106_spill] sm:$0xff] }
 0x4b7   :  { %v1449_v16 = vpop.f32.mrf.mxu0  ;;  %1978 = vmatpush.msrb.mxu2 %v10111_v44 }
 0x4b8   :  { %5396 = vmatmul.msk.f32.gmra.mxu1 %vm648_vm0, %v1449_v16  ;;  %5400 = vmatmul.msk.f32.gmra.mxu2 %vm648_vm0, %v7626_v25 }
 0x4bf   :  { %v1452_v6 = vpop.f32.mrf.mxu0 }
 0x4c0   :  { %5397 = vmatmul.msk.f32.gmra.mxu1 %vm648_vm0, %v1452_v6  ;;  %5401 = vmatmul.msk.f32.gmra.mxu2 %vm648_vm0, %v7621_v8 }
 0x4c7   :  { %v1455_v5 = vpop.f32.mrf.mxu0 }
 0x4c8   :  { %5398 = vmatmul.msk.f32.gmra.mxu1 %vm648_vm0, %v1455_v5  ;;  %5402 = vmatmul.msk.f32.gmra.mxu2 %vm648_vm0, %v7618_v17 }
 0x4cf   :  { %v1686_v13 = vpop.f32.mrf.mxu0 }
 0x4d7   :  { %v1689_v57 = vpop.f32.mrf.mxu0 }
 0x4df   :  { %v1692_v50 = vpop.f32.mrf.mxu0 }
 0x513   :  { %v1376_v61 = vpop.f32.mrf.mxu2  ;;  %v1417_v59 = vpop.f32.mrf.mxu3 }
 0x514   :  { %v1418_v2 = vadd.f32 %v1417_v59, %v1376_v61 }
 0x51b   :  { %v1379_v0 = vpop.f32.mrf.mxu2  ;;  %v1420_v49 = vpop.f32.mrf.mxu3 }
 0x51c   :  { %v1421_v21 = vadd.f32 %v1420_v49, %v1379_v0 }
 0x523   :  { %v1382_v4 = vpop.f32.mrf.mxu2  ;;  %v1423_v18 = vpop.f32.mrf.mxu3 }
 0x524   :  { %v1424_v31 = vadd.f32 %v1423_v18, %v1382_v4 }
 0x52b   :  { %v1385_v34 = vpop.f32.mrf.mxu2  ;;  %v1426_v35 = vpop.f32.mrf.mxu3 }
 0x52c   :  { %v1427_v36 = vadd.f32 %v1426_v35, %v1385_v34 }
 0x52d   :  { %v1487_v29 = vpop.f32.mrf.mxu1 }
 0x52e   :  { %v1499_v45 = vadd.f32 %v1487_v29, %v1418_v2 }
 0x530   :  { %v1503_v46 = vadd.f32 %v10112_v63, %v1499_v45 }
 0x532   :  { %5403 = vmatmul.msk.f32.vlgmr.msrb.gmra.mxu3 %vm648_vm0, %v1503_v46  ;;  %5415 = vmatmul.msk.f32.vlgmr.msrb.gmra.mxu1 %vm648_vm0, %v1503_v46 }
 0x533   :  { %5423 = vmatmul.msk.f32.vlgmr.msra.gmra.mxu2 %vm648_vm0, %v1503_v46  ;;  %2016 = vmatpush.msrb.mxu3 %v10113_v23  ;;  %v1536_v12 = vpop.f32.mrf.mxu2 }
 0x534   :  { %2135 = vmatpush.msra.mxu2 %v10114_v62  ;;  %v1695_v62 = vpop.f32.mrf.mxu0 }
 0x535   :  { %v1490_v56 = vpop.f32.mrf.mxu1  ;;  %2017 = vmatpush.msrb.mxu3 %v10115_v26 }
 0x536   :  { %v1500_v27 = vadd.f32 %v1490_v56, %v1421_v21  ;;  %2136 = vmatpush.msra.mxu2 %v10116_v52 }
 0x537   :  { %2018 = vmatpush.msrb.mxu3 %v10117_v7 }
 0x538   :  { %v1504_v53 = vadd.f32 %v10112_v63, %v1500_v27  ;;  %2137 = vmatpush.msra.mxu2 %v10118_v20 }
 0x539   :  { %2019 = vmatpush.msrb.mxu3 %v10119_v28 }
 0x53a   :  { %5404 = vmatmul.msk.f32.gmra.mxu3 %vm648_vm0, %v1504_v53  ;;  %5416 = vmatmul.msk.f32.gmra.mxu1 %vm648_vm0, %v1504_v53 }
 0x53b   :  { %5424 = vmatmul.msk.f32.gmra.mxu2 %vm648_vm0, %v1504_v53  ;;  %v1539_v14 = vpop.f32.mrf.mxu2 }
 0x53c   :  { %2138 = vmatpush.msra.mxu2 %v10120_v58 }
 0x53d   :  { %v1493_v3 = vpop.f32.mrf.mxu1 }
 0x53e   :  { %v1501_v32 = vadd.f32 %v1493_v3, %v1424_v31 }
 0x540   :  { %v1505_v33 = vadd.f32 %v10112_v63, %v1501_v32 }
 0x542   :  { %5405 = vmatmul.msk.f32.gmra.mxu3 %vm648_vm0, %v1505_v33  ;;  %5417 = vmatmul.msk.f32.gmra.mxu1 %vm648_vm0, %v1505_v33 }
 0x543   :  { %5425 = vmatmul.msk.f32.gmra.mxu2 %vm648_vm0, %v1505_v33  ;;  %v1542_v22 = vpop.f32.mrf.mxu2 }
 0x545   :  { %v1496_v38 = vpop.f32.mrf.mxu1 }
 0x546   :  { %v1502_v39 = vadd.f32 %v1496_v38, %v1427_v36 }
 0x548   :  { %v1506_v40 = vadd.f32 %v10112_v63, %v1502_v39 }
 0x54a   :  { %5406 = vmatmul.msk.f32.gmra.mxu3 %vm648_vm0, %v1506_v40  ;;  %5418 = vmatmul.msk.f32.gmra.mxu1 %vm648_vm0, %v1506_v40 }
 0x54b   :  { %5426 = vmatmul.msk.f32.gmra.mxu2 %vm648_vm0, %v1506_v40  ;;  %v1545_v59 = vpop.f32.mrf.mxu2 }
 0x552   :  { %5427 = vmatmul.msk.f32.vlgmr.msra.gmra.mxu3 %vm648_vm0, %v7630_v30 }
 0x553   :  { %2176 = vmatpush.msra.mxu3 %v10121_v41 }
 0x555   :  { %2177 = vmatpush.msra.mxu3 %v10122_v42 }
 0x557   :  { %2178 = vmatpush.msra.mxu3 %v10123_v43 }
 0x559   :  { %2179 = vmatpush.msra.mxu3 %v10124_v11 }
 0x55a   :  { %5428 = vmatmul.msk.f32.gmra.mxu3 %vm648_vm0, %v7626_v25 }
 0x562   :  { %5429 = vmatmul.msk.f32.gmra.mxu3 %vm648_vm0, %v7621_v8 }
 0x56a   :  { %5430 = vmatmul.msk.f32.gmra.mxu3 %vm648_vm0, %v7618_v17 }
 0x5af   :  { %v1715_v54 = vpop.f32.mrf.mxu1 }
 0x5b0   :  { %v1716_v48 = vadd.f32 %v1715_v54, %v1686_v13 }
 0x5b2   :  { %v1727_v16 = vadd.f32 %v10126_v9, %v1716_v48 }
 0x5b4   :  { %v5419_v0 = vmul.f32 -1.442695, %v1727_v16 }
 0x5b5   :  { %v1577_v60 = vpop.f32.mrf.mxu3 }
 0x5b6   :  { %v1578_v19 = vadd.f32 %v1577_v60, %v1536_v12  ;;  %v1824_v4 = vpop.f32.mrf.mxu2 }
 0x5b7   :  { %v1718_v51 = vpop.f32.mrf.mxu1 }
 0x5b8   :  { %v1589_v47 = vadd.f32 %v10125_v1, %v1578_v19  ;;  %v1719_v10 = vadd.f32 %v1718_v51, %v1689_v57 }
 0x5ba   :  { %v5407_v55 = vmul.f32 -1.442695, %v1589_v47  ;;  %v1728_v2 = vadd.f32 %v10126_v9, %v1719_v10  ;;  %v7806_v10 = vadd.f32 %v7431_v24, %v1824_v4 }
 0x5bc   :  { %5831 = vpow2.f32 %v5407_v55  ;;  %v5420_v63 = vmul.f32 -1.442695, %v1728_v2 }
 0x5bd   :  { %v1580_v15 = vpop.f32.mrf.mxu3 }
 0x5be   :  { %v1581_v44 = vadd.f32 %v1580_v15, %v1539_v14  ;;  %v1827_v42 = vpop.f32.mrf.mxu2 }
 0x5bf   :  { %v1721_v6 = vpop.f32.mrf.mxu1 }
 0x5c0   :  { %v1590_v5 = vadd.f32 %v10125_v1, %v1581_v44  ;;  %v1722_v61 = vadd.f32 %v1721_v6, %v1692_v50  ;;  %v7812_v44 = vadd.f32 %v7431_v24, %v1827_v42 }
 0x5c2   :  { %v5408_v49 = vmul.f32 -1.442695, %v1590_v5  ;;  %v5832_v29 = vpop.eup %5831  ;;  %v1729_v45 = vadd.f32 %v10126_v9, %v1722_v61 }
 0x5c3   :  { %v7757_v23 = vadd.f32 1.0, %v5832_v29 }
 0x5c4   :  { %5833 = vpow2.f32 %v5408_v49  ;;  %v5421_v56 = vmul.f32 -1.442695, %v1729_v45 }
 0x5c5   :  { %v1583_v46 = vpop.f32.mrf.mxu3  ;;  %5835 = vpow2.f32 %v5419_v0  ;;  %vm1614_vm14 = vweird.f32 %v7757_v23  ;;  %v1620_v5 = vand.u32 2147483648, %v7757_v23 }
 0x5c6   :  { %v1584_v21 = vadd.f32 %v1583_v46, %v1542_v22  ;;  %5837 = vpow2.f32 %v5420_v63  ;;  %v1830_v15 = vpop.f32.mrf.mxu2 }
 0x5c7   :  { %v1724_v26 = vpop.f32.mrf.mxu1  ;;  %5839 = vrcp.f32 %v7757_v23  ;;  %v7826_v63 = vadd.f32 %v7431_v24, %v1830_v15 }
 0x5c8   :  { %v1591_v27 = vadd.f32 %v10125_v1, %v1584_v21  ;;  %v1725_v52 = vadd.f32 %v1724_v26, %v1695_v62  ;;  %5841 = vpow2.f32 %v5421_v56 }
 0x5ca   :  { %v5834_v18 = vpop.eup %5833  ;;  %v5409_v7 = vmul.f32 -1.442695, %v1591_v27  ;;  %v1730_v53 = vadd.f32 %v10126_v9, %v1725_v52  ;;  %v1621_v27 = vor.u32 1.1754944e-38, %v1620_v5 }
 0x5cb   :  { %v7762_v20 = vadd.f32 1.0, %v5834_v18  ;;  %v5836_v28 = vpop.eup %5835 }
 0x5cc   :  { %5843 = vpow2.f32 %v5409_v7  ;;  %v5422_v31 = vmul.f32 -1.442695, %v1730_v53  ;;  %v5838_v32 = vpop.eup %5837  ;;  %v7765_v33 = vadd.f32 1.0, %v5836_v28 }
 0x5cd   :  { %5845 = vrcp.f32 %v7762_v20  ;;  %v1586_v58 = vpop.f32.mrf.mxu3  ;;  %v7767_v34 = vpop.eup %5839  ;;  %v7773_v41 = vadd.f32 1.0, %v5838_v32  ;;  %v1633_v21 = vand.u32 2147483647, %v7762_v20  ;;  %v1635_v62 = vand.u32 2147483648, %v7762_v20 }
 0x5ce   :  { %5847 = vpow2.f32 %v5422_v31  ;;  %v1587_v3 = vadd.f32 %v1586_v58, %v1545_v59  ;;  %v5842_v36 = vpop.eup %5841  ;;  %v1610_v54 = vmul.f32 %v7767_v34, %v7757_v23  ;;  %v1618_v59 = vand.u32 2147483647, %v7757_v23 }
 0x5cf   :  { %5849 = vrcp.f32 %v7765_v33  ;;  %v7777_v12 = vadd.f32 1.0, %v5842_v36  ;;  %v1773_v61 = vand.u32 2147483648, %v7773_v41  ;;  %vm1615_vm4 = vweird.f32 %v7767_v34 }
 0x5d0   :  { %v1592_v35 = vadd.f32 %v10125_v1, %v1587_v3  ;;  %v1611_v22 = vsub.f32 1.0, %v1610_v54  ;;  %vm7846_vm7 = vmor %vm1614_vm14, %vm1615_vm4  ;;  %vm1629_vm8 = vweird.f32 %v7762_v20  ;;  %vm7855_vm10 = vcmp.eq.f32.partialorder %v1633_v21, 8.507059e+37 }
 0x5d1   :  { %v1636_v23 = vor.u32 1.1754944e-38, %v1635_v62  ;;  %vm1767_vm3 = vweird.f32 %v7773_v41  ;;  %vm1619_vm14 = vcmp.eq.f32.partialorder %v1618_v59, 8.507059e+37 }
 0x5d2   :  { %v5844_v38 = vpop.eup %5843  ;;  %v5410_v39 = vmul.f32 -1.442695, %v1592_v35  ;;  %v1612_v6 = vmul.f32 %v7767_v34, %v1611_v22 }
 0x5d3   :  { %v7770_v40 = vpop.eup %5845  ;;  %v7775_v43 = vadd.f32 1.0, %v5844_v38 }
 0x5d4   :  { %v5848_v11 = vpop.eup %5847  ;;  %5851 = vpow2.f32 %v5410_v39  ;;  %v1625_v57 = vmul.f32 %v7770_v40, %v7762_v20  ;;  %v1613_v26 = vadd.f32 %v7767_v34, %v1612_v6  ;;  %vm1630_vm5 = vweird.f32 %v7770_v40 }
 0x5d5   :  { %5853 = vrcp.f32 %v7775_v43  ;;  %v7780_v13 = vpop.f32.mrf.mxu3  ;;  %v7782_v14 = vadd.f32 1.0, %v5848_v11  ;;  %v7790_v60 = vpop.eup %5849  ;;  %v1650_v53 = vand.u32 2147483648, %v7775_v43  ;;  %vm1644_vm9 = vweird.f32 %v7775_v43  ;;  %vm7870_vm12 = vmor %vm1629_vm8, %vm1630_vm5 }
 0x5d6   :  { %5855 = vrcp.f32 %v7773_v41  ;;  %v1626_v47 = vsub.f32 1.0, %v1625_v57  ;;  %v7799_v48 = vmul.f32 %v7790_v60, %v7765_v33  ;;  %v1648_v31 = vand.u32 2147483647, %v7775_v43 }
 0x5d7   :  { %5857 = vrcp.f32 %v7777_v12  ;;  %v1617_v38 = vsel %vm7846_vm7, %v7767_v34, %v1613_v26  ;;  %v1854_v22 = vadd.f32 %v7485_v37, %v7780_v13  ;;  %vm1753_vm15 = vweird.f32 %v7790_v60 }
 0x5d8   :  { %5859 = vrcp.f32 %v7782_v14  ;;  %v1627_v2 = vmul.f32 %v7770_v40, %v1626_v47  ;;  %v1749_v29 = vsub.f32 1.0, %v7799_v48  ;;  %vm1649_vm13 = vcmp.eq.f32.partialorder %v1648_v31, 8.507059e+37 }
 0x5d9   :  { %vm1752_vm7 = vweird.f32 %v7765_v33  ;;  %v1756_v39 = vand.u32 2147483647, %v7765_v33 }
 0x5da   :  { %v5852_v19 = vpop.eup %5851  ;;  %v1628_v18 = vadd.f32 %v7770_v40, %v1627_v2  ;;  %v1750_v6 = vmul.f32 %v7790_v60, %v1749_v29 }
 0x5db   :  { %v7793_v51 = vpop.eup %5853  ;;  %v7795_v1 = vadd.f32 1.0, %v5852_v19  ;;  %v1651_v19 = vor.u32 1.1754944e-38, %v1650_v53  ;;  %v1803_v53 = vand.u32 2147483648, %v7782_v14 }
 0x5dc   :  { %v1640_v55 = vmul.f32 %v7793_v51, %v7775_v43  ;;  %v7803_v50 = vpop.eup %5855  ;;  %vm1645_vm6 = vweird.f32 %v7793_v51  ;;  %v1632_v57 = vsel %vm7870_vm12, %v7770_v40, %v1628_v18  ;;  %vm1797_vm12 = vweird.f32 %v7782_v14 }
 0x5dd   :  { %5861 = vrcp.f32 %v7795_v1  ;;  %v1856_v9 = vpop.f32.mrf.mxu3  ;;  %v7809_v16 = vpop.eup %5857  ;;  %v1763_v45 = vmul.f32 %v7803_v50, %v7773_v41  ;;  %vm7861_vm11 = vmor %vm1644_vm9, %vm1645_vm6  ;;  %vm1659_vm2 = vweird.f32 %v7795_v1  ;;  %v1637_v40 = vsel %vm7855_vm10, %v1636_v23, %v1632_v57 }
 0x5de   :  { %v1641_v0 = vsub.f32 1.0, %v1640_v55  ;;  %v7820_v49 = vpop.eup %5859  ;;  %v1778_v46 = vmul.f32 %v7809_v16, %v7777_v12  ;;  %v1857_v34 = vadd.f32 %v7485_v37, %v1856_v9  ;;  %v1665_v55 = vand.u32 2147483648, %v7795_v1 }
 0x5df   :  { %v1793_v4 = vmul.f32 %v7820_v49, %v7782_v14  ;;  %v1764_v3 = vsub.f32 1.0, %v1763_v45  ;;  %v1663_v13 = vand.u32 2147483647, %v7795_v1  ;;  %vm1768_vm5 = vweird.f32 %v7803_v50  ;;  %v1833_v45 = vpop.f32.mrf.mxu2 }
 0x5e0   :  { %v1642_v56 = vmul.f32 %v7793_v51, %v1641_v0  ;;  %v1779_v32 = vsub.f32 1.0, %v1778_v46  ;;  %v1866_v2 = vmul.f32 %v1857_v34, %v1637_v40  ;;  %vm1782_vm6 = vweird.f32 %v7777_v12 }
 0x5e1   :  { %v1794_v54 = vsub.f32 1.0, %v1793_v4  ;;  %v1765_v59 = vmul.f32 %v7803_v50, %v1764_v3  ;;  %vm1783_vm8 = vweird.f32 %v7809_v16  ;;  %v1666_v21 = vor.u32 1.1754944e-38, %v1665_v55  ;;  %v8079_v3 = vld [vmem:[#allocation6 + $0x18] sm:$0xff] }
 0x5e2   :  { %v1643_v7 = vadd.f32 %v7793_v51, %v1642_v56  ;;  %vm1664_vm9 = vcmp.eq.f32.partialorder %v1663_v13, 8.507059e+37  ;;  %vm1798_vm10 = vweird.f32 %v7820_v49  ;;  %v1834_v28 = vadd.f32 %v7431_v24, %v1833_v45  ;;  %v8013_v45 = vld [vmem:[#allocation11] sm:$0xff]  ;;  %10152 = vst [vmem:[#allocation71_spill] sm:$0xff] %v8079_v3 }
 0x5e3   :  { %v7837_v52 = vpop.eup %5861  ;;  %v1795_v5 = vmul.f32 %v7820_v49, %v1794_v54  ;;  %v1751_v23 = vadd.f32 %v7790_v60, %v1750_v6 }
 0x5e4   :  { %v1655_v58 = vmul.f32 %v7837_v52, %v7795_v1  ;;  %v1647_v42 = vsel %vm7861_vm11, %v7793_v51, %v1643_v7  ;;  %vm1660_vm1 = vweird.f32 %v7837_v52  ;;  %v1780_v51 = vmul.f32 %v7809_v16, %v1779_v32  ;;  %vm7924_vm11 = vmor %vm1782_vm6, %vm1783_vm8 }
 0x5e5   :  { %v1859_v20 = vpop.f32.mrf.mxu3  ;;  %v1652_v48 = vsel %vm1649_vm13, %v1651_v19, %v1647_v42  ;;  %vm7899_vm4 = vmor %vm1659_vm2, %vm1660_vm1  ;;  %v1622_v1 = vsel %vm1619_vm14, %v1621_v27, %v1617_v38  ;;  %v1796_v18 = vadd.f32 %v7820_v49, %v1795_v5  ;;  %v1788_v7 = vand.u32 2147483648, %v7777_v12 }
 0x5e6   :  { %v1860_v43 = vadd.f32 %v7485_v37, %v1859_v20  ;;  %v1656_v11 = vsub.f32 1.0, %v1655_v58  ;;  %v1865_v46 = vmul.f32 %v1854_v22, %v1622_v1  ;;  %v1781_v56 = vadd.f32 %v7809_v16, %v1780_v51  ;;  %vm7932_vm13 = vmor %vm1797_vm12, %vm1798_vm10  ;;  %v8001_v1 = vld [vmem:[#allocation11 + $0x18] sm:$0xff] }
 0x5e7   :  { %v1801_v58 = vand.u32 2147483647, %v7782_v14  ;;  %v1771_v32 = vand.u32 2147483647, %v7773_v41  ;;  %v1758_v14 = vand.u32 2147483648, %v7765_v33  ;;  %vm7950_vm1 = vmor %vm1767_vm3, %vm1768_vm5  ;;  %v1789_v20 = vor.u32 1.1754944e-38, %v1788_v7 }
 0x5e8   :  { %v1657_v47 = vmul.f32 %v7837_v52, %v1656_v11  ;;  %v1867_v15 = vmul.f32 %v1860_v43, %v1652_v48  ;;  %v1869_v24 = vadd.f32 %v1865_v46, %v7806_v10  ;;  %v1785_v36 = vsel %vm7924_vm11, %v7809_v16, %v1781_v56  ;;  %v8017_v46 = vld [vmem:[%s10029_s17 + $0x8] sm:$0xff]  ;;  %v8028_v56 = vld [vmem:[#allocation14 + $0x18] sm:$0xff] }
 0x5e9   :  { %v1804_v38 = vor.u32 1.1754944e-38, %v1803_v53  ;;  %vm1802_vm14 = vcmp.eq.f32.partialorder %v1801_v58, 8.507059e+37  ;;  %v1774_v42 = vor.u32 1.1754944e-38, %v1773_v61  ;;  %vm1772_vm3 = vcmp.eq.f32.partialorder %v1771_v32, 8.507059e+37  ;;  %v8046_v7 = vld [vmem:[#allocation14] sm:$0xff]  ;;  %v8050_v53 = vld [vmem:[%s10029_s17 + $0x10] sm:$0xff] }
 0x5ea   :  { %v1658_v9 = vadd.f32 %v7837_v52, %v1657_v47  ;;  %v1871_v26 = vadd.f32 %v1867_v15, %v7826_v63  ;;  %v1786_v63 = vand.u32 2147483647, %v7777_v12  ;;  %v1800_v12 = vsel %vm7932_vm13, %v7820_v49, %v1796_v18  ;;  %v8043_v18 = vld [vmem:[#allocation18] sm:$0xff]  ;;  %10145 = vst [vmem:[#allocation96_spill] sm:$0xff] %v8050_v53  ;;  %v8075_v58 = vld [vmem:[#allocation6 + $0x10] sm:$0xff] }
 0x5eb   :  { %v1805_v11 = vsel %vm1802_vm14, %v1804_v38, %v1800_v12  ;;  %v1759_v57 = vor.u32 1.1754944e-38, %v1758_v14  ;;  %vm1757_vm5 = vcmp.eq.f32.partialorder %v1756_v39, 8.507059e+37  ;;  %10151 = vst [vmem:[#allocation68_spill] sm:$0xff] %v8075_v58  ;;  %v8102_v12 = vld [vmem:[#allocation20 + $0x10] sm:$0xff]  ;;  %v8105_v14 = vld [vmem:[#allocation15 + $0x8] sm:$0xff]  ;;  %v8111_v39 = vld [vmem:[#allocation15] sm:$0xff] }
 0x5ec   :  { %v1662_v29 = vsel %vm7899_vm4, %v7837_v52, %v1658_v9  ;;  %v1870_v52 = vadd.f32 %v1866_v2, %v7812_v44  ;;  %v1766_v44 = vadd.f32 %v7803_v50, %v1765_v59  ;;  %5863 = vtanh.f32 %v1871_v26  ;;  %vm7962_vm4 = vmor %vm1752_vm7, %vm1753_vm15  ;;  %v8009_v59 = vld [vmem:[#allocation11 + $0x8] sm:$0xff]  ;;  %v8031_v26 = vld [vmem:[#allocation18 + $0x10] sm:$0xff]  ;;  %10156 = vst [vmem:[#allocation92_spill] sm:$0xff] %v8102_v12 }
 0x5ed   :  { %v1862_v62 = vpop.f32.mrf.mxu3  ;;  %v1667_v4 = vsel %vm1664_vm9, %v1666_v21, %v1662_v29  ;;  %vm1787_vm2 = vcmp.eq.f32.partialorder %v1786_v63, 8.507059e+37  ;;  %v1880_v22 = vsub.f32 1.0, %v1805_v11  ;;  %v1888_v55 = vmul.f32 %v1805_v11, %v7618_v17  ;;  %v8005_v29 = vld [vmem:[#allocation11 + $0x10] sm:$0xff]  ;;  %v8021_v21 = vld [vmem:[#allocation4 + $0x8] sm:$0xff]  ;;  %10157 = vst [vmem:[#allocation101_spill] sm:$0xff] %v8105_v14 }
 0x5ee   :  { %v1863_v27 = vadd.f32 %v7485_v37, %v1862_v62  ;;  %5865 = vtanh.f32 %v1870_v52  ;;  %v1770_v16 = vsel %vm7950_vm1, %v7803_v50, %v1766_v44  ;;  %v1790_v43 = vsel %vm1787_vm2, %v1789_v20, %v1785_v36  ;;  %v8025_v62 = vld [vmem:[#allocation18 + $0x18] sm:$0xff]  ;;  %v8037_v52 = vld [vmem:[#allocation18 + $0x8] sm:$0xff]  ;;  %v8099_v36 = vld [vmem:[#allocation15 + $0x10] sm:$0xff]  ;;  %10159 = vst [vmem:[#allocation103_spill] sm:$0xff] %v8111_v39 }
 0x5ef   :  { %v1755_v50 = vsel %vm7962_vm4, %v7790_v60, %v1751_v23  ;;  %v1775_v34 = vsel %vm1772_vm3, %v1774_v42, %v1770_v16  ;;  %v1879_v33 = vsub.f32 1.0, %v1790_v43  ;;  %v1887_v60 = vmul.f32 %v1790_v43, %v7621_v8  ;;  %v8063_v37 = vld [vmem:[#allocation4 + $0x18] sm:$0xff]  ;;  %v8067_v44 = vld [vmem:[#allocation6] sm:$0xff]  ;;  %v8071_v63 = vld [vmem:[#allocation6 + $0x8] sm:$0xff]  ;;  %10155 = vst [vmem:[#allocation100_spill] sm:$0xff] %v8099_v36 }
 0x5f0   :  { %v1868_v31 = vmul.f32 %v1863_v27, %v1667_v4  ;;  %v1760_v51 = vsel %vm1757_vm5, %v1759_v57, %v1755_v50  ;;  %v1878_v48 = vsub.f32 1.0, %v1775_v34  ;;  %v1886_v5 = vmul.f32 %v1775_v34, %v7626_v25  ;;  %v7992_v25 = vld [vmem:[%s10029_s17] sm:$0xff]  ;;  %v8034_v27 = vld [vmem:[#allocation14 + $0x10] sm:$0xff]  ;;  %v8040_v4 = vld [vmem:[#allocation14 + $0x8] sm:$0xff]  ;;  %10148 = vst [vmem:[#allocation72_spill] sm:$0xff] %v8063_v37 }
 0x5f1   :  { %v1877_v15 = vsub.f32 1.0, %v1760_v51  ;;  %v1885_v0 = vmul.f32 %v1760_v51, %v7630_v30  ;;  %v7996_v30 = vld [vmem:[#allocation4] sm:$0xff]  ;;  %10149 = vst [vmem:[#allocation73_spill] sm:$0xff] %v8067_v44  ;;  %v8108_v10 = vld [vmem:[#allocation20 + $0x8] sm:$0xff] }
 0x5f2   :  { %v1872_v35 = vadd.f32 %v1868_v31, %v1834_v28  ;;  %v5864_v54 = vpop.eup %5863  ;;  %v8054_v28 = vld [vmem:[#allocation4 + $0x10] sm:$0xff]  ;;  %10150 = vst [vmem:[#allocation67_spill] sm:$0xff] %v8071_v63  ;;  %v8096_v23 = vld [vmem:[#allocation20 + $0x18] sm:$0xff]  ;;  %v8114_v16 = vld [vmem:[#allocation20] sm:$0xff] }
 0x5f3   :  { %v1883_v41 = vmul.f32 %v5864_v54, %v1879_v33  ;;  %10146 = vst [vmem:[#allocation69_spill] sm:$0xff] %v8054_v28  ;;  %v8059_v31 = vld [vmem:[%s10029_s17 + $0x18] sm:$0xff]  ;;  %v8132_v34 = vld [vmem:[#allocation9 + $0x8] sm:$0xff]  ;;  %v8135_v33 = vld [vmem:[#allocation9] sm:$0xff] }
 0x5f4   :  { %5867 = vtanh.f32 %v1872_v35  ;;  %v5866_v19 = vpop.eup %5865  ;;  %10147 = vst [vmem:[#allocation70_spill] sm:$0xff] %v8059_v31  ;;  %v8093_v35 = vld [vmem:[#allocation15 + $0x18] sm:$0xff]  ;;  %v8129_v57 = vld [vmem:[#allocation9 + $0x10] sm:$0xff] }
 0x5f5   :  { %5869 = vtanh.f32 %v1869_v24  ;;  %v1882_v9 = vmul.f32 %v5866_v19, %v1878_v48  ;;  %v7976_v2 = vadd.f32 %v1887_v60, %v1883_v41  ;;  %10153 = vst [vmem:[#allocation74_spill] sm:$0xff] %v8093_v35  ;;  %v8126_v54 = vld [vmem:[#allocation9 + $0x18] sm:$0xff] }
 0x5f6   :  { %10154 = vst [vmem:[#allocation90_spill] sm:$0xff] %v8096_v23 }
 0x5f7   :  { %v7981_v17 = vadd.f32 %v1886_v5, %v1882_v9  ;;  %10158 = vst [vmem:[#allocation94_spill] sm:$0xff] %v8108_v10  ;;  %v8147_v9 = vld [vmem:[#allocation12] ss:$0 sm:$0xff] }
 0x5f8   :  { %10160 = vst [vmem:[#allocation97_spill] sm:$0xff] %v8114_v16 }
 0x5f9   :  { %10161 = vst [vmem:[#allocation104_spill] sm:$0xff] %v8126_v54 }
 0x5fa   :  { %v5868_v47 = vpop.eup %5867  ;;  %10162 = vst [vmem:[#allocation75_spill] sm:$0xff] %v8129_v57 }
 0x5fb   :  { %v1884_v61 = vmul.f32 %v5868_v47, %v1880_v22  ;;  %v5870_v40 = vpop.eup %5869  ;;  %10163 = vst [vmem:[#allocation77_spill] sm:$0xff] %v8132_v34 }
 0x5fc   :  { %v1881_v6 = vmul.f32 %v5870_v40, %v1877_v15  ;;  %10164 = vst [vmem:[#allocation79_spill] sm:$0xff] %v8135_v33 }
 0x5fd   :  { %v7973_v13 = vadd.f32 %v1888_v55, %v1884_v61  ;;  %10165 = vst [vmem:[#allocation81_spill] sm:$0xff] %v8147_v9 }
 0x5fe   :  { %v7985_v8 = vadd.f32 %v1885_v0, %v1881_v6  ;;  %v8153_v6 = vld [vmem:[#allocation8 + $0x18] sm:$0xff] }
 0x5ff   :  { %1905 = vmatpush.msra.mxu0 %v7973_v13  ;;  %1934 = vmatpush.msra.mxu1 %v7973_v13  ;;  %10166 = vst [vmem:[#allocation102_spill] sm:$0xff] %v8153_v6  ;;  %v8156_v0 = vld [vmem:[#allocation17 + $0x18] sm:$0xff] }
 0x600   :  { %10167 = vst [vmem:[#allocation76_spill] sm:$0xff] %v8156_v0 }
 0x601   :  { %1906 = vmatpush.msra.mxu0 %v7976_v2  ;;  %1935 = vmatpush.msra.mxu1 %v7976_v2 }
 0x603   :  { %1907 = vmatpush.msra.mxu0 %v7981_v17  ;;  %1936 = vmatpush.msra.mxu1 %v7981_v17 }
 0x605   :  { %1908 = vmatpush.msra.mxu0 %v7985_v8  ;;  %1937 = vmatpush.msra.mxu1 %v7985_v8 }
 0x606   :  { %5431 = vmatmul.msk.f32.vlgmr.msra.gmra.mxu0 %vm648_vm0, %v7992_v25  ;;  %5435 = vmatmul.msk.f32.vlgmr.msra.gmra.mxu1 %vm648_vm0, %v7996_v30 }
 0x607   :  { %2045 = vmatpush.msrb.mxu0 %v7973_v13  ;;  %2086 = vmatpush.msrb.mxu1 %v8001_v1 }
 0x609   :  { %2046 = vmatpush.msrb.mxu0 %v7976_v2  ;;  %2087 = vmatpush.msrb.mxu1 %v8005_v29 }
 0x60b   :  { %2047 = vmatpush.msrb.mxu0 %v7981_v17  ;;  %2088 = vmatpush.msrb.mxu1 %v8009_v59 }
 0x60d   :  { %2048 = vmatpush.msrb.mxu0 %v7985_v8  ;;  %2089 = vmatpush.msrb.mxu1 %v8013_v45 }
 0x60e   :  { %5432 = vmatmul.msk.f32.gmra.mxu0 %vm648_vm0, %v8017_v46  ;;  %5436 = vmatmul.msk.f32.gmra.mxu1 %vm648_vm0, %v8021_v21 }
 0x60f   :  { %2285 = vmatpush.msra.mxu0 %v8025_v62  ;;  %2314 = vmatpush.msra.mxu1 %v8028_v56 }
 0x611   :  { %2286 = vmatpush.msra.mxu0 %v8031_v26  ;;  %2315 = vmatpush.msra.mxu1 %v8034_v27 }
 0x613   :  { %2287 = vmatpush.msra.mxu0 %v8037_v52  ;;  %2316 = vmatpush.msra.mxu1 %v8040_v4 }
 0x615   :  { %2288 = vmatpush.msra.mxu0 %v8043_v18  ;;  %2317 = vmatpush.msra.mxu1 %v8046_v7 }
 0x616   :  { %5433 = vmatmul.msk.f32.gmra.mxu0 %vm648_vm0, %v8050_v53  ;;  %5437 = vmatmul.msk.f32.gmra.mxu1 %vm648_vm0, %v8054_v28 }
 0x61e   :  { %5434 = vmatmul.msk.f32.gmra.mxu0 %vm648_vm0, %v8059_v31  ;;  %5438 = vmatmul.msk.f32.gmra.mxu1 %vm648_vm0, %v8063_v37 }
 0x626   :  { %5447 = vmatmul.msk.f32.vlgmr.msrb.gmra.mxu0 %vm648_vm0, %v8067_v44 }
 0x62e   :  { %5448 = vmatmul.msk.f32.gmra.mxu0 %vm648_vm0, %v8071_v63 }
 0x636   :  { %5449 = vmatmul.msk.f32.gmra.mxu0 %vm648_vm0, %v8075_v58 }
 0x63e   :  { %5450 = vmatmul.msk.f32.gmra.mxu0 %vm648_vm0, %v8079_v3 }
 0x646   :  { %5467 = vmatmul.msk.f32.vlgmr.msra.gmra.mxu0 %vm648_vm0, %v7985_v8 }
 0x64e   :  { %5468 = vmatmul.msk.f32.gmra.mxu0 %vm648_vm0, %v7981_v17 }
 0x656   :  { %5469 = vmatmul.msk.f32.gmra.mxu0 %vm648_vm0, %v7976_v2 }
 0x65e   :  { %5470 = vmatmul.msk.f32.gmra.mxu0 %vm648_vm0, %v7973_v13 }
 0x683   :  { %v1910_v24 = vpop.f32.mrf.mxu0  ;;  %v1939_v32 = vpop.f32.mrf.mxu1 }
 0x684   :  { %5439 = vmatmul.msk.f32.vlgmr.msrb.gmra.mxu2 %vm648_vm0, %v1939_v32  ;;  %5443 = vmatmul.msk.f32.vlgmr.msrb.gmra.mxu3 %vm648_vm0, %v1910_v24  ;;  %v8159_v32 = vld [vmem:[#allocation8 + $0x10] sm:$0xff] }
 0x685   :  { %2423 = vmatpush.msrb.mxu2 %v8093_v35  ;;  %2452 = vmatpush.msrb.mxu3 %v8096_v23  ;;  %10168 = vst [vmem:[#allocation83_spill] sm:$0xff] %v8159_v32 }
 0x687   :  { %2424 = vmatpush.msrb.mxu2 %v8099_v36  ;;  %2453 = vmatpush.msrb.mxu3 %v8102_v12 }
 0x689   :  { %2425 = vmatpush.msrb.mxu2 %v8105_v14  ;;  %2454 = vmatpush.msrb.mxu3 %v8108_v10 }
 0x68b   :  { %v1913_v20 = vpop.f32.mrf.mxu0  ;;  %v1942_v38 = vpop.f32.mrf.mxu1  ;;  %2426 = vmatpush.msrb.mxu2 %v8111_v39  ;;  %2455 = vmatpush.msrb.mxu3 %v8114_v16 }
 0x68c   :  { %5440 = vmatmul.msk.f32.gmra.mxu2 %vm648_vm0, %v1942_v38  ;;  %5444 = vmatmul.msk.f32.gmra.mxu3 %vm648_vm0, %v1913_v20  ;;  %v8162_v38 = vld [vmem:[#allocation17 + $0x10] sm:$0xff] }
 0x68d   :  { %10169 = vst [vmem:[#allocation78_spill] sm:$0xff] %v8162_v38 }
 0x693   :  { %v1916_v49 = vpop.f32.mrf.mxu0  ;;  %v1945_v42 = vpop.f32.mrf.mxu1 }
 0x694   :  { %5441 = vmatmul.msk.f32.gmra.mxu2 %vm648_vm0, %v1945_v42  ;;  %5445 = vmatmul.msk.f32.gmra.mxu3 %vm648_vm0, %v1916_v49 }
 0x69b   :  { %v1919_v43 = vpop.f32.mrf.mxu0  ;;  %v1948_v11 = vpop.f32.mrf.mxu1 }
 0x69c   :  { %5442 = vmatmul.msk.f32.gmra.mxu2 %vm648_vm0, %v1948_v11  ;;  %5446 = vmatmul.msk.f32.gmra.mxu3 %vm648_vm0, %v1919_v43  ;;  %v8165_v43 = vld [vmem:[#allocation8 + $0x8] sm:$0xff] }
 0x69d   :  { %10170 = vst [vmem:[#allocation84_spill] sm:$0xff] %v8165_v43 }
 0x6a3   :  { %v2050_v50 = vpop.f32.mrf.mxu0 }
 0x6a4   :  { %5451 = vmatmul.msk.f32.vlgmr.msrb.gmra.mxu1 %vm648_vm0, %v2050_v50  ;;  %5455 = vmatmul.msk.f32.vlgmr.msra.gmra.mxu2 %vm648_vm0, %v7985_v8  ;;  %v8169_v50 = vld [vmem:[#allocation17 + $0x8] sm:$0xff] }
 0x6a5   :  { %2579 = vmatpush.msra.mxu2 %v8126_v54  ;;  %10171 = vst [vmem:[#allocation80_spill] sm:$0xff] %v8169_v50 }
 0x6a7   :  { %2580 = vmatpush.msra.mxu2 %v8129_v57 }
 0x6a9   :  { %2581 = vmatpush.msra.mxu2 %v8132_v34 }
 0x6ab   :  { %v2053_v19 = vpop.f32.mrf.mxu0  ;;  %2582 = vmatpush.msra.mxu2 %v8135_v33 }
 0x6ac   :  { %5452 = vmatmul.msk.f32.gmra.mxu1 %vm648_vm0, %v2053_v19  ;;  %5456 = vmatmul.msk.f32.gmra.mxu2 %vm648_vm0, %v7981_v17  ;;  %v8172_v19 = vld [vmem:[#allocation8] sm:$0xff] }
 0x6ad   :  { %10172 = vst [vmem:[#allocation85_spill] sm:$0xff] %v8172_v19 }
 0x6b3   :  { %v2056_v22 = vpop.f32.mrf.mxu0 }
 0x6b4   :  { %5453 = vmatmul.msk.f32.gmra.mxu1 %vm648_vm0, %v2056_v22  ;;  %5457 = vmatmul.msk.f32.gmra.mxu2 %vm648_vm0, %v7976_v2 }
 0x6bb   :  { %v2059_v47 = vpop.f32.mrf.mxu0 }
 0x6bc   :  { %5454 = vmatmul.msk.f32.gmra.mxu1 %vm648_vm0, %v2059_v47  ;;  %5458 = vmatmul.msk.f32.gmra.mxu2 %vm648_vm0, %v7973_v13  ;;  %v8178_v47 = vld [vmem:[#allocation17] sm:$0xff] }
 0x6bd   :  { %10173 = vst [vmem:[#allocation82_spill] sm:$0xff] %v8178_v47 }
 0x707   :  { %v1980_v51 = vpop.f32.mrf.mxu2  ;;  %v2021_v48 = vpop.f32.mrf.mxu3 }
 0x708   :  { %v2022_v41 = vadd.f32 %v2021_v48, %v1980_v51 }
 0x70f   :  { %v1983_v61 = vpop.f32.mrf.mxu2  ;;  %v2024_v55 = vpop.f32.mrf.mxu3 }
 0x710   :  { %v2025_v5 = vadd.f32 %v2024_v55, %v1983_v61 }
 0x717   :  { %v1986_v49 = vpop.f32.mrf.mxu2  ;;  %v2027_v42 = vpop.f32.mrf.mxu3 }
 0x718   :  { %v2028_v22 = vadd.f32 %v2027_v42, %v1986_v49  ;;  %v8200_v49 = vld [vmem:[%s10051_s24 + $0x8] sm:$0xff]  ;;  %v8204_v42 = vld [vmem:[%s10051_s24] sm:$0xff] }
 0x719   :  { %10176 = vst [vmem:[#allocation91_spill] sm:$0xff] %v8200_v49 }
 0x71a   :  { %10177 = vst [vmem:[#allocation93_spill] sm:$0xff] %v8204_v42 }
 0x71f   :  { %v1989_v61 = vpop.f32.mrf.mxu2  ;;  %v2030_v55 = vpop.f32.mrf.mxu3 }
 0x721   :  { %v2091_v40 = vpop.f32.mrf.mxu1 }
 0x722   :  { %v2103_v15 = vadd.f32 %v2091_v40, %v2022_v41  ;;  %v2031_v40 = vadd.f32 %v2030_v55, %v1989_v61 }
 0x724   :  { %v2107_v60 = vadd.f32 %v8147_v9, %v2103_v15 }
 0x726   :  { %5459 = vmatmul.msk.f32.vlgmr.msra.gmra.mxu3 %vm648_vm0, %v2107_v60  ;;  %5471 = vmatmul.msk.f32.vlgmr.msra.gmra.mxu1 %vm648_vm0, %v2107_v60 }
 0x727   :  { %5479 = vmatmul.msk.f32.vlgmr.msrb.gmra.mxu2 %vm648_vm0, %v2107_v60  ;;  %2620 = vmatpush.msra.mxu3 %v8153_v6 }
 0x728   :  { %2739 = vmatpush.msrb.mxu2 %v8156_v0 }
 0x729   :  { %v2094_v24 = vpop.f32.mrf.mxu1  ;;  %2621 = vmatpush.msra.mxu3 %v8159_v32 }
 0x72a   :  { %v2104_v20 = vadd.f32 %v2094_v24, %v2025_v5  ;;  %2740 = vmatpush.msrb.mxu2 %v8162_v38  ;;  %v8192_v24 = vld [vmem:[%s10051_s24 + $0x18] sm:$0xff] }
 0x72b   :  { %2622 = vmatpush.msra.mxu3 %v8165_v43  ;;  %10174 = vst [vmem:[#allocation86_spill] sm:$0xff] %v8192_v24 }
 0x72c   :  { %v2108_v11 = vadd.f32 %v8147_v9, %v2104_v20  ;;  %2741 = vmatpush.msrb.mxu2 %v8169_v50  ;;  %v8196_v20 = vld [vmem:[%s10051_s24 + $0x10] sm:$0xff] }
 0x72d   :  { %2623 = vmatpush.msra.mxu3 %v8172_v19  ;;  %10175 = vst [vmem:[#allocation89_spill] sm:$0xff] %v8196_v20  ;;  %v8216_v19 = vld [vmem:[#allocation23] ss:$0 sm:$0xff] }
 0x72e   :  { %5460 = vmatmul.msk.f32.gmra.mxu3 %vm648_vm0, %v2108_v11  ;;  %5472 = vmatmul.msk.f32.gmra.mxu1 %vm648_vm0, %v2108_v11  ;;  %10179 = vst [vmem:[#allocation105_spill] sm:$0xff] %v8216_v19 }
 0x72f   :  { %5480 = vmatmul.msk.f32.gmra.mxu2 %vm648_vm0, %v2108_v11  ;;  %v2140_v11 = vpop.f32.mrf.mxu2 }
 0x730   :  { %2742 = vmatpush.msrb.mxu2 %v8178_v47 }
 0x731   :  { %v2097_v51 = vpop.f32.mrf.mxu1 }
 0x732   :  { %v2105_v48 = vadd.f32 %v2097_v51, %v2028_v22  ;;  %v2290_v22 = vpop.f32.mrf.mxu0 }
 0x734   :  { %v2109_v41 = vadd.f32 %v8147_v9, %v2105_v48 }
 0x736   :  { %5461 = vmatmul.msk.f32.gmra.mxu3 %vm648_vm0, %v2109_v41  ;;  %5473 = vmatmul.msk.f32.gmra.mxu1 %vm648_vm0, %v2109_v41 }
 0x737   :  { %5481 = vmatmul.msk.f32.gmra.mxu2 %vm648_vm0, %v2109_v41  ;;  %v2143_v51 = vpop.f32.mrf.mxu2 }
 0x739   :  { %v2100_v15 = vpop.f32.mrf.mxu1 }
 0x73a   :  { %v2106_v60 = vadd.f32 %v2100_v15, %v2031_v40  ;;  %v2293_v41 = vpop.f32.mrf.mxu0 }
 0x73c   :  { %v2110_v5 = vadd.f32 %v8147_v9, %v2106_v60  ;;  %v8213_v60 = vld [vmem:[#allocation21] ss:$0 sm:$0xff]  ;;  %v8270_v9 = vld [vmem:[#allocation24] ss:$0 sm:$0xff] }
 0x73d   :  { %10178 = vst [vmem:[#allocation95_spill] sm:$0xff] %v8213_v60 }
 0x73e   :  { %5462 = vmatmul.msk.f32.gmra.mxu3 %vm648_vm0, %v2110_v5  ;;  %5474 = vmatmul.msk.f32.gmra.mxu1 %vm648_vm0, %v2110_v5 }
 0x73f   :  { %5482 = vmatmul.msk.f32.gmra.mxu2 %vm648_vm0, %v2110_v5  ;;  %v2146_v40 = vpop.f32.mrf.mxu2 }
 0x746   :  { %5483 = vmatmul.msk.f32.vlgmr.msrb.gmra.mxu3 %vm648_vm0, %v7985_v8 }
 0x747   :  { %2780 = vmatpush.msrb.mxu3 %v8192_v24  ;;  %v2149_v32 = vpop.f32.mrf.mxu2 }
 0x749   :  { %2781 = vmatpush.msrb.mxu3 %v8196_v20  ;;  %v2296_v20 = vpop.f32.mrf.mxu0 }
 0x74b   :  { %2782 = vmatpush.msrb.mxu3 %v8200_v49 }
 0x74d   :  { %2783 = vmatpush.msrb.mxu3 %v8204_v42 }
 0x74e   :  { %5484 = vmatmul.msk.f32.gmra.mxu3 %vm648_vm0, %v7981_v17 }
 0x756   :  { %5485 = vmatmul.msk.f32.gmra.mxu3 %vm648_vm0, %v7976_v2 }
 0x75e   :  { %5486 = vmatmul.msk.f32.gmra.mxu3 %vm648_vm0, %v7973_v13 }
 0x7a3   :  { %v2319_v48 = vpop.f32.mrf.mxu1 }
 0x7a4   :  { %v2320_v42 = vadd.f32 %v2319_v48, %v2290_v22 }
 0x7a6   :  { %v2331_v50 = vadd.f32 %v8216_v19, %v2320_v42 }
 0x7a8   :  { %v5475_v6 = vmul.f32 -1.442695, %v2331_v50 }
 0x7a9   :  { %v2181_v61 = vpop.f32.mrf.mxu3 }
 0x7aa   :  { %v2182_v55 = vadd.f32 %v2181_v61, %v2140_v11 }
 0x7ab   :  { %v2322_v15 = vpop.f32.mrf.mxu1 }
 0x7ac   :  { %v2193_v5 = vadd.f32 %v8213_v60, %v2182_v55  ;;  %v2323_v24 = vadd.f32 %v2322_v15, %v2293_v41 }
 0x7ae   :  { %v5463_v49 = vmul.f32 -1.442695, %v2193_v5  ;;  %v2332_v0 = vadd.f32 %v8216_v19, %v2323_v24 }
 0x7b0   :  { %5871 = vpow2.f32 %v5463_v49  ;;  %v5476_v49 = vmul.f32 -1.442695, %v2332_v0 }
 0x7b1   :  { %v2184_v47 = vpop.f32.mrf.mxu3 }
 0x7b2   :  { %v2185_v43 = vadd.f32 %v2184_v47, %v2143_v51  ;;  %v2299_v47 = vpop.f32.mrf.mxu0 }
 0x7b3   :  { %v2325_v38 = vpop.f32.mrf.mxu1 }
 0x7b4   :  { %v2194_v11 = vadd.f32 %v8213_v60, %v2185_v43  ;;  %v2326_v61 = vadd.f32 %v2325_v38, %v2296_v20  ;;  %v2428_v20 = vpop.f32.mrf.mxu2 }
 0x7b5   :  { %v8273_v33 = vadd.f32 %v8270_v9, %v2428_v20 }
 0x7b6   :  { %v5464_v55 = vmul.f32 -1.442695, %v2194_v11  ;;  %v5872_v22 = vpop.eup %5871  ;;  %v2333_v48 = vadd.f32 %v8216_v19, %v2326_v61 }
 0x7b7   :  { %v8222_v15 = vadd.f32 1.0, %v5872_v22 }
 0x7b8   :  { %5873 = vpow2.f32 %v5464_v55  ;;  %v5477_v51 = vmul.f32 -1.442695, %v2333_v48 }
 0x7b9   :  { %v2187_v41 = vpop.f32.mrf.mxu3  ;;  %5875 = vpow2.f32 %v5475_v6  ;;  %vm2218_vm15 = vweird.f32 %v8222_v15  ;;  %v2224_v54 = vand.u32 2147483648, %v8222_v15  ;;  %v2222_v20 = vand.u32 2147483647, %v8222_v15 }
 0x7ba   :  { %v2188_v42 = vadd.f32 %v2187_v41, %v2146_v40  ;;  %5877 = vpow2.f32 %v5476_v49 }
 0x7bb   :  { %v2328_v5 = vpop.f32.mrf.mxu1  ;;  %5879 = vrcp.f32 %v8222_v15 }
 0x7bc   :  { %v2195_v38 = vadd.f32 %v8213_v60, %v2188_v42  ;;  %v2329_v43 = vadd.f32 %v2328_v5, %v2299_v47  ;;  %5881 = vpow2.f32 %v5477_v51 }
 0x7be   :  { %v5874_v50 = vpop.eup %5873  ;;  %v5465_v24 = vmul.f32 -1.442695, %v2195_v38  ;;  %v2334_v11 = vadd.f32 %v8216_v19, %v2329_v43  ;;  %v2431_v43 = vpop.f32.mrf.mxu2 }
 0x7bf   :  { %v8227_v0 = vadd.f32 1.0, %v5874_v50  ;;  %v5876_v6 = vpop.eup %5875 }
 0x7c0   :  { %5883 = vpow2.f32 %v5465_v24  ;;  %v5478_v40 = vmul.f32 -1.442695, %v2334_v11  ;;  %v5878_v22 = vpop.eup %5877  ;;  %v8230_v48 = vadd.f32 1.0, %v5876_v6 }
 0x7c1   :  { %5885 = vrcp.f32 %v8227_v0  ;;  %v2190_v61 = vpop.f32.mrf.mxu3  ;;  %v8232_v49 = vpop.eup %5879  ;;  %v8238_v51 = vadd.f32 1.0, %v5878_v22  ;;  %v2237_v36 = vand.u32 2147483647, %v8227_v0  ;;  %vm2233_vm10 = vweird.f32 %v8227_v0 }
 0x7c2   :  { %5887 = vpow2.f32 %v5478_v40  ;;  %v2191_v55 = vadd.f32 %v2190_v61, %v2149_v32  ;;  %v5882_v42 = vpop.eup %5881  ;;  %v2214_v40 = vmul.f32 %v8232_v49, %v8222_v15  ;;  %vm2219_vm6 = vweird.f32 %v8232_v49 }
 0x7c3   :  { %5889 = vrcp.f32 %v8230_v48  ;;  %v8242_v24 = vadd.f32 1.0, %v5882_v42  ;;  %vm8313_vm9 = vmor %vm2218_vm15, %vm2219_vm6  ;;  %vm8322_vm12 = vcmp.eq.f32.partialorder %v2237_v36, 8.507059e+37  ;;  %vm2371_vm5 = vweird.f32 %v8238_v51 }
 0x7c4   :  { %v2196_v41 = vadd.f32 %v8213_v60, %v2191_v55  ;;  %vm2223_vm15 = vcmp.eq.f32.partialorder %v2222_v20, 8.507059e+37 }
 0x7c6   :  { %v5884_v47 = vpop.eup %5883  ;;  %v5466_v5 = vmul.f32 -1.442695, %v2196_v41  ;;  %v2215_v41 = vsub.f32 1.0, %v2214_v40  ;;  %v2434_v40 = vpop.f32.mrf.mxu2 }
 0x7c7   :  { %v8235_v38 = vpop.eup %5885  ;;  %v8240_v50 = vadd.f32 1.0, %v5884_v47 }
 0x7c8   :  { %v5888_v32 = vpop.eup %5887  ;;  %5891 = vpow2.f32 %v5466_v5  ;;  %v2229_v61 = vmul.f32 %v8235_v38, %v8227_v0  ;;  %v2216_v57 = vmul.f32 %v8232_v49, %v2215_v41  ;;  %v8293_v41 = vadd.f32 %v8270_v9, %v2434_v40 }
 0x7c9   :  { %5893 = vrcp.f32 %v8240_v50  ;;  %v8245_v11 = vpop.f32.mrf.mxu3  ;;  %v8247_v6 = vadd.f32 1.0, %v5888_v32  ;;  %v8255_v55 = vpop.eup %5889  ;;  %vm2234_vm7 = vweird.f32 %v8235_v38  ;;  %v2254_v63 = vand.u32 2147483648, %v8240_v50 }
 0x7ca   :  { %5895 = vrcp.f32 %v8238_v51  ;;  %v2230_v5 = vsub.f32 1.0, %v2229_v61  ;;  %v8264_v32 = vmul.f32 %v8255_v55, %v8230_v48  ;;  %v8279_v61 = vadd.f32 %v8270_v9, %v2431_v43  ;;  %vm8337_vm1 = vmor %vm2233_vm10, %vm2234_vm7 }
 0x7cb   :  { %5897 = vrcp.f32 %v8242_v24  ;;  %v2217_v23 = vadd.f32 %v8232_v49, %v2216_v57  ;;  %vm2248_vm11 = vweird.f32 %v8240_v50  ;;  %vm2357_vm3 = vweird.f32 %v8255_v55 }
 0x7cc   :  { %5899 = vrcp.f32 %v8247_v6  ;;  %v2231_v39 = vmul.f32 %v8235_v38, %v2230_v5  ;;  %v2353_v12 = vsub.f32 1.0, %v8264_v32  ;;  %v2239_v5 = vand.u32 2147483648, %v8227_v0 }
 0x7cd   :  { %v2225_v32 = vor.u32 1.1754944e-38, %v2224_v54  ;;  %v2252_v54 = vand.u32 2147483647, %v8240_v50 }
 0x7ce   :  { %v5892_v22 = vpop.eup %5891  ;;  %v2232_v3 = vadd.f32 %v8235_v38, %v2231_v39  ;;  %v2240_v15 = vor.u32 1.1754944e-38, %v2239_v5  ;;  %v2437_v20 = vpop.f32.mrf.mxu2 }
 0x7cf   :  { %v8258_v42 = vpop.eup %5893  ;;  %v8260_v47 = vadd.f32 1.0, %v5892_v22  ;;  %vm2253_vm2 = vcmp.eq.f32.partialorder %v2252_v54, 8.507059e+37 }
 0x7d0   :  { %v2244_v19 = vmul.f32 %v8258_v42, %v8240_v50  ;;  %v8268_v60 = vpop.eup %5895  ;;  %vm2249_vm8 = vweird.f32 %v8258_v42  ;;  %v2221_v50 = vsel %vm8313_vm9, %v8232_v49, %v2217_v23  ;;  %v2236_v23 = vsel %vm8337_vm1, %v8235_v38, %v2232_v3 }
 0x7d1   :  { %5901 = vrcp.f32 %v8260_v47  ;;  %v2460_v22 = vpop.f32.mrf.mxu3  ;;  %v8276_v34 = vpop.eup %5897  ;;  %v2367_v43 = vmul.f32 %v8268_v60, %v8238_v51  ;;  %vm8328_vm13 = vmor %vm2248_vm11, %vm2249_vm8  ;;  %vm2263_vm4 = vweird.f32 %v8260_v47  ;;  %v2241_v3 = vsel %vm8322_vm12, %v2240_v15, %v2236_v23 }
 0x7d2   :  { %v2245_v10 = vsub.f32 1.0, %v2244_v19  ;;  %v8287_v14 = vpop.eup %5899  ;;  %v2382_v16 = vmul.f32 %v8276_v34, %v8242_v24  ;;  %vm2372_vm7 = vweird.f32 %v8268_v60  ;;  %vm2386_vm8 = vweird.f32 %v8242_v24 }
 0x7d3   :  { %v2397_v35 = vmul.f32 %v8287_v14, %v8247_v6  ;;  %v2368_v39 = vsub.f32 1.0, %v2367_v43  ;;  %v8344_v43 = vld [vmem:[#allocation26] ss:$0 sm:$0xff]  ;;  %vm2356_vm9 = vweird.f32 %v8230_v48  ;;  %vm2387_vm10 = vweird.f32 %v8276_v34 }
 0x7d4   :  { %v2246_v19 = vmul.f32 %v8258_v42, %v2245_v10  ;;  %v2383_v44 = vsub.f32 1.0, %v2382_v16  ;;  %v2461_v49 = vadd.f32 %v8344_v43, %v2460_v22  ;;  %v2255_v10 = vor.u32 1.1754944e-38, %v2254_v63 }
 0x7d5   :  { %v2398_v28 = vsub.f32 1.0, %v2397_v35  ;;  %v2458_v53 = vadd.f32 %v8344_v43, %v8245_v11  ;;  %v2269_v35 = vand.u32 2147483648, %v8260_v47  ;;  %v2267_v11 = vand.u32 2147483647, %v8260_v47 }
 0x7d6   :  { %v2247_v58 = vadd.f32 %v8258_v42, %v2246_v19  ;;  %v2354_v22 = vmul.f32 %v8255_v55, %v2353_v12  ;;  %vm2402_vm12 = vweird.f32 %v8287_v14  ;;  %vm2401_vm1 = vweird.f32 %v8247_v6 }
 0x7d7   :  { %v8304_v40 = vpop.eup %5901  ;;  %v2270_v19 = vor.u32 1.1754944e-38, %v2269_v35  ;;  %vm2268_vm11 = vcmp.eq.f32.partialorder %v2267_v11, 8.507059e+37 }
 0x7d8   :  { %v2259_v57 = vmul.f32 %v8304_v40, %v8260_v47  ;;  %v2251_v36 = vsel %vm8328_vm13, %v8258_v42, %v2247_v58  ;;  %vm2264_vm14 = vweird.f32 %v8304_v40  ;;  %v2384_v58 = vmul.f32 %v8276_v34, %v2383_v44  ;;  %vm8393_vm13 = vmor %vm2386_vm8, %vm2387_vm10 }
 0x7d9   :  { %v2463_v0 = vpop.f32.mrf.mxu3  ;;  %v2256_v42 = vsel %vm2253_vm2, %v2255_v10, %v2251_v36  ;;  %v2470_v44 = vmul.f32 %v2461_v49, %v2241_v3  ;;  %vm8368_vm6 = vmor %vm2263_vm4, %vm2264_vm14  ;;  %v2226_v47 = vsel %vm2223_vm15, %v2225_v32, %v2221_v50  ;;  %v2392_v36 = vand.u32 2147483648, %v8242_v24 }
 0x7da   :  { %v2464_v5 = vadd.f32 %v8344_v43, %v2463_v0  ;;  %v2260_v31 = vsub.f32 1.0, %v2259_v57  ;;  %v2469_v57 = vmul.f32 %v2458_v53, %v2226_v47  ;;  %v2385_v0 = vadd.f32 %v8276_v34, %v2384_v58  ;;  %vm8401_vm2 = vmor %vm2401_vm1, %vm2402_vm12 }
 0x7db   :  { %v2407_v53 = vand.u32 2147483648, %v8247_v6  ;;  %v2390_v49 = vand.u32 2147483647, %v8242_v24  ;;  %v2405_v10 = vand.u32 2147483647, %v8247_v6  ;;  %v2355_v3 = vadd.f32 %v8255_v55, %v2354_v22  ;;  %vm8419_vm14 = vmor %vm2371_vm5, %vm2372_vm7 }
 0x7dc   :  { %v2261_v37 = vmul.f32 %v8304_v40, %v2260_v31  ;;  %v2471_v38 = vmul.f32 %v2464_v5, %v2256_v42  ;;  %v2399_v31 = vmul.f32 %v8287_v14, %v2398_v28  ;;  %v2369_v28 = vmul.f32 %v8268_v60, %v2368_v39 }
 0x7dd   :  { %v2438_v5 = vadd.f32 %v8270_v9, %v2437_v20  ;;  %v2473_v58 = vadd.f32 %v2469_v57, %v8273_v33  ;;  %v2375_v42 = vand.u32 2147483647, %v8238_v51  ;;  %v2362_v6 = vand.u32 2147483648, %v8230_v48 }
 0x7de   :  { %v2262_v63 = vadd.f32 %v8304_v40, %v2261_v37  ;;  %v2475_v16 = vadd.f32 %v2471_v38, %v8293_v41  ;;  %v2400_v39 = vadd.f32 %v8287_v14, %v2399_v31  ;;  %v2389_v38 = vsel %vm8393_vm13, %v8276_v34, %v2385_v0 }
 0x7df   :  { %v2408_v11 = vor.u32 1.1754944e-38, %v2407_v53  ;;  %v2360_v22 = vand.u32 2147483647, %v8230_v48  ;;  %vm2391_vm4 = vcmp.eq.f32.partialorder %v2390_v49, 8.507059e+37  ;;  %vm2406_vm15 = vcmp.eq.f32.partialorder %v2405_v10, 8.507059e+37  ;;  %v10214_v10 = vld [vmem:[#allocation97_spill] sm:$0xff] }
 0x7e0   :  { %v2266_v12 = vsel %vm8368_vm6, %v8304_v40, %v2262_v63  ;;  %v2474_v40 = vadd.f32 %v2470_v44, %v8279_v61  ;;  %v2370_v61 = vadd.f32 %v8268_v60, %v2369_v28  ;;  %5903 = vtanh.f32 %v2475_v16  ;;  %vm8431_vm6 = vmor %vm2356_vm9, %vm2357_vm3 }
 0x7e1   :  { %v2466_v15 = vpop.f32.mrf.mxu3  ;;  %v2271_v50 = vsel %vm2268_vm11, %v2270_v19, %v2266_v12  ;;  %v2404_v24 = vsel %vm8401_vm2, %v8287_v14, %v2400_v39  ;;  %v2393_v63 = vor.u32 1.1754944e-38, %v2392_v36  ;;  %v10198_v31 = vand.u32 2147483648, %v8238_v51 }
 0x7e2   :  { %v2467_v32 = vadd.f32 %v8344_v43, %v2466_v15  ;;  %5905 = vtanh.f32 %v2474_v40  ;;  %v2374_v34 = vsel %vm8419_vm14, %v8268_v60, %v2370_v61  ;;  %v2409_v47 = vsel %vm2406_vm15, %v2408_v11, %v2404_v24  ;;  %v10216_v24 = vld [vmem:[#allocation75_spill] sm:$0xff] }
 0x7e3   :  { %v2378_v44 = vor.u32 1.1754944e-38, %v10198_v31  ;;  %v2394_v54 = vsel %vm2391_vm4, %v2393_v63, %v2389_v38  ;;  %v2359_v60 = vsel %vm8431_vm6, %v8255_v55, %v2355_v3  ;;  %vm2376_vm5 = vcmp.eq.f32.partialorder %v2375_v42, 8.507059e+37  ;;  %v10215_v38 = vld [vmem:[#allocation104_spill] sm:$0xff]  ;;  %v10218_v63 = vld [vmem:[#allocation79_spill] sm:$0xff] }
 0x7e4   :  { %v2472_v23 = vmul.f32 %v2467_v32, %v2271_v50  ;;  %v2363_v28 = vor.u32 1.1754944e-38, %v2362_v6  ;;  %vm2361_vm7 = vcmp.eq.f32.partialorder %v2360_v22, 8.507059e+37  ;;  %v2483_v48 = vsub.f32 1.0, %v2394_v54  ;;  %v10217_v6 = vld [vmem:[#allocation77_spill] sm:$0xff] }
 0x7e5   :  { %v2379_v20 = vsel %vm2376_vm5, %v2378_v44, %v2374_v34  ;;  %v2484_v19 = vsub.f32 1.0, %v2409_v47  ;;  %v2492_v40 = vmul.f32 %v2409_v47, %v7973_v13  ;;  %v2491_v55 = vmul.f32 %v2394_v54, %v7976_v2  ;;  %v10199_v2 = vld [vmem:[#allocation96_spill] sm:$0xff] }
 0x7e6   :  { %v2476_v35 = vadd.f32 %v2472_v23, %v2438_v5  ;;  %v5904_v12 = vpop.eup %5903  ;;  %v2364_v0 = vsel %vm2361_vm7, %v2363_v28, %v2359_v60  ;;  %v2482_v16 = vsub.f32 1.0, %v2379_v20  ;;  %v2490_v23 = vmul.f32 %v2379_v20, %v7981_v17  ;;  %v10200_v17 = vld [vmem:[#allocation69_spill] sm:$0xff]  ;;  %v10220_v20 = vld [vmem:[#allocation102_spill] sm:$0xff] }
 0x7e7   :  { %v2487_v51 = vmul.f32 %v5904_v12, %v2483_v48  ;;  %v2481_v39 = vsub.f32 1.0, %v2364_v0  ;;  %v2489_v61 = vmul.f32 %v2364_v0, %v7985_v8  ;;  %v10201_v8 = vld [vmem:[#allocation70_spill] sm:$0xff]  ;;  %v10219_v12 = vld [vmem:[#allocation81_spill] sm:$0xff]  ;;  %v10221_v48 = vld [vmem:[#allocation76_spill] sm:$0xff] }
 0x7e8   :  { %5907 = vtanh.f32 %v2476_v35  ;;  %v5906_v57 = vpop.eup %5905 }
 0x7e9   :  { %5909 = vtanh.f32 %v2473_v58  ;;  %v2486_v36 = vmul.f32 %v5906_v57, %v2482_v16  ;;  %v8445_v41 = vadd.f32 %v2491_v55, %v2487_v51  ;;  %v10223_v16 = vld [vmem:[#allocation78_spill] sm:$0xff] }
 0x7eb   :  { %v8450_v49 = vadd.f32 %v2490_v23, %v2486_v36  ;;  %v10226_v36 = vld [vmem:[#allocation85_spill] sm:$0xff] }
 0x7ee   :  { %v5908_v15 = vpop.eup %5907 }
 0x7ef   :  { %v2488_v32 = vmul.f32 %v5908_v15, %v2484_v19  ;;  %v5910_v50 = vpop.eup %5909  ;;  %v10222_v15 = vld [vmem:[#allocation83_spill] sm:$0xff] }
 0x7f0   :  { %v2485_v5 = vmul.f32 %v5910_v50, %v2481_v39  ;;  %v10225_v39 = vld [vmem:[#allocation80_spill] sm:$0xff] }
 0x7f1   :  { %v8442_v53 = vadd.f32 %v2492_v40, %v2488_v32  ;;  %v10224_v40 = vld [vmem:[#allocation84_spill] sm:$0xff] }
 0x7f2   :  { %v8454_v13 = vadd.f32 %v2489_v61, %v2485_v5  ;;  %v10227_v5 = vld [vmem:[#allocation82_spill] sm:$0xff] }
 0x7f3   :  { %2509 = vmatpush.msrb.mxu0 %v8442_v53  ;;  %2538 = vmatpush.msrb.mxu1 %v8442_v53 }
 0x7f5   :  { %2510 = vmatpush.msrb.mxu0 %v8445_v41  ;;  %2539 = vmatpush.msrb.mxu1 %v8445_v41 }
 0x7f7   :  { %2511 = vmatpush.msrb.mxu0 %v8450_v49  ;;  %2540 = vmatpush.msrb.mxu1 %v8450_v49 }
 0x7f9   :  { %2512 = vmatpush.msrb.mxu0 %v8454_v13  ;;  %2541 = vmatpush.msrb.mxu1 %v8454_v13 }
 0x7fa   :  { %5487 = vmatmul.msk.f32.vlgmr.msrb.gmra.mxu0 %vm648_vm0, %v7992_v25  ;;  %5491 = vmatmul.msk.f32.vlgmr.msrb.gmra.mxu1 %vm648_vm0, %v7996_v30  ;;  %v10202_v25 = vld [vmem:[#allocation72_spill] sm:$0xff]  ;;  %v10203_v30 = vld [vmem:[#allocation73_spill] sm:$0xff] }
 0x7fb   :  { %2649 = vmatpush.msra.mxu0 %v8442_v53  ;;  %2690 = vmatpush.msra.mxu1 %v8001_v1  ;;  %v10204_v1 = vld [vmem:[#allocation67_spill] sm:$0xff] }
 0x7fd   :  { %2650 = vmatpush.msra.mxu0 %v8445_v41  ;;  %2691 = vmatpush.msra.mxu1 %v8005_v29  ;;  %v10205_v29 = vld [vmem:[#allocation68_spill] sm:$0xff] }
 0x7ff   :  { %2651 = vmatpush.msra.mxu0 %v8450_v49  ;;  %2692 = vmatpush.msra.mxu1 %v8009_v59  ;;  %v10206_v59 = vld [vmem:[#allocation71_spill] sm:$0xff] }
 0x801   :  { %2652 = vmatpush.msra.mxu0 %v8454_v13  ;;  %2693 = vmatpush.msra.mxu1 %v8013_v45 }
 0x802   :  { %5488 = vmatmul.msk.f32.gmra.mxu0 %vm648_vm0, %v8017_v46  ;;  %5492 = vmatmul.msk.f32.gmra.mxu1 %vm648_vm0, %v8021_v21  ;;  %v10207_v21 = vld [vmem:[#allocation74_spill] sm:$0xff] }
 0x803   :  { %2889 = vmatpush.msrb.mxu0 %v8025_v62  ;;  %2918 = vmatpush.msrb.mxu1 %v8028_v56  ;;  %v10208_v62 = vld [vmem:[#allocation90_spill] sm:$0xff]  ;;  %v10209_v56 = vld [vmem:[#allocation100_spill] sm:$0xff] }
 0x805   :  { %2890 = vmatpush.msrb.mxu0 %v8031_v26  ;;  %2919 = vmatpush.msrb.mxu1 %v8034_v27  ;;  %v10210_v26 = vld [vmem:[#allocation92_spill] sm:$0xff]  ;;  %v10211_v27 = vld [vmem:[#allocation101_spill] sm:$0xff] }
 0x807   :  { %2891 = vmatpush.msrb.mxu0 %v8037_v52  ;;  %2920 = vmatpush.msrb.mxu1 %v8040_v4  ;;  %v10212_v52 = vld [vmem:[#allocation94_spill] sm:$0xff] }
 0x809   :  { %2892 = vmatpush.msrb.mxu0 %v8043_v18  ;;  %2921 = vmatpush.msrb.mxu1 %v8046_v7  ;;  %v10213_v7 = vld [vmem:[#allocation103_spill] sm:$0xff] }
 0x80a   :  { %5489 = vmatmul.msk.f32.gmra.mxu0 %vm648_vm0, %v10199_v2  ;;  %5493 = vmatmul.msk.f32.gmra.mxu1 %vm648_vm0, %v10200_v17 }
 0x812   :  { %5490 = vmatmul.msk.f32.gmra.mxu0 %vm648_vm0, %v10201_v8  ;;  %5494 = vmatmul.msk.f32.gmra.mxu1 %vm648_vm0, %v10202_v25 }
 0x81a   :  { %5503 = vmatmul.msk.f32.vlgmr.msra.gmra.mxu0 %vm648_vm0, %v10203_v30 }
 0x822   :  { %5504 = vmatmul.msk.f32.gmra.mxu0 %vm648_vm0, %v10204_v1 }
 0x82a   :  { %5505 = vmatmul.msk.f32.gmra.mxu0 %vm648_vm0, %v10205_v29 }
 0x832   :  { %5506 = vmatmul.msk.f32.gmra.mxu0 %vm648_vm0, %v10206_v59  ;;  %v10228_v59 = vld [vmem:[#allocation86_spill] sm:$0xff] }
 0x83a   :  { %5523 = vmatmul.msk.f32.vlgmr.msrb.gmra.mxu0 %vm648_vm0, %v8454_v13 }
 0x842   :  { %5524 = vmatmul.msk.f32.gmra.mxu0 %vm648_vm0, %v8450_v49 }
 0x84a   :  { %5525 = vmatmul.msk.f32.gmra.mxu0 %vm648_vm0, %v8445_v41 }
 0x852   :  { %5526 = vmatmul.msk.f32.gmra.mxu0 %vm648_vm0, %v8442_v53 }
 0x877   :  { %v2514_v45 = vpop.f32.mrf.mxu0  ;;  %v2543_v46 = vpop.f32.mrf.mxu1 }
 0x878   :  { %5495 = vmatmul.msk.f32.vlgmr.msra.gmra.mxu2 %vm648_vm0, %v2543_v46  ;;  %5499 = vmatmul.msk.f32.vlgmr.msra.gmra.mxu3 %vm648_vm0, %v2514_v45  ;;  %v10229_v45 = vld [vmem:[#allocation89_spill] sm:$0xff]  ;;  %v10230_v46 = vld [vmem:[#allocation91_spill] sm:$0xff] }
 0x879   :  { %3027 = vmatpush.msra.mxu2 %v10207_v21  ;;  %3056 = vmatpush.msra.mxu3 %v10208_v62  ;;  %v10231_v21 = vld [vmem:[#allocation93_spill] sm:$0xff] }
 0x87b   :  { %3028 = vmatpush.msra.mxu2 %v10209_v56  ;;  %3057 = vmatpush.msra.mxu3 %v10210_v26 }
 0x87d   :  { %3029 = vmatpush.msra.mxu2 %v10211_v27  ;;  %3058 = vmatpush.msra.mxu3 %v10212_v52 }
 0x87f   :  { %v2517_v4 = vpop.f32.mrf.mxu0  ;;  %v2546_v18 = vpop.f32.mrf.mxu1  ;;  %3030 = vmatpush.msra.mxu2 %v10213_v7  ;;  %3059 = vmatpush.msra.mxu3 %v10214_v10 }
 0x880   :  { %5496 = vmatmul.msk.f32.gmra.mxu2 %vm648_vm0, %v2546_v18  ;;  %5500 = vmatmul.msk.f32.gmra.mxu3 %vm648_vm0, %v2517_v4 }
 0x887   :  { %v2520_v37 = vpop.f32.mrf.mxu0  ;;  %v2549_v58 = vpop.f32.mrf.mxu1 }
 0x888   :  { %5497 = vmatmul.msk.f32.gmra.mxu2 %vm648_vm0, %v2549_v58  ;;  %5501 = vmatmul.msk.f32.gmra.mxu3 %vm648_vm0, %v2520_v37  ;;  %v10232_v37 = vld [vmem:[#allocation95_spill] sm:$0xff] }
 0x88f   :  { %v2523_v42 = vpop.f32.mrf.mxu0  ;;  %v2552_v35 = vpop.f32.mrf.mxu1 }
 0x890   :  { %5498 = vmatmul.msk.f32.gmra.mxu2 %vm648_vm0, %v2552_v35  ;;  %5502 = vmatmul.msk.f32.gmra.mxu3 %vm648_vm0, %v2523_v42 }
 0x897   :  { %v2654_v3 = vpop.f32.mrf.mxu0 }
 0x898   :  { %5507 = vmatmul.msk.f32.vlgmr.msra.gmra.mxu1 %vm648_vm0, %v2654_v3  ;;  %5511 = vmatmul.msk.f32.vlgmr.msrb.gmra.mxu2 %vm648_vm0, %v8454_v13 }
 0x899   :  { %3183 = vmatpush.msrb.mxu2 %v10215_v38 }
 0x89b   :  { %3184 = vmatpush.msrb.mxu2 %v10216_v24 }
 0x89d   :  { %3185 = vmatpush.msrb.mxu2 %v10217_v6  ;;  %v10233_v6 = vld [vmem:[#allocation105_spill] sm:$0xff] }
 0x89f   :  { %v2657_v33 = vpop.f32.mrf.mxu0  ;;  %3186 = vmatpush.msrb.mxu2 %v10218_v63 }
 0x8a0   :  { %5508 = vmatmul.msk.f32.gmra.mxu1 %vm648_vm0, %v2657_v33  ;;  %5512 = vmatmul.msk.f32.gmra.mxu2 %vm648_vm0, %v8450_v49 }
 0x8a7   :  { %v2660_v11 = vpop.f32.mrf.mxu0 }
 0x8a8   :  { %5509 = vmatmul.msk.f32.gmra.mxu1 %vm648_vm0, %v2660_v11  ;;  %5513 = vmatmul.msk.f32.gmra.mxu2 %vm648_vm0, %v8445_v41 }
 0x8af   :  { %v2663_v22 = vpop.f32.mrf.mxu0 }
 0x8b0   :  { %5510 = vmatmul.msk.f32.gmra.mxu1 %vm648_vm0, %v2663_v22  ;;  %5514 = vmatmul.msk.f32.gmra.mxu2 %vm648_vm0, %v8442_v53 }
 0x8b7   :  { %v2894_v56 = vpop.f32.mrf.mxu0 }
 0x8bf   :  { %v2897_v52 = vpop.f32.mrf.mxu0 }
 0x8c7   :  { %v2900_v3 = vpop.f32.mrf.mxu0 }
 0x8fb   :  { %v2584_v34 = vpop.f32.mrf.mxu2  ;;  %v2625_v14 = vpop.f32.mrf.mxu3 }
 0x8fc   :  { %v2626_v31 = vadd.f32 %v2625_v14, %v2584_v34 }
 0x903   :  { %v2587_v44 = vpop.f32.mrf.mxu2  ;;  %v2628_v54 = vpop.f32.mrf.mxu3 }
 0x904   :  { %v2629_v57 = vadd.f32 %v2628_v54, %v2587_v44 }
 0x90b   :  { %v2590_v51 = vpop.f32.mrf.mxu2  ;;  %v2631_v32 = vpop.f32.mrf.mxu3 }
 0x90c   :  { %v2632_v55 = vadd.f32 %v2631_v32, %v2590_v51 }
 0x913   :  { %v2593_v17 = vpop.f32.mrf.mxu2  ;;  %v2634_v8 = vpop.f32.mrf.mxu3 }
 0x914   :  { %v2635_v25 = vadd.f32 %v2634_v8, %v2593_v17 }
 0x915   :  { %v2695_v47 = vpop.f32.mrf.mxu1 }
 0x916   :  { %v2707_v60 = vadd.f32 %v2695_v47, %v2626_v31 }
 0x918   :  { %v2711_v28 = vadd.f32 %v10219_v12, %v2707_v60 }
 0x91a   :  { %5515 = vmatmul.msk.f32.vlgmr.msrb.gmra.mxu3 %vm648_vm0, %v2711_v28  ;;  %5527 = vmatmul.msk.f32.vlgmr.msrb.gmra.mxu1 %vm648_vm0, %v2711_v28 }
 0x91b   :  { %5535 = vmatmul.msk.f32.vlgmr.msra.gmra.mxu2 %vm648_vm0, %v2711_v28  ;;  %3224 = vmatpush.msrb.mxu3 %v10220_v20  ;;  %v2744_v62 = vpop.f32.mrf.mxu2 }
 0x91c   :  { %3343 = vmatpush.msra.mxu2 %v10221_v48  ;;  %v2903_v48 = vpop.f32.mrf.mxu0 }
 0x91d   :  { %v2698_v19 = vpop.f32.mrf.mxu1  ;;  %3225 = vmatpush.msrb.mxu3 %v10222_v15 }
 0x91e   :  { %v2708_v0 = vadd.f32 %v2698_v19, %v2629_v57  ;;  %3344 = vmatpush.msra.mxu2 %v10223_v16 }
 0x91f   :  { %3226 = vmatpush.msrb.mxu3 %v10224_v40 }
 0x920   :  { %v2712_v50 = vadd.f32 %v10219_v12, %v2708_v0  ;;  %3345 = vmatpush.msra.mxu2 %v10225_v39 }
 0x921   :  { %3227 = vmatpush.msrb.mxu3 %v10226_v36 }
 0x922   :  { %5516 = vmatmul.msk.f32.gmra.mxu3 %vm648_vm0, %v2712_v50  ;;  %5528 = vmatmul.msk.f32.gmra.mxu1 %vm648_vm0, %v2712_v50 }
 0x923   :  { %5536 = vmatmul.msk.f32.gmra.mxu2 %vm648_vm0, %v2712_v50  ;;  %v2747_v26 = vpop.f32.mrf.mxu2 }
 0x924   :  { %3346 = vmatpush.msra.mxu2 %v10227_v5 }
 0x925   :  { %v2701_v23 = vpop.f32.mrf.mxu1 }
 0x926   :  { %v2709_v61 = vadd.f32 %v2701_v23, %v2632_v55 }
 0x928   :  { %v2713_v2 = vadd.f32 %v10219_v12, %v2709_v61 }
 0x92a   :  { %5517 = vmatmul.msk.f32.gmra.mxu3 %vm648_vm0, %v2713_v2  ;;  %5529 = vmatmul.msk.f32.gmra.mxu1 %vm648_vm0, %v2713_v2 }
 0x92b   :  { %5537 = vmatmul.msk.f32.gmra.mxu2 %vm648_vm0, %v2713_v2  ;;  %v2750_v7 = vpop.f32.mrf.mxu2 }
 0x92d   :  { %v2704_v30 = vpop.f32.mrf.mxu1 }
 0x92e   :  { %v2710_v1 = vadd.f32 %v2704_v30, %v2635_v25 }
 0x930   :  { %v2714_v29 = vadd.f32 %v10219_v12, %v2710_v1 }
 0x932   :  { %5518 = vmatmul.msk.f32.gmra.mxu3 %vm648_vm0, %v2714_v29  ;;  %5530 = vmatmul.msk.f32.gmra.mxu1 %vm648_vm0, %v2714_v29 }
 0x933   :  { %5538 = vmatmul.msk.f32.gmra.mxu2 %vm648_vm0, %v2714_v29  ;;  %v2753_v14 = vpop.f32.mrf.mxu2 }
 0x93a   :  { %5539 = vmatmul.msk.f32.vlgmr.msra.gmra.mxu3 %vm648_vm0, %v8454_v13 }
 0x93b   :  { %3384 = vmatpush.msra.mxu3 %v10228_v59 }
 0x93d   :  { %3385 = vmatpush.msra.mxu3 %v10229_v45 }
 0x93f   :  { %3386 = vmatpush.msra.mxu3 %v10230_v46 }
 0x941   :  { %3387 = vmatpush.msra.mxu3 %v10231_v21 }
 0x942   :  { %5540 = vmatmul.msk.f32.gmra.mxu3 %vm648_vm0, %v8450_v49 }
 0x94a   :  { %5541 = vmatmul.msk.f32.gmra.mxu3 %vm648_vm0, %v8445_v41 }
 0x952   :  { %5542 = vmatmul.msk.f32.gmra.mxu3 %vm648_vm0, %v8442_v53 }
 0x997   :  { %v2923_v27 = vpop.f32.mrf.mxu1 }
 0x998   :  { %v2924_v42 = vadd.f32 %v2923_v27, %v2894_v56 }
 0x99a   :  { %v2935_v33 = vadd.f32 %v10233_v6, %v2924_v42 }
 0x99c   :  { %v5531_v44 = vmul.f32 -1.442695, %v2935_v33 }
 0x99d   :  { %v2785_v4 = vpop.f32.mrf.mxu3 }
 0x99e   :  { %v2786_v18 = vadd.f32 %v2785_v4, %v2744_v62  ;;  %v3032_v51 = vpop.f32.mrf.mxu2 }
 0x99f   :  { %v2926_v10 = vpop.f32.mrf.mxu1 }
 0x9a0   :  { %v2797_v58 = vadd.f32 %v10232_v37, %v2786_v18  ;;  %v2927_v38 = vadd.f32 %v2926_v10, %v2897_v52 }
 0x9a2   :  { %v5519_v35 = vmul.f32 -1.442695, %v2797_v58  ;;  %v2936_v31 = vadd.f32 %v10233_v6, %v2927_v38  ;;  %v8630_v38 = vadd.f32 %v8270_v9, %v3032_v51 }
 0x9a4   :  { %5911 = vpow2.f32 %v5519_v35  ;;  %v5532_v12 = vmul.f32 -1.442695, %v2936_v31 }
 0x9a5   :  { %v2788_v24 = vpop.f32.mrf.mxu3 }
 0x9a6   :  { %v2789_v63 = vadd.f32 %v2788_v24, %v2747_v26  ;;  %v3035_v45 = vpop.f32.mrf.mxu2 }
 0x9a7   :  { %v2929_v11 = vpop.f32.mrf.mxu1 }
 0x9a8   :  { %v2798_v22 = vadd.f32 %v10232_v37, %v2789_v63  ;;  %v2930_v34 = vadd.f32 %v2929_v11, %v2900_v3  ;;  %v8636_v63 = vadd.f32 %v8270_v9, %v3035_v45 }
 0x9aa   :  { %v5520_v54 = vmul.f32 -1.442695, %v2798_v22  ;;  %v5912_v47 = vpop.eup %5911  ;;  %v2937_v60 = vadd.f32 %v10233_v6, %v2930_v34 }
 0x9ab   :  { %v8581_v20 = vadd.f32 1.0, %v5912_v47 }
 0x9ac   :  { %5913 = vpow2.f32 %v5520_v54  ;;  %v5533_v19 = vmul.f32 -1.442695, %v2937_v60 }
 0x9ad   :  { %v2791_v28 = vpop.f32.mrf.mxu3  ;;  %5915 = vpow2.f32 %v5531_v44  ;;  %vm2822_vm3 = vweird.f32 %v8581_v20  ;;  %v2828_v22 = vand.u32 2147483648, %v8581_v20 }
 0x9ae   :  { %v2792_v57 = vadd.f32 %v2791_v28, %v2750_v7  ;;  %5917 = vpow2.f32 %v5532_v12  ;;  %v3038_v24 = vpop.f32.mrf.mxu2 }
 0x9af   :  { %v2932_v15 = vpop.f32.mrf.mxu1  ;;  %5919 = vrcp.f32 %v8581_v20  ;;  %v8650_v12 = vadd.f32 %v8270_v9, %v3038_v24 }
 0x9b0   :  { %v2799_v0 = vadd.f32 %v10232_v37, %v2792_v57  ;;  %v2933_v16 = vadd.f32 %v2932_v15, %v2903_v48  ;;  %5921 = vpow2.f32 %v5533_v19 }
 0x9b2   :  { %v5914_v32 = vpop.eup %5913  ;;  %v5521_v40 = vmul.f32 -1.442695, %v2799_v0  ;;  %v2938_v50 = vadd.f32 %v10233_v6, %v2933_v16  ;;  %v2829_v0 = vor.u32 1.1754944e-38, %v2828_v22 }
 0x9b3   :  { %v8586_v39 = vadd.f32 1.0, %v5914_v32  ;;  %v5916_v36 = vpop.eup %5915 }
 0x9b4   :  { %5923 = vpow2.f32 %v5521_v40  ;;  %v5534_v55 = vmul.f32 -1.442695, %v2938_v50  ;;  %v5918_v61 = vpop.eup %5917  ;;  %v8589_v2 = vadd.f32 1.0, %v5916_v36 }
 0x9b5   :  { %5925 = vrcp.f32 %v8586_v39  ;;  %v2794_v5 = vpop.f32.mrf.mxu3  ;;  %v8591_v17 = vpop.eup %5919  ;;  %v8597_v59 = vadd.f32 1.0, %v5918_v61  ;;  %v2841_v57 = vand.u32 2147483647, %v8586_v39  ;;  %v2843_v48 = vand.u32 2147483648, %v8586_v39 }
 0x9b6   :  { %5927 = vpow2.f32 %v5534_v55  ;;  %v2795_v23 = vadd.f32 %v2794_v5, %v2753_v14  ;;  %v5922_v25 = vpop.eup %5921  ;;  %v2818_v27 = vmul.f32 %v8591_v17, %v8581_v20  ;;  %v2826_v14 = vand.u32 2147483647, %v8581_v20 }
 0x9b7   :  { %5929 = vrcp.f32 %v8589_v2  ;;  %v8601_v62 = vadd.f32 1.0, %v5922_v25  ;;  %v2981_v34 = vand.u32 2147483648, %v8597_v59  ;;  %vm2823_vm8 = vweird.f32 %v8591_v17 }
 0x9b8   :  { %v2800_v8 = vadd.f32 %v10232_v37, %v2795_v23  ;;  %v2819_v7 = vsub.f32 1.0, %v2818_v27  ;;  %vm8670_vm11 = vmor %vm2822_vm3, %vm2823_vm8  ;;  %vm2837_vm12 = vweird.f32 %v8586_v39  ;;  %vm8679_vm1 = vcmp.eq.f32.partialorder %v2841_v57, 8.507059e+37 }
 0x9b9   :  { %v2844_v20 = vor.u32 1.1754944e-38, %v2843_v48  ;;  %vm2975_vm7 = vweird.f32 %v8597_v59  ;;  %vm2827_vm3 = vcmp.eq.f32.partialorder %v2826_v14, 8.507059e+37 }
 0x9ba   :  { %v5924_v30 = vpop.eup %5923  ;;  %v5522_v1 = vmul.f32 -1.442695, %v2800_v8  ;;  %v2820_v11 = vmul.f32 %v8591_v17, %v2819_v7 }
 0x9bb   :  { %v8594_v29 = vpop.eup %5925  ;;  %v8599_v46 = vadd.f32 1.0, %v5924_v30 }
 0x9bc   :  { %v5928_v21 = vpop.eup %5927  ;;  %5931 = vpow2.f32 %v5522_v1  ;;  %v2833_v52 = vmul.f32 %v8594_v29, %v8586_v39  ;;  %v2821_v15 = vadd.f32 %v8591_v17, %v2820_v11  ;;  %vm2838_vm9 = vweird.f32 %v8594_v29 }
 0x9bd   :  { %5933 = vrcp.f32 %v8599_v46  ;;  %v8604_v56 = vpop.f32.mrf.mxu3  ;;  %v8606_v26 = vadd.f32 1.0, %v5928_v21  ;;  %v8614_v4 = vpop.eup %5929  ;;  %v2858_v50 = vand.u32 2147483648, %v8599_v46  ;;  %vm2852_vm13 = vweird.f32 %v8599_v46  ;;  %vm8694_vm14 = vmor %vm2837_vm12, %vm2838_vm9 }
 0x9be   :  { %5935 = vrcp.f32 %v8597_v59  ;;  %v2834_v58 = vsub.f32 1.0, %v2833_v52  ;;  %v8623_v42 = vmul.f32 %v8614_v4, %v8589_v2  ;;  %v2856_v55 = vand.u32 2147483647, %v8599_v46 }
 0x9bf   :  { %5937 = vrcp.f32 %v8601_v62  ;;  %v2825_v30 = vsel %vm8670_vm11, %v8591_v17, %v2821_v15  ;;  %v3062_v7 = vadd.f32 %v8344_v43, %v8604_v56  ;;  %vm2961_vm5 = vweird.f32 %v8614_v4 }
 0x9c0   :  { %5939 = vrcp.f32 %v8606_v26  ;;  %v2835_v31 = vmul.f32 %v8594_v29, %v2834_v58  ;;  %v2957_v47 = vsub.f32 1.0, %v8623_v42  ;;  %vm2857_vm4 = vcmp.eq.f32.partialorder %v2856_v55, 8.507059e+37 }
 0x9c1   :  { %vm2960_vm11 = vweird.f32 %v8589_v2  ;;  %v2964_v1 = vand.u32 2147483647, %v8589_v2 }
 0x9c2   :  { %v5932_v18 = vpop.eup %5931  ;;  %v2836_v32 = vadd.f32 %v8594_v29, %v2835_v31  ;;  %v2958_v11 = vmul.f32 %v8614_v4, %v2957_v47 }
 0x9c3   :  { %v8617_v10 = vpop.eup %5933  ;;  %v8619_v37 = vadd.f32 1.0, %v5932_v18  ;;  %v2859_v18 = vor.u32 1.1754944e-38, %v2858_v50  ;;  %v3011_v50 = vand.u32 2147483648, %v8606_v26 }
 0x9c4   :  { %v2848_v35 = vmul.f32 %v8617_v10, %v8599_v46  ;;  %v8627_v3 = vpop.eup %5935  ;;  %vm2853_vm10 = vweird.f32 %v8617_v10  ;;  %v2840_v52 = vsel %vm8694_vm14, %v8594_v29, %v2836_v32  ;;  %vm3005_vm14 = vweird.f32 %v8606_v26 }
 0x9c5   :  { %5941 = vrcp.f32 %v8619_v37  ;;  %v3064_v6 = vpop.f32.mrf.mxu3  ;;  %v8633_v33 = vpop.eup %5937  ;;  %v2971_v60 = vmul.f32 %v8627_v3, %v8597_v59  ;;  %vm8685_vm2 = vmor %vm2852_vm13, %vm2853_vm10  ;;  %vm2867_vm6 = vweird.f32 %v8619_v37  ;;  %v2845_v29 = vsel %vm8679_vm1, %v2844_v20, %v2840_v52 }
 0x9c6   :  { %v2849_v44 = vsub.f32 1.0, %v2848_v35  ;;  %v8644_v54 = vpop.eup %5939  ;;  %v2986_v28 = vmul.f32 %v8633_v33, %v8601_v62  ;;  %v3065_v17 = vadd.f32 %v8344_v43, %v3064_v6  ;;  %v2873_v35 = vand.u32 2147483648, %v8619_v37 }
 0x9c7   :  { %v3001_v51 = vmul.f32 %v8644_v54, %v8606_v26  ;;  %v2972_v23 = vsub.f32 1.0, %v2971_v60  ;;  %v2871_v56 = vand.u32 2147483647, %v8619_v37  ;;  %vm2976_vm9 = vweird.f32 %v8627_v3  ;;  %v3041_v60 = vpop.f32.mrf.mxu2 }
 0x9c8   :  { %v2850_v19 = vmul.f32 %v8617_v10, %v2849_v44  ;;  %v2987_v61 = vsub.f32 1.0, %v2986_v28  ;;  %v3074_v31 = vmul.f32 %v3065_v17, %v2845_v29  ;;  %vm2990_vm10 = vweird.f32 %v8601_v62 }
 0x9c9   :  { %v3002_v27 = vsub.f32 1.0, %v3001_v51  ;;  %v2973_v14 = vmul.f32 %v8627_v3, %v2972_v23  ;;  %vm2991_vm12 = vweird.f32 %v8633_v33  ;;  %v2874_v57 = vor.u32 1.1754944e-38, %v2873_v35  ;;  %v8903_v23 = vld [vmem:[#allocation6 + $0x18] sm:$0xff] }
 0x9ca   :  { %v2851_v40 = vadd.f32 %v8617_v10, %v2850_v19  ;;  %vm2872_vm13 = vcmp.eq.f32.partialorder %v2871_v56, 8.507059e+37  ;;  %vm3006_vm1 = vweird.f32 %v8644_v54  ;;  %v3042_v36 = vadd.f32 %v8270_v9, %v3041_v60  ;;  %v8837_v60 = vld [vmem:[#allocation11] sm:$0xff]  ;;  %10261 = vst [vmem:[#allocation74_spill] sm:$0xff] %v8903_v23 }
 0x9cb   :  { %v8661_v16 = vpop.eup %5941  ;;  %v3003_v22 = vmul.f32 %v8644_v54, %v3002_v27  ;;  %v2959_v20 = vadd.f32 %v8614_v4, %v2958_v11 }
 0x9cc   :  { %v2863_v5 = vmul.f32 %v8661_v16, %v8619_v37  ;;  %v2855_v45 = vsel %vm8685_vm2, %v8617_v10, %v2851_v40  ;;  %vm2868_vm15 = vweird.f32 %v8661_v16  ;;  %v2988_v10 = vmul.f32 %v8633_v33, %v2987_v61  ;;  %vm8748_vm2 = vmor %vm2990_vm10, %vm2991_vm12 }
 0x9cd   :  { %v3067_v39 = vpop.f32.mrf.mxu3  ;;  %v2860_v42 = vsel %vm2857_vm4, %v2859_v18, %v2855_v45  ;;  %vm8723_vm8 = vmor %vm2867_vm6, %vm2868_vm15  ;;  %v2830_v37 = vsel %vm2827_vm3, %v2829_v0, %v2825_v30  ;;  %v3004_v32 = vadd.f32 %v8644_v54, %v3003_v22  ;;  %v2996_v40 = vand.u32 2147483648, %v8601_v62 }
 0x9ce   :  { %v3068_v46 = vadd.f32 %v8344_v43, %v3067_v39  ;;  %v2864_v21 = vsub.f32 1.0, %v2863_v5  ;;  %v3073_v28 = vmul.f32 %v3062_v7, %v2830_v37  ;;  %v2989_v19 = vadd.f32 %v8633_v33, %v2988_v10  ;;  %vm8756_vm4 = vmor %vm3005_vm14, %vm3006_vm1  ;;  %v8825_v37 = vld [vmem:[#allocation11 + $0x18] sm:$0xff] }
 0x9cf   :  { %v3009_v5 = vand.u32 2147483647, %v8606_v26  ;;  %v2979_v61 = vand.u32 2147483647, %v8597_v59  ;;  %v2966_v26 = vand.u32 2147483648, %v8589_v2  ;;  %vm8774_vm15 = vmor %vm2975_vm7, %vm2976_vm9  ;;  %v2997_v39 = vor.u32 1.1754944e-38, %v2996_v40 }
 0x9d0   :  { %v2865_v58 = vmul.f32 %v8661_v16, %v2864_v21  ;;  %v3075_v24 = vmul.f32 %v3068_v46, %v2860_v42  ;;  %v3077_v9 = vadd.f32 %v3073_v28, %v8630_v38  ;;  %v2993_v25 = vsel %vm8748_vm2, %v8633_v33, %v2989_v19  ;;  %v8841_v28 = vld [vmem:[%s10029_s17 + $0x8] sm:$0xff]  ;;  %v8852_v19 = vld [vmem:[#allocation14 + $0x18] sm:$0xff] }
 0x9d1   :  { %v3012_v30 = vor.u32 1.1754944e-38, %v3011_v50  ;;  %vm3010_vm3 = vcmp.eq.f32.partialorder %v3009_v5, 8.507059e+37  ;;  %v2982_v45 = vor.u32 1.1754944e-38, %v2981_v34  ;;  %vm2980_vm7 = vcmp.eq.f32.partialorder %v2979_v61, 8.507059e+37  ;;  %v8870_v40 = vld [vmem:[#allocation14] sm:$0xff]  ;;  %v8874_v50 = vld [vmem:[%s10029_s17 + $0x10] sm:$0xff] }
 0x9d2   :  { %v2866_v6 = vadd.f32 %v8661_v16, %v2865_v58  ;;  %v3079_v15 = vadd.f32 %v3075_v24, %v8650_v12  ;;  %v2994_v12 = vand.u32 2147483647, %v8601_v62  ;;  %v3008_v62 = vsel %vm8756_vm4, %v8644_v54, %v3004_v32  ;;  %v8867_v32 = vld [vmem:[#allocation18] sm:$0xff]  ;;  %10253 = vst [vmem:[#allocation96_spill] sm:$0xff] %v8870_v40  ;;  %v8899_v5 = vld [vmem:[#allocation6 + $0x10] sm:$0xff] }
 0x9d3   :  { %v3013_v21 = vsel %vm3010_vm3, %v3012_v30, %v3008_v62  ;;  %v2967_v52 = vor.u32 1.1754944e-38, %v2966_v26  ;;  %vm2965_vm9 = vcmp.eq.f32.partialorder %v2964_v1, 8.507059e+37  ;;  %10252 = vst [vmem:[#allocation106_spill] sm:$0xff] %v8867_v32  ;;  %v8926_v62 = vld [vmem:[#allocation20 + $0x10] sm:$0xff]  ;;  %v8929_v26 = vld [vmem:[#allocation15 + $0x8] sm:$0xff]  ;;  %v8935_v1 = vld [vmem:[#allocation15] sm:$0xff] }
 0x9d4   :  { %v2870_v47 = vsel %vm8723_vm8, %v8661_v16, %v2866_v6  ;;  %v3078_v16 = vadd.f32 %v3074_v31, %v8636_v63  ;;  %v2974_v63 = vadd.f32 %v8627_v3, %v2973_v14  ;;  %5943 = vtanh.f32 %v3079_v15  ;;  %vm8786_vm8 = vmor %vm2960_vm11, %vm2961_vm5  ;;  %v8833_v14 = vld [vmem:[#allocation11 + $0x8] sm:$0xff]  ;;  %v8855_v15 = vld [vmem:[#allocation18 + $0x10] sm:$0xff]  ;;  %10254 = vst [vmem:[#allocation69_spill] sm:$0xff] %v8874_v50 }
 0x9d5   :  { %v3070_v48 = vpop.f32.mrf.mxu3  ;;  %v2875_v51 = vsel %vm2872_vm13, %v2874_v57, %v2870_v47  ;;  %vm2995_vm6 = vcmp.eq.f32.partialorder %v2994_v12, 8.507059e+37  ;;  %v3088_v7 = vsub.f32 1.0, %v3013_v21  ;;  %v3096_v35 = vmul.f32 %v3013_v21, %v8442_v53  ;;  %v8829_v47 = vld [vmem:[#allocation11 + $0x10] sm:$0xff]  ;;  %v8845_v57 = vld [vmem:[#allocation4 + $0x8] sm:$0xff]  ;;  %10260 = vst [vmem:[#allocation71_spill] sm:$0xff] %v8899_v5 }
 0x9d6   :  { %v3071_v0 = vadd.f32 %v8344_v43, %v3070_v48  ;;  %5945 = vtanh.f32 %v3078_v16  ;;  %v2978_v33 = vsel %vm8774_vm15, %v8627_v3, %v2974_v63  ;;  %v2998_v46 = vsel %vm2995_vm6, %v2997_v39, %v2993_v25  ;;  %v8849_v48 = vld [vmem:[#allocation18 + $0x18] sm:$0xff]  ;;  %v8861_v16 = vld [vmem:[#allocation18 + $0x8] sm:$0xff]  ;;  %v8923_v25 = vld [vmem:[#allocation15 + $0x10] sm:$0xff]  ;;  %10265 = vst [vmem:[#allocation101_spill] sm:$0xff] %v8926_v62 }
 0x9d7   :  { %v2963_v3 = vsel %vm8786_vm8, %v8614_v4, %v2959_v20  ;;  %v2983_v17 = vsel %vm2980_vm7, %v2982_v45, %v2978_v33  ;;  %v3087_v2 = vsub.f32 1.0, %v2998_v46  ;;  %v3095_v4 = vmul.f32 %v2998_v46, %v8445_v41  ;;  %v8887_v43 = vld [vmem:[#allocation4 + $0x18] sm:$0xff]  ;;  %v8891_v63 = vld [vmem:[#allocation6] sm:$0xff]  ;;  %v8895_v12 = vld [vmem:[#allocation6 + $0x8] sm:$0xff]  ;;  %10264 = vst [vmem:[#allocation92_spill] sm:$0xff] %v8923_v25 }
 0x9d8   :  { %v3076_v55 = vmul.f32 %v3071_v0, %v2875_v51  ;;  %v2968_v10 = vsel %vm2965_vm9, %v2967_v52, %v2963_v3  ;;  %v3086_v42 = vsub.f32 1.0, %v2983_v17  ;;  %v3094_v22 = vmul.f32 %v2983_v17, %v8450_v49  ;;  %v8816_v49 = vld [vmem:[%s10029_s17] sm:$0xff]  ;;  %v8858_v0 = vld [vmem:[#allocation14 + $0x10] sm:$0xff]  ;;  %v8864_v51 = vld [vmem:[#allocation14 + $0x8] sm:$0xff]  ;;  %10257 = vst [vmem:[#allocation73_spill] sm:$0xff] %v8887_v43 }
 0x9d9   :  { %v3085_v24 = vsub.f32 1.0, %v2968_v10  ;;  %v3093_v44 = vmul.f32 %v2968_v10, %v8454_v13  ;;  %v8820_v13 = vld [vmem:[#allocation4] sm:$0xff]  ;;  %10258 = vst [vmem:[#allocation67_spill] sm:$0xff] %v8891_v63  ;;  %v8932_v38 = vld [vmem:[#allocation20 + $0x8] sm:$0xff] }
 0x9da   :  { %v3080_v8 = vadd.f32 %v3076_v55, %v3042_v36  ;;  %v5944_v27 = vpop.eup %5943  ;;  %v8878_v36 = vld [vmem:[#allocation4 + $0x10] sm:$0xff]  ;;  %10259 = vst [vmem:[#allocation68_spill] sm:$0xff] %v8895_v12  ;;  %v8920_v20 = vld [vmem:[#allocation20 + $0x18] sm:$0xff]  ;;  %v8938_v33 = vld [vmem:[#allocation20] sm:$0xff] }
 0x9db   :  { %v3091_v59 = vmul.f32 %v5944_v27, %v3087_v2  ;;  %10255 = vst [vmem:[#allocation70_spill] sm:$0xff] %v8878_v36  ;;  %v8883_v55 = vld [vmem:[%s10029_s17 + $0x18] sm:$0xff]  ;;  %v6124_v17 = vld [vmem:[#allocation9 + $0x8] sm:$0xff]  ;;  %v6125_v2 = vld [vmem:[#allocation9] sm:$0xff] }
 0x9dc   :  { %5947 = vtanh.f32 %v3080_v8  ;;  %v5946_v18 = vpop.eup %5945  ;;  %10256 = vst [vmem:[#allocation72_spill] sm:$0xff] %v8883_v55  ;;  %v8917_v8 = vld [vmem:[#allocation15 + $0x18] sm:$0xff]  ;;  %v6123_v52 = vld [vmem:[#allocation9 + $0x10] sm:$0xff] }
 0x9dd   :  { %5949 = vtanh.f32 %v3077_v9  ;;  %v3090_v6 = vmul.f32 %v5946_v18, %v3086_v42  ;;  %v8800_v31 = vadd.f32 %v3095_v4, %v3091_v59  ;;  %10262 = vst [vmem:[#allocation90_spill] sm:$0xff] %v8917_v8  ;;  %v6122_v27 = vld [vmem:[#allocation9 + $0x18] sm:$0xff] }
 0x9de   :  { %10263 = vst [vmem:[#allocation100_spill] sm:$0xff] %v8920_v20 }
 0x9df   :  { %v8805_v53 = vadd.f32 %v3094_v22, %v3090_v6  ;;  %10266 = vst [vmem:[#allocation94_spill] sm:$0xff] %v8929_v26  ;;  %v8959_v6 = vld [vmem:[#allocation12] ss:$0 sm:$0xff] }
 0x9e0   :  { %10267 = vst [vmem:[#allocation103_spill] sm:$0xff] %v8932_v38 }
 0x9e1   :  { %10268 = vst [vmem:[#allocation97_spill] sm:$0xff] %v8935_v1 }
 0x9e2   :  { %v5948_v58 = vpop.eup %5947  ;;  %10269 = vst [vmem:[#allocation104_spill] sm:$0xff] %v8938_v33 }
 0x9e3   :  { %v3092_v34 = vmul.f32 %v5948_v58, %v3088_v7  ;;  %v5950_v29 = vpop.eup %5949  ;;  %10270 = vst [vmem:[#allocation75_spill] sm:$0xff] %v8959_v6 }
 0x9e4   :  { %v3089_v11 = vmul.f32 %v5950_v29, %v3085_v24 }
 0x9e5   :  { %v8797_v56 = vadd.f32 %v3096_v35, %v3092_v34 }
 0x9e6   :  { %v8809_v41 = vadd.f32 %v3093_v44, %v3089_v11  ;;  %v6127_v11 = vld [vmem:[#allocation8 + $0x18] sm:$0xff] }
 0x9e7   :  { %3113 = vmatpush.msra.mxu0 %v8797_v56  ;;  %3142 = vmatpush.msra.mxu1 %v8797_v56  ;;  %v6128_v44 = vld [vmem:[#allocation17 + $0x18] sm:$0xff] }
 0x9e9   :  { %3114 = vmatpush.msra.mxu0 %v8800_v31  ;;  %3143 = vmatpush.msra.mxu1 %v8800_v31 }
 0x9eb   :  { %3115 = vmatpush.msra.mxu0 %v8805_v53  ;;  %3144 = vmatpush.msra.mxu1 %v8805_v53 }
 0x9ed   :  { %3116 = vmatpush.msra.mxu0 %v8809_v41  ;;  %3145 = vmatpush.msra.mxu1 %v8809_v41 }
 0x9ee   :  { %5543 = vmatmul.msk.f32.vlgmr.msra.gmra.mxu0 %vm648_vm0, %v8816_v49  ;;  %5547 = vmatmul.msk.f32.vlgmr.msra.gmra.mxu1 %vm648_vm0, %v8820_v13 }
 0x9ef   :  { %3253 = vmatpush.msrb.mxu0 %v8797_v56  ;;  %3294 = vmatpush.msrb.mxu1 %v8825_v37 }
 0x9f1   :  { %3254 = vmatpush.msrb.mxu0 %v8800_v31  ;;  %3295 = vmatpush.msrb.mxu1 %v8829_v47 }
 0x9f3   :  { %3255 = vmatpush.msrb.mxu0 %v8805_v53  ;;  %3296 = vmatpush.msrb.mxu1 %v8833_v14 }
 0x9f5   :  { %3256 = vmatpush.msrb.mxu0 %v8809_v41  ;;  %3297 = vmatpush.msrb.mxu1 %v8837_v60 }
 0x9f6   :  { %5544 = vmatmul.msk.f32.gmra.mxu0 %vm648_vm0, %v8841_v28  ;;  %5548 = vmatmul.msk.f32.gmra.mxu1 %vm648_vm0, %v8845_v57 }
 0x9f7   :  { %3493 = vmatpush.msra.mxu0 %v8849_v48  ;;  %3522 = vmatpush.msra.mxu1 %v8852_v19 }
 0x9f9   :  { %3494 = vmatpush.msra.mxu0 %v8855_v15  ;;  %3523 = vmatpush.msra.mxu1 %v8858_v0 }
 0x9fb   :  { %3495 = vmatpush.msra.mxu0 %v8861_v16  ;;  %3524 = vmatpush.msra.mxu1 %v8864_v51 }
 0x9fd   :  { %3496 = vmatpush.msra.mxu0 %v8867_v32  ;;  %3525 = vmatpush.msra.mxu1 %v8870_v40 }
 0x9fe   :  { %5545 = vmatmul.msk.f32.gmra.mxu0 %vm648_vm0, %v8874_v50  ;;  %5549 = vmatmul.msk.f32.gmra.mxu1 %vm648_vm0, %v8878_v36 }
 0xa06   :  { %5546 = vmatmul.msk.f32.gmra.mxu0 %vm648_vm0, %v8883_v55  ;;  %5550 = vmatmul.msk.f32.gmra.mxu1 %vm648_vm0, %v8887_v43 }
 0xa0e   :  { %5559 = vmatmul.msk.f32.vlgmr.msrb.gmra.mxu0 %vm648_vm0, %v8891_v63 }
 0xa16   :  { %5560 = vmatmul.msk.f32.gmra.mxu0 %vm648_vm0, %v8895_v12 }
 0xa1e   :  { %5561 = vmatmul.msk.f32.gmra.mxu0 %vm648_vm0, %v8899_v5 }
 0xa26   :  { %5562 = vmatmul.msk.f32.gmra.mxu0 %vm648_vm0, %v8903_v23 }
 0xa2e   :  { %5579 = vmatmul.msk.f32.vlgmr.msra.gmra.mxu0 %vm648_vm0, %v8809_v41 }
 0xa36   :  { %5580 = vmatmul.msk.f32.gmra.mxu0 %vm648_vm0, %v8805_v53 }
 0xa3e   :  { %5581 = vmatmul.msk.f32.gmra.mxu0 %vm648_vm0, %v8800_v31 }
 0xa46   :  { %5582 = vmatmul.msk.f32.gmra.mxu0 %vm648_vm0, %v8797_v56 }
 0xa6b   :  { %v3118_v9 = vpop.f32.mrf.mxu0  ;;  %v3147_v61 = vpop.f32.mrf.mxu1 }
 0xa6c   :  { %5551 = vmatmul.msk.f32.vlgmr.msrb.gmra.mxu2 %vm648_vm0, %v3147_v61  ;;  %5555 = vmatmul.msk.f32.vlgmr.msrb.gmra.mxu3 %vm648_vm0, %v3118_v9  ;;  %v6129_v61 = vld [vmem:[#allocation8 + $0x10] sm:$0xff] }
 0xa6d   :  { %3631 = vmatpush.msrb.mxu2 %v8917_v8  ;;  %3660 = vmatpush.msrb.mxu3 %v8920_v20 }
 0xa6f   :  { %3632 = vmatpush.msrb.mxu2 %v8923_v25  ;;  %3661 = vmatpush.msrb.mxu3 %v8926_v62 }
 0xa71   :  { %3633 = vmatpush.msrb.mxu2 %v8929_v26  ;;  %3662 = vmatpush.msrb.mxu3 %v8932_v38 }
 0xa73   :  { %v3121_v39 = vpop.f32.mrf.mxu0  ;;  %v3150_v30 = vpop.f32.mrf.mxu1  ;;  %3634 = vmatpush.msrb.mxu2 %v8935_v1  ;;  %3663 = vmatpush.msrb.mxu3 %v8938_v33 }
 0xa74   :  { %5552 = vmatmul.msk.f32.gmra.mxu2 %vm648_vm0, %v3150_v30  ;;  %5556 = vmatmul.msk.f32.gmra.mxu3 %vm648_vm0, %v3121_v39  ;;  %v6130_v30 = vld [vmem:[#allocation17 + $0x10] sm:$0xff] }
 0xa7b   :  { %v3124_v54 = vpop.f32.mrf.mxu0  ;;  %v3153_v45 = vpop.f32.mrf.mxu1 }
 0xa7c   :  { %5553 = vmatmul.msk.f32.gmra.mxu2 %vm648_vm0, %v3153_v45  ;;  %5557 = vmatmul.msk.f32.gmra.mxu3 %vm648_vm0, %v3124_v54 }
 0xa83   :  { %v3127_v46 = vpop.f32.mrf.mxu0  ;;  %v3156_v21 = vpop.f32.mrf.mxu1 }
 0xa84   :  { %5554 = vmatmul.msk.f32.gmra.mxu2 %vm648_vm0, %v3156_v21  ;;  %5558 = vmatmul.msk.f32.gmra.mxu3 %vm648_vm0, %v3127_v46  ;;  %v6131_v46 = vld [vmem:[#allocation8 + $0x8] sm:$0xff] }
 0xa8b   :  { %v3258_v3 = vpop.f32.mrf.mxu0 }
 0xa8c   :  { %5563 = vmatmul.msk.f32.vlgmr.msrb.gmra.mxu1 %vm648_vm0, %v3258_v3  ;;  %5567 = vmatmul.msk.f32.vlgmr.msra.gmra.mxu2 %vm648_vm0, %v8809_v41  ;;  %v6132_v3 = vld [vmem:[#allocation17 + $0x8] sm:$0xff] }
 0xa8d   :  { %3787 = vmatpush.msra.mxu2 %v6122_v27  ;;  %v6133_v27 = vld [vmem:[#allocation8] sm:$0xff] }
 0xa8f   :  { %3788 = vmatpush.msra.mxu2 %v6123_v52 }
 0xa91   :  { %3789 = vmatpush.msra.mxu2 %v6124_v17  ;;  %v6134_v17 = vld [vmem:[#allocation17] sm:$0xff] }
 0xa93   :  { %v3261_v18 = vpop.f32.mrf.mxu0  ;;  %3790 = vmatpush.msra.mxu2 %v6125_v2 }
 0xa94   :  { %5564 = vmatmul.msk.f32.gmra.mxu1 %vm648_vm0, %v3261_v18  ;;  %5568 = vmatmul.msk.f32.gmra.mxu2 %vm648_vm0, %v8805_v53 }
 0xa9b   :  { %v3264_v7 = vpop.f32.mrf.mxu0 }
 0xa9c   :  { %5565 = vmatmul.msk.f32.gmra.mxu1 %vm648_vm0, %v3264_v7  ;;  %5569 = vmatmul.msk.f32.gmra.mxu2 %vm648_vm0, %v8800_v31 }
 0xaa3   :  { %v3267_v58 = vpop.f32.mrf.mxu0 }
 0xaa4   :  { %5566 = vmatmul.msk.f32.gmra.mxu1 %vm648_vm0, %v3267_v58  ;;  %5570 = vmatmul.msk.f32.gmra.mxu2 %vm648_vm0, %v8797_v56 }
 0xaef   :  { %v3188_v10 = vpop.f32.mrf.mxu2  ;;  %v3229_v42 = vpop.f32.mrf.mxu3 }
 0xaf0   :  { %v3230_v59 = vadd.f32 %v3229_v42, %v3188_v10 }
 0xaf7   :  { %v3191_v34 = vpop.f32.mrf.mxu2  ;;  %v3232_v35 = vpop.f32.mrf.mxu3 }
 0xaf8   :  { %v3233_v22 = vadd.f32 %v3232_v35, %v3191_v34 }
 0xaff   :  { %v3194_v54 = vpop.f32.mrf.mxu2  ;;  %v3235_v45 = vpop.f32.mrf.mxu3 }
 0xb00   :  { %v3236_v52 = vadd.f32 %v3235_v45, %v3194_v54 }
 0xb07   :  { %v3197_v58 = vpop.f32.mrf.mxu2  ;;  %v3238_v10 = vpop.f32.mrf.mxu3 }
 0xb08   :  { %v3239_v42 = vadd.f32 %v3238_v10, %v3197_v58 }
 0xb09   :  { %v3299_v29 = vpop.f32.mrf.mxu1 }
 0xb0a   :  { %v3311_v24 = vadd.f32 %v3299_v29, %v3230_v59  ;;  %v6135_v29 = vld [vmem:[%s10051_s24 + $0x18] sm:$0xff] }
 0xb0c   :  { %v3315_v4 = vadd.f32 %v8959_v6, %v3311_v24  ;;  %v6136_v24 = vld [vmem:[%s10051_s24 + $0x10] sm:$0xff] }
 0xb0e   :  { %5571 = vmatmul.msk.f32.vlgmr.msra.gmra.mxu3 %vm648_vm0, %v3315_v4  ;;  %5583 = vmatmul.msk.f32.vlgmr.msra.gmra.mxu1 %vm648_vm0, %v3315_v4 }
 0xb0f   :  { %5591 = vmatmul.msk.f32.vlgmr.msrb.gmra.mxu2 %vm648_vm0, %v3315_v4  ;;  %3828 = vmatpush.msra.mxu3 %v6127_v11  ;;  %v6137_v4 = vld [vmem:[%s10051_s24 + $0x8] sm:$0xff]  ;;  %v6138_v11 = vld [vmem:[%s10051_s24] sm:$0xff] }
 0xb10   :  { %3947 = vmatpush.msrb.mxu2 %v6128_v44  ;;  %v3498_v44 = vpop.f32.mrf.mxu0 }
 0xb11   :  { %v3302_v9 = vpop.f32.mrf.mxu1  ;;  %3829 = vmatpush.msra.mxu3 %v6129_v61 }
 0xb12   :  { %v3312_v39 = vadd.f32 %v3302_v9, %v3233_v22  ;;  %3948 = vmatpush.msrb.mxu2 %v6130_v30  ;;  %v3348_v22 = vpop.f32.mrf.mxu2 }
 0xb13   :  { %3830 = vmatpush.msra.mxu3 %v6131_v46 }
 0xb14   :  { %v3316_v21 = vadd.f32 %v8959_v6, %v3312_v39  ;;  %3949 = vmatpush.msrb.mxu2 %v6132_v3 }
 0xb15   :  { %3831 = vmatpush.msra.mxu3 %v6133_v27 }
 0xb16   :  { %5572 = vmatmul.msk.f32.gmra.mxu3 %vm648_vm0, %v3316_v21  ;;  %5584 = vmatmul.msk.f32.gmra.mxu1 %vm648_vm0, %v3316_v21 }
 0xb17   :  { %5592 = vmatmul.msk.f32.gmra.mxu2 %vm648_vm0, %v3316_v21  ;;  %v8989_v21 = vld [vmem:[#allocation21] ss:$0 sm:$0xff] }
 0xb18   :  { %3950 = vmatpush.msrb.mxu2 %v6134_v17  ;;  %v3501_v39 = vpop.f32.mrf.mxu0  ;;  %10271 = vst [vmem:[#allocation77_spill] sm:$0xff] %v8989_v21 }
 0xb19   :  { %v3305_v18 = vpop.f32.mrf.mxu1 }
 0xb1a   :  { %v3313_v2 = vadd.f32 %v3305_v18, %v3236_v52  ;;  %v3351_v9 = vpop.f32.mrf.mxu2 }
 0xb1c   :  { %v3317_v7 = vadd.f32 %v8959_v6, %v3313_v2 }
 0xb1e   :  { %5573 = vmatmul.msk.f32.gmra.mxu3 %vm648_vm0, %v3317_v7  ;;  %5585 = vmatmul.msk.f32.gmra.mxu1 %vm648_vm0, %v3317_v7 }
 0xb1f   :  { %5593 = vmatmul.msk.f32.gmra.mxu2 %vm648_vm0, %v3317_v7  ;;  %v8992_v7 = vld [vmem:[#allocation23] ss:$0 sm:$0xff] }
 0xb20   :  { %v3504_v17 = vpop.f32.mrf.mxu0  ;;  %10272 = vst [vmem:[#allocation79_spill] sm:$0xff] %v8992_v7 }
 0xb21   :  { %v3308_v59 = vpop.f32.mrf.mxu1 }
 0xb22   :  { %v3314_v34 = vadd.f32 %v3308_v59, %v3239_v42  ;;  %v3354_v54 = vpop.f32.mrf.mxu2 }
 0xb24   :  { %v3318_v35 = vadd.f32 %v8959_v6, %v3314_v34 }
 0xb26   :  { %5574 = vmatmul.msk.f32.gmra.mxu3 %vm648_vm0, %v3318_v35  ;;  %5586 = vmatmul.msk.f32.gmra.mxu1 %vm648_vm0, %v3318_v35 }
 0xb27   :  { %5594 = vmatmul.msk.f32.gmra.mxu2 %vm648_vm0, %v3318_v35 }
 0xb2a   :  { %v3357_v59 = vpop.f32.mrf.mxu2 }
 0xb2e   :  { %5595 = vmatmul.msk.f32.vlgmr.msrb.gmra.mxu3 %vm648_vm0, %v8809_v41 }
 0xb2f   :  { %3988 = vmatpush.msrb.mxu3 %v6135_v29 }
 0xb31   :  { %3989 = vmatpush.msrb.mxu3 %v6136_v24 }
 0xb33   :  { %3990 = vmatpush.msrb.mxu3 %v6137_v4 }
 0xb35   :  { %3991 = vmatpush.msrb.mxu3 %v6138_v11 }
 0xb36   :  { %5596 = vmatmul.msk.f32.gmra.mxu3 %vm648_vm0, %v8805_v53 }
 0xb3e   :  { %5597 = vmatmul.msk.f32.gmra.mxu3 %vm648_vm0, %v8800_v31 }
 0xb46   :  { %5598 = vmatmul.msk.f32.gmra.mxu3 %vm648_vm0, %v8797_v56 }
 0xb8b   :  { %v3527_v61 = vpop.f32.mrf.mxu1 }
 0xb8c   :  { %v3528_v27 = vadd.f32 %v3527_v61, %v3498_v44 }
 0xb8e   :  { %v3539_v58 = vadd.f32 %v8992_v7, %v3528_v27 }
 0xb90   :  { %v5587_v24 = vmul.f32 -1.442695, %v3539_v58 }
 0xb91   :  { %v3389_v30 = vpop.f32.mrf.mxu3 }
 0xb92   :  { %v3390_v45 = vadd.f32 %v3389_v30, %v3348_v22 }
 0xb93   :  { %v3530_v46 = vpop.f32.mrf.mxu1 }
 0xb94   :  { %v3401_v3 = vadd.f32 %v8989_v21, %v3390_v45  ;;  %v3531_v18 = vadd.f32 %v3530_v46, %v3501_v39 }
 0xb96   :  { %v5575_v52 = vmul.f32 -1.442695, %v3401_v3  ;;  %v3540_v29 = vadd.f32 %v8992_v7, %v3531_v18  ;;  %v3636_v3 = vpop.f32.mrf.mxu2 }
 0xb98   :  { %5951 = vpow2.f32 %v5575_v52  ;;  %v5588_v44 = vmul.f32 -1.442695, %v3540_v29 }
 0xb99   :  { %v3392_v2 = vpop.f32.mrf.mxu3 }
 0xb9a   :  { %v3393_v10 = vadd.f32 %v3392_v2, %v3351_v9  ;;  %v3507_v9 = vpop.f32.mrf.mxu0 }
 0xb9b   :  { %v3533_v42 = vpop.f32.mrf.mxu1 }
 0xb9c   :  { %v3402_v34 = vadd.f32 %v8989_v21, %v3393_v10  ;;  %v3534_v35 = vadd.f32 %v3533_v42, %v3504_v17 }
 0xb9e   :  { %v5576_v4 = vmul.f32 -1.442695, %v3402_v34  ;;  %v5952_v11 = vpop.eup %5951  ;;  %v3541_v22 = vadd.f32 %v8992_v7, %v3534_v35 }
 0xb9f   :  { %v8998_v39 = vadd.f32 1.0, %v5952_v11 }
 0xba0   :  { %5953 = vpow2.f32 %v5576_v4  ;;  %v5589_v45 = vmul.f32 -1.442695, %v3541_v22 }
 0xba1   :  { %v3395_v61 = vpop.f32.mrf.mxu3  ;;  %5955 = vpow2.f32 %v5587_v24  ;;  %vm3426_vm5 = vweird.f32 %v8998_v39  ;;  %v3430_v38 = vand.u32 2147483647, %v8998_v39  ;;  %v3432_v25 = vand.u32 2147483648, %v8998_v39 }
 0xba2   :  { %v3396_v30 = vadd.f32 %v3395_v61, %v3354_v54  ;;  %5957 = vpow2.f32 %v5588_v44  ;;  %v3639_v44 = vpop.f32.mrf.mxu2 }
 0xba3   :  { %v3536_v46 = vpop.f32.mrf.mxu1  ;;  %5959 = vrcp.f32 %v8998_v39  ;;  %v3433_v5 = vor.u32 1.1754944e-38, %v3432_v25 }
 0xba4   :  { %v3403_v27 = vadd.f32 %v8989_v21, %v3396_v30  ;;  %v3537_v52 = vadd.f32 %v3536_v46, %v3507_v9  ;;  %5961 = vpow2.f32 %v5589_v45 }
 0xba6   :  { %v5954_v17 = vpop.eup %5953  ;;  %v5577_v18 = vmul.f32 -1.442695, %v3403_v27  ;;  %v3542_v2 = vadd.f32 %v8992_v7, %v3537_v52 }
 0xba7   :  { %v9003_v58 = vadd.f32 1.0, %v5954_v17  ;;  %v5956_v10 = vpop.eup %5955 }
 0xba8   :  { %5963 = vpow2.f32 %v5577_v18  ;;  %v5590_v54 = vmul.f32 -1.442695, %v3542_v2  ;;  %v5958_v35 = vpop.eup %5957  ;;  %v9006_v29 = vadd.f32 1.0, %v5956_v10 }
 0xba9   :  { %5965 = vrcp.f32 %v9003_v58  ;;  %v3398_v42 = vpop.f32.mrf.mxu3  ;;  %v9008_v24 = vpop.eup %5959  ;;  %v9014_v9 = vadd.f32 1.0, %v5958_v35  ;;  %vm3441_vm13 = vweird.f32 %v9003_v58 }
 0xbaa   :  { %5967 = vpow2.f32 %v5590_v54  ;;  %v3399_v34 = vadd.f32 %v3398_v42, %v3357_v59  ;;  %v5962_v11 = vpop.eup %5961  ;;  %v3422_v18 = vmul.f32 %v9008_v24, %v8998_v39  ;;  %vm3427_vm11 = vweird.f32 %v9008_v24 }
 0xbab   :  { %5969 = vrcp.f32 %v9006_v29  ;;  %v9018_v46 = vadd.f32 1.0, %v5962_v11  ;;  %v3642_v11 = vpop.f32.mrf.mxu2  ;;  %vm9110_vm15 = vmor %vm3426_vm5, %vm3427_vm11  ;;  %vm3579_vm9 = vweird.f32 %v9014_v9  ;;  %vm3431_vm5 = vcmp.eq.f32.partialorder %v3430_v38, 8.507059e+37 }
 0xbac   :  { %v3404_v4 = vadd.f32 %v8989_v21, %v3399_v34  ;;  %v3423_v35 = vsub.f32 1.0, %v3422_v18 }
 0xbad   :  { %vm3594_vm11 = vweird.f32 %v9018_v46 }
 0xbae   :  { %v5964_v22 = vpop.eup %5963  ;;  %v5578_v61 = vmul.f32 -1.442695, %v3404_v4 }
 0xbaf   :  { %v9011_v30 = vpop.eup %5965  ;;  %v9016_v45 = vadd.f32 1.0, %v5964_v22 }
 0xbb0   :  { %v5968_v59 = vpop.eup %5967  ;;  %5971 = vpow2.f32 %v5578_v61  ;;  %v3437_v17 = vmul.f32 %v9011_v30, %v9003_v58  ;;  %vm3442_vm10 = vweird.f32 %v9011_v30 }
 0xbb1   :  { %5973 = vrcp.f32 %v9016_v45  ;;  %v9021_v27 = vpop.f32.mrf.mxu3  ;;  %v9023_v52 = vadd.f32 1.0, %v5968_v59  ;;  %v9031_v2 = vpop.eup %5969  ;;  %v9046_v59 = vld [vmem:[#allocation24] ss:$0 sm:$0xff]  ;;  %v3462_v23 = vand.u32 2147483648, %v9016_v45  ;;  %vm9088_vm1 = vmor %vm3441_vm13, %vm3442_vm10  ;;  %vm3456_vm2 = vweird.f32 %v9016_v45 }
 0xbb2   :  { %5975 = vrcp.f32 %v9014_v9  ;;  %v3438_v54 = vsub.f32 1.0, %v3437_v17  ;;  %v9040_v4 = vmul.f32 %v9031_v2, %v9006_v29  ;;  %v9049_v21 = vadd.f32 %v9046_v59, %v3636_v3 }
 0xbb3   :  { %5977 = vrcp.f32 %v9018_v46  ;;  %v9055_v18 = vadd.f32 %v9046_v59, %v3639_v44  ;;  %v9061_v1 = vadd.f32 %v9046_v59, %v3642_v11  ;;  %v3424_v3 = vmul.f32 %v9008_v24, %v3423_v35 }
 0xbb4   :  { %5979 = vrcp.f32 %v9023_v52  ;;  %v3439_v7 = vmul.f32 %v9011_v30, %v3438_v54  ;;  %v3561_v62 = vsub.f32 1.0, %v9040_v4  ;;  %v3445_v35 = vand.u32 2147483647, %v9003_v58 }
 0xbb5   :  { %v3447_v11 = vand.u32 2147483648, %v9003_v58  ;;  %v3425_v8 = vadd.f32 %v9008_v24, %v3424_v3  ;;  %v3463_v32 = vor.u32 1.1754944e-38, %v3462_v23  ;;  %vm3565_vm7 = vweird.f32 %v9031_v2 }
 0xbb6   :  { %v5972_v10 = vpop.eup %5971  ;;  %v3440_v4 = vadd.f32 %v9011_v30, %v3439_v7  ;;  %v3460_v7 = vand.u32 2147483647, %v9016_v45  ;;  %vm9096_vm14 = vcmp.eq.f32.partialorder %v3445_v35, 8.507059e+37  ;;  %v9120_v35 = vld [vmem:[#allocation26] ss:$0 sm:$0xff]  ;;  %v3615_v25 = vand.u32 2147483648, %v9023_v52 }
 0xbb7   :  { %v9034_v42 = vpop.eup %5973  ;;  %v9036_v34 = vadd.f32 1.0, %v5972_v10  ;;  %v3448_v58 = vor.u32 1.1754944e-38, %v3447_v11  ;;  %v3429_v39 = vsel %vm9110_vm15, %v9008_v24, %v3425_v8  ;;  %v3666_v12 = vadd.f32 %v9120_v35, %v9021_v27 }
 0xbb8   :  { %v3452_v22 = vmul.f32 %v9034_v42, %v9016_v45  ;;  %v9044_v61 = vpop.eup %5975  ;;  %vm3457_vm12 = vweird.f32 %v9034_v42  ;;  %vm3461_vm6 = vcmp.eq.f32.partialorder %v3460_v7, 8.507059e+37  ;;  %v3562_v27 = vmul.f32 %v9031_v2, %v3561_v62 }
 0xbb9   :  { %5981 = vrcp.f32 %v9036_v34  ;;  %v3668_v17 = vpop.f32.mrf.mxu3  ;;  %v9052_v10 = vpop.eup %5977  ;;  %v3575_v44 = vmul.f32 %v9044_v61, %v9014_v9  ;;  %vm9102_vm4 = vmor %vm3456_vm2, %vm3457_vm12  ;;  %vm3471_vm8 = vweird.f32 %v9036_v34  ;;  %v3475_v23 = vand.u32 2147483647, %v9036_v34 }
 0xbba   :  { %v3453_v6 = vsub.f32 1.0, %v3452_v22  ;;  %v9065_v26 = vpop.eup %5979  ;;  %v3590_v22 = vmul.f32 %v9052_v10, %v9018_v46  ;;  %v3669_v40 = vadd.f32 %v9120_v35, %v3668_v17  ;;  %v3434_v17 = vsel %vm3431_vm5, %v3433_v5, %v3429_v39  ;;  %v10308_v39 = vld [vmem:[#allocation97_spill] sm:$0xff] }
 0xbbb   :  { %v3576_v63 = vsub.f32 1.0, %v3575_v44  ;;  %v3444_v44 = vsel %vm9088_vm1, %v9011_v30, %v3440_v4  ;;  %v3477_v4 = vand.u32 2147483648, %v9036_v34  ;;  %vm3564_vm12 = vweird.f32 %v9006_v29 }
 0xbbc   :  { %v3454_v54 = vmul.f32 %v9034_v42, %v3453_v6  ;;  %v3605_v6 = vmul.f32 %v9065_v26, %v9023_v52  ;;  %v3591_v43 = vsub.f32 1.0, %v3590_v22  ;;  %v3677_v38 = vmul.f32 %v3666_v12, %v3434_v17 }
 0xbbd   :  { %vm3595_vm13 = vweird.f32 %v9052_v10  ;;  %vm3476_vm1 = vcmp.eq.f32.partialorder %v3475_v23, 8.507059e+37  ;;  %vm3610_vm2 = vweird.f32 %v9065_v26  ;;  %v10291_v23 = vand.u32 2147483648, %v9014_v9 }
 0xbbe   :  { %v3455_v33 = vadd.f32 %v9034_v42, %v3454_v54  ;;  %v3606_v50 = vsub.f32 1.0, %v3605_v6  ;;  %v3478_v6 = vor.u32 1.1754944e-38, %v3477_v4  ;;  %vm9171_vm15 = vmor %vm3594_vm11, %vm3595_vm13  ;;  %v3681_v12 = vadd.f32 %v3677_v38, %v9049_v21 }
 0xbbf   :  { %v9081_v20 = vpop.eup %5981  ;;  %v3616_v4 = vor.u32 1.1754944e-38, %v3615_v25 }
 0xbc0   :  { %v3467_v54 = vmul.f32 %v9081_v20, %v9036_v34  ;;  %v3459_v22 = vsel %vm9102_vm4, %v9034_v42, %v3455_v33  ;;  %vm3472_vm3 = vweird.f32 %v9081_v20  ;;  %v3592_v33 = vmul.f32 %v9052_v10, %v3591_v43 }
 0xbc1   :  { %v3671_v55 = vpop.f32.mrf.mxu3  ;;  %v3464_v42 = vsel %vm3461_vm6, %v3463_v32, %v3459_v22  ;;  %vm9144_vm10 = vmor %vm3471_vm8, %vm3472_vm3  ;;  %v3600_v34 = vand.u32 2147483648, %v9018_v46  ;;  %vm3609_vm4 = vweird.f32 %v9023_v52  ;;  %v3598_v22 = vand.u32 2147483647, %v9018_v46 }
 0xbc2   :  { %v3672_v11 = vadd.f32 %v9120_v35, %v3671_v55  ;;  %v3468_v36 = vsub.f32 1.0, %v3467_v54  ;;  %v3449_v55 = vsel %vm9096_vm14, %v3448_v58, %v3444_v44  ;;  %v3593_v54 = vadd.f32 %v9052_v10, %v3592_v33  ;;  %vm9177_vm6 = vmor %vm3609_vm4, %vm3610_vm2 }
 0xbc3   :  { %v3678_v43 = vmul.f32 %v3669_v40, %v3449_v55  ;;  %v3645_v40 = vpop.f32.mrf.mxu2  ;;  %vm3580_vm14 = vweird.f32 %v9044_v61  ;;  %v3563_v55 = vadd.f32 %v9031_v2, %v3562_v27  ;;  %vm3599_vm8 = vcmp.eq.f32.partialorder %v3598_v22, 8.507059e+37 }
 0xbc4   :  { %v3469_v30 = vmul.f32 %v9081_v20, %v3468_v36  ;;  %v3679_v8 = vmul.f32 %v3672_v11, %v3464_v42  ;;  %v3607_v36 = vmul.f32 %v9065_v26, %v3606_v50  ;;  %v3577_v50 = vmul.f32 %v9044_v61, %v3576_v63  ;;  %vm9195_vm3 = vmor %vm3579_vm9, %vm3580_vm14 }
 0xbc5   :  { %v3646_v45 = vadd.f32 %v9046_v59, %v3645_v40  ;;  %v3613_v11 = vand.u32 2147483647, %v9023_v52  ;;  %v3597_v42 = vsel %vm9171_vm15, %v9052_v10, %v3593_v54  ;;  %v3570_v52 = vand.u32 2147483648, %v9006_v29 }
 0xbc6   :  { %v3470_v24 = vadd.f32 %v9081_v20, %v3469_v30  ;;  %v3683_v3 = vadd.f32 %v3679_v8, %v9061_v1  ;;  %v3608_v63 = vadd.f32 %v9065_v26, %v3607_v36  ;;  %v3578_v1 = vadd.f32 %v9044_v61, %v3577_v50 }
 0xbc7   :  { %v3583_v30 = vand.u32 2147483647, %v9014_v9  ;;  %v3601_v8 = vor.u32 1.1754944e-38, %v3600_v34  ;;  %vm3614_vm5 = vcmp.eq.f32.partialorder %v3613_v11, 8.507059e+37  ;;  %v3586_v27 = vor.u32 1.1754944e-38, %v10291_v23 }
 0xbc8   :  { %v3474_v62 = vsel %vm9144_vm10, %v9081_v20, %v3470_v24  ;;  %v3682_v20 = vadd.f32 %v3678_v43, %v9055_v18  ;;  %5983 = vtanh.f32 %v3683_v3  ;;  %v3612_v46 = vsel %vm9177_vm6, %v9065_v26, %v3608_v63  ;;  %vm9207_vm10 = vmor %vm3564_vm12, %vm3565_vm7  ;;  %v10307_v18 = vld [vmem:[#allocation103_spill] sm:$0xff] }
 0xbc9   :  { %v3674_v7 = vpop.f32.mrf.mxu3  ;;  %v3479_v58 = vsel %vm3476_vm1, %v3478_v6, %v3474_v62  ;;  %v3568_v24 = vand.u32 2147483647, %v9006_v29  ;;  %v3582_v10 = vsel %vm9195_vm3, %v9044_v61, %v3578_v1  ;;  %v3602_v36 = vsel %vm3599_vm8, %v3601_v8, %v3597_v42 }
 0xbca   :  { %v3675_v5 = vadd.f32 %v9120_v35, %v3674_v7  ;;  %5985 = vtanh.f32 %v3682_v20  ;;  %v3617_v43 = vsel %vm3614_vm5, %v3616_v4, %v3612_v46  ;;  %v3567_v61 = vsel %vm9207_vm10, %v9031_v2, %v3563_v55 }
 0xbcb   :  { %vm3584_vm9 = vcmp.eq.f32.partialorder %v3583_v30, 8.507059e+37  ;;  %v3571_v34 = vor.u32 1.1754944e-38, %v3570_v52  ;;  %vm3569_vm11 = vcmp.eq.f32.partialorder %v3568_v24, 8.507059e+37  ;;  %v3691_v29 = vsub.f32 1.0, %v3602_v36 }
 0xbcc   :  { %v3680_v44 = vmul.f32 %v3675_v5, %v3479_v58  ;;  %v3587_v17 = vsel %vm3584_vm9, %v3586_v27, %v3582_v10  ;;  %v3692_v50 = vsub.f32 1.0, %v3617_v43  ;;  %v3700_v54 = vmul.f32 %v3617_v43, %v8797_v56  ;;  %v10310_v43 = vld [vmem:[#allocation75_spill] sm:$0xff] }
 0xbcd   :  { %v3572_v38 = vsel %vm3569_vm11, %v3571_v34, %v3567_v61  ;;  %v3690_v6 = vsub.f32 1.0, %v3587_v17  ;;  %v3699_v2 = vmul.f32 %v3602_v36, %v8800_v31  ;;  %v3698_v25 = vmul.f32 %v3587_v17, %v8805_v53  ;;  %v10292_v31 = vld [vmem:[#allocation106_spill] sm:$0xff]  ;;  %v10293_v53 = vld [vmem:[#allocation96_spill] sm:$0xff] }
 0xbce   :  { %v3684_v33 = vadd.f32 %v3680_v44, %v3646_v45  ;;  %v5984_v32 = vpop.eup %5983  ;;  %v3689_v5 = vsub.f32 1.0, %v3572_v38  ;;  %v3697_v44 = vmul.f32 %v3572_v38, %v8809_v41  ;;  %v10294_v41 = vld [vmem:[#allocation69_spill] sm:$0xff] }
 0xbcf   :  { %v3695_v7 = vmul.f32 %v5984_v32, %v3691_v29 }
 0xbd0   :  { %5987 = vtanh.f32 %v3684_v33  ;;  %v5986_v62 = vpop.eup %5985 }
 0xbd1   :  { %5989 = vtanh.f32 %v3681_v12  ;;  %v3694_v20 = vmul.f32 %v5986_v62, %v3690_v6  ;;  %v9221_v45 = vadd.f32 %v3699_v2, %v3695_v7  ;;  %v10309_v12 = vld [vmem:[#allocation104_spill] sm:$0xff] }
 0xbd3   :  { %v9226_v1 = vadd.f32 %v3698_v25, %v3694_v20 }
 0xbd6   :  { %v5988_v40 = vpop.eup %5987 }
 0xbd7   :  { %v3696_v9 = vmul.f32 %v5988_v40, %v3692_v50  ;;  %v5990_v3 = vpop.eup %5989 }
 0xbd8   :  { %v3693_v63 = vmul.f32 %v5990_v3, %v3689_v5 }
 0xbd9   :  { %v9218_v58 = vadd.f32 %v3700_v54, %v3696_v9 }
 0xbda   :  { %v9230_v56 = vadd.f32 %v3697_v44, %v3693_v63 }
 0xbdb   :  { %3717 = vmatpush.msrb.mxu0 %v9218_v58  ;;  %3746 = vmatpush.msrb.mxu1 %v9218_v58 }
 0xbdd   :  { %3718 = vmatpush.msrb.mxu0 %v9221_v45  ;;  %3747 = vmatpush.msrb.mxu1 %v9221_v45 }
 0xbdf   :  { %3719 = vmatpush.msrb.mxu0 %v9226_v1  ;;  %3748 = vmatpush.msrb.mxu1 %v9226_v1 }
 0xbe1   :  { %3720 = vmatpush.msrb.mxu0 %v9230_v56  ;;  %3749 = vmatpush.msrb.mxu1 %v9230_v56 }
 0xbe2   :  { %5599 = vmatmul.msk.f32.vlgmr.msrb.gmra.mxu0 %vm648_vm0, %v8816_v49  ;;  %5603 = vmatmul.msk.f32.vlgmr.msrb.gmra.mxu1 %vm648_vm0, %v8820_v13  ;;  %v10295_v49 = vld [vmem:[#allocation70_spill] sm:$0xff]  ;;  %v10296_v13 = vld [vmem:[#allocation72_spill] sm:$0xff] }
 0xbe3   :  { %3857 = vmatpush.msra.mxu0 %v9218_v58  ;;  %3898 = vmatpush.msra.mxu1 %v8825_v37  ;;  %v10297_v37 = vld [vmem:[#allocation73_spill] sm:$0xff] }
 0xbe5   :  { %3858 = vmatpush.msra.mxu0 %v9221_v45  ;;  %3899 = vmatpush.msra.mxu1 %v8829_v47  ;;  %v10298_v47 = vld [vmem:[#allocation67_spill] sm:$0xff] }
 0xbe7   :  { %3859 = vmatpush.msra.mxu0 %v9226_v1  ;;  %3900 = vmatpush.msra.mxu1 %v8833_v14  ;;  %v10299_v14 = vld [vmem:[#allocation68_spill] sm:$0xff] }
 0xbe9   :  { %3860 = vmatpush.msra.mxu0 %v9230_v56  ;;  %3901 = vmatpush.msra.mxu1 %v8837_v60  ;;  %v10300_v60 = vld [vmem:[#allocation71_spill] sm:$0xff] }
 0xbea   :  { %5600 = vmatmul.msk.f32.gmra.mxu0 %vm648_vm0, %v8841_v28  ;;  %5604 = vmatmul.msk.f32.gmra.mxu1 %vm648_vm0, %v8845_v57  ;;  %v10301_v28 = vld [vmem:[#allocation74_spill] sm:$0xff] }
 0xbeb   :  { %4097 = vmatpush.msrb.mxu0 %v8849_v48  ;;  %4126 = vmatpush.msrb.mxu1 %v8852_v19  ;;  %v10302_v19 = vld [vmem:[#allocation90_spill] sm:$0xff] }
 0xbed   :  { %4098 = vmatpush.msrb.mxu0 %v8855_v15  ;;  %4127 = vmatpush.msrb.mxu1 %v8858_v0  ;;  %v10303_v15 = vld [vmem:[#allocation100_spill] sm:$0xff] }
 0xbee   :  { %v10304_v0 = vld [vmem:[#allocation92_spill] sm:$0xff] }
 0xbef   :  { %4099 = vmatpush.msrb.mxu0 %v8861_v16  ;;  %4128 = vmatpush.msrb.mxu1 %v8864_v51  ;;  %v10305_v16 = vld [vmem:[#allocation101_spill] sm:$0xff]  ;;  %v10306_v51 = vld [vmem:[#allocation94_spill] sm:$0xff] }
 0xbf1   :  { %4100 = vmatpush.msrb.mxu0 %v10292_v31  ;;  %4129 = vmatpush.msrb.mxu1 %v10293_v53  ;;  %v10311_v53 = vld [vmem:[#allocation79_spill] sm:$0xff] }
 0xbf2   :  { %5601 = vmatmul.msk.f32.gmra.mxu0 %vm648_vm0, %v10294_v41  ;;  %5605 = vmatmul.msk.f32.gmra.mxu1 %vm648_vm0, %v10295_v49 }
 0xbfa   :  { %5602 = vmatmul.msk.f32.gmra.mxu0 %vm648_vm0, %v10296_v13  ;;  %5606 = vmatmul.msk.f32.gmra.mxu1 %vm648_vm0, %v10297_v37 }
 0xc02   :  { %5615 = vmatmul.msk.f32.vlgmr.msra.gmra.mxu0 %vm648_vm0, %v10298_v47 }
 0xc0a   :  { %5616 = vmatmul.msk.f32.gmra.mxu0 %vm648_vm0, %v10299_v14 }
 0xc12   :  { %5617 = vmatmul.msk.f32.gmra.mxu0 %vm648_vm0, %v10300_v60 }
 0xc1a   :  { %5618 = vmatmul.msk.f32.gmra.mxu0 %vm648_vm0, %v10301_v28  ;;  %v10312_v28 = vld [vmem:[#allocation77_spill] sm:$0xff] }
 0xc22   :  { %5635 = vmatmul.msk.f32.vlgmr.msrb.gmra.mxu0 %vm648_vm0, %v9230_v56 }
 0xc2a   :  { %5636 = vmatmul.msk.f32.gmra.mxu0 %vm648_vm0, %v9226_v1 }
 0xc32   :  { %5637 = vmatmul.msk.f32.gmra.mxu0 %vm648_vm0, %v9221_v45 }
 0xc3a   :  { %5638 = vmatmul.msk.f32.gmra.mxu0 %vm648_vm0, %v9218_v58 }
 0xc5f   :  { %v3722_v57 = vpop.f32.mrf.mxu0  ;;  %v3751_v48 = vpop.f32.mrf.mxu1 }
 0xc60   :  { %5607 = vmatmul.msk.f32.vlgmr.msra.gmra.mxu2 %vm648_vm0, %v3751_v48  ;;  %5611 = vmatmul.msk.f32.vlgmr.msra.gmra.mxu3 %vm648_vm0, %v3722_v57 }
 0xc61   :  { %4235 = vmatpush.msra.mxu2 %v10302_v19  ;;  %4264 = vmatpush.msra.mxu3 %v10303_v15 }
 0xc63   :  { %4236 = vmatpush.msra.mxu2 %v10304_v0  ;;  %4265 = vmatpush.msra.mxu3 %v10305_v16 }
 0xc65   :  { %4237 = vmatpush.msra.mxu2 %v10306_v51  ;;  %4266 = vmatpush.msra.mxu3 %v10307_v18 }
 0xc67   :  { %v3725_v22 = vpop.f32.mrf.mxu0  ;;  %v3754_v11 = vpop.f32.mrf.mxu1  ;;  %4238 = vmatpush.msra.mxu2 %v10308_v39  ;;  %4267 = vmatpush.msra.mxu3 %v10309_v12 }
 0xc68   :  { %5608 = vmatmul.msk.f32.gmra.mxu2 %vm648_vm0, %v3754_v11  ;;  %5612 = vmatmul.msk.f32.gmra.mxu3 %vm648_vm0, %v3725_v22 }
 0xc6f   :  { %v3728_v30 = vpop.f32.mrf.mxu0  ;;  %v3757_v33 = vpop.f32.mrf.mxu1 }
 0xc70   :  { %5609 = vmatmul.msk.f32.gmra.mxu2 %vm648_vm0, %v3757_v33  ;;  %5613 = vmatmul.msk.f32.gmra.mxu3 %vm648_vm0, %v3728_v30 }
 0xc77   :  { %v3731_v55 = vpop.f32.mrf.mxu0  ;;  %v3760_v42 = vpop.f32.mrf.mxu1 }
 0xc78   :  { %5610 = vmatmul.msk.f32.gmra.mxu2 %vm648_vm0, %v3760_v42  ;;  %5614 = vmatmul.msk.f32.gmra.mxu3 %vm648_vm0, %v3731_v55 }
 0xc7f   :  { %v3862_v46 = vpop.f32.mrf.mxu0 }
 0xc80   :  { %5619 = vmatmul.msk.f32.vlgmr.msra.gmra.mxu1 %vm648_vm0, %v3862_v46  ;;  %5623 = vmatmul.msk.f32.vlgmr.msrb.gmra.mxu2 %vm648_vm0, %v9230_v56 }
 0xc87   :  { %v3865_v52 = vpop.f32.mrf.mxu0 }
 0xc88   :  { %5620 = vmatmul.msk.f32.gmra.mxu1 %vm648_vm0, %v3865_v52  ;;  %5624 = vmatmul.msk.f32.gmra.mxu2 %vm648_vm0, %v9226_v1 }
 0xc8f   :  { %v3868_v4 = vpop.f32.mrf.mxu0 }
 0xc90   :  { %5621 = vmatmul.msk.f32.gmra.mxu1 %vm648_vm0, %v3868_v4  ;;  %5625 = vmatmul.msk.f32.gmra.mxu2 %vm648_vm0, %v9221_v45  ;;  %v9347_v4 = vld [vmem:[%s10313_s18 + $0x18] sm:$0xff] }
 0xc91   :  { %4412 = vmatpush.msra.mxu1 %v9347_v4 }
 0xc97   :  { %v3871_v21 = vpop.f32.mrf.mxu0 }
 0xc98   :  { %5622 = vmatmul.msk.f32.gmra.mxu1 %vm648_vm0, %v3871_v21  ;;  %5626 = vmatmul.msk.f32.gmra.mxu2 %vm648_vm0, %v9218_v58  ;;  %v9350_v21 = vld [vmem:[%s10313_s18 + $0x10] sm:$0xff] }
 0xc99   :  { %4413 = vmatpush.msra.mxu1 %v9350_v21 }
 0xc9f   :  { %v4102_v63 = vpop.f32.mrf.mxu0 }
 0xca7   :  { %v4105_v13 = vpop.f32.mrf.mxu0 }
 0xcaf   :  { %v4108_v11 = vpop.f32.mrf.mxu0 }
 0xce3   :  { %v3792_v8 = vpop.f32.mrf.mxu2  ;;  %v3833_v24 = vpop.f32.mrf.mxu3 }
 0xce4   :  { %v3834_v26 = vadd.f32 %v3833_v24, %v3792_v8 }
 0xceb   :  { %v3795_v10 = vpop.f32.mrf.mxu2  ;;  %v3836_v27 = vpop.f32.mrf.mxu3 }
 0xcec   :  { %v3837_v32 = vadd.f32 %v3836_v27, %v3795_v10 }
 0xcf3   :  { %v3798_v62 = vpop.f32.mrf.mxu2  ;;  %v3839_v29 = vpop.f32.mrf.mxu3 }
 0xcf4   :  { %v3840_v40 = vadd.f32 %v3839_v29, %v3798_v62 }
 0xcfb   :  { %v3801_v9 = vpop.f32.mrf.mxu2  ;;  %v3842_v54 = vpop.f32.mrf.mxu3 }
 0xcfc   :  { %v3843_v3 = vadd.f32 %v3842_v54, %v3801_v9 }
 0xcfd   :  { %v3903_v23 = vpop.f32.mrf.mxu1 }
 0xcfe   :  { %v3915_v36 = vadd.f32 %v3903_v23, %v3834_v26  ;;  %v9356_v26 = vld [vmem:[%s10313_s18 + $0x8] sm:$0xff] }
 0xcff   :  { %4414 = vmatpush.msra.mxu1 %v9356_v26 }
 0xd00   :  { %v3919_v61 = vadd.f32 %v10310_v43, %v3915_v36  ;;  %v4111_v36 = vpop.f32.mrf.mxu0 }
 0xd02   :  { %5627 = vmatmul.msk.f32.vlgmr.msrb.gmra.mxu3 %vm648_vm0, %v3919_v61  ;;  %5639 = vmatmul.msk.f32.vlgmr.msrb.gmra.mxu1 %vm648_vm0, %v3919_v61 }
 0xd03   :  { %5647 = vmatmul.msk.f32.vlgmr.msra.gmra.mxu2 %vm648_vm0, %v3919_v61  ;;  %v3952_v25 = vpop.f32.mrf.mxu2 }
 0xd05   :  { %v3906_v34 = vpop.f32.mrf.mxu1 }
 0xd06   :  { %v3916_v17 = vadd.f32 %v3906_v34, %v3837_v32 }
 0xd08   :  { %v3920_v50 = vadd.f32 %v10310_v43, %v3916_v17 }
 0xd0a   :  { %5628 = vmatmul.msk.f32.gmra.mxu3 %vm648_vm0, %v3920_v50  ;;  %5640 = vmatmul.msk.f32.gmra.mxu1 %vm648_vm0, %v3920_v50 }
 0xd0b   :  { %5648 = vmatmul.msk.f32.gmra.mxu2 %vm648_vm0, %v3920_v50  ;;  %v3955_v47 = vpop.f32.mrf.mxu2 }
 0xd0d   :  { %v3909_v38 = vpop.f32.mrf.mxu1 }
 0xd0e   :  { %v3917_v6 = vadd.f32 %v3909_v38, %v3840_v40 }
 0xd10   :  { %v3921_v7 = vadd.f32 %v10310_v43, %v3917_v6 }
 0xd12   :  { %5629 = vmatmul.msk.f32.gmra.mxu3 %vm648_vm0, %v3921_v7  ;;  %5641 = vmatmul.msk.f32.gmra.mxu1 %vm648_vm0, %v3921_v7 }
 0xd13   :  { %5649 = vmatmul.msk.f32.gmra.mxu2 %vm648_vm0, %v3921_v7  ;;  %v3958_v12 = vpop.f32.mrf.mxu2 }
 0xd15   :  { %v3912_v5 = vpop.f32.mrf.mxu1 }
 0xd16   :  { %v3918_v20 = vadd.f32 %v3912_v5, %v3843_v3 }
 0xd18   :  { %v3922_v2 = vadd.f32 %v10310_v43, %v3918_v20 }
 0xd1a   :  { %5630 = vmatmul.msk.f32.gmra.mxu3 %vm648_vm0, %v3922_v2  ;;  %5642 = vmatmul.msk.f32.gmra.mxu1 %vm648_vm0, %v3922_v2 }
 0xd1b   :  { %5650 = vmatmul.msk.f32.gmra.mxu2 %vm648_vm0, %v3922_v2  ;;  %v3961_v32 = vpop.f32.mrf.mxu2 }
 0xd22   :  { %5651 = vmatmul.msk.f32.vlgmr.msra.gmra.mxu3 %vm648_vm0, %v9230_v56 }
 0xd2a   :  { %5652 = vmatmul.msk.f32.gmra.mxu3 %vm648_vm0, %v9226_v1 }
 0xd32   :  { %5653 = vmatmul.msk.f32.gmra.mxu3 %vm648_vm0, %v9221_v45 }
 0xd3a   :  { %5654 = vmatmul.msk.f32.gmra.mxu3 %vm648_vm0, %v9218_v58 }
 0xd7f   :  { %v4131_v44 = vpop.f32.mrf.mxu1 }
 0xd80   :  { %v4132_v31 = vadd.f32 %v4131_v44, %v4102_v63 }
 0xd82   :  { %v4143_v41 = vadd.f32 %v10311_v53, %v4132_v31 }
 0xd84   :  { %v5643_v49 = vmul.f32 -1.442695, %v4143_v41 }
 0xd85   :  { %v3993_v37 = vpop.f32.mrf.mxu3 }
 0xd86   :  { %5991 = vpow2.f32 %v5643_v49  ;;  %v3994_v14 = vadd.f32 %v3993_v37, %v3952_v25  ;;  %v4240_v31 = vpop.f32.mrf.mxu2 }
 0xd87   :  { %v4134_v60 = vpop.f32.mrf.mxu1 }
 0xd88   :  { %v4005_v57 = vadd.f32 %v10312_v28, %v3994_v14  ;;  %v4135_v48 = vadd.f32 %v4134_v60, %v4105_v13 }
 0xd8a   :  { %v5631_v19 = vmul.f32 -1.442695, %v4005_v57  ;;  %v4144_v15 = vadd.f32 %v10311_v53, %v4135_v48 }
 0xd8c   :  { %v5992_v0 = vpop.eup %5991  ;;  %5993 = vpow2.f32 %v5631_v19  ;;  %v5644_v16 = vmul.f32 -1.442695, %v4144_v15  ;;  %v4241_v19 = vadd.f32 %v9046_v59, %v4240_v31  ;;  %v9466_v31 = vld [vmem:[%s10313_s18 + $0x40] sm:$0xff] }
 0xd8d   :  { %v3996_v51 = vpop.f32.mrf.mxu3  ;;  %v9339_v18 = vadd.f32 1.0, %v5992_v0 }
 0xd8e   :  { %5995 = vpow2.f32 %v5644_v16  ;;  %v3997_v22 = vadd.f32 %v3996_v51, %v3955_v47  ;;  %v9399_v51 = vld [vmem:[%s10313_s18 + $0x38] sm:$0xff] }
 0xd8f   :  { %v4137_v39 = vpop.f32.mrf.mxu1  ;;  %5997 = vrcp.f32 %v9339_v18  ;;  %4385 = vmatpush.msra.mxu0 %v9399_v51  ;;  %vm4168_vm4 = vweird.f32 %v9339_v18 }
 0xd90   :  { %v4006_v30 = vadd.f32 %v10312_v28, %v3997_v22  ;;  %v4138_v43 = vadd.f32 %v4137_v39, %v4108_v11  ;;  %v9402_v22 = vld [vmem:[%s10313_s18 + $0x58] sm:$0xff] }
 0xd91   :  { %4443 = vmatpush.msrb.mxu2 %v9402_v22 }
 0xd92   :  { %v5994_v33 = vpop.eup %5993  ;;  %v5632_v55 = vmul.f32 -1.442695, %v4006_v30  ;;  %v4145_v38 = vadd.f32 %v10311_v53, %v4138_v43 }
 0xd93   :  { %v9343_v42 = vadd.f32 1.0, %v5994_v33 }
 0xd94   :  { %v5996_v46 = vpop.eup %5995  ;;  %5999 = vpow2.f32 %v5632_v55  ;;  %v5645_v63 = vmul.f32 -1.442695, %v4145_v38  ;;  %v4174_v55 = vand.u32 2147483648, %v9339_v18 }
 0xd95   :  { %6001 = vrcp.f32 %v9343_v42  ;;  %v3999_v52 = vpop.f32.mrf.mxu3  ;;  %v9352_v8 = vadd.f32 1.0, %v5996_v46  ;;  %v9358_v23 = vpop.eup %5997  ;;  %vm4030_vm12 = vweird.f32 %v9343_v42  ;;  %v4036_v25 = vand.u32 2147483648, %v9343_v42 }
 0xd96   :  { %v4000_v24 = vadd.f32 %v3999_v52, %v3958_v12  ;;  %v4164_v29 = vmul.f32 %v9358_v23, %v9339_v18  ;;  %v4034_v13 = vand.u32 2147483647, %v9343_v42  ;;  %vm4169_vm2 = vweird.f32 %v9358_v23 }
 0xd97   :  { %v4140_v10 = vpop.f32.mrf.mxu1  ;;  %6003 = vrcp.f32 %v9352_v8  ;;  %v4037_v0 = vor.u32 1.1754944e-38, %v4036_v25  ;;  %v4172_v52 = vand.u32 2147483647, %v9339_v18  ;;  %vm9416_vm15 = vmor %vm4168_vm4, %vm4169_vm2  ;;  %v4175_v38 = vor.u32 1.1754944e-38, %v4174_v55 }
 0xd98   :  { %v4007_v27 = vadd.f32 %v10312_v28, %v4000_v24  ;;  %v4141_v17 = vadd.f32 %v4140_v10, %v4111_v36  ;;  %v4165_v3 = vsub.f32 1.0, %v4164_v29  ;;  %vm4035_vm1 = vcmp.eq.f32.partialorder %v4034_v13, 8.507059e+37  ;;  %v9542_v29 = vld [vmem:[%s10321_s6 + $0x20] sm:$0xff] }
 0xd99   :  { %vm4173_vm8 = vcmp.eq.f32.partialorder %v4172_v52, 8.507059e+37  ;;  %vm4183_vm9 = vweird.f32 %v9352_v8 }
 0xd9a   :  { %v6000_v61 = vpop.eup %5999  ;;  %v5633_v34 = vmul.f32 -1.442695, %v4007_v27  ;;  %v4146_v7 = vadd.f32 %v10311_v53, %v4141_v17  ;;  %v4166_v47 = vmul.f32 %v9358_v23, %v4165_v3 }
 0xd9b   :  { %v6002_v62 = vpop.eup %6001  ;;  %v9366_v50 = vadd.f32 1.0, %v6000_v61 }
 0xd9c   :  { %6005 = vpow2.f32 %v5633_v34  ;;  %v4026_v40 = vmul.f32 %v6002_v62, %v9343_v42  ;;  %vm4031_vm7 = vweird.f32 %v6002_v62  ;;  %v5646_v41 = vmul.f32 -1.442695, %v4146_v7  ;;  %v9427_v34 = vld [vmem:[%s10313_s18 + $0x50] sm:$0xff]  ;;  %v9450_v7 = vld [vmem:[%s10313_s18 + $0x48] sm:$0xff] }
 0xd9d   :  { %6007 = vrcp.f32 %v9366_v50  ;;  %v4002_v6 = vpop.f32.mrf.mxu3  ;;  %v9372_v5 = vpop.eup %6003  ;;  %vm9383_vm13 = vmor %vm4030_vm12, %vm4031_vm7  ;;  %v4167_v33 = vadd.f32 %v9358_v23, %v4166_v47  ;;  %v4051_v24 = vand.u32 2147483648, %v9366_v50  ;;  %vm4045_vm6 = vweird.f32 %v9366_v50  ;;  %4444 = vmatpush.msrb.mxu2 %v9427_v34  ;;  %v9480_v47 = vld [vmem:[%s10320_s3 + $0x8] sm:$0xff] }
 0xd9e   :  { %v4003_v9 = vadd.f32 %v4002_v6, %v3961_v32  ;;  %v4027_v54 = vsub.f32 1.0, %v4026_v40  ;;  %v4179_v14 = vmul.f32 %v9372_v5, %v9352_v8  ;;  %v4049_v61 = vand.u32 2147483647, %v9366_v50  ;;  %v9424_v32 = vld [vmem:[%s10313_s18 + $0x30] sm:$0xff]  ;;  %v9447_v6 = vld [vmem:[%s10313_s18 + $0x28] sm:$0xff] }
 0xd9f   :  { %4386 = vmatpush.msra.mxu0 %v9424_v32  ;;  %4445 = vmatpush.msrb.mxu2 %v9450_v7  ;;  %vm4184_vm10 = vweird.f32 %v9372_v5  ;;  %vm4365_vm12 = vcmask 1046528  }
 0xda0   :  { %v4008_v20 = vadd.f32 %v10312_v28, %v4003_v9  ;;  %v4028_v2 = vmul.f32 %v6002_v62, %v4027_v54  ;;  %v9388_v28 = vld [vmem:[%s10313_s18] sm:$0xff]  ;;  %v4180_v12 = vsub.f32 1.0, %v4179_v14  ;;  %v4243_v9 = vpop.f32.mrf.mxu2  ;;  %v4052_v54 = vor.u32 1.1754944e-38, %v4051_v24  ;;  %v9483_v14 = vld [vmem:[%s10320_s3 + $0x38] sm:$0xff]  ;;  %vm9509_vm11 = vmor %vm4183_vm9, %vm4184_vm10 }
 0xda1   :  { %4415 = vmatpush.msra.mxu1 %v9388_v28  ;;  %4387 = vmatpush.msra.mxu0 %v9447_v6  ;;  %vm4050_vm5 = vcmp.eq.f32.partialorder %v4049_v61, 8.507059e+37  ;;  %v4244_v60 = vadd.f32 %v9046_v59, %v4243_v9  ;;  %v9502_v59 = vld [vmem:[%s10321_s6] sm:$0xff] }
 0xda2   :  { %v6006_v44 = vpop.eup %6005  ;;  %v5634_v49 = vmul.f32 -1.442695, %v4008_v20  ;;  %v4029_v53 = vadd.f32 %v6002_v62, %v4028_v2  ;;  %v9456_v20 = vld [vmem:[%s10320_s3 + $0x18] sm:$0xff]  ;;  %v9459_v2 = vld [vmem:[%s10313_s18 + $0x20] sm:$0xff]  ;;  %4446 = vmatpush.msrb.mxu2 %v9466_v31 }
 0xda3   :  { %v9378_v37 = vpop.eup %6007  ;;  %v9396_v15 = vadd.f32 1.0, %v6006_v44  ;;  %4586 = vmatpush.msrb.mxu1 %v9456_v20  ;;  %4388 = vmatpush.msra.mxu0 %v9459_v2 }
 0xda4   :  { %6009 = vpow2.f32 %v5634_v49  ;;  %v4033_v57 = vsel %vm9383_vm13, %v6002_v62, %v4029_v53  ;;  %v4041_v48 = vmul.f32 %v9378_v37, %v9366_v50  ;;  %vm4046_vm14 = vweird.f32 %v9378_v37 }
 0xda5   :  { %6011 = vpow2.f32 %v5645_v63  ;;  %v4269_v16 = vpop.f32.mrf.mxu3  ;;  %v4038_v30 = vsel %vm4035_vm1, %v4037_v0, %v4033_v57  ;;  %v4171_v62 = vsel %vm9416_vm15, %v9358_v23, %v4167_v33  ;;  %vm9436_vm3 = vmor %vm4045_vm6, %vm4046_vm14  ;;  %v4181_v50 = vmul.f32 %v9372_v5, %v4180_v12  ;;  %4563 = vmatpush.msrb.mxu0 %v9483_v14  ;;  %v9493_v0 = vld [vmem:[%s10321_s6 + $0x8] sm:$0xff] }
 0xda6   :  { %6013 = vpow2.f32 %v5646_v41  ;;  %v4270_v11 = vadd.f32 %v9120_v35, %v4269_v16  ;;  %v4042_v39 = vsub.f32 1.0, %v4041_v48  ;;  %v4176_v25 = vsel %vm4173_vm8, %v4175_v38, %v4171_v62  ;;  %v9469_v41 = vld [vmem:[%s10320_s3 + $0x10] sm:$0xff]  ;;  %4643 = vmatpush.msra.mxu2 %v9493_v0 }
 0xda7   :  { %6015 = vrcp.f32 %v9396_v15  ;;  %v4189_v48 = vand.u32 2147483648, %v9352_v8  ;;  %4587 = vmatpush.msrb.mxu1 %v9469_v41  ;;  %v4293_v16 = vsub.f32 1.0, %v4176_v25  ;;  %v4301_v52 = vmul.f32 %v4176_v25, %v9230_v56 }
 0xda8   :  { %v4281_v42 = vmul.f32 %v4270_v11, %v4038_v30  ;;  %v4043_v46 = vmul.f32 %v9378_v37, %v4042_v39  ;;  %v4187_v11 = vand.u32 2147483647, %v9352_v8  ;;  %v9498_v39 = vld [vmem:[%s10320_s3] sm:$0xff]  ;;  %v9515_v8 = vld [vmem:[%s10320_s3 + $0x28] sm:$0xff]  ;;  %4644 = vmatpush.msra.mxu2 %v9502_v59  ;;  %vm4423_vm1 = vcmask 1045504  }
 0xda9   :  { %4588 = vmatpush.msrb.mxu1 %v9480_v47  ;;  %v4190_v27 = vor.u32 1.1754944e-38, %v4189_v48  ;;  %vm4060_vm15 = vweird.f32 %v9396_v15 }
 0xdaa   :  { %v6010_v10 = vpop.eup %6009  ;;  %v4285_v36 = vadd.f32 %v4281_v42, %v4241_v19  ;;  %v4044_v43 = vadd.f32 %v9378_v37, %v4043_v46  ;;  %v9490_v19 = vld [vmem:[%s10320_s3 + $0x30] sm:$0xff]  ;;  %vm4188_vm7 = vcmp.eq.f32.partialorder %v4187_v11, 8.507059e+37 }
 0xdab   :  { %v6012_v18 = vpop.eup %6011  ;;  %v9429_v17 = vadd.f32 1.0, %v6010_v10  ;;  %4564 = vmatpush.msrb.mxu0 %v9490_v19  ;;  %4589 = vmatpush.msrb.mxu1 %v9498_v39 }
 0xdac   :  { %v6014_v40 = vpop.eup %6013  ;;  %6017 = vtanh.f32 %v4285_v36  ;;  %v4048_v23 = vsel %vm9436_vm3, %v9378_v37, %v4044_v43  ;;  %v9461_v63 = vadd.f32 1.0, %v6012_v18  ;;  %v4182_v37 = vadd.f32 %v9372_v5, %v4181_v50  ;;  %v9530_v36 = vld [vmem:[%s10320_s3 + $0x20] sm:$0xff] }
 0xdad   :  { %6019 = vrcp.f32 %v9429_v17  ;;  %v4272_v3 = vpop.f32.mrf.mxu3  ;;  %v9471_v49 = vpop.eup %6015  ;;  %v9473_v53 = vadd.f32 1.0, %v6014_v40  ;;  %v4053_v13 = vsel %vm4050_vm5, %v4052_v54, %v4048_v23  ;;  %4565 = vmatpush.msrb.mxu0 %v9515_v8  ;;  %v4081_v48 = vand.u32 2147483648, %v9429_v17 }
 0xdae   :  { %v4273_v44 = vadd.f32 %v9120_v35, %v4272_v3  ;;  %6021 = vrcp.f32 %v9461_v63  ;;  %v4056_v33 = vmul.f32 %v9471_v49, %v9396_v15  ;;  %v4186_v24 = vsel %vm9509_vm11, %v9372_v5, %v4182_v37  ;;  %v9536_v5 = vld [vmem:[%s10321_s6 + $0x28] sm:$0xff]  ;;  %v4246_v23 = vpop.f32.mrf.mxu2 }
 0xdaf   :  { %6023 = vrcp.f32 %v9473_v53  ;;  %v4191_v62 = vsel %vm4188_vm7, %v4190_v27, %v4186_v24  ;;  %4566 = vmatpush.msrb.mxu0 %v9530_v36  ;;  %vm4061_vm2 = vweird.f32 %v9471_v49  ;;  %vm4075_vm14 = vweird.f32 %v9429_v17  ;;  %v9588_v27 = vld [vmem:[%s10321_s6 + $0x18] sm:$0xff] }
 0xdb0   :  { %v4282_v57 = vmul.f32 %v4273_v44, %v4053_v13  ;;  %v4057_v61 = vsub.f32 1.0, %v4056_v33  ;;  %v4294_v9 = vsub.f32 1.0, %v4191_v62  ;;  %v4302_v44 = vmul.f32 %v4191_v62, %v9226_v1  ;;  %vm9592_vm6 = vmor %vm4060_vm15, %vm4061_vm2 }
 0xdb1   :  { %v4082_v62 = vor.u32 1.1754944e-38, %v4081_v48  ;;  %v6143_v48 = vld [vmem:[#allocation24] ss:$0 sm:$0xff]  ;;  %vm4213_vm9 = vweird.f32 %v9473_v53  ;;  %vm4198_vm7 = vweird.f32 %v9461_v63  ;;  %vm4491_vm15 = vcmask 1040384  }
 0xdb2   :  { %v6018_v12 = vpop.eup %6017  ;;  %v4286_v30 = vadd.f32 %v4282_v57, %v4244_v60  ;;  %v4058_v3 = vmul.f32 %v9471_v49, %v4057_v61  ;;  %v4066_v57 = vand.u32 2147483648, %v9396_v15 }
 0xdb3   :  { %v9517_v42 = vpop.eup %6019  ;;  %v4297_v46 = vmul.f32 %v6018_v12, %v4293_v16  ;;  %v4079_v12 = vand.u32 2147483647, %v9429_v17 }
 0xdb4   :  { %6025 = vtanh.f32 %v4286_v30  ;;  %v4071_v10 = vmul.f32 %v9517_v42, %v9429_v17  ;;  %v9544_v50 = vpop.eup %6021  ;;  %vm4076_vm13 = vweird.f32 %v9517_v42  ;;  %v4059_v1 = vadd.f32 %v9471_v49, %v4058_v3 }
 0xdb5   :  { %v9532_v43 = vadd.f32 %v4301_v52, %v4297_v46  ;;  %v4275_v56 = vpop.f32.mrf.mxu3  ;;  %v9548_v38 = vpop.eup %6023  ;;  %v4194_v13 = vmul.f32 %v9544_v50, %v9461_v63  ;;  %vm9567_vm4 = vmor %vm4075_vm14, %vm4076_vm13  ;;  %v4064_v17 = vand.u32 2147483647, %v9396_v15  ;;  %vm4080_vm3 = vcmp.eq.f32.partialorder %v4079_v12, 8.507059e+37  ;;  %v10329_v12 = vld [vmem:[#allocation87_spill] sm:$0xff] }
 0xdb6   :  { %v4072_v18 = vsub.f32 1.0, %v4071_v10  ;;  %v4209_v60 = vmul.f32 %v9548_v38, %v9473_v53  ;;  %vm4214_vm5 = vweird.f32 %v9548_v38  ;;  %vm4199_vm10 = vweird.f32 %v9544_v50 }
 0xdb7   :  { %5677 = vmatmul.msk.f32.vlgmr.msra.gmra.mxu1 %vm648_vm0, %v9532_v43  ;;  %v4366_v33 = vrot.slane %v9532_v43, 1  ;;  %v4424_v46 = vrot.slane %v9532_v43, 2  ;;  %v4195_v3 = vsub.f32 1.0, %v4194_v13  ;;  %vm4065_vm8 = vcmp.eq.f32.partialorder %v4064_v17, 8.507059e+37  ;;  %vm9644_vm11 = vmor %vm4213_vm9, %vm4214_vm5 }
 0xdb8   :  { %v4073_v40 = vmul.f32 %v9517_v42, %v4072_v18  ;;  %4707 = vmatpush.msra.mxu1 %v9536_v5  ;;  %v4210_v61 = vsub.f32 1.0, %v4209_v60  ;;  %v9621_v60 = vld [vmem:[%s10328_s16] ss:$0 sm:$0xff]  ;;  %v4219_v17 = vand.u32 2147483648, %v9473_v53  ;;  %vm4200_vm13 = vmor %vm4198_vm7, %vm4199_vm10  ;;  %vm4622_vm14 = vcmask 130048  }
 0xdb9   :  { %v565_v30 = vadd.f32 %v9621_v60, %v10329_v12  ;;  %v4347_v12 = vld [vmem:[#allocation29 + $0x8] sm:$0xff]  ;;  %vm4499_vm5 = vcmask 1044480   ;;  %vm4543_vm10 = vcmask 256000   ;;  %vm4761_vm9 = vcmask 392192  }
 0xdba   :  { %v6026_v54 = vpop.eup %6025  ;;  %4708 = vmatpush.msra.mxu1 %v9542_v29  ;;  %v4074_v37 = vadd.f32 %v9517_v42, %v4073_v40 }
 0xdbb   :  { %v4298_v25 = vmul.f32 %v6026_v54, %v4294_v9  ;;  %v4276_v9 = vadd.f32 %v9120_v35, %v4275_v56  ;;  %v9613_v54 = vld [vmem:[%s10321_s6 + $0x10] sm:$0xff]  ;;  %v576_v18 = vmax.f32 %v565_v30, 0.0 }
 0xdbc   :  { %v4078_v24 = vsel %vm9567_vm4, %v9517_v42, %v4074_v37  ;;  %v4063_v42 = vsel %vm9592_vm6, %v9471_v49, %v4059_v1  ;;  %v4211_v49 = vmul.f32 %v9548_v38, %v4210_v61  ;;  %vm4493_vm6 = vcmask 1041408  }
 0xdbd   :  { %v4278_v16 = vpop.f32.mrf.mxu3  ;;  %v9561_v11 = vadd.f32 %v4302_v44, %v4298_v25  ;;  %v4249_v25 = vpop.f32.mrf.mxu2  ;;  %v4067_v44 = vor.u32 1.1754944e-38, %v4066_v57  ;;  %v4083_v37 = vsel %vm4080_vm3, %v4082_v62, %v4078_v24  ;;  %v4196_v57 = vmul.f32 %v9544_v50, %v4195_v3 }
 0xdbe   :  { %v4279_v10 = vadd.f32 %v9120_v35, %v4278_v16  ;;  %v4250_v13 = vadd.f32 %v6143_v48, %v4249_v25  ;;  %v4686_v25 = vrot.slane %v576_v18, 2  ;;  %vm4495_vm3 = vcmask 1042432  }
 0xdbf   :  { %5678 = vmatmul.msk.f32.gmra.mxu1 %vm648_vm0, %v9561_v11  ;;  %v9575_v55 = vrot.slane %v9561_v11, 1  ;;  %v9579_v52 = vrot.slane %v9561_v11, 2  ;;  %v4068_v56 = vsel %vm4065_vm8, %v4067_v44, %v4063_v42  ;;  %v4220_v42 = vor.u32 1.1754944e-38, %v4219_v17  ;;  %v9732_v17 = vld [vmem:[%s10320_s3 + $0x58] sm:$0xff] }
 0xdc0   :  { %v4284_v35 = vmul.f32 %v4279_v10, %v4083_v37  ;;  %v4283_v16 = vmul.f32 %v4276_v9, %v4068_v56  ;;  %v4202_v10 = vand.u32 2147483647, %v9461_v63  ;;  %vm4497_vm8 = vcmask 1043456  }
 0xdc1   :  { %v9598_v40 = vsel %vm4365_vm12, %v4366_v33, %v9575_v55  ;;  %v9602_v15 = vsel %vm4423_vm1, %v4424_v46, %v9579_v52  ;;  %v10330_v33 = vld [vmem:[#allocation88_spill] sm:$0xff] }
 0xdc2   :  { %5675 = vmatmul.msk.f32.vlgmr.msra.gmra.mxu0 %vm648_vm0, %v9598_v40  ;;  %5679 = vmatmul.msk.f32.vlgmr.msrb.gmra.mxu2 %vm648_vm0, %v9602_v15  ;;  %v4288_v1 = vadd.f32 %v4284_v35, %v4250_v13  ;;  %v568_v46 = vadd.f32 %v9621_v60, %v10330_v33  ;;  %vm4203_vm4 = vcmp.eq.f32.partialorder %v4202_v10, 8.507059e+37  ;;  %v4346_v33 = vld [vmem:[#allocation29] sm:$0xff] }
 0xdc3   :  { %4847 = vmatpush.msrb.mxu2 %v9399_v51  ;;  %4675 = vmatpush.msra.mxu0 %v9588_v27  ;;  %v4247_v51 = vadd.f32 %v6143_v48, %v4246_v23  ;;  %v9746_v23 = vld [vmem:[%s10320_s3 + $0x40] sm:$0xff] }
 0xdc4   :  { %6027 = vtanh.f32 %v4288_v1  ;;  %v577_v62 = vmax.f32 %v568_v46, 0.0 }
 0xdc5   :  { %4848 = vmatpush.msrb.mxu2 %v9424_v32  ;;  %4676 = vmatpush.msra.mxu0 %v9613_v54  ;;  %v4212_v32 = vadd.f32 %v9548_v38, %v4211_v49  ;;  %v4287_v24 = vadd.f32 %v4283_v16, %v4247_v51 }
 0xdc6   :  { %v4687_v44 = vrot.slane %v577_v62, 2 }
 0xdc7   :  { %5684 = vmatmul.msk.f32.vlgmr.msrb.gmra.mxu1 %vm648_vm0, %v9532_v43  ;;  %4849 = vmatpush.msrb.mxu2 %v9447_v6  ;;  %v4197_v6 = vadd.f32 %v9544_v50, %v4196_v57  ;;  %v4204_v43 = vand.u32 2147483648, %v9461_v63  ;;  %v4216_v61 = vsel %vm9644_vm11, %v9548_v38, %v4212_v32  ;;  %6029 = vtanh.f32 %v4287_v24  ;;  %v4348_v32 = vld [vmem:[#allocation29 + $0x10] sm:$0xff]  ;;  %v9735_v24 = vld [vmem:[%s10320_s3 + $0x50] sm:$0xff] }
 0xdc8   :  { %v4688_v49 = vsel %vm4423_vm1, %v4686_v25, %v4687_v44  ;;  %vm4801_vm11 = vcmask 387072  }
 0xdc9   :  { %4850 = vmatpush.msrb.mxu2 %v9459_v2  ;;  %v4217_v2 = vand.u32 2147483647, %v9473_v53  ;;  %v4201_v53 = vsel %vm4200_vm13, %v9544_v50, %v4197_v6  ;;  %v4205_v9 = vor.u32 1.1754944e-38, %v4204_v43  ;;  %vm5266_vm13 = vcmask 1024  }
 0xdca   :  { %5676 = vmatmul.msk.f32.gmra.mxu0 %vm648_vm0, %v9575_v55  ;;  %5680 = vmatmul.msk.f32.gmra.mxu2 %vm648_vm0, %v9579_v52  ;;  %v6028_v63 = vpop.eup %6027 }
 0xdcb   :  { %vm4218_vm2 = vcmp.eq.f32.partialorder %v4217_v2, 8.507059e+37  ;;  %v4206_v37 = vsel %vm4203_vm4, %v4205_v9, %v4201_v53  ;;  %v9741_v2 = vld [vmem:[%s10320_s3 + $0x48] sm:$0xff] }
 0xdcc   :  { %v4221_v3 = vsel %vm4218_vm2, %v4220_v42, %v4216_v61  ;;  %v9749_v61 = vld [vmem:[#allocation27] ss:$0 sm:$0xff] }
 0xdcd   :  { %v4296_v38 = vsub.f32 1.0, %v4221_v3  ;;  %v6030_v50 = vpop.eup %6029  ;;  %v4304_v48 = vmul.f32 %v4221_v3, %v9218_v58  ;;  %v4654_v58 = vrot.slane %v576_v18, 1 }
 0xdcf   :  { %5685 = vmatmul.msk.f32.gmra.mxu1 %vm648_vm0, %v9561_v11  ;;  %v4295_v11 = vsub.f32 1.0, %v4206_v37  ;;  %v4300_v35 = vmul.f32 %v6028_v63, %v4296_v38 }
 0xdd1   :  { %v4299_v56 = vmul.f32 %v6030_v50, %v4295_v11 }
 0xdd2   :  { %5682 = vmatmul.msk.f32.vlgmr.msrb.gmra.mxu0 %vm648_vm0, %v9598_v40  ;;  %5688 = vmatmul.msk.f32.vlgmr.msra.gmra.mxu2 %vm4622_vm14, %v576_v18 }
 0xdd3   :  { %4904 = vmatpush.msrb.mxu0 %v9402_v22  ;;  %5029 = vmatpush.msra.mxu2 %v9456_v20  ;;  %v4303_v22 = vmul.f32 %v4206_v37, %v9221_v45  ;;  %v9669_v20 = vadd.f32 %v4304_v48, %v4300_v35 }
 0xdd5   :  { %4905 = vmatpush.msrb.mxu0 %v9427_v34  ;;  %5030 = vmatpush.msra.mxu2 %v9469_v41  ;;  %v9675_v34 = vadd.f32 %v4303_v22, %v4299_v56  ;;  %v4655_v41 = vrot.slane %v577_v62, 1 }
 0xdd7   :  { %5692 = vmatmul.msk.f32.vlgmr.msra.gmra.mxu1 %vm4622_vm14, %v4688_v49  ;;  %4906 = vmatpush.msrb.mxu0 %v9450_v7  ;;  %v9679_v7 = vrot.slane %v9669_v20, 1  ;;  %v4828_v45 = vrot.slane %v9675_v34, 1 }
 0xdd8   :  { %5031 = vmatpush.msra.mxu2 %v9480_v47 }
 0xdd9   :  { %4907 = vmatpush.msrb.mxu0 %v9466_v31  ;;  %v4656_v31 = vsel %vm4365_vm12, %v4654_v58, %v4655_v41  ;;  %v9686_v47 = vsel %vm4365_vm12, %v4828_v45, %v9679_v7 }
 0xdda   :  { %5683 = vmatmul.msk.f32.gmra.mxu0 %vm648_vm0, %v9575_v55  ;;  %5689 = vmatmul.msk.f32.gmra.mxu2 %vm4622_vm14, %v577_v62  ;;  %v4885_v55 = vrot.slane %v9675_v34, 2 }
 0xddb   :  { %5032 = vmatpush.msra.mxu2 %v9498_v39  ;;  %v9699_v39 = vrot.slane %v9669_v20, 2 }
 0xddd   :  { %v9704_v40 = vsel %vm4423_vm1, %v4885_v55, %v9699_v39 }
 0xddf   :  { %5693 = vmatmul.msk.f32.gmra.mxu1 %vm4622_vm14, %v4687_v44 }
 0xde2   :  { %5690 = vmatmul.msk.f32.vlgmr.msra.gmra.mxu0 %vm4622_vm14, %v4656_v31  ;;  %5695 = vmatmul.msk.f32.vlgmr.msrb.gmra.mxu2 %vm648_vm0, %v9686_v47 }
 0xde3   :  { %5085 = vmatpush.msra.mxu0 %v9493_v0  ;;  %5149 = vmatpush.msrb.mxu2 %v9536_v5  ;;  %v10333_v0 = vld [vmem:[#allocation98_spill] sm:$0xff]  ;;  %v10334_v5 = vld [vmem:[#allocation99_spill] sm:$0xff] }
 0xde5   :  { %5086 = vmatpush.msra.mxu0 %v9502_v59  ;;  %5150 = vmatpush.msrb.mxu2 %v9542_v29  ;;  %v571_v59 = vadd.f32 %v9621_v60, %v10333_v0  ;;  %v574_v29 = vadd.f32 %v9621_v60, %v10334_v5  ;;  %v4349_v60 = vld [vmem:[#allocation29 + $0x18] sm:$0xff] }
 0xde6   :  { %4519 = vmatpush.msrb.mxu3 %v4349_v60  ;;  %4969 = vmatpush.msrb.mxu1 %v4349_v60 }
 0xde7   :  { %v9714_v13 = vmax.f32 %v571_v59, 0.0  ;;  %v9716_v16 = vmax.f32 %v574_v29, 0.0 }
 0xde8   :  { %4520 = vmatpush.msrb.mxu3 %v4348_v32  ;;  %4970 = vmatpush.msrb.mxu1 %v4348_v32 }
 0xde9   :  { %v5128_v57 = vrot.slane %v9714_v13, 2  ;;  %v5129_v51 = vrot.slane %v9716_v16, 2 }
 0xdea   :  { %5691 = vmatmul.msk.f32.gmra.mxu0 %vm4622_vm14, %v4655_v41  ;;  %5696 = vmatmul.msk.f32.gmra.mxu2 %vm648_vm0, %v9679_v7 }
 0xdeb   :  { %v5130_v1 = vsel %vm4423_vm1, %v5128_v57, %v5129_v51  ;;  %4521 = vmatpush.msrb.mxu3 %v4347_v12  ;;  %4971 = vmatpush.msrb.mxu1 %v4347_v12  ;;  %v9767_v57 = vld [vmem:[#allocation30] ss:$0 sm:$0xff] }
 0xdec   :  { %v9771_v12 = vld [vmem:[%s10335_s25 + $0x28] sm:$0xff] }
 0xded   :  { %4522 = vmatpush.msrb.mxu3 %v4346_v33  ;;  %4972 = vmatpush.msrb.mxu1 %v4346_v33 }
 0xdef   :  { %4609 = vmatpush.msra.mxu3 %v9732_v17  ;;  %5006 = vmatpush.msra.mxu1 %v9483_v14 }
 0xdf1   :  { %4610 = vmatpush.msra.mxu3 %v9735_v24  ;;  %5007 = vmatpush.msra.mxu1 %v9490_v19 }
 0xdf2   :  { %5699 = vmatmul.msk.f32.vlgmr.msrb.gmra.mxu0 %vm648_vm0, %v9704_v40  ;;  %5704 = vmatmul.msk.f32.vlgmr.msra.gmra.mxu2 %vm648_vm0, %v9675_v34 }
 0xdf3   :  { %4611 = vmatpush.msra.mxu3 %v9741_v2  ;;  %5008 = vmatpush.msra.mxu1 %v9515_v8 }
 0xdf5   :  { %4612 = vmatpush.msra.mxu3 %v9746_v23  ;;  %5009 = vmatpush.msra.mxu1 %v9530_v36 }
 0xdfa   :  { %5700 = vmatmul.msk.f32.gmra.mxu0 %vm648_vm0, %v9699_v39  ;;  %5705 = vmatmul.msk.f32.gmra.mxu2 %vm648_vm0, %v9669_v20 }
 0xe02   :  { %5708 = vmatmul.msk.f32.vlgmr.msra.gmra.mxu0 %vm4622_vm14, %v9714_v13  ;;  %5712 = vmatmul.msk.f32.vlgmr.msrb.gmra.mxu2 %vm4622_vm14, %v5130_v1 }
 0xe0a   :  { %5709 = vmatmul.msk.f32.gmra.mxu0 %vm4622_vm14, %v9716_v16  ;;  %5713 = vmatmul.msk.f32.gmra.mxu2 %vm4622_vm14, %v5129_v51 }
 0xe34   :  { %v4417_v46 = vpop.f32.mrf.mxu1 }
 0xe3c   :  { %v4420_v14 = vpop.f32.mrf.mxu1 }
 0xe3f   :  { %v4390_v30 = vpop.f32.mrf.mxu0 }
 0xe40   :  { %v4418_v43 = vadd.f32 %v4417_v46, %v4390_v30  ;;  %v9774_v30 = vld [vmem:[%s10335_s25 + $0x20] sm:$0xff]  ;;  %v9782_v46 = vld [vmem:[%s10335_s25 + $0x10] sm:$0xff] }
 0xe44   :  { %v4591_v29 = vpop.f32.mrf.mxu1 }
 0xe45   :  { %v4448_v6 = vpop.f32.mrf.mxu2 }
 0xe46   :  { %v4454_v10 = vadd.f32 %v4448_v6, %v4418_v43 }
 0xe47   :  { %v4393_v18 = vpop.f32.mrf.mxu0 }
 0xe48   :  { %v4459_v62 = vadd.f32 %v9749_v61, %v4454_v10  ;;  %v4421_v42 = vadd.f32 %v4420_v14, %v4393_v18  ;;  %v9786_v14 = vld [vmem:[%s10335_s25 + $0x8] sm:$0xff] }
 0xe4a   :  { %v4461_v9 = vmax.f32 %v4459_v62, 0.0 }
 0xe4c   :  { %v4465_v25 = vrot.slane %v4461_v9, 1  ;;  %v4472_v37 = vrot.slane %v4461_v9, 2  ;;  %v4594_v32 = vpop.f32.mrf.mxu1 }
 0xe4d   :  { %v4451_v19 = vpop.f32.mrf.mxu2 }
 0xe4e   :  { %v4455_v53 = vadd.f32 %v4451_v19, %v4421_v42 }
 0xe4f   :  { %v4568_v5 = vpop.f32.mrf.mxu0 }
 0xe50   :  { %v4460_v3 = vadd.f32 %v9749_v61, %v4455_v53  ;;  %v4592_v6 = vadd.f32 %v4591_v29, %v4568_v5  ;;  %v9788_v53 = vld [vmem:[#allocation32] ss:$0 sm:$0xff] }
 0xe52   :  { %v4462_v63 = vmax.f32 %v4460_v3, 0.0  ;;  %v9792_v3 = vld [vmem:[%s10335_s25] sm:$0xff] }
 0xe54   :  { %v4466_v8 = vrot.slane %v4462_v63, 1  ;;  %v4473_v44 = vrot.slane %v4462_v63, 2 }
 0xe55   :  { %v4646_v10 = vpop.f32.mrf.mxu2 }
 0xe56   :  { %v4467_v38 = vsel %vm4365_vm12, %v4465_v25, %v4466_v8  ;;  %v4471_v50 = vmax.f32 %v4462_v63, %v4466_v8  ;;  %v4474_v36 = vsel %vm4423_vm1, %v4472_v37, %v4473_v44  ;;  %v4710_v8 = vpop.f32.mrf.mxu1 }
 0xe57   :  { %v4470_v11 = vmax.f32 %v4461_v9, %v4467_v38  ;;  %v4571_v51 = vpop.f32.mrf.mxu0 }
 0xe58   :  { %v4478_v49 = vmax.f32 %v4471_v50, %v4473_v44  ;;  %v4595_v50 = vadd.f32 %v4594_v32, %v4571_v51 }
 0xe59   :  { %v4477_v35 = vmax.f32 %v4470_v11, %v4474_v36 }
 0xe5a   :  { %v4487_v41 = vrot.slane %v4478_v49, 4  ;;  %v4489_v31 = vrot.slane %v4478_v49, 5  ;;  %v9802_v49 = vld [vmem:[#allocation33] ss:$0 sm:$0xff] }
 0xe5b   :  { %v4480_v56 = vrot.slane %v4477_v35, 1  ;;  %v4482_v48 = vrot.slane %v4477_v35, 2  ;;  %v4484_v22 = vrot.slane %v4477_v35, 3 }
 0xe5d   :  { %v4492_v58 = vsel %vm4491_vm15, %v4477_v35, %v4480_v56 }
 0xe5e   :  { %v4494_v45 = vsel %vm4493_vm6, %v4492_v58, %v4482_v48  ;;  %v4649_v48 = vpop.f32.mrf.mxu2 }
 0xe5f   :  { %v4496_v55 = vsel %vm4495_vm3, %v4494_v45, %v4484_v22  ;;  %v4678_v9 = vpop.f32.mrf.mxu0  ;;  %v4713_v45 = vpop.f32.mrf.mxu1 }
 0xe60   :  { %v4498_v0 = vsel %vm4497_vm8, %v4496_v55, %v4487_v41 }
 0xe61   :  { %v4500_v59 = vsel %vm4499_vm5, %v4498_v0, %v4489_v31 }
 0xe62   :  { %5681 = vmatmul.msk.f32.vlgmr.msrb.gmra.mxu3 %vm648_vm0, %v4500_v59 }
 0xe63   :  { %4775 = vmatpush.msrb.mxu3 %v9771_v12 }
 0xe65   :  { %4776 = vmatpush.msrb.mxu3 %v9774_v30 }
 0xe67   :  { %v4681_v58 = vpop.f32.mrf.mxu0 }
 0xe6a   :  { %5686 = vmatmul.msk.f32.vlgmr.msra.gmra.mxu3 %vm648_vm0, %v9602_v15  ;;  %v9778_v15 = vld [vmem:[%s10335_s25 + $0x18] sm:$0xff] }
 0xe6b   :  { %4777 = vmatpush.msrb.mxu3 %v9778_v15 }
 0xe6d   :  { %4778 = vmatpush.msrb.mxu3 %v9782_v46 }
 0xe6f   :  { %4779 = vmatpush.msrb.mxu3 %v9786_v14 }
 0xe71   :  { %4780 = vmatpush.msrb.mxu3 %v9792_v3 }
 0xe72   :  { %5687 = vmatmul.msk.f32.gmra.mxu3 %vm648_vm0, %v9579_v52 }
 0xe73   :  { %4874 = vmatpush.msra.mxu3 %v9347_v4 }
 0xe75   :  { %4875 = vmatpush.msra.mxu3 %v9350_v21 }
 0xe77   :  { %4876 = vmatpush.msra.mxu3 %v9356_v26 }
 0xe79   :  { %4877 = vmatpush.msra.mxu3 %v9388_v28 }
 0xee5   :  { %v4524_v1 = vpop.f32.mrf.mxu3 }
 0xee6   :  { %v4525_v60 = vadd.f32 %v9767_v57, %v4524_v1 }
 0xee8   :  { %v4527_v33 = vmax.f32 %v4525_v60, 0.0 }
 0xeea   :  { %v4529_v52 = vrot.slane %v4527_v33, 1 }
 0xeec   :  { %v4531_v43 = vmax.f32 %v4527_v33, %v4529_v52 }
 0xeed   :  { %v4614_v18 = vpop.f32.mrf.mxu3 }
 0xeee   :  { %v4533_v62 = vrot.slane %v4531_v43, 1  ;;  %v4620_v42 = vadd.f32 %v4614_v18, %v4592_v6  ;;  %v4535_v19 = vrot.slane %v4531_v43, 2 }
 0xef0   :  { %v4652_v63 = vadd.f32 %v4646_v10, %v4620_v42  ;;  %v4537_v25 = vsel %vm4491_vm15, %v4531_v43, %v4533_v62 }
 0xef1   :  { %v4538_v44 = vsel %vm4493_vm6, %v4537_v25, %v4535_v19  ;;  %v9837_v25 = vld [vmem:[#allocation36] ss:$0 sm:$0xff] }
 0xef2   :  { %v4684_v37 = vadd.f32 %v4678_v9, %v4652_v63  ;;  %v4542_v38 = vmul.f32 %v9788_v53, %v4538_v44 }
 0xef4   :  { %v4544_v11 = vsel %vm4543_vm10, %v4542_v38, 0.0  ;;  %v4716_v35 = vadd.f32 %v4710_v8, %v4684_v37 }
 0xef5   :  { %v4617_v36 = vpop.f32.mrf.mxu3  ;;  %4545 = vadd.xlane.f32.xlu0 %v4544_v11 }
 0xef6   :  { %v4621_v56 = vadd.f32 %v4617_v36, %v4595_v50  ;;  %v4721_v4 = vadd.f32 %v9802_v49, %v4716_v35 }
 0xef8   :  { %v4653_v22 = vadd.f32 %v4649_v48, %v4621_v56  ;;  %v4723_v55 = vmax.f32 %v4721_v4, 0.0 }
 0xefa   :  { %v4685_v41 = vadd.f32 %v4681_v58, %v4653_v22  ;;  %v4727_v59 = vrot.slane %v4723_v55, 1  ;;  %v4734_v51 = vrot.slane %v4723_v55, 2 }
 0xefc   :  { %v4717_v31 = vadd.f32 %v4713_v45, %v4685_v41 }
 0xefe   :  { %v4722_v0 = vadd.f32 %v9802_v49, %v4717_v31 }
 0xf00   :  { %v4724_v21 = vmax.f32 %v4722_v0, 0.0 }
 0xf02   :  { %v4728_v5 = vrot.slane %v4724_v21, 1  ;;  %v4735_v29 = vrot.slane %v4724_v21, 2 }
 0xf04   :  { %v4729_v1 = vsel %vm4365_vm12, %v4727_v59, %v4728_v5  ;;  %v4733_v26 = vmax.f32 %v4724_v21, %v4728_v5  ;;  %v4736_v32 = vsel %vm4423_vm1, %v4734_v51, %v4735_v29 }
 0xf05   :  { %v4732_v60 = vmax.f32 %v4723_v55, %v4729_v1 }
 0xf06   :  { %v4740_v33 = vmax.f32 %v4733_v26, %v4735_v29 }
 0xf07   :  { %v4739_v28 = vmax.f32 %v4732_v60, %v4736_v32 }
 0xf08   :  { %v4749_v18 = vrot.slane %v4740_v33, 4  ;;  %v4751_v42 = vrot.slane %v4740_v33, 5 }
 0xf09   :  { %v4742_v52 = vrot.slane %v4739_v28, 1  ;;  %v4744_v6 = vrot.slane %v4739_v28, 2  ;;  %v4746_v43 = vrot.slane %v4739_v28, 3 }
 0xf0b   :  { %v4753_v10 = vsel %vm4491_vm15, %v4739_v28, %v4742_v52 }
 0xf0c   :  { %v4754_v62 = vsel %vm4493_vm6, %v4753_v10, %v4744_v6  ;;  %v5097_v10 = vrot.slane %v9716_v16, 1 }
 0xf0d   :  { %v4755_v19 = vsel %vm4495_vm3, %v4754_v62, %v4746_v43  ;;  %v5096_v43 = vrot.slane %v9714_v13, 1 }
 0xf0e   :  { %v4756_v9 = vsel %vm4497_vm8, %v4755_v19, %v4749_v18 }
 0xf0f   :  { %v4757_v63 = vsel %vm4499_vm5, %v4756_v9, %v4751_v42  ;;  %v5098_v18 = vsel %vm4365_vm12, %v5096_v43, %v5097_v10 }
 0xf10   :  { %5694 = vmatmul.msk.f32.vlgmr.msrb.gmra.mxu3 %vm4761_vm9, %v4757_v63 }
 0xf11   :  { %5052 = vmatpush.msrb.mxu3 %v9732_v17 }
 0xf13   :  { %5053 = vmatpush.msrb.mxu3 %v9735_v24 }
 0xf15   :  { %5054 = vmatpush.msrb.mxu3 %v9741_v2 }
 0xf17   :  { %5055 = vmatpush.msrb.mxu3 %v9746_v23 }
 0xf18   :  { %5697 = vmatmul.msk.f32.vlgmr.msra.gmra.mxu3 %vm648_vm0, %v9675_v34  ;;  %v9834_v34 = vld [vmem:[#allocation35] ss:$0 sm:$0xff] }
 0xf19   :  { %5210 = vmatpush.msra.mxu3 %v9771_v12  ;;  %v4852_v12 = vpop.f32.mrf.mxu2 }
 0xf1b   :  { %5211 = vmatpush.msra.mxu3 %v9774_v30 }
 0xf1d   :  { %5212 = vmatpush.msra.mxu3 %v9778_v15 }
 0xf1f   :  { %5213 = vmatpush.msra.mxu3 %v9782_v46 }
 0xf20   :  { %5698 = vmatmul.msk.f32.gmra.mxu3 %vm648_vm0, %v9669_v20  ;;  %v4909_v20 = vpop.f32.mrf.mxu0 }
 0xf21   :  { %5214 = vmatpush.msra.mxu3 %v9786_v14  ;;  %v4855_v38 = vpop.f32.mrf.mxu2 }
 0xf23   :  { %5215 = vmatpush.msra.mxu3 %v9792_v3 }
 0xf28   :  { %5706 = vmatmul.msk.f32.vlgmr.msrb.gmra.mxu3 %vm648_vm0, %v9704_v40  ;;  %v4912_v35 = vpop.f32.mrf.mxu0 }
 0xf29   :  { %v5034_v42 = vpop.f32.mrf.mxu2 }
 0xf30   :  { %5707 = vmatmul.msk.f32.gmra.mxu3 %vm648_vm0, %v9699_v39 }
 0xf93   :  { %v4782_v17 = vpop.f32.mrf.mxu3 }
 0xf94   :  { %v4783_v24 = vadd.f32 %v9834_v34, %v4782_v17 }
 0xf96   :  { %v4785_v2 = vmax.f32 %v4783_v24, 0.0  ;;  %v5037_v24 = vpop.f32.mrf.mxu2 }
 0xf98   :  { %v4787_v23 = vrot.slane %v4785_v2, 1 }
 0xf9a   :  { %v4789_v30 = vmax.f32 %v4785_v2, %v4787_v23 }
 0xf9b   :  { %v4879_v15 = vpop.f32.mrf.mxu3 }
 0xf9c   :  { %v4791_v46 = vrot.slane %v4789_v30, 1  ;;  %v4793_v14 = vrot.slane %v4789_v30, 2  ;;  %v4880_v3 = vadd.f32 %v4879_v15, %v4852_v12 }
 0xf9e   :  { %v4795_v40 = vsel %vm4491_vm15, %v4789_v30, %v4791_v46  ;;  %v4915_v8 = vadd.f32 %v4909_v20, %v4880_v3  ;;  %v5088_v20 = vpop.f32.mrf.mxu0 }
 0xf9f   :  { %v4796_v39 = vsel %vm4493_vm6, %v4795_v40, %v4793_v14  ;;  %v5152_v14 = vpop.f32.mrf.mxu2 }
 0xfa0   :  { %v4800_v44 = vmul.f32 %v9837_v25, %v4796_v39  ;;  %v4917_v11 = vadd.f32 %v9749_v61, %v4915_v8 }
 0xfa2   :  { %v4802_v37 = vsel %vm4801_vm11, %v4800_v44, 0.0  ;;  %v4919_v48 = vmax.f32 %v4917_v11, 0.0 }
 0xfa3   :  { %4803 = vadd.xlane.f32.xlu0 %v4802_v37  ;;  %v4882_v50 = vpop.f32.mrf.mxu3 }
 0xfa4   :  { %v4883_v36 = vadd.f32 %v4882_v50, %v4855_v38  ;;  %v4923_v4 = vrot.slane %v4919_v48, 1  ;;  %v4930_v31 = vrot.slane %v4919_v48, 2 }
 0xfa6   :  { %v4916_v56 = vadd.f32 %v4912_v35, %v4883_v36  ;;  %v5091_v37 = vpop.f32.mrf.mxu0 }
 0xfa7   :  { %v5155_v36 = vpop.f32.mrf.mxu2 }
 0xfa8   :  { %v4918_v22 = vadd.f32 %v9749_v61, %v4916_v56 }
 0xfaa   :  { %v4920_v58 = vmax.f32 %v4918_v22, 0.0 }
 0xfab   :  { %v5057_v12 = vpop.f32.mrf.mxu3 }
 0xfac   :  { %v4924_v41 = vrot.slane %v4920_v58, 1  ;;  %v4931_v45 = vrot.slane %v4920_v58, 2 }
 0xfae   :  { %v4925_v55 = vsel %vm4365_vm12, %v4923_v4, %v4924_v41  ;;  %v4929_v0 = vmax.f32 %v4920_v58, %v4924_v41  ;;  %v4932_v59 = vsel %vm4423_vm1, %v4930_v31, %v4931_v45 }
 0xfaf   :  { %v4928_v21 = vmax.f32 %v4919_v48, %v4925_v55 }
 0xfb0   :  { %v4936_v29 = vmax.f32 %v4929_v0, %v4931_v45 }
 0xfb1   :  { %v4935_v5 = vmax.f32 %v4928_v21, %v4932_v59 }
 0xfb2   :  { %v4945_v32 = vrot.slane %v4936_v29, 4  ;;  %v4947_v28 = vrot.slane %v4936_v29, 5 }
 0xfb3   :  { %v4938_v51 = vrot.slane %v4935_v5, 1  ;;  %v4940_v1 = vrot.slane %v4935_v5, 2  ;;  %v4942_v26 = vrot.slane %v4935_v5, 3  ;;  %v5060_v39 = vpop.f32.mrf.mxu3 }
 0xfb5   :  { %v4949_v60 = vsel %vm4491_vm15, %v4935_v5, %v4938_v51 }
 0xfb6   :  { %v4950_v61 = vsel %vm4493_vm6, %v4949_v60, %v4940_v1 }
 0xfb7   :  { %v4951_v33 = vsel %vm4495_vm3, %v4950_v61, %v4942_v26 }
 0xfb8   :  { %v4952_v52 = vsel %vm4497_vm8, %v4951_v33, %v4945_v32 }
 0xfb9   :  { %v4953_v6 = vsel %vm4499_vm5, %v4952_v52, %v4947_v28 }
 0xfba   :  { %5701 = vmatmul.msk.f32.vlgmr.msrb.gmra.mxu1 %vm648_vm0, %v4953_v6 }
 0xfbb   :  { %5117 = vmatpush.msrb.mxu1 %v9588_v27 }
 0xfbd   :  { %5118 = vmatpush.msrb.mxu1 %v9613_v54 }
 0xfc2   :  { %5702 = vmatmul.msk.f32.vlgmr.msra.gmra.mxu1 %vm648_vm0, %v9686_v47 }
 0xfca   :  { %5703 = vmatmul.msk.f32.gmra.mxu1 %vm648_vm0, %v9679_v7  ;;  %vm4810_vm0 = vcmask 2048  }
 0xfd2   :  { %5710 = vmatmul.msk.f32.vlgmr.msrb.gmra.mxu1 %vm4622_vm14, %v5098_v18 }
 0xfda   :  { %5711 = vmatmul.msk.f32.gmra.mxu1 %vm4622_vm14, %v5097_v10 }
0x1037   :  { %v4974_v62 = vpop.f32.mrf.mxu1 }
0x1038   :  { %v4975_v27 = vadd.f32 %v9767_v57, %v4974_v62 }
0x103a   :  { %v4977_v54 = vmax.f32 %v4975_v27, 0.0 }
0x103c   :  { %v4979_v19 = vrot.slane %v4977_v54, 1 }
0x103e   :  { %v4981_v47 = vmax.f32 %v4977_v54, %v4979_v19 }
0x103f   :  { %v5011_v9 = vpop.f32.mrf.mxu1 }
0x1040   :  { %v4983_v63 = vrot.slane %v4981_v47, 1  ;;  %v4985_v7 = vrot.slane %v4981_v47, 2  ;;  %v5035_v2 = vadd.f32 %v5034_v42, %v5011_v9  ;;  %v4546_v9 = vpop.xlane.xlu0 %4545 }
0x1042   :  { %v4987_v13 = vsel %vm4491_vm15, %v4981_v47, %v4983_v63  ;;  %v5063_v57 = vadd.f32 %v5057_v12, %v5035_v2  ;;  %v5790_v63 = vld [vmem:[#allocation3] ss:$0 sm:$0xff] }
0x1043   :  { %v4988_v16 = vsel %vm4493_vm6, %v4987_v13, %v4985_v7  ;;  %v5787_v13 = vld [vmem:[#allocation2] ss:$0 sm:$0xff] }
0x1044   :  { %v4989_v17 = vmul.f32 %v9788_v53, %v4988_v16  ;;  %v5094_v46 = vadd.f32 %v5088_v20, %v5063_v57 }
0x1046   :  { %v4990_v23 = vsel %vm4543_vm10, %v4989_v17, 0.0 }
0x1047   :  { %v5014_v30 = vpop.f32.mrf.mxu1  ;;  %4991 = vadd.xlane.f32.xlu1 %v4990_v23 }
0x1048   :  { %v5038_v15 = vadd.f32 %v5037_v24, %v5014_v30  ;;  %v4804_v7 = vpop.xlane.xlu0 %4803  ;;  %v6755_v24 = vmov 3.0  }
0x1049   :  { %v4808_v16 = vadd.f32 %v5790_v63, %v4804_v7  ;;  %6031 = vrcp.f32 %v6755_v24 }
0x104a   :  { %v5064_v8 = vadd.f32 %v5060_v39, %v5038_v15 }
0x104c   :  { %v5095_v38 = vadd.f32 %v5091_v37, %v5064_v8 }
0x104f   :  { %v5120_v3 = vpop.f32.mrf.mxu1  ;;  %v6032_v30 = vpop.eup %6031 }
0x1050   :  { %v5126_v40 = vadd.f32 %v5120_v3, %v5094_v46  ;;  %v4819_v20 = vmul.f32 3.0, %v6032_v30 }
0x1052   :  { %v5158_v44 = vadd.f32 %v5152_v14, %v5126_v40  ;;  %v4820_v3 = vsub.f32 1.0, %v4819_v20 }
0x1054   :  { %v5160_v50 = vadd.f32 %v9802_v49, %v5158_v44  ;;  %v4821_v37 = vmul.f32 %v6032_v30, %v4820_v3 }
0x1056   :  { %v5162_v56 = vmax.f32 %v5160_v50, 0.0 }
0x1057   :  { %v5123_v53 = vpop.f32.mrf.mxu1 }
0x1058   :  { %v5127_v11 = vadd.f32 %v5123_v53, %v5095_v38  ;;  %v5166_v58 = vrot.slane %v5162_v56, 1  ;;  %v5173_v45 = vrot.slane %v5162_v56, 2 }
0x105a   :  { %v5159_v35 = vadd.f32 %v5155_v36, %v5127_v11  ;;  %v4822_v11 = vadd.f32 %v6032_v30, %v4821_v37 }
0x105c   :  { %v5161_v48 = vadd.f32 %v9802_v49, %v5159_v35 }
0x105e   :  { %v5163_v22 = vmax.f32 %v5161_v48, 0.0 }
0x1060   :  { %v5167_v4 = vrot.slane %v5163_v22, 1  ;;  %v5174_v41 = vrot.slane %v5163_v22, 2 }
0x1062   :  { %v5168_v31 = vsel %vm4365_vm12, %v5166_v58, %v5167_v4  ;;  %v5172_v55 = vmax.f32 %v5163_v22, %v5167_v4  ;;  %v5175_v21 = vsel %vm4423_vm1, %v5173_v45, %v5174_v41  ;;  %vm4823_vm12 = vweird.f32 %v6032_v30 }
0x1063   :  { %v5171_v0 = vmax.f32 %v5162_v56, %v5168_v31  ;;  %v4824_v48 = vsel %vm4823_vm12, %v6032_v30, %v4822_v11 }
0x1064   :  { %v5179_v5 = vmax.f32 %v5172_v55, %v5174_v41 }
0x1065   :  { %v5178_v59 = vmax.f32 %v5171_v0, %v5175_v21 }
0x1066   :  { %v5188_v60 = vrot.slane %v5179_v5, 4  ;;  %v5190_v32 = vrot.slane %v5179_v5, 5 }
0x1067   :  { %v5181_v29 = vrot.slane %v5178_v59, 1  ;;  %v5183_v51 = vrot.slane %v5178_v59, 2  ;;  %v5185_v1 = vrot.slane %v5178_v59, 3 }
0x1069   :  { %v5192_v26 = vsel %vm4491_vm15, %v5178_v59, %v5181_v29 }
0x106a   :  { %v5193_v49 = vsel %vm4493_vm6, %v5192_v26, %v5183_v51 }
0x106b   :  { %v5194_v61 = vsel %vm4495_vm3, %v5193_v49, %v5185_v1 }
0x106c   :  { %v5195_v28 = vsel %vm4497_vm8, %v5194_v61, %v5188_v60 }
0x106d   :  { %v5196_v33 = vsel %vm4499_vm5, %v5195_v28, %v5190_v32 }
0x106e   :  { %5714 = vmatmul.msk.f32.vlgmr.msra.gmra.mxu3 %vm4761_vm9, %v5196_v33 }
0x10ba   :  { %v4992_v23 = vpop.xlane.xlu1 %4991 }
0x10bb   :  { %v4993_v15 = vadd.f32 %v5787_v13, %v4992_v23 }
0x10f1   :  { %v5217_v52 = vpop.f32.mrf.mxu3 }
0x10f2   :  { %v5218_v6 = vadd.f32 %v9834_v34, %v5217_v52  ;;  %v4550_v34 = vadd.f32 %v5787_v13, %v4546_v9 }
0x10f4   :  { %v5220_v43 = vmax.f32 %v5218_v6, 0.0  ;;  %v4809_v17 = vmul.f32 %v4808_v16, %v4550_v34 }
0x10f6   :  { %v5222_v10 = vrot.slane %v5220_v43, 1  ;;  %v4811_v2 = vsel %vm4810_vm0, %v4809_v17, 0.0 }
0x10f7   :  { %v4812_v12 = vrot.slane %v4811_v2, 4 }
0x10f8   :  { %v5224_v18 = vmax.f32 %v5220_v43, %v5222_v10 }
0x10f9   :  { %v4813_v57 = vadd.f32 %v4812_v12, %v4811_v2 }
0x10fa   :  { %v5226_v62 = vrot.slane %v5224_v18, 1  ;;  %v5228_v27 = vrot.slane %v5224_v18, 2 }
0x10fb   :  { %v4814_v14 = vrot.slane %v4813_v57, 2 }
0x10fc   :  { %v5230_v54 = vsel %vm4491_vm15, %v5224_v18, %v5226_v62 }
0x10fd   :  { %v5231_v42 = vsel %vm4493_vm6, %v5230_v54, %v5228_v27  ;;  %v4815_v8 = vadd.f32 %v4814_v14, %v4813_v57 }
0x10fe   :  { %v5232_v19 = vmul.f32 %v9837_v25, %v5231_v42 }
0x10ff   :  { %v4816_v53 = vrot.slane %v4815_v8, 1 }
0x1100   :  { %v5233_v47 = vsel %vm4801_vm11, %v5232_v19, 0.0 }
0x1101   :  { %5234 = vadd.xlane.f32.xlu1 %v5233_v47  ;;  %v4817_v35 = vadd.f32 %v4816_v53, %v4815_v8 }
0x1103   :  { %v4825_v58 = vmul.f32 %v4824_v48, %v4817_v35 }
0x1174   :  { %v5235_v25 = vpop.xlane.xlu1 %5234 }
0x1175   :  { %v5236_v46 = vadd.f32 %v5790_v63, %v5235_v25 }
0x1177   :  { %v5237_v40 = vmul.f32 %v5236_v46, %v4993_v15 }
0x1179   :  { %v5238_v39 = vsel %vm4810_vm0, %v5237_v40, 0.0 }
0x117a   :  { %v5239_v44 = vrot.slane %v5238_v39, 4 }
0x117c   :  { %v5240_v38 = vadd.f32 %v5239_v44, %v5238_v39 }
0x117e   :  { %v5241_v50 = vrot.slane %v5240_v38, 2 }
0x1180   :  { %v5242_v36 = vadd.f32 %v5241_v50, %v5240_v38 }
0x1182   :  { %v5243_v56 = vrot.slane %v5242_v36, 1 }
0x1184   :  { %v5244_v22 = vadd.f32 %v5243_v56, %v5242_v36 }
0x1186   :  { %v5245_v4 = vmul.f32 %v5244_v22, %v4824_v48 }
0x1188   :  { %v5246_v41 = vsel %vm4491_vm15, %v4825_v58, %v5245_v4 }
0x1189   :  { %v5715_v45 = vmul.f32 -1.442695, %v5246_v41 }
0x118b   :  { %6033 = vpow2.f32 %v5715_v45 }
0x1191   :  { %v6034_v31 = vpop.eup %6033 }
0x1192   :  { %v5250_v55 = vadd.f32 1.0, %v6034_v31 }
0x1194   :  { %6035 = vrcp.f32 %v5250_v55  ;;  %v5262_v5 = vand.u32 2147483648, %v5250_v55  ;;  %v5260_v51 = vand.u32 2147483647, %v5250_v55  ;;  %vm5256_vm7 = vweird.f32 %v5250_v55 }
0x1196   :  { %v5263_v26 = vor.u32 1.1754944e-38, %v5262_v5  ;;  %vm5261_vm14 = vcmp.eq.f32.partialorder %v5260_v51, 8.507059e+37 }
0x119a   :  { %v6036_v0 = vpop.eup %6035 }
0x119b   :  { %v5252_v21 = vmul.f32 %v6036_v0, %v5250_v55  ;;  %vm5257_vm1 = vweird.f32 %v6036_v0 }
0x119c   :  { %vm5258_vm2 = vmor %vm5256_vm7, %vm5257_vm1 }
0x119d   :  { %v5253_v59 = vsub.f32 1.0, %v5252_v21 }
0x119f   :  { %v5254_v29 = vmul.f32 %v6036_v0, %v5253_v59 }
0x11a1   :  { %v5255_v1 = vadd.f32 %v6036_v0, %v5254_v29 }
0x11a3   :  { %v5259_v60 = vsel %vm5258_vm2, %v6036_v0, %v5255_v1 }
0x11a4   :  { %v5264_v49 = vsel %vm5261_vm14, %v5263_v26, %v5259_v60 }
0x11a5   :  { %5267 = vst.msk [vmem:[%s6932_s15] sm:$0x3] %vm5266_vm13, %v5264_v49 }
0x11a6   :  { %5272 = vsyncpa [#allocation5], 1 }
0x11a7   :  { %5273 = vsyncpa [#allocation7], 1 }
0x11a8   :  { %5274 = vsyncpa [#allocation10], 1 }
0x11a9   :  { %5275 = vsyncpa [#allocation13], 1 }
0x11aa   :  { %5276 = vsyncpa [#allocation16], 1 }
0x11ab   :  { %5277 = vsyncpa [#allocation19], 1 }
0x11ac   :  { %5278 = vsyncpa [#allocation22], 1 }
0x11ad   :  { %5279 = vsyncpa [#allocation25], 1 }
0x11ae   :  { %5280 = vsyncpa [#allocation28], 1 }
0x11af   :  { %5281 = vsyncpa [#allocation31], 1 }
0x11b0   :  { %5282 = vsyncpa [#allocation34], 1 }
0x11b1   :  { %5283 = vsyncpa [#allocation37], 1 }

</bundles_post_ra>
